<compile_context>
chip_gen: v6e
topology: v6e:2x2x1
jax: 0.10.0
libtpu: 0.0.40
codegen_flags: <defaults>
</compile_context>

<pallas_src>
import functools

import jax
import jax.numpy as jnp
from jax import lax
from jax.experimental import pallas as pl
from jax.experimental.pallas import tpu as pltpu
import numpy as np


def _im2col_same(dst_ref, src, *, H, W, C, K):
    """Writes the zero-padded ('SAME') im2col of `src` into `dst_ref`.

    src     : (bt, H, W, C) ref or value (NHWC).
    dst_ref : (bt, H, W, K*K*C) VMEM ref.  For output pixel (i, j), column
              block tap*C:(tap+1)*C holds src[i + kh - pad, j + kw - pad, :]
              (zero outside the image), with tap = kh*K + kw.

    Every element of dst_ref is (re)written on each call, so the scratch can
    be reused and needs no initialization.
    """
    pad = (K - 1) // 2
    bt = src.shape[0]
    for kh in range(K):
        for kw in range(K):
            tap = kh * K + kw
            c0 = tap * C
            dh, dw = kh - pad, kw - pad
            di0, di1 = max(0, -dh), H - max(0, dh)   # valid dest rows
            dj0, dj1 = max(0, -dw), W - max(0, dw)   # valid dest cols
            si0, sj0 = di0 + dh, dj0 + dw            # matching source origin

            # Zero only the border strips that fall off the image (at most
            # one |dh|-row strip and one |dw|-col strip per tap).
            if di0 > 0:
                dst_ref[:, 0:di0, :, c0:c0 + C] = jnp.zeros(
                    (bt, di0, W, C), dst_ref.dtype)
            if di1 < H:
                dst_ref[:, di1:H, :, c0:c0 + C] = jnp.zeros(
                    (bt, H - di1, W, C), dst_ref.dtype)
            if dj0 > 0:
                dst_ref[:, :, 0:dj0, c0:c0 + C] = jnp.zeros(
                    (bt, H, dj0, C), dst_ref.dtype)
            if dj1 < W:
                dst_ref[:, :, dj1:W, c0:c0 + C] = jnp.zeros(
                    (bt, H, W - dj1, C), dst_ref.dtype)

            dst_ref[:, di0:di1, dj0:dj1, c0:c0 + C] = (
                src[:, si0:si0 + (di1 - di0), sj0:sj0 + (dj1 - dj0), :]
                .astype(dst_ref.dtype))


def _soa_kernel(x_ref, wcat_ref, b2_ref, w4_ref, o_ref, im_ref,
                *, H, W, C, K, bt):
    """One batch tile per grid step.

    x_ref   : (bt, H, W, C)        input, NHWC (unpadded)
    wcat_ref: (K*K*C, 2C)          [k3 im2col weights | k2 weights placed on
                                    the centre-tap rows, zero elsewhere]
    b2_ref  : (1, C)               k2 bias
    w4_ref  : (K*K*C, C)           k4 im2col weights
    o_ref   : (bt, H, W, C)        output, NHWC
    im_ref  : (bt, H, W, K*K*C)    im2col scratch (reused by both convs)
    """
    N = bt * H * W
    KC = K * K * C

    # ---- im2col(x), then ONE fused MXU matmul computing k3(x) and k2(x) ---
    _im2col_same(im_ref, x_ref, H=H, W=W, C=C, K=K)
    im = im_ref[...].reshape(N, KC)
    z = jnp.dot(im, wcat_ref[...], preferred_element_type=jnp.float32)  # (N, 2C)

    conv3 = z[:, :C]                                                    # k3(x)
    gate = jax.nn.sigmoid(z[:, C:] + b2_ref[...].astype(jnp.float32))   # sig(k2(x))
    t = conv3 * gate                                                    # (N, C) f32

    # ---- im2col(t) ('SAME' zero pad via border strips), then k4 matmul ----
    _im2col_same(im_ref, t.reshape(bt, H, W, C), H=H, W=W, C=C, K=K)
    im2 = im_ref[...].reshape(N, KC)
    out = jnp.dot(im2, w4_ref[...], preferred_element_type=jnp.float32)  # (N, C)

    o_ref[...] = out.reshape(bt, H, W, C).astype(o_ref.dtype)


def soa_conv_pallas(x_nchw, k2_w, k2_b, k3_w, k4_w, *, k_size=3,
                    batch_tile=None, compute_dtype=jnp.float32):
    """x_nchw: (B, C, H, W); weights in PyTorch layout (Cout, Cin, kh, kw).

    compute_dtype=jnp.bfloat16 feeds bf16 operands to the MXU (f32 accum) on
    v6e/v7x; default f32 keeps the strict correctness tolerance.
    """
    B, C, H, W = x_nchw.shape
    K = k_size
    bt = B if batch_tile is None else batch_tile
    assert B % bt == 0, "batch_tile must divide the batch size"

    # NCHW -> NHWC (channels on the lane axis inside the kernel).
    x = jnp.transpose(x_nchw, (0, 2, 3, 1))

    # k3 / k4 weights repacked for im2col: row = (kh*K + kw)*C + cin, col = cout.
    w3 = jnp.transpose(k3_w, (2, 3, 1, 0)).reshape(K * K * C, C)
    w4 = jnp.transpose(k4_w, (2, 3, 1, 0)).reshape(K * K * C, C)
    # k2 (1x1) fused into the k3 matmul: its (Cin, Cout) weights sit on the
    # centre-tap rows of an extra block of output columns.
    w2 = jnp.transpose(k2_w[:, :, 0, 0])                     # (Cin, Cout)
    ctr = (K // 2) * K + (K // 2)
    w2_ext = jnp.zeros((K * K * C, C), w2.dtype).at[ctr * C:(ctr + 1) * C].set(w2)
    wcat = jnp.concatenate([w3, w2_ext], axis=1)             # (K*K*C, 2C)
    b2 = k2_b.reshape(1, C).astype(jnp.float32)

    kernel = functools.partial(_soa_kernel, H=H, W=W, C=C, K=K, bt=bt)

    out_nhwc = pl.pallas_call(
        kernel,
        out_shape=jax.ShapeDtypeStruct((B, H, W, C), x_nchw.dtype),
        grid_spec=pltpu.PrefetchScalarGridSpec(
            num_scalar_prefetch=0,
            grid=(B // bt,),
            in_specs=[
                pl.BlockSpec((bt, H, W, C), lambda b: (b, 0, 0, 0)),
                pl.BlockSpec((K * K * C, 2 * C), lambda b: (0, 0)),
                pl.BlockSpec((1, C), lambda b: (0, 0)),
                pl.BlockSpec((K * K * C, C), lambda b: (0, 0)),
            ],
            out_specs=pl.BlockSpec((bt, H, W, C), lambda b: (b, 0, 0, 0)),
            scratch_shapes=[pltpu.VMEM((bt, H, W, K * K * C), compute_dtype)],
        ),
        compiler_params=pltpu.CompilerParams(
            dimension_semantics=("parallel",),
            vmem_limit_bytes=64 * 1024 * 1024),
    )(x.astype(compute_dtype), wcat.astype(compute_dtype), b2,
      w4.astype(compute_dtype))

    return jnp.transpose(out_nhwc, (0, 3, 1, 2))             # back to NCHW


def soa_conv_ref(x, k2_w, k2_b, k3_w, k4_w):
    """Pure-JAX reference mirroring the PyTorch module (NCHW)."""
    dn = ('NCHW', 'OIHW', 'NCHW')
    y = jax.nn.sigmoid(
        lax.conv_general_dilated(x, k2_w, (1, 1), 'SAME', dimension_numbers=dn)
        + k2_b[None, :, None, None])
    t = lax.conv_general_dilated(x, k3_w, (1, 1), 'SAME',
                                 dimension_numbers=dn) * y
    return lax.conv_general_dilated(t, k4_w, (1, 1), 'SAME',
                                    dimension_numbers=dn)


if __name__ == "__main__":
    B, C, H, W = 2, 4, 16, 16   # nf = 4
    K = 3

    key = jax.random.PRNGKey(0)
    kx, kw2, kb2, kw3, kw4 = jax.random.split(key, 5)

    x = jax.random.normal(kx, (B, C, H, W), jnp.float32)
    # Deterministic synthetic parameters (shapes match nn.Conv2d in __init__).
    k2_w = 0.2 * jax.random.normal(kw2, (C, C, 1, 1), jnp.float32)
    k2_b = 0.1 * jax.random.normal(kb2, (C,), jnp.float32)
    k3_w = 0.2 * jax.random.normal(kw3, (C, C, K, K), jnp.float32)
    k4_w = 0.2 * jax.random.normal(kw4, (C, C, K, K), jnp.float32)

    out = soa_conv_pallas(x, k2_w, k2_b, k3_w, k4_w, k_size=K)
    out = jax.block_until_ready(out)

    ref = soa_conv_ref(x, k2_w, k2_b, k3_w, k4_w)
    np.testing.assert_allclose(np.asarray(out), np.asarray(ref),
                               rtol=1e-4, atol=1e-4)

    print("KERNEL_OK")
</pallas_src>

<mosaic_0001>
module attributes {stable_mosaic.version = 11 : i64} {
  func.func @_soa_kernel(%arg0: i32, %arg1: memref<2x16x16x4xf32, #tpu.memory_space<vmem>>, %arg2: memref<36x8xf32, #tpu.memory_space<vmem>>, %arg3: memref<1x4xf32, #tpu.memory_space<vmem>>, %arg4: memref<36x4xf32, #tpu.memory_space<vmem>>, %arg5: memref<2x16x16x4xf32, #tpu.memory_space<vmem>>, %arg6: memref<2x16x16x36xf32, #tpu.memory_space<vmem>>) attributes {dimension_semantics = [#tpu.dimension_semantics<parallel>], iteration_bounds = array<i64: 1>, scalar_prefetch = 0 : i64, scratch_operands = 1 : i64, tpu.core_type = #tpu.core_type<tc>, window_params = [{transform_indices = @transform_0, window_bounds = array<i64: 2, 16, 16, 4>}, {pipeline_mode = #tpu.pipeline_mode<synchronous>, transform_indices = @transform_1, window_bounds = array<i64: 36, 8>}, {pipeline_mode = #tpu.pipeline_mode<synchronous>, transform_indices = @transform_2, window_bounds = array<i64: 1, 4>}, {pipeline_mode = #tpu.pipeline_mode<synchronous>, transform_indices = @transform_3, window_bounds = array<i64: 36, 4>}, {transform_indices = @transform_4, window_bounds = array<i64: 2, 16, 16, 4>}]} {
    %cst = arith.constant 0.000000e+00 : f32
    %0 = vector.broadcast %cst : f32 to vector<2x1x16x4xf32>
    %c0 = arith.constant 0 : index
    %c0_0 = arith.constant 0 : index
    %c0_1 = arith.constant 0 : index
    %c0_2 = arith.constant 0 : index
    %1 = vector.load %arg6[%c0, %c0_0, %c0_1, %c0_2] : memref<2x16x16x36xf32, #tpu.memory_space<vmem>>, vector<2x1x16x4xf32>
    tpu.vector_store %arg6[%c0, %c0_0, %c0_1, %c0_2], %0 {strides = array<i32>} : memref<2x16x16x36xf32, #tpu.memory_space<vmem>>, vector<2x1x16x4xf32>,
    %cst_3 = arith.constant 0.000000e+00 : f32
    %2 = vector.broadcast %cst_3 : f32 to vector<2x16x1x4xf32>
    %c0_4 = arith.constant 0 : index
    %c0_5 = arith.constant 0 : index
    %c0_6 = arith.constant 0 : index
    %c0_7 = arith.constant 0 : index
    %3 = vector.load %arg6[%c0_4, %c0_5, %c0_6, %c0_7] : memref<2x16x16x36xf32, #tpu.memory_space<vmem>>, vector<2x16x1x4xf32>
    tpu.vector_store %arg6[%c0_4, %c0_5, %c0_6, %c0_7], %2 {strides = array<i32>} : memref<2x16x16x36xf32, #tpu.memory_space<vmem>>, vector<2x16x1x4xf32>,
    %c0_8 = arith.constant 0 : index
    %c0_9 = arith.constant 0 : index
    %c0_10 = arith.constant 0 : index
    %c0_11 = arith.constant 0 : index
    %4 = vector.load %arg1[%c0_8, %c0_9, %c0_10, %c0_11] : memref<2x16x16x4xf32, #tpu.memory_space<vmem>>, vector<2x15x15x4xf32>
    %c0_12 = arith.constant 0 : index
    %c1 = arith.constant 1 : index
    %c1_13 = arith.constant 1 : index
    %c0_14 = arith.constant 0 : index
    %5 = vector.load %arg6[%c0_12, %c1, %c1_13, %c0_14] : memref<2x16x16x36xf32, #tpu.memory_space<vmem>>, vector<2x15x15x4xf32>
    tpu.vector_store %arg6[%c0_12, %c1, %c1_13, %c0_14], %4 {strides = array<i32>} : memref<2x16x16x36xf32, #tpu.memory_space<vmem>>, vector<2x15x15x4xf32>,
    %cst_15 = arith.constant 0.000000e+00 : f32
    %6 = vector.broadcast %cst_15 : f32 to vector<2x1x16x4xf32>
    %c0_16 = arith.constant 0 : index
    %c0_17 = arith.constant 0 : index
    %c0_18 = arith.constant 0 : index
    %c4 = arith.constant 4 : index
    %7 = vector.load %arg6[%c0_16, %c0_17, %c0_18, %c4] : memref<2x16x16x36xf32, #tpu.memory_space<vmem>>, vector<2x1x16x4xf32>
    tpu.vector_store %arg6[%c0_16, %c0_17, %c0_18, %c4], %6 {strides = array<i32>} : memref<2x16x16x36xf32, #tpu.memory_space<vmem>>, vector<2x1x16x4xf32>,
    %c0_19 = arith.constant 0 : index
    %c0_20 = arith.constant 0 : index
    %c0_21 = arith.constant 0 : index
    %c0_22 = arith.constant 0 : index
    %8 = vector.load %arg1[%c0_19, %c0_20, %c0_21, %c0_22] : memref<2x16x16x4xf32, #tpu.memory_space<vmem>>, vector<2x15x16x4xf32>
    %c0_23 = arith.constant 0 : index
    %c1_24 = arith.constant 1 : index
    %c0_25 = arith.constant 0 : index
    %c4_26 = arith.constant 4 : index
    %9 = vector.load %arg6[%c0_23, %c1_24, %c0_25, %c4_26] : memref<2x16x16x36xf32, #tpu.memory_space<vmem>>, vector<2x15x16x4xf32>
    tpu.vector_store %arg6[%c0_23, %c1_24, %c0_25, %c4_26], %8 {strides = array<i32>} : memref<2x16x16x36xf32, #tpu.memory_space<vmem>>, vector<2x15x16x4xf32>,
    %cst_27 = arith.constant 0.000000e+00 : f32
    %10 = vector.broadcast %cst_27 : f32 to vector<2x1x16x4xf32>
    %c0_28 = arith.constant 0 : index
    %c0_29 = arith.constant 0 : index
    %c0_30 = arith.constant 0 : index
    %c8 = arith.constant 8 : index
    %11 = vector.load %arg6[%c0_28, %c0_29, %c0_30, %c8] : memref<2x16x16x36xf32, #tpu.memory_space<vmem>>, vector<2x1x16x4xf32>
    tpu.vector_store %arg6[%c0_28, %c0_29, %c0_30, %c8], %10 {strides = array<i32>} : memref<2x16x16x36xf32, #tpu.memory_space<vmem>>, vector<2x1x16x4xf32>,
    %cst_31 = arith.constant 0.000000e+00 : f32
    %12 = vector.broadcast %cst_31 : f32 to vector<2x16x1x4xf32>
    %c0_32 = arith.constant 0 : index
    %c0_33 = arith.constant 0 : index
    %c15 = arith.constant 15 : index
    %c8_34 = arith.constant 8 : index
    %13 = vector.load %arg6[%c0_32, %c0_33, %c15, %c8_34] : memref<2x16x16x36xf32, #tpu.memory_space<vmem>>, vector<2x16x1x4xf32>
    tpu.vector_store %arg6[%c0_32, %c0_33, %c15, %c8_34], %12 {strides = array<i32>} : memref<2x16x16x36xf32, #tpu.memory_space<vmem>>, vector<2x16x1x4xf32>,
    %c0_35 = arith.constant 0 : index
    %c0_36 = arith.constant 0 : index
    %c1_37 = arith.constant 1 : index
    %c0_38 = arith.constant 0 : index
    %14 = vector.load %arg1[%c0_35, %c0_36, %c1_37, %c0_38] : memref<2x16x16x4xf32, #tpu.memory_space<vmem>>, vector<2x15x15x4xf32>
    %c0_39 = arith.constant 0 : index
    %c1_40 = arith.constant 1 : index
    %c0_41 = arith.constant 0 : index
    %c8_42 = arith.constant 8 : index
    %15 = vector.load %arg6[%c0_39, %c1_40, %c0_41, %c8_42] : memref<2x16x16x36xf32, #tpu.memory_space<vmem>>, vector<2x15x15x4xf32>
    tpu.vector_store %arg6[%c0_39, %c1_40, %c0_41, %c8_42], %14 {strides = array<i32>} : memref<2x16x16x36xf32, #tpu.memory_space<vmem>>, vector<2x15x15x4xf32>,
    %cst_43 = arith.constant 0.000000e+00 : f32
    %16 = vector.broadcast %cst_43 : f32 to vector<2x16x1x4xf32>
    %c0_44 = arith.constant 0 : index
    %c0_45 = arith.constant 0 : index
    %c0_46 = arith.constant 0 : index
    %c12 = arith.constant 12 : index
    %17 = vector.load %arg6[%c0_44, %c0_45, %c0_46, %c12] : memref<2x16x16x36xf32, #tpu.memory_space<vmem>>, vector<2x16x1x4xf32>
    tpu.vector_store %arg6[%c0_44, %c0_45, %c0_46, %c12], %16 {strides = array<i32>} : memref<2x16x16x36xf32, #tpu.memory_space<vmem>>, vector<2x16x1x4xf32>,
    %c0_47 = arith.constant 0 : index
    %c0_48 = arith.constant 0 : index
    %c0_49 = arith.constant 0 : index
    %c0_50 = arith.constant 0 : index
    %18 = vector.load %arg1[%c0_47, %c0_48, %c0_49, %c0_50] : memref<2x16x16x4xf32, #tpu.memory_space<vmem>>, vector<2x16x15x4xf32>
    %c0_51 = arith.constant 0 : index
    %c0_52 = arith.constant 0 : index
    %c1_53 = arith.constant 1 : index
    %c12_54 = arith.constant 12 : index
    %19 = vector.load %arg6[%c0_51, %c0_52, %c1_53, %c12_54] : memref<2x16x16x36xf32, #tpu.memory_space<vmem>>, vector<2x16x15x4xf32>
    tpu.vector_store %arg6[%c0_51, %c0_52, %c1_53, %c12_54], %18 {strides = array<i32>} : memref<2x16x16x36xf32, #tpu.memory_space<vmem>>, vector<2x16x15x4xf32>,
    %c0_55 = arith.constant 0 : index
    %c0_56 = arith.constant 0 : index
    %c0_57 = arith.constant 0 : index
    %c0_58 = arith.constant 0 : index
    %20 = vector.load %arg1[%c0_55, %c0_56, %c0_57, %c0_58] : memref<2x16x16x4xf32, #tpu.memory_space<vmem>>, vector<2x16x16x4xf32>
    %c0_59 = arith.constant 0 : index
    %c0_60 = arith.constant 0 : index
    %c0_61 = arith.constant 0 : index
    %c16 = arith.constant 16 : index
    %21 = vector.load %arg6[%c0_59, %c0_60, %c0_61, %c16] : memref<2x16x16x36xf32, #tpu.memory_space<vmem>>, vector<2x16x16x4xf32>
    tpu.vector_store %arg6[%c0_59, %c0_60, %c0_61, %c16], %20 {strides = array<i32>} : memref<2x16x16x36xf32, #tpu.memory_space<vmem>>, vector<2x16x16x4xf32>,
    %cst_62 = arith.constant 0.000000e+00 : f32
    %22 = vector.broadcast %cst_62 : f32 to vector<2x16x1x4xf32>
    %c0_63 = arith.constant 0 : index
    %c0_64 = arith.constant 0 : index
    %c15_65 = arith.constant 15 : index
    %c20 = arith.constant 20 : index
    %23 = vector.load %arg6[%c0_63, %c0_64, %c15_65, %c20] : memref<2x16x16x36xf32, #tpu.memory_space<vmem>>, vector<2x16x1x4xf32>
    tpu.vector_store %arg6[%c0_63, %c0_64, %c15_65, %c20], %22 {strides = array<i32>} : memref<2x16x16x36xf32, #tpu.memory_space<vmem>>, vector<2x16x1x4xf32>,
    %c0_66 = arith.constant 0 : index
    %c0_67 = arith.constant 0 : index
    %c1_68 = arith.constant 1 : index
    %c0_69 = arith.constant 0 : index
    %24 = vector.load %arg1[%c0_66, %c0_67, %c1_68, %c0_69] : memref<2x16x16x4xf32, #tpu.memory_space<vmem>>, vector<2x16x15x4xf32>
    %c0_70 = arith.constant 0 : index
    %c0_71 = arith.constant 0 : index
    %c0_72 = arith.constant 0 : index
    %c20_73 = arith.constant 20 : index
    %25 = vector.load %arg6[%c0_70, %c0_71, %c0_72, %c20_73] : memref<2x16x16x36xf32, #tpu.memory_space<vmem>>, vector<2x16x15x4xf32>
    tpu.vector_store %arg6[%c0_70, %c0_71, %c0_72, %c20_73], %24 {strides = array<i32>} : memref<2x16x16x36xf32, #tpu.memory_space<vmem>>, vector<2x16x15x4xf32>,
    %cst_74 = arith.constant 0.000000e+00 : f32
    %26 = vector.broadcast %cst_74 : f32 to vector<2x1x16x4xf32>
    %c0_75 = arith.constant 0 : index
    %c15_76 = arith.constant 15 : index
    %c0_77 = arith.constant 0 : index
    %c24 = arith.constant 24 : index
    %27 = vector.load %arg6[%c0_75, %c15_76, %c0_77, %c24] : memref<2x16x16x36xf32, #tpu.memory_space<vmem>>, vector<2x1x16x4xf32>
    tpu.vector_store %arg6[%c0_75, %c15_76, %c0_77, %c24], %26 {strides = array<i32>} : memref<2x16x16x36xf32, #tpu.memory_space<vmem>>, vector<2x1x16x4xf32>,
    %cst_78 = arith.constant 0.000000e+00 : f32
    %28 = vector.broadcast %cst_78 : f32 to vector<2x16x1x4xf32>
    %c0_79 = arith.constant 0 : index
    %c0_80 = arith.constant 0 : index
    %c0_81 = arith.constant 0 : index
    %c24_82 = arith.constant 24 : index
    %29 = vector.load %arg6[%c0_79, %c0_80, %c0_81, %c24_82] : memref<2x16x16x36xf32, #tpu.memory_space<vmem>>, vector<2x16x1x4xf32>
    tpu.vector_store %arg6[%c0_79, %c0_80, %c0_81, %c24_82], %28 {strides = array<i32>} : memref<2x16x16x36xf32, #tpu.memory_space<vmem>>, vector<2x16x1x4xf32>,
    %c0_83 = arith.constant 0 : index
    %c1_84 = arith.constant 1 : index
    %c0_85 = arith.constant 0 : index
    %c0_86 = arith.constant 0 : index
    %30 = vector.load %arg1[%c0_83, %c1_84, %c0_85, %c0_86] : memref<2x16x16x4xf32, #tpu.memory_space<vmem>>, vector<2x15x15x4xf32>
    %c0_87 = arith.constant 0 : index
    %c0_88 = arith.constant 0 : index
    %c1_89 = arith.constant 1 : index
    %c24_90 = arith.constant 24 : index
    %31 = vector.load %arg6[%c0_87, %c0_88, %c1_89, %c24_90] : memref<2x16x16x36xf32, #tpu.memory_space<vmem>>, vector<2x15x15x4xf32>
    tpu.vector_store %arg6[%c0_87, %c0_88, %c1_89, %c24_90], %30 {strides = array<i32>} : memref<2x16x16x36xf32, #tpu.memory_space<vmem>>, vector<2x15x15x4xf32>,
    %cst_91 = arith.constant 0.000000e+00 : f32
    %32 = vector.broadcast %cst_91 : f32 to vector<2x1x16x4xf32>
    %c0_92 = arith.constant 0 : index
    %c15_93 = arith.constant 15 : index
    %c0_94 = arith.constant 0 : index
    %c28 = arith.constant 28 : index
    %33 = vector.load %arg6[%c0_92, %c15_93, %c0_94, %c28] : memref<2x16x16x36xf32, #tpu.memory_space<vmem>>, vector<2x1x16x4xf32>
    tpu.vector_store %arg6[%c0_92, %c15_93, %c0_94, %c28], %32 {strides = array<i32>} : memref<2x16x16x36xf32, #tpu.memory_space<vmem>>, vector<2x1x16x4xf32>,
    %c0_95 = arith.constant 0 : index
    %c1_96 = arith.constant 1 : index
    %c0_97 = arith.constant 0 : index
    %c0_98 = arith.constant 0 : index
    %34 = vector.load %arg1[%c0_95, %c1_96, %c0_97, %c0_98] : memref<2x16x16x4xf32, #tpu.memory_space<vmem>>, vector<2x15x16x4xf32>
    %c0_99 = arith.constant 0 : index
    %c0_100 = arith.constant 0 : index
    %c0_101 = arith.constant 0 : index
    %c28_102 = arith.constant 28 : index
    %35 = vector.load %arg6[%c0_99, %c0_100, %c0_101, %c28_102] : memref<2x16x16x36xf32, #tpu.memory_space<vmem>>, vector<2x15x16x4xf32>
    tpu.vector_store %arg6[%c0_99, %c0_100, %c0_101, %c28_102], %34 {strides = array<i32>} : memref<2x16x16x36xf32, #tpu.memory_space<vmem>>, vector<2x15x16x4xf32>,
    %cst_103 = arith.constant 0.000000e+00 : f32
    %36 = vector.broadcast %cst_103 : f32 to vector<2x1x16x4xf32>
    %c0_104 = arith.constant 0 : index
    %c15_105 = arith.constant 15 : index
    %c0_106 = arith.constant 0 : index
    %c32 = arith.constant 32 : index
    %37 = vector.load %arg6[%c0_104, %c15_105, %c0_106, %c32] : memref<2x16x16x36xf32, #tpu.memory_space<vmem>>, vector<2x1x16x4xf32>
    tpu.vector_store %arg6[%c0_104, %c15_105, %c0_106, %c32], %36 {strides = array<i32>} : memref<2x16x16x36xf32, #tpu.memory_space<vmem>>, vector<2x1x16x4xf32>,
    %cst_107 = arith.constant 0.000000e+00 : f32
    %38 = vector.broadcast %cst_107 : f32 to vector<2x16x1x4xf32>
    %c0_108 = arith.constant 0 : index
    %c0_109 = arith.constant 0 : index
    %c15_110 = arith.constant 15 : index
    %c32_111 = arith.constant 32 : index
    %39 = vector.load %arg6[%c0_108, %c0_109, %c15_110, %c32_111] : memref<2x16x16x36xf32, #tpu.memory_space<vmem>>, vector<2x16x1x4xf32>
    tpu.vector_store %arg6[%c0_108, %c0_109, %c15_110, %c32_111], %38 {strides = array<i32>} : memref<2x16x16x36xf32, #tpu.memory_space<vmem>>, vector<2x16x1x4xf32>,
    %c0_112 = arith.constant 0 : index
    %c1_113 = arith.constant 1 : index
    %c1_114 = arith.constant 1 : index
    %c0_115 = arith.constant 0 : index
    %40 = vector.load %arg1[%c0_112, %c1_113, %c1_114, %c0_115] : memref<2x16x16x4xf32, #tpu.memory_space<vmem>>, vector<2x15x15x4xf32>
    %c0_116 = arith.constant 0 : index
    %c0_117 = arith.constant 0 : index
    %c0_118 = arith.constant 0 : index
    %c32_119 = arith.constant 32 : index
    %41 = vector.load %arg6[%c0_116, %c0_117, %c0_118, %c32_119] : memref<2x16x16x36xf32, #tpu.memory_space<vmem>>, vector<2x15x15x4xf32>
    tpu.vector_store %arg6[%c0_116, %c0_117, %c0_118, %c32_119], %40 {strides = array<i32>} : memref<2x16x16x36xf32, #tpu.memory_space<vmem>>, vector<2x15x15x4xf32>,
    %c0_120 = arith.constant 0 : index
    %c0_121 = arith.constant 0 : index
    %c0_122 = arith.constant 0 : index
    %c0_123 = arith.constant 0 : index
    %42 = vector.load %arg6[%c0_120, %c0_121, %c0_122, %c0_123] : memref<2x16x16x36xf32, #tpu.memory_space<vmem>>, vector<2x16x16x36xf32>
    %43 = vector.shape_cast %42 : vector<2x16x16x36xf32> to vector<512x36xf32>
    %c0_124 = arith.constant 0 : index
    %c0_125 = arith.constant 0 : index
    %44 = vector.load %arg2[%c0_124, %c0_125] : memref<36x8xf32, #tpu.memory_space<vmem>>, vector<36x8xf32>
    %cst_126 = arith.constant dense<0.000000e+00> : vector<512x8xf32>
    %45 = tpu.matmul %43, %44, %cst_126 {dimension_numbers = #tpu.dot_dimension_numbers<[1], [0], [0], [1], [0, 0, 1, 1], [], []>} : vector<512x36xf32>, vector<36x8xf32>, vector<512x8xf32> -> vector<512x8xf32>
    %46 = vector.extract_strided_slice %45 {offsets = [0, 0], sizes = [512, 4], strides = [1, 1]} : vector<512x8xf32> to vector<512x4xf32>
    %47 = vector.extract_strided_slice %45 {offsets = [0, 4], sizes = [512, 4], strides = [1, 1]} : vector<512x8xf32> to vector<512x4xf32>
    %c0_127 = arith.constant 0 : index
    %c0_128 = arith.constant 0 : index
    %48 = vector.load %arg3[%c0_127, %c0_128] : memref<1x4xf32, #tpu.memory_space<vmem>>, vector<1x4xf32>
    %49 = vector.broadcast %48 : vector<1x4xf32> to vector<512x4xf32>
    %50 = arith.addf %47, %49 : vector<512x4xf32>
    %51 = arith.negf %50 : vector<512x4xf32>
    %52 = math.exp %51 : vector<512x4xf32>
    %cst_129 = arith.constant 1.000000e+00 : f32
    %53 = vector.broadcast %cst_129 : f32 to vector<512x4xf32>
    %54 = arith.addf %53, %52 : vector<512x4xf32>
    %55 = arith.divf %53, %54 : vector<512x4xf32>
    %56 = arith.mulf %46, %55 : vector<512x4xf32>
    %57 = vector.shape_cast %56 : vector<512x4xf32> to vector<2x16x16x4xf32>
    %cst_130 = arith.constant 0.000000e+00 : f32
    %58 = vector.broadcast %cst_130 : f32 to vector<2x1x16x4xf32>
    %c0_131 = arith.constant 0 : index
    %c0_132 = arith.constant 0 : index
    %c0_133 = arith.constant 0 : index
    %c0_134 = arith.constant 0 : index
    %59 = vector.load %arg6[%c0_131, %c0_132, %c0_133, %c0_134] : memref<2x16x16x36xf32, #tpu.memory_space<vmem>>, vector<2x1x16x4xf32>
    tpu.vector_store %arg6[%c0_131, %c0_132, %c0_133, %c0_134], %58 {strides = array<i32>} : memref<2x16x16x36xf32, #tpu.memory_space<vmem>>, vector<2x1x16x4xf32>,
    %cst_135 = arith.constant 0.000000e+00 : f32
    %60 = vector.broadcast %cst_135 : f32 to vector<2x16x1x4xf32>
    %c0_136 = arith.constant 0 : index
    %c0_137 = arith.constant 0 : index
    %c0_138 = arith.constant 0 : index
    %c0_139 = arith.constant 0 : index
    %61 = vector.load %arg6[%c0_136, %c0_137, %c0_138, %c0_139] : memref<2x16x16x36xf32, #tpu.memory_space<vmem>>, vector<2x16x1x4xf32>
    tpu.vector_store %arg6[%c0_136, %c0_137, %c0_138, %c0_139], %60 {strides = array<i32>} : memref<2x16x16x36xf32, #tpu.memory_space<vmem>>, vector<2x16x1x4xf32>,
    %62 = vector.extract_strided_slice %57 {offsets = [0, 0, 0, 0], sizes = [2, 15, 15, 4], strides = [1, 1, 1, 1]} : vector<2x16x16x4xf32> to vector<2x15x15x4xf32>
    %c0_140 = arith.constant 0 : index
    %c1_141 = arith.constant 1 : index
    %c1_142 = arith.constant 1 : index
    %c0_143 = arith.constant 0 : index
    %63 = vector.load %arg6[%c0_140, %c1_141, %c1_142, %c0_143] : memref<2x16x16x36xf32, #tpu.memory_space<vmem>>, vector<2x15x15x4xf32>
    tpu.vector_store %arg6[%c0_140, %c1_141, %c1_142, %c0_143], %62 {strides = array<i32>} : memref<2x16x16x36xf32, #tpu.memory_space<vmem>>, vector<2x15x15x4xf32>,
    %cst_144 = arith.constant 0.000000e+00 : f32
    %64 = vector.broadcast %cst_144 : f32 to vector<2x1x16x4xf32>
    %c0_145 = arith.constant 0 : index
    %c0_146 = arith.constant 0 : index
    %c0_147 = arith.constant 0 : index
    %c4_148 = arith.constant 4 : index
    %65 = vector.load %arg6[%c0_145, %c0_146, %c0_147, %c4_148] : memref<2x16x16x36xf32, #tpu.memory_space<vmem>>, vector<2x1x16x4xf32>
    tpu.vector_store %arg6[%c0_145, %c0_146, %c0_147, %c4_148], %64 {strides = array<i32>} : memref<2x16x16x36xf32, #tpu.memory_space<vmem>>, vector<2x1x16x4xf32>,
    %66 = vector.extract_strided_slice %57 {offsets = [0, 0, 0, 0], sizes = [2, 15, 16, 4], strides = [1, 1, 1, 1]} : vector<2x16x16x4xf32> to vector<2x15x16x4xf32>
    %c0_149 = arith.constant 0 : index
    %c1_150 = arith.constant 1 : index
    %c0_151 = arith.constant 0 : index
    %c4_152 = arith.constant 4 : index
    %67 = vector.load %arg6[%c0_149, %c1_150, %c0_151, %c4_152] : memref<2x16x16x36xf32, #tpu.memory_space<vmem>>, vector<2x15x16x4xf32>
    tpu.vector_store %arg6[%c0_149, %c1_150, %c0_151, %c4_152], %66 {strides = array<i32>} : memref<2x16x16x36xf32, #tpu.memory_space<vmem>>, vector<2x15x16x4xf32>,
    %cst_153 = arith.constant 0.000000e+00 : f32
    %68 = vector.broadcast %cst_153 : f32 to vector<2x1x16x4xf32>
    %c0_154 = arith.constant 0 : index
    %c0_155 = arith.constant 0 : index
    %c0_156 = arith.constant 0 : index
    %c8_157 = arith.constant 8 : index
    %69 = vector.load %arg6[%c0_154, %c0_155, %c0_156, %c8_157] : memref<2x16x16x36xf32, #tpu.memory_space<vmem>>, vector<2x1x16x4xf32>
    tpu.vector_store %arg6[%c0_154, %c0_155, %c0_156, %c8_157], %68 {strides = array<i32>} : memref<2x16x16x36xf32, #tpu.memory_space<vmem>>, vector<2x1x16x4xf32>,
    %cst_158 = arith.constant 0.000000e+00 : f32
    %70 = vector.broadcast %cst_158 : f32 to vector<2x16x1x4xf32>
    %c0_159 = arith.constant 0 : index
    %c0_160 = arith.constant 0 : index
    %c15_161 = arith.constant 15 : index
    %c8_162 = arith.constant 8 : index
    %71 = vector.load %arg6[%c0_159, %c0_160, %c15_161, %c8_162] : memref<2x16x16x36xf32, #tpu.memory_space<vmem>>, vector<2x16x1x4xf32>
    tpu.vector_store %arg6[%c0_159, %c0_160, %c15_161, %c8_162], %70 {strides = array<i32>} : memref<2x16x16x36xf32, #tpu.memory_space<vmem>>, vector<2x16x1x4xf32>,
    %72 = vector.extract_strided_slice %57 {offsets = [0, 0, 1, 0], sizes = [2, 15, 15, 4], strides = [1, 1, 1, 1]} : vector<2x16x16x4xf32> to vector<2x15x15x4xf32>
    %c0_163 = arith.constant 0 : index
    %c1_164 = arith.constant 1 : index
    %c0_165 = arith.constant 0 : index
    %c8_166 = arith.constant 8 : index
    %73 = vector.load %arg6[%c0_163, %c1_164, %c0_165, %c8_166] : memref<2x16x16x36xf32, #tpu.memory_space<vmem>>, vector<2x15x15x4xf32>
    tpu.vector_store %arg6[%c0_163, %c1_164, %c0_165, %c8_166], %72 {strides = array<i32>} : memref<2x16x16x36xf32, #tpu.memory_space<vmem>>, vector<2x15x15x4xf32>,
    %cst_167 = arith.constant 0.000000e+00 : f32
    %74 = vector.broadcast %cst_167 : f32 to vector<2x16x1x4xf32>
    %c0_168 = arith.constant 0 : index
    %c0_169 = arith.constant 0 : index
    %c0_170 = arith.constant 0 : index
    %c12_171 = arith.constant 12 : index
    %75 = vector.load %arg6[%c0_168, %c0_169, %c0_170, %c12_171] : memref<2x16x16x36xf32, #tpu.memory_space<vmem>>, vector<2x16x1x4xf32>
    tpu.vector_store %arg6[%c0_168, %c0_169, %c0_170, %c12_171], %74 {strides = array<i32>} : memref<2x16x16x36xf32, #tpu.memory_space<vmem>>, vector<2x16x1x4xf32>,
    %76 = vector.extract_strided_slice %57 {offsets = [0, 0, 0, 0], sizes = [2, 16, 15, 4], strides = [1, 1, 1, 1]} : vector<2x16x16x4xf32> to vector<2x16x15x4xf32>
    %c0_172 = arith.constant 0 : index
    %c0_173 = arith.constant 0 : index
    %c1_174 = arith.constant 1 : index
    %c12_175 = arith.constant 12 : index
    %77 = vector.load %arg6[%c0_172, %c0_173, %c1_174, %c12_175] : memref<2x16x16x36xf32, #tpu.memory_space<vmem>>, vector<2x16x15x4xf32>
    tpu.vector_store %arg6[%c0_172, %c0_173, %c1_174, %c12_175], %76 {strides = array<i32>} : memref<2x16x16x36xf32, #tpu.memory_space<vmem>>, vector<2x16x15x4xf32>,
    %c0_176 = arith.constant 0 : index
    %c0_177 = arith.constant 0 : index
    %c0_178 = arith.constant 0 : index
    %c16_179 = arith.constant 16 : index
    %78 = vector.load %arg6[%c0_176, %c0_177, %c0_178, %c16_179] : memref<2x16x16x36xf32, #tpu.memory_space<vmem>>, vector<2x16x16x4xf32>
    tpu.vector_store %arg6[%c0_176, %c0_177, %c0_178, %c16_179], %57 {strides = array<i32>} : memref<2x16x16x36xf32, #tpu.memory_space<vmem>>, vector<2x16x16x4xf32>,
    %cst_180 = arith.constant 0.000000e+00 : f32
    %79 = vector.broadcast %cst_180 : f32 to vector<2x16x1x4xf32>
    %c0_181 = arith.constant 0 : index
    %c0_182 = arith.constant 0 : index
    %c15_183 = arith.constant 15 : index
    %c20_184 = arith.constant 20 : index
    %80 = vector.load %arg6[%c0_181, %c0_182, %c15_183, %c20_184] : memref<2x16x16x36xf32, #tpu.memory_space<vmem>>, vector<2x16x1x4xf32>
    tpu.vector_store %arg6[%c0_181, %c0_182, %c15_183, %c20_184], %79 {strides = array<i32>} : memref<2x16x16x36xf32, #tpu.memory_space<vmem>>, vector<2x16x1x4xf32>,
    %81 = vector.extract_strided_slice %57 {offsets = [0, 0, 1, 0], sizes = [2, 16, 15, 4], strides = [1, 1, 1, 1]} : vector<2x16x16x4xf32> to vector<2x16x15x4xf32>
    %c0_185 = arith.constant 0 : index
    %c0_186 = arith.constant 0 : index
    %c0_187 = arith.constant 0 : index
    %c20_188 = arith.constant 20 : index
    %82 = vector.load %arg6[%c0_185, %c0_186, %c0_187, %c20_188] : memref<2x16x16x36xf32, #tpu.memory_space<vmem>>, vector<2x16x15x4xf32>
    tpu.vector_store %arg6[%c0_185, %c0_186, %c0_187, %c20_188], %81 {strides = array<i32>} : memref<2x16x16x36xf32, #tpu.memory_space<vmem>>, vector<2x16x15x4xf32>,
    %cst_189 = arith.constant 0.000000e+00 : f32
    %83 = vector.broadcast %cst_189 : f32 to vector<2x1x16x4xf32>
    %c0_190 = arith.constant 0 : index
    %c15_191 = arith.constant 15 : index
    %c0_192 = arith.constant 0 : index
    %c24_193 = arith.constant 24 : index
    %84 = vector.load %arg6[%c0_190, %c15_191, %c0_192, %c24_193] : memref<2x16x16x36xf32, #tpu.memory_space<vmem>>, vector<2x1x16x4xf32>
    tpu.vector_store %arg6[%c0_190, %c15_191, %c0_192, %c24_193], %83 {strides = array<i32>} : memref<2x16x16x36xf32, #tpu.memory_space<vmem>>, vector<2x1x16x4xf32>,
    %cst_194 = arith.constant 0.000000e+00 : f32
    %85 = vector.broadcast %cst_194 : f32 to vector<2x16x1x4xf32>
    %c0_195 = arith.constant 0 : index
    %c0_196 = arith.constant 0 : index
    %c0_197 = arith.constant 0 : index
    %c24_198 = arith.constant 24 : index
    %86 = vector.load %arg6[%c0_195, %c0_196, %c0_197, %c24_198] : memref<2x16x16x36xf32, #tpu.memory_space<vmem>>, vector<2x16x1x4xf32>
    tpu.vector_store %arg6[%c0_195, %c0_196, %c0_197, %c24_198], %85 {strides = array<i32>} : memref<2x16x16x36xf32, #tpu.memory_space<vmem>>, vector<2x16x1x4xf32>,
    %87 = vector.extract_strided_slice %57 {offsets = [0, 1, 0, 0], sizes = [2, 15, 15, 4], strides = [1, 1, 1, 1]} : vector<2x16x16x4xf32> to vector<2x15x15x4xf32>
    %c0_199 = arith.constant 0 : index
    %c0_200 = arith.constant 0 : index
    %c1_201 = arith.constant 1 : index
    %c24_202 = arith.constant 24 : index
    %88 = vector.load %arg6[%c0_199, %c0_200, %c1_201, %c24_202] : memref<2x16x16x36xf32, #tpu.memory_space<vmem>>, vector<2x15x15x4xf32>
    tpu.vector_store %arg6[%c0_199, %c0_200, %c1_201, %c24_202], %87 {strides = array<i32>} : memref<2x16x16x36xf32, #tpu.memory_space<vmem>>, vector<2x15x15x4xf32>,
    %cst_203 = arith.constant 0.000000e+00 : f32
    %89 = vector.broadcast %cst_203 : f32 to vector<2x1x16x4xf32>
    %c0_204 = arith.constant 0 : index
    %c15_205 = arith.constant 15 : index
    %c0_206 = arith.constant 0 : index
    %c28_207 = arith.constant 28 : index
    %90 = vector.load %arg6[%c0_204, %c15_205, %c0_206, %c28_207] : memref<2x16x16x36xf32, #tpu.memory_space<vmem>>, vector<2x1x16x4xf32>
    tpu.vector_store %arg6[%c0_204, %c15_205, %c0_206, %c28_207], %89 {strides = array<i32>} : memref<2x16x16x36xf32, #tpu.memory_space<vmem>>, vector<2x1x16x4xf32>,
    %91 = vector.extract_strided_slice %57 {offsets = [0, 1, 0, 0], sizes = [2, 15, 16, 4], strides = [1, 1, 1, 1]} : vector<2x16x16x4xf32> to vector<2x15x16x4xf32>
    %c0_208 = arith.constant 0 : index
    %c0_209 = arith.constant 0 : index
    %c0_210 = arith.constant 0 : index
    %c28_211 = arith.constant 28 : index
    %92 = vector.load %arg6[%c0_208, %c0_209, %c0_210, %c28_211] : memref<2x16x16x36xf32, #tpu.memory_space<vmem>>, vector<2x15x16x4xf32>
    tpu.vector_store %arg6[%c0_208, %c0_209, %c0_210, %c28_211], %91 {strides = array<i32>} : memref<2x16x16x36xf32, #tpu.memory_space<vmem>>, vector<2x15x16x4xf32>,
    %cst_212 = arith.constant 0.000000e+00 : f32
    %93 = vector.broadcast %cst_212 : f32 to vector<2x1x16x4xf32>
    %c0_213 = arith.constant 0 : index
    %c15_214 = arith.constant 15 : index
    %c0_215 = arith.constant 0 : index
    %c32_216 = arith.constant 32 : index
    %94 = vector.load %arg6[%c0_213, %c15_214, %c0_215, %c32_216] : memref<2x16x16x36xf32, #tpu.memory_space<vmem>>, vector<2x1x16x4xf32>
    tpu.vector_store %arg6[%c0_213, %c15_214, %c0_215, %c32_216], %93 {strides = array<i32>} : memref<2x16x16x36xf32, #tpu.memory_space<vmem>>, vector<2x1x16x4xf32>,
    %cst_217 = arith.constant 0.000000e+00 : f32
    %95 = vector.broadcast %cst_217 : f32 to vector<2x16x1x4xf32>
    %c0_218 = arith.constant 0 : index
    %c0_219 = arith.constant 0 : index
    %c15_220 = arith.constant 15 : index
    %c32_221 = arith.constant 32 : index
    %96 = vector.load %arg6[%c0_218, %c0_219, %c15_220, %c32_221] : memref<2x16x16x36xf32, #tpu.memory_space<vmem>>, vector<2x16x1x4xf32>
    tpu.vector_store %arg6[%c0_218, %c0_219, %c15_220, %c32_221], %95 {strides = array<i32>} : memref<2x16x16x36xf32, #tpu.memory_space<vmem>>, vector<2x16x1x4xf32>,
    %97 = vector.extract_strided_slice %57 {offsets = [0, 1, 1, 0], sizes = [2, 15, 15, 4], strides = [1, 1, 1, 1]} : vector<2x16x16x4xf32> to vector<2x15x15x4xf32>
    %c0_222 = arith.constant 0 : index
    %c0_223 = arith.constant 0 : index
    %c0_224 = arith.constant 0 : index
    %c32_225 = arith.constant 32 : index
    %98 = vector.load %arg6[%c0_222, %c0_223, %c0_224, %c32_225] : memref<2x16x16x36xf32, #tpu.memory_space<vmem>>, vector<2x15x15x4xf32>
    tpu.vector_store %arg6[%c0_222, %c0_223, %c0_224, %c32_225], %97 {strides = array<i32>} : memref<2x16x16x36xf32, #tpu.memory_space<vmem>>, vector<2x15x15x4xf32>,
    %c0_226 = arith.constant 0 : index
    %c0_227 = arith.constant 0 : index
    %c0_228 = arith.constant 0 : index
    %c0_229 = arith.constant 0 : index
    %99 = vector.load %arg6[%c0_226, %c0_227, %c0_228, %c0_229] : memref<2x16x16x36xf32, #tpu.memory_space<vmem>>, vector<2x16x16x36xf32>
    %100 = vector.shape_cast %99 : vector<2x16x16x36xf32> to vector<512x36xf32>
    %c0_230 = arith.constant 0 : index
    %c0_231 = arith.constant 0 : index
    %101 = vector.load %arg4[%c0_230, %c0_231] : memref<36x4xf32, #tpu.memory_space<vmem>>, vector<36x4xf32>
    %cst_232 = arith.constant dense<0.000000e+00> : vector<512x4xf32>
    %102 = tpu.matmul %100, %101, %cst_232 {dimension_numbers = #tpu.dot_dimension_numbers<[1], [0], [0], [1], [0, 0, 1, 1], [], []>} : vector<512x36xf32>, vector<36x4xf32>, vector<512x4xf32> -> vector<512x4xf32>
    %103 = vector.shape_cast %102 : vector<512x4xf32> to vector<2x16x16x4xf32>
    %c0_233 = arith.constant 0 : index
    %c0_234 = arith.constant 0 : index
    %c0_235 = arith.constant 0 : index
    %c0_236 = arith.constant 0 : index
    %104 = vector.load %arg5[%c0_233, %c0_234, %c0_235, %c0_236] : memref<2x16x16x4xf32, #tpu.memory_space<vmem>>, vector<2x16x16x4xf32>
    tpu.vector_store %arg5[%c0_233, %c0_234, %c0_235, %c0_236], %103 {strides = array<i32>} : memref<2x16x16x4xf32, #tpu.memory_space<vmem>>, vector<2x16x16x4xf32>,
    return
  }
  func.func @transform_0(%arg0: i32) -> (i32, i32, i32, i32) {
    %c0_i32 = arith.constant 0 : i32
    %c0_i32_0 = arith.constant 0 : i32
    %c0_i32_1 = arith.constant 0 : i32
    %c0_i32_2 = arith.constant 0 : i32
    return %arg0, %c0_i32, %c0_i32_0, %c0_i32_1 : i32, i32, i32, i32
  }
  func.func @transform_1(%arg0: i32) -> (i32, i32) {
    %c0_i32 = arith.constant 0 : i32
    %c0_i32_0 = arith.constant 0 : i32
    %c0_i32_1 = arith.constant 0 : i32
    return %c0_i32, %c0_i32_0 : i32, i32
  }
  func.func @transform_2(%arg0: i32) -> (i32, i32) {
    %c0_i32 = arith.constant 0 : i32
    %c0_i32_0 = arith.constant 0 : i32
    %c0_i32_1 = arith.constant 0 : i32
    return %c0_i32, %c0_i32_0 : i32, i32
  }
  func.func @transform_3(%arg0: i32) -> (i32, i32) {
    %c0_i32 = arith.constant 0 : i32
    %c0_i32_0 = arith.constant 0 : i32
    %c0_i32_1 = arith.constant 0 : i32
    return %c0_i32, %c0_i32_0 : i32, i32
  }
  func.func @transform_4(%arg0: i32) -> (i32, i32, i32, i32) {
    %c0_i32 = arith.constant 0 : i32
    %c0_i32_0 = arith.constant 0 : i32
    %c0_i32_1 = arith.constant 0 : i32
    %c0_i32_2 = arith.constant 0 : i32
    return %arg0, %c0_i32, %c0_i32_0, %c0_i32_1 : i32, i32, i32, i32
  }
}

</mosaic_0001>

<bundles_post_ra>
// kernel: tpu_custom_call.1
= control target key start
LH: loop header
LB: loop body
LE: loop exit
PB: predicated region body
PF: predicated region fallthrough
CT: control target
= control target key end

     0   :  { %vm17_vm0 = vcmask 31744   ;;  %vm22_vm1 = vcmask 24576   ;;  %v15003_v2 = vmov 0.0   ;;  %vm177_vm2 = vcmask 64544   ;;  %s8777_s19 = smov 4   ;;  %s8778_s25 = smov 8   ;;  %s14993_s0 = inlined_call_operand.vmem [shape: f32[2,16,16,4], index: 0, kind: input, shape index: {}]   ;;  %s14994_s1 = inlined_call_operand.vmem [shape: f32[36,8], index: 1, kind: input, shape index: {}]   ;;  %s14995_s2 = inlined_call_operand.vmem [shape: f32[1,4], index: 2, kind: input, shape index: {}]   ;;  %s14996_s3 = inlined_call_operand.vmem [shape: f32[36,4], index: 3, kind: input, shape index: {}]   ;;  %s14997_s4 = inlined_call_operand.vmem [shape: f32[2,16,16,4], index: 4, kind: output, shape index: {}]  }
   0x1   :  { %v182_v0 = vld [vmem:[%s14993_s0] sm:$0xff]  ;;  %v184_v1 = vld [vmem:[%s14993_s0 + $0x10] sm:$0xff]  ;;  %24 = vst.msk [vmem:[#allocation2 + $0x10] sm:$0x1] %vm22_vm1, %v15003_v2  ;;  %25 = vst.msk [vmem:[#allocation2 + $0x20] sm:$0x1] %vm22_vm1, %v15003_v2 }
   0x2   :  { %18 = vst.msk [vmem:[#allocation2] sm:$0xff] %vm17_vm0, %v15003_v2  ;;  %19 = vst.msk [vmem:[#allocation2 + $0x8] sm:$0xff] %vm17_vm0, %v15003_v2  ;;  %302 = vrot.lane.b32.xlu0 %v182_v0, %s8777_s19  ;;  %306 = vrot.lane.b32.xlu1 %v184_v1, %s8777_s19  ;;  %v186_v3 = vld [vmem:[%s14993_s0 + $0x20] sm:$0xff]  ;;  %v183_v4 = vld [vmem:[%s14993_s0 + $0x8] sm:$0xff]  ;;  %vm117_vm3 = vcmask 30720   ;;  %vm547_vm4 = vcmask 90176  }
   0x3   :  { %20 = vst.msk [vmem:[#allocation2 + $0x100] sm:$0xff] %vm17_vm0, %v15003_v2  ;;  %21 = vst.msk [vmem:[#allocation2 + $0x108] sm:$0xff] %vm17_vm0, %v15003_v2  ;;  %v185_v5 = vld [vmem:[%s14993_s0 + $0x18] sm:$0xff]  ;;  %v188_v6 = vld [vmem:[%s14993_s0 + $0x30] sm:$0xff]  ;;  %vm542_vm5 = vcmask 97344   ;;  %vm941_vm6 = vcmask 122976  }
   0x4   :  { %26 = vst.msk [vmem:[#allocation2 + $0x30] sm:$0x1] %vm22_vm1, %v15003_v2  ;;  %27 = vst.msk [vmem:[#allocation2 + $0x40] sm:$0x1] %vm22_vm1, %v15003_v2  ;;  %v190_v7 = vld [vmem:[%s14993_s0 + $0x40] sm:$0xff]  ;;  %v192_v8 = vld [vmem:[%s14993_s0 + $0x50] sm:$0xff] }
   0x5   :  { %28 = vst.msk [vmem:[#allocation2 + $0x50] sm:$0x1] %vm22_vm1, %v15003_v2  ;;  %29 = vst.msk [vmem:[#allocation2 + $0x60] sm:$0x1] %vm22_vm1, %v15003_v2  ;;  %v8924_v9 = vld [vmem:[%s14993_s0 + $0x60] sm:$0xff]  ;;  %v8933_v10 = vld [vmem:[%s14993_s0 + $0x70] sm:$0xff] }
   0x6   :  { %30 = vst.msk [vmem:[#allocation2 + $0x70] sm:$0x1] %vm22_vm1, %v15003_v2  ;;  %31 = vst.msk [vmem:[#allocation2 + $0x80] sm:$0x1] %vm22_vm1, %v15003_v2  ;;  %304 = vrot.lane.b32.xlu0 %v183_v4, %s8777_s19  ;;  %308 = vrot.lane.b32.xlu1 %v185_v5, %s8777_s19  ;;  %v187_v11 = vld [vmem:[%s14993_s0 + $0x28] sm:$0xff]  ;;  %v8943_v12 = vld [vmem:[%s14993_s0 + $0x80] sm:$0xff] }
   0x7   :  { %32 = vst.msk [vmem:[#allocation2 + $0x90] sm:$0x1] %vm22_vm1, %v15003_v2  ;;  %33 = vst.msk [vmem:[#allocation2 + $0xa0] sm:$0x1] %vm22_vm1, %v15003_v2  ;;  %v8948_v13 = vld [vmem:[%s14993_s0 + $0x90] sm:$0xff]  ;;  %v8955_v14 = vld [vmem:[%s14993_s0 + $0xa0] sm:$0xff] }
   0x8   :  { %34 = vst.msk [vmem:[#allocation2 + $0xb0] sm:$0x1] %vm22_vm1, %v15003_v2  ;;  %35 = vst.msk [vmem:[#allocation2 + $0xc0] sm:$0x1] %vm22_vm1, %v15003_v2  ;;  %v8964_v15 = vld [vmem:[%s14993_s0 + $0xb0] sm:$0xff]  ;;  %v8969_v16 = vld [vmem:[%s14993_s0 + $0xc0] sm:$0xff] }
   0x9   :  { %36 = vst.msk [vmem:[#allocation2 + $0xd0] sm:$0x1] %vm22_vm1, %v15003_v2  ;;  %37 = vst.msk [vmem:[#allocation2 + $0xe0] sm:$0x1] %vm22_vm1, %v15003_v2  ;;  %v8978_v17 = vld [vmem:[%s14993_s0 + $0xd0] sm:$0xff]  ;;  %v189_v18 = vld [vmem:[%s14993_s0 + $0x38] sm:$0xff] }
   0xa   :  { %38 = vst.msk [vmem:[#allocation2 + $0xf0] sm:$0x1] %vm22_vm1, %v15003_v2  ;;  %40 = vst.msk [vmem:[#allocation2 + $0x110] sm:$0x1] %vm22_vm1, %v15003_v2  ;;  %310 = vrot.lane.b32.xlu0 %v186_v3, %s8777_s19  ;;  %312 = vrot.lane.b32.xlu1 %v187_v11, %s8777_s19  ;;  %v8990_v19 = vld [vmem:[%s14993_s0 + $0xe0] sm:$0xff]  ;;  %v9002_v21 = vld [vmem:[%s14993_s0 + $0x110] sm:$0xff] }
   0xb   :  { %41 = vst.msk [vmem:[#allocation2 + $0x120] sm:$0x1] %vm22_vm1, %v15003_v2  ;;  %42 = vst.msk [vmem:[#allocation2 + $0x130] sm:$0x1] %vm22_vm1, %v15003_v2  ;;  %v8997_v20 = vld [vmem:[%s14993_s0 + $0x100] sm:$0xff]  ;;  %v9020_v23 = vld [vmem:[%s14993_s0 + $0x130] sm:$0xff] }
   0xc   :  { %43 = vst.msk [vmem:[#allocation2 + $0x140] sm:$0x1] %vm22_vm1, %v15003_v2  ;;  %44 = vst.msk [vmem:[#allocation2 + $0x150] sm:$0x1] %vm22_vm1, %v15003_v2  ;;  %v9009_v22 = vld [vmem:[%s14993_s0 + $0x120] sm:$0xff]  ;;  %v191_v24 = vld [vmem:[%s14993_s0 + $0x48] sm:$0xff] }
   0xd   :  { %45 = vst.msk [vmem:[#allocation2 + $0x160] sm:$0x1] %vm22_vm1, %v15003_v2  ;;  %46 = vst.msk [vmem:[#allocation2 + $0x170] sm:$0x1] %vm22_vm1, %v15003_v2  ;;  %v9030_v25 = vld [vmem:[%s14993_s0 + $0x140] sm:$0xff]  ;;  %v9035_v26 = vld [vmem:[%s14993_s0 + $0x150] sm:$0xff] }
   0xe   :  { %47 = vst.msk [vmem:[#allocation2 + $0x180] sm:$0x1] %vm22_vm1, %v15003_v2  ;;  %48 = vst.msk [vmem:[#allocation2 + $0x190] sm:$0x1] %vm22_vm1, %v15003_v2  ;;  %314 = vrot.lane.b32.xlu0 %v188_v6, %s8777_s19  ;;  %316 = vrot.lane.b32.xlu1 %v189_v18, %s8777_s19  ;;  %v9042_v27 = vld [vmem:[%s14993_s0 + $0x160] sm:$0xff]  ;;  %v9051_v28 = vld [vmem:[%s14993_s0 + $0x170] sm:$0xff] }
   0xf   :  { %49 = vst.msk [vmem:[#allocation2 + $0x1a0] sm:$0x1] %vm22_vm1, %v15003_v2  ;;  %50 = vst.msk [vmem:[#allocation2 + $0x1b0] sm:$0x1] %vm22_vm1, %v15003_v2  ;;  %v9056_v29 = vld [vmem:[%s14993_s0 + $0x180] sm:$0xff]  ;;  %v9065_v30 = vld [vmem:[%s14993_s0 + $0x190] sm:$0xff] }
  0x10   :  { %51 = vst.msk [vmem:[#allocation2 + $0x1c0] sm:$0x1] %vm22_vm1, %v15003_v2  ;;  %52 = vst.msk [vmem:[#allocation2 + $0x1d0] sm:$0x1] %vm22_vm1, %v15003_v2  ;;  %v193_v31 = vld [vmem:[%s14993_s0 + $0x58] sm:$0xff]  ;;  %v9077_v32 = vld [vmem:[%s14993_s0 + $0x1a0] sm:$0xff] }
  0x11   :  { %53 = vst.msk [vmem:[#allocation2 + $0x1e0] sm:$0x1] %vm22_vm1, %v15003_v2  ;;  %54 = vst.msk [vmem:[#allocation2 + $0x1f0] sm:$0x1] %vm22_vm1, %v15003_v2  ;;  %v9084_v33 = vld [vmem:[%s14993_s0 + $0x1b0] sm:$0xff]  ;;  %v9089_v34 = vld [vmem:[%s14993_s0 + $0x1c0] sm:$0xff] }
  0x12   :  { %116 = vst.msk [vmem:[#allocation2 + $0x11] sm:$0xff] %vm17_vm0, %v182_v0  ;;  %119 = vst.msk [vmem:[#allocation2 + $0x21] sm:$0xff] %vm17_vm0, %v184_v1  ;;  %318 = vrot.lane.b32.xlu0 %v190_v7, %s8777_s19  ;;  %320 = vrot.lane.b32.xlu1 %v191_v24, %s8777_s19  ;;  %v9096_v35 = vld [vmem:[%s14993_s0 + $0x1d0] sm:$0xff]  ;;  %v9107_v36 = vld [vmem:[%s14993_s0 + $0x1e0] sm:$0xff]  ;;  %vm881_vm7 = vcmask 96320   ;;  %s8779_s26 = smov 12  }
  0x13   :  { %23 = vst.msk [vmem:[#allocation2] sm:$0x1] %vm22_vm1, %v15003_v2  ;;  %39 = vst.msk [vmem:[#allocation2 + $0x100] sm:$0x1] %vm22_vm1, %v15003_v2  ;;  %v195_v37 = vld [vmem:[%s14993_s0 + $0x68] sm:$0xff]  ;;  %v197_v43 = vld [vmem:[%s14993_s0 + $0x78] sm:$0xff] }
  0x14   :  { %179 = vst.msk [vmem:[#allocation2 + $0x8] sm:$0xff] %vm177_vm2, %v15003_v2  ;;  %181 = vst.msk [vmem:[#allocation2 + $0x108] sm:$0xff] %vm177_vm2, %v15003_v2  ;;  %v56_v38 = vld [vmem:[%s14993_s0 + $0x8] sm:$0x7f]  ;;  %v58_v39 = vld [vmem:[%s14993_s0 + $0x18] sm:$0x7f] }
  0x15   :  { %178 = vst.msk [vmem:[#allocation2] sm:$0xff] %vm177_vm2, %v15003_v2  ;;  %180 = vst.msk [vmem:[#allocation2 + $0x100] sm:$0xff] %vm177_vm2, %v15003_v2  ;;  %v60_v40 = vld [vmem:[%s14993_s0 + $0x28] sm:$0x7f]  ;;  %v62_v41 = vld [vmem:[%s14993_s0 + $0x38] sm:$0x7f] }
  0x16   :  { %121 = vst.msk [vmem:[#allocation2 + $0x31] sm:$0xff] %vm17_vm0, %v186_v3  ;;  %123 = vst.msk [vmem:[#allocation2 + $0x41] sm:$0xff] %vm17_vm0, %v188_v6  ;;  %322 = vrot.lane.b32.xlu0 %v192_v8, %s8777_s19  ;;  %324 = vrot.lane.b32.xlu1 %v193_v31, %s8777_s19  ;;  %v64_v42 = vld [vmem:[%s14993_s0 + $0x48] sm:$0x7f]  ;;  %v66_v44 = vld [vmem:[%s14993_s0 + $0x58] sm:$0x7f] }
  0x17   :  { %125 = vst.msk [vmem:[#allocation2 + $0x51] sm:$0xff] %vm17_vm0, %v190_v7  ;;  %127 = vst.msk [vmem:[#allocation2 + $0x61] sm:$0xff] %vm17_vm0, %v192_v8  ;;  %v68_v45 = vld [vmem:[%s14993_s0 + $0x68] sm:$0x7f]  ;;  %v70_v46 = vld [vmem:[%s14993_s0 + $0x78] sm:$0x7f] }
  0x18   :  { %129 = vst.msk [vmem:[#allocation2 + $0x71] sm:$0xff] %vm17_vm0, %v8924_v9  ;;  %131 = vst.msk [vmem:[#allocation2 + $0x81] sm:$0xff] %vm17_vm0, %v8933_v10  ;;  %v199_v47 = vld [vmem:[%s14993_s0 + $0x88] sm:$0xff]  ;;  %v74_v49 = vld [vmem:[%s14993_s0 + $0x98] sm:$0x7f]  ;;  %vm15000_vm8 = vcmask 130144  }
  0x19   :  { %133 = vst.msk [vmem:[#allocation2 + $0x91] sm:$0xff] %vm17_vm0, %v8943_v12  ;;  %135 = vst.msk [vmem:[#allocation2 + $0xa1] sm:$0xff] %vm17_vm0, %v8948_v13  ;;  %v72_v48 = vld [vmem:[%s14993_s0 + $0x88] sm:$0x7f]  ;;  %v78_v51 = vld [vmem:[%s14993_s0 + $0xb8] sm:$0x7f] }
  0x1a   :  { %137 = vst.msk [vmem:[#allocation2 + $0xb1] sm:$0xff] %vm17_vm0, %v8955_v14  ;;  %139 = vst.msk [vmem:[#allocation2 + $0xc1] sm:$0xff] %vm17_vm0, %v8964_v15  ;;  %326 = vrot.lane.b32.xlu0 %v8924_v9, %s8777_s19  ;;  %328 = vrot.lane.b32.xlu1 %v195_v37, %s8777_s19  ;;  %v76_v50 = vld [vmem:[%s14993_s0 + $0xa8] sm:$0x7f]  ;;  %v201_v52 = vld [vmem:[%s14993_s0 + $0x98] sm:$0xff]  ;;  %vm1296_vm9 = vcmask 129120  }
  0x1b   :  { %141 = vst.msk [vmem:[#allocation2 + $0xd1] sm:$0xff] %vm17_vm0, %v8969_v16  ;;  %143 = vst.msk [vmem:[#allocation2 + $0xe1] sm:$0xff] %vm17_vm0, %v8978_v17  ;;  %v80_v53 = vld [vmem:[%s14993_s0 + $0xc8] sm:$0x7f]  ;;  %v82_v55 = vld [vmem:[%s14993_s0 + $0xd8] sm:$0x7f] }
  0x1c   :  { %145 = vst.msk [vmem:[#allocation2 + $0xf1] sm:$0xff] %vm17_vm0, %v8990_v19  ;;  %147 = vst.msk [vmem:[#allocation2 + $0x111] sm:$0xff] %vm17_vm0, %v8997_v20  ;;  %v203_v54 = vld [vmem:[%s14993_s0 + $0xa8] sm:$0xff]  ;;  %v205_v56 = vld [vmem:[%s14993_s0 + $0xb8] sm:$0xff]  ;;  %s8780_s12 = smov 16   ;;  %vm14999_vm10 = vcmask 162944  }
  0x1d   :  { %149 = vst.msk [vmem:[#allocation2 + $0x121] sm:$0xff] %vm17_vm0, %v9002_v21  ;;  %151 = vst.msk [vmem:[#allocation2 + $0x131] sm:$0xff] %vm17_vm0, %v9009_v22  ;;  %v84_v57 = vld [vmem:[%s14993_s0 + $0xe8] sm:$0x7f]  ;;  %v209_v60 = vld [vmem:[%s14993_s0 + $0xd8] sm:$0xff]  ;;  %vm14998_vm11 = vcmask 188576  }
  0x1e   :  { %153 = vst.msk [vmem:[#allocation2 + $0x141] sm:$0xff] %vm17_vm0, %v9020_v23  ;;  %155 = vst.msk [vmem:[#allocation2 + $0x151] sm:$0xff] %vm17_vm0, %v9030_v25  ;;  %330 = vrot.lane.b32.xlu0 %v8933_v10, %s8777_s19  ;;  %332 = vrot.lane.b32.xlu1 %v197_v43, %s8777_s19  ;;  %v207_v58 = vld [vmem:[%s14993_s0 + $0xc8] sm:$0xff]  ;;  %v88_v61 = vld [vmem:[%s14993_s0 + $0x118] sm:$0x7f]  ;;  %s8781_s13 = smov 20  }
  0x1f   :  { %157 = vst.msk [vmem:[#allocation2 + $0x161] sm:$0xff] %vm17_vm0, %v9035_v26  ;;  %159 = vst.msk [vmem:[#allocation2 + $0x171] sm:$0xff] %vm17_vm0, %v9042_v27  ;;  %v86_v59 = vld [vmem:[%s14993_s0 + $0x108] sm:$0x7f]  ;;  %v92_v1 = vld [vmem:[%s14993_s0 + $0x138] sm:$0x7f] }
  0x20   :  { %161 = vst.msk [vmem:[#allocation2 + $0x181] sm:$0xff] %vm17_vm0, %v9051_v28  ;;  %163 = vst.msk [vmem:[#allocation2 + $0x191] sm:$0xff] %vm17_vm0, %v9056_v29  ;;  %v211_v62 = vld [vmem:[%s14993_s0 + $0xe8] sm:$0xff]  ;;  %v215_v3 = vld [vmem:[%s14993_s0 + $0x118] sm:$0xff]  ;;  %vm2098_vm12 = vcmask 195744   ;;  %vm2100_vm13 = vcmask 194720  }
  0x21   :  { %165 = vst.msk [vmem:[#allocation2 + $0x1a1] sm:$0xff] %vm17_vm0, %v9065_v30  ;;  %167 = vst.msk [vmem:[#allocation2 + $0x1b1] sm:$0xff] %vm17_vm0, %v9077_v32  ;;  %v90_v63 = vld [vmem:[%s14993_s0 + $0x128] sm:$0x7f]  ;;  %v96_v6 = vld [vmem:[%s14993_s0 + $0x158] sm:$0x7f] }
  0x22   :  { %169 = vst.msk [vmem:[#allocation2 + $0x1c1] sm:$0xff] %vm17_vm0, %v9084_v33  ;;  %171 = vst.msk [vmem:[#allocation2 + $0x1d1] sm:$0xff] %vm17_vm0, %v9089_v34  ;;  %334 = vrot.lane.b32.xlu0 %v8943_v12, %s8777_s19  ;;  %336 = vrot.lane.b32.xlu1 %v199_v47, %s8777_s19  ;;  %v213_v0 = vld [vmem:[%s14993_s0 + $0x108] sm:$0xff]  ;;  %v219_v7 = vld [vmem:[%s14993_s0 + $0x138] sm:$0xff]  ;;  %vm2170_vm14 = vcmask 221376   ;;  %s8782_s16 = smov 24  }
  0x23   :  { %173 = vst.msk [vmem:[#allocation2 + $0x1e1] sm:$0xff] %vm17_vm0, %v9096_v35  ;;  %175 = vst.msk [vmem:[#allocation2 + $0x1f1] sm:$0xff] %vm17_vm0, %v9107_v36  ;;  %v94_v4 = vld [vmem:[%s14993_s0 + $0x148] sm:$0x7f]  ;;  %v100_v10 = vld [vmem:[%s14993_s0 + $0x178] sm:$0x7f] }
  0x24   :  { %118 = vst.msk [vmem:[#allocation2 + $0x19] sm:$0x7f] %vm117_vm3, %v56_v38  ;;  %120 = vst.msk [vmem:[#allocation2 + $0x29] sm:$0x7f] %vm117_vm3, %v58_v39  ;;  %v217_v5 = vld [vmem:[%s14993_s0 + $0x128] sm:$0xff]  ;;  %v223_v11 = vld [vmem:[%s14993_s0 + $0x158] sm:$0xff] }
  0x25   :  { %122 = vst.msk [vmem:[#allocation2 + $0x39] sm:$0x7f] %vm117_vm3, %v60_v40  ;;  %124 = vst.msk [vmem:[#allocation2 + $0x49] sm:$0x7f] %vm117_vm3, %v62_v41  ;;  %v98_v8 = vld [vmem:[%s14993_s0 + $0x168] sm:$0x7f] }
  0x26   :  { %126 = vst.msk [vmem:[#allocation2 + $0x59] sm:$0x7f] %vm117_vm3, %v64_v42  ;;  %128 = vst.msk [vmem:[#allocation2 + $0x69] sm:$0x7f] %vm117_vm3, %v66_v44  ;;  %338 = vrot.lane.b32.xlu0 %v8948_v13, %s8777_s19  ;;  %340 = vrot.lane.b32.xlu1 %v201_v52, %s8777_s19  ;;  %v221_v9 = vld [vmem:[%s14993_s0 + $0x148] sm:$0xff]  ;;  %v586_v42 = vld [vmem:[%s14993_s0 + $0x31] sm:$0xff] }
  0x27   :  { %130 = vst.msk [vmem:[#allocation2 + $0x79] sm:$0x7f] %vm117_vm3, %v68_v45  ;;  %132 = vst.msk [vmem:[#allocation2 + $0x89] sm:$0x7f] %vm117_vm3, %v70_v46  ;;  %v102_v12 = vld [vmem:[%s14993_s0 + $0x188] sm:$0x7f] }
  0x28   :  { %134 = vst.msk [vmem:[#allocation2 + $0x99] sm:$0x7f] %vm117_vm3, %v72_v48  ;;  %136 = vst.msk [vmem:[#allocation2 + $0xa9] sm:$0x7f] %vm117_vm3, %v74_v49  ;;  %v225_v13 = vld [vmem:[%s14993_s0 + $0x168] sm:$0xff]  ;;  %vm2165_vm15 = vcmask 228544  }
  0x29   :  { %138 = vst.msk [vmem:[#allocation2 + $0xb9] sm:$0x7f] %vm117_vm3, %v76_v50  ;;  %140 = vst.msk [vmem:[#allocation2 + $0xc9] sm:$0x7f] %vm117_vm3, %v78_v51  ;;  %v108_v18 = vld [vmem:[%s14993_s0 + $0x1b8] sm:$0x7f] }
  0x2a   :  { %142 = vst.msk [vmem:[#allocation2 + $0xd9] sm:$0x7f] %vm117_vm3, %v80_v53  ;;  %144 = vst.msk [vmem:[#allocation2 + $0xe9] sm:$0x7f] %vm117_vm3, %v82_v55  ;;  %342 = vrot.lane.b32.xlu0 %v8955_v14, %s8777_s19  ;;  %344 = vrot.lane.b32.xlu1 %v203_v54, %s8777_s19  ;;  %v104_v14 = vld [vmem:[%s14993_s0 + $0x198] sm:$0x7f] }
  0x2b   :  { %146 = vst.msk [vmem:[#allocation2 + $0xf9] sm:$0x7f] %vm117_vm3, %v84_v57  ;;  %148 = vst.msk [vmem:[#allocation2 + $0x119] sm:$0x7f] %vm117_vm3, %v86_v59  ;;  %v114_v24 = vld [vmem:[%s14993_s0 + $0x1e8] sm:$0x7f] }
  0x2c   :  { %150 = vst.msk [vmem:[#allocation2 + $0x129] sm:$0x7f] %vm117_vm3, %v88_v61  ;;  %152 = vst.msk [vmem:[#allocation2 + $0x139] sm:$0x7f] %vm117_vm3, %v90_v63  ;;  %v581_v31 = vld [vmem:[%s14993_s0 + $0x9] sm:$0x7f] }
  0x2d   :  { %154 = vst.msk [vmem:[#allocation2 + $0x149] sm:$0x7f] %vm117_vm3, %v92_v1  ;;  %156 = vst.msk [vmem:[#allocation2 + $0x159] sm:$0x7f] %vm117_vm3, %v94_v4  ;;  %v584_v38 = vld [vmem:[%s14993_s0 + $0x21] sm:$0xff]  ;;  %v590_v50 = vld [vmem:[%s14993_s0 + $0x51] sm:$0xff] }
  0x2e   :  { %346 = vrot.lane.b32.xlu0 %v8964_v15, %s8777_s19  ;;  %348 = vrot.lane.b32.xlu1 %v205_v56, %s8777_s19  ;;  %158 = vst.msk [vmem:[#allocation2 + $0x169] sm:$0x7f] %vm117_vm3, %v96_v6  ;;  %160 = vst.msk [vmem:[#allocation2 + $0x179] sm:$0x7f] %vm117_vm3, %v98_v8  ;;  %v227_v15 = vld [vmem:[%s14993_s0 + $0x178] sm:$0xff]  ;;  %v588_v46 = vld [vmem:[%s14993_s0 + $0x41] sm:$0xff] }
  0x2f   :  { %162 = vst.msk [vmem:[#allocation2 + $0x189] sm:$0x7f] %vm117_vm3, %v100_v10  ;;  %164 = vst.msk [vmem:[#allocation2 + $0x199] sm:$0x7f] %vm117_vm3, %v102_v12  ;;  %v585_v39 = vld [vmem:[%s14993_s0 + $0x29] sm:$0x7f] }
  0x30   :  { %166 = vst.msk [vmem:[#allocation2 + $0x1a9] sm:$0x7f] %vm117_vm3, %v104_v14  ;;  %170 = vst.msk [vmem:[#allocation2 + $0x1c9] sm:$0x7f] %vm117_vm3, %v108_v18  ;;  %v587_v43 = vld [vmem:[%s14993_s0 + $0x39] sm:$0x7f] }
  0x31   :  { %176 = vst.msk [vmem:[#allocation2 + $0x1f9] sm:$0x7f] %vm117_vm3, %v114_v24  ;;  %v589_v47 = vld [vmem:[%s14993_s0 + $0x49] sm:$0x7f]  ;;  %v591_v51 = vld [vmem:[%s14993_s0 + $0x59] sm:$0x7f] }
  0x32   :  { %350 = vrot.lane.b32.xlu0 %v8969_v16, %s8777_s19  ;;  %352 = vrot.lane.b32.xlu1 %v207_v58, %s8777_s19  ;;  %v106_v16 = vld [vmem:[%s14993_s0 + $0x1a8] sm:$0x7f]  ;;  %543 = vst.msk [vmem:[#allocation2] sm:$0xff] %vm542_vm5, %v15003_v2  ;;  %544 = vst.msk [vmem:[#allocation2 + $0x8] sm:$0xff] %vm542_vm5, %v15003_v2  ;;  %v594_v58 = vld [vmem:[%s14993_s0 + $0x71] sm:$0xff]  ;;  %s8783_s14 = smov 28  }
  0x33   :  { %168 = vst.msk [vmem:[#allocation2 + $0x1b9] sm:$0x7f] %vm117_vm3, %v106_v16  ;;  %v592_v54 = vld [vmem:[%s14993_s0 + $0x61] sm:$0xff]  ;;  %v593_v55 = vld [vmem:[%s14993_s0 + $0x69] sm:$0x7f] }
  0x34   :  { %545 = vst.msk [vmem:[#allocation2 + $0x100] sm:$0xff] %vm542_vm5, %v15003_v2  ;;  %546 = vst.msk [vmem:[#allocation2 + $0x108] sm:$0xff] %vm542_vm5, %v15003_v2  ;;  %v595_v59 = vld [vmem:[%s14993_s0 + $0x79] sm:$0x7f]  ;;  %v597_v63 = vld [vmem:[%s14993_s0 + $0x89] sm:$0x7f] }
  0x35   :  { %548 = vst.msk [vmem:[#allocation2 + $0xf] sm:$0x1] %vm547_vm4, %v15003_v2  ;;  %564 = vst.msk [vmem:[#allocation2 + $0x10f] sm:$0x1] %vm547_vm4, %v15003_v2  ;;  %v599_v4 = vld [vmem:[%s14993_s0 + $0x99] sm:$0x7f] }
  0x36   :  { %354 = vrot.lane.b32.xlu0 %v8978_v17, %s8777_s19  ;;  %356 = vrot.lane.b32.xlu1 %v209_v60, %s8777_s19  ;;  %v229_v17 = vld [vmem:[%s14993_s0 + $0x188] sm:$0xff]  ;;  %942 = vst.msk [vmem:[#allocation2] sm:$0x1] %vm941_vm6, %v15003_v2  ;;  %958 = vst.msk [vmem:[#allocation2 + $0x100] sm:$0x1] %vm941_vm6, %v15003_v2 }
  0x37   :  { %v601_v8 = vld [vmem:[%s14993_s0 + $0xa9] sm:$0x7f]  ;;  %v603_v12 = vld [vmem:[%s14993_s0 + $0xb9] sm:$0x7f] }
  0x38   :  { %v605_v16 = vld [vmem:[%s14993_s0 + $0xc9] sm:$0x7f] }
  0x39   :  { %v609_v24 = vld [vmem:[%s14993_s0 + $0xe9] sm:$0x7f] }
  0x3a   :  { %358 = vrot.lane.b32.xlu0 %v8990_v19, %s8777_s19  ;;  %360 = vrot.lane.b32.xlu1 %v211_v62, %s8777_s19  ;;  %v231_v19 = vld [vmem:[%s14993_s0 + $0x198] sm:$0xff]  ;;  %v596_v62 = vld [vmem:[%s14993_s0 + $0x81] sm:$0xff] }
  0x3e   :  { %362 = vrot.lane.b32.xlu0 %v8997_v20, %s8777_s19  ;;  %364 = vrot.lane.b32.xlu1 %v213_v0, %s8777_s19  ;;  %v110_v20 = vld [vmem:[%s14993_s0 + $0x1c8] sm:$0x7f] }
  0x3f   :  { %172 = vst.msk [vmem:[#allocation2 + $0x1d9] sm:$0x7f] %vm117_vm3, %v110_v20  ;;  %v607_v20 = vld [vmem:[%s14993_s0 + $0xd9] sm:$0x7f] }
  0x42   :  { %366 = vrot.lane.b32.xlu0 %v9002_v21, %s8777_s19  ;;  %368 = vrot.lane.b32.xlu1 %v215_v3, %s8777_s19  ;;  %v233_v21 = vld [vmem:[%s14993_s0 + $0x1a8] sm:$0xff]  ;;  %v598_v3 = vld [vmem:[%s14993_s0 + $0x91] sm:$0xff] }
  0x46   :  { %370 = vrot.lane.b32.xlu0 %v9009_v22, %s8777_s19  ;;  %372 = vrot.lane.b32.xlu1 %v217_v5, %s8777_s19  ;;  %v112_v22 = vld [vmem:[%s14993_s0 + $0x1d8] sm:$0x7f] }
  0x47   :  { %174 = vst.msk [vmem:[#allocation2 + $0x1e9] sm:$0x7f] %vm117_vm3, %v112_v22 }
  0x4a   :  { %374 = vrot.lane.b32.xlu0 %v9020_v23, %s8777_s19  ;;  %376 = vrot.lane.b32.xlu1 %v219_v7, %s8777_s19  ;;  %v235_v23 = vld [vmem:[%s14993_s0 + $0x1b8] sm:$0xff]  ;;  %v600_v7 = vld [vmem:[%s14993_s0 + $0xa1] sm:$0xff] }
  0x4e   :  { %378 = vrot.lane.b32.xlu0 %v9030_v25, %s8777_s19  ;;  %380 = vrot.lane.b32.xlu1 %v221_v9, %s8777_s19  ;;  %v237_v25 = vld [vmem:[%s14993_s0 + $0x1c8] sm:$0xff] }
  0x52   :  { %382 = vrot.lane.b32.xlu0 %v9035_v26, %s8777_s19  ;;  %384 = vrot.lane.b32.xlu1 %v223_v11, %s8777_s19  ;;  %v239_v26 = vld [vmem:[%s14993_s0 + $0x1d8] sm:$0xff] }
  0x53   :  { %v602_v11 = vld [vmem:[%s14993_s0 + $0xb1] sm:$0xff] }
  0x56   :  { %386 = vrot.lane.b32.xlu0 %v9042_v27, %s8777_s19  ;;  %388 = vrot.lane.b32.xlu1 %v225_v13, %s8777_s19  ;;  %v241_v27 = vld [vmem:[%s14993_s0 + $0x1e8] sm:$0xff] }
  0x5a   :  { %390 = vrot.lane.b32.xlu0 %v9051_v28, %s8777_s19  ;;  %392 = vrot.lane.b32.xlu1 %v227_v15, %s8777_s19  ;;  %v604_v15 = vld [vmem:[%s14993_s0 + $0xc1] sm:$0xff] }
  0x5e   :  { %394 = vrot.lane.b32.xlu0 %v9056_v29, %s8777_s19  ;;  %396 = vrot.lane.b32.xlu1 %v229_v17, %s8777_s19 }
  0x62   :  { %398 = vrot.lane.b32.xlu0 %v9065_v30, %s8777_s19  ;;  %400 = vrot.lane.b32.xlu1 %v231_v19, %s8777_s19  ;;  %v580_v30 = vld [vmem:[%s14993_s0 + $0x1] sm:$0xff]  ;;  %v606_v19 = vld [vmem:[%s14993_s0 + $0xd1] sm:$0xff] }
  0x66   :  { %402 = vrot.lane.b32.xlu0 %v9077_v32, %s8777_s19  ;;  %404 = vrot.lane.b32.xlu1 %v233_v21, %s8777_s19 }
  0x6a   :  { %406 = vrot.lane.b32.xlu0 %v9084_v33, %s8777_s19  ;;  %408 = vrot.lane.b32.xlu1 %v235_v23, %s8777_s19  ;;  %v608_v23 = vld [vmem:[%s14993_s0 + $0xe1] sm:$0xff] }
  0x6e   :  { %410 = vrot.lane.b32.xlu0 %v9089_v34, %s8777_s19  ;;  %412 = vrot.lane.b32.xlu1 %v237_v25, %s8777_s19  ;;  %v582_v34 = vld [vmem:[%s14993_s0 + $0x11] sm:$0xff] }
  0x72   :  { %414 = vrot.lane.b32.xlu0 %v9096_v35, %s8777_s19  ;;  %416 = vrot.lane.b32.xlu1 %v239_v26, %s8777_s19  ;;  %v583_v35 = vld [vmem:[%s14993_s0 + $0x19] sm:$0x7f] }
  0x74   :  { %v303_v28 = vpop.permute.xlu0 %302  ;;  %v307_v29 = vpop.permute.xlu1 %306 }
  0x75   :  { %482 = vst.msk [vmem:[#allocation2 + $0x10] sm:$0xff] %vm177_vm2, %v303_v28  ;;  %484 = vst.msk [vmem:[#allocation2 + $0x20] sm:$0xff] %vm177_vm2, %v307_v29  ;;  %v611_v28 = vld [vmem:[%s14993_s0 + $0x109] sm:$0x7f] }
  0x76   :  { %418 = vrot.lane.b32.xlu0 %v9107_v36, %s8777_s19  ;;  %420 = vrot.lane.b32.xlu1 %v241_v27, %s8777_s19  ;;  %v610_v27 = vld [vmem:[%s14993_s0 + $0x101] sm:$0xff] }
  0x78   :  { %v305_v32 = vpop.permute.xlu0 %304  ;;  %v309_v33 = vpop.permute.xlu1 %308 }
  0x79   :  { %483 = vst.msk [vmem:[#allocation2 + $0x18] sm:$0xff] %vm177_vm2, %v305_v32  ;;  %485 = vst.msk [vmem:[#allocation2 + $0x28] sm:$0xff] %vm177_vm2, %v309_v33  ;;  %v613_v32 = vld [vmem:[%s14993_s0 + $0x119] sm:$0x7f] }
  0x7a   :  { %549 = vst.msk [vmem:[#allocation2 + $0x1f] sm:$0x1] %vm547_vm4, %v15003_v2  ;;  %550 = vst.msk [vmem:[#allocation2 + $0x2f] sm:$0x1] %vm547_vm4, %v15003_v2  ;;  %700 = vrot.lane.b32.xlu0 %v580_v30, %s8778_s25  ;;  %702 = vrot.lane.b32.xlu1 %v581_v31, %s8778_s25  ;;  %v612_v31 = vld [vmem:[%s14993_s0 + $0x111] sm:$0xff] }
  0x7c   :  { %v311_v36 = vpop.permute.xlu0 %310  ;;  %v313_v37 = vpop.permute.xlu1 %312 }
  0x7d   :  { %486 = vst.msk [vmem:[#allocation2 + $0x30] sm:$0xff] %vm177_vm2, %v311_v36  ;;  %487 = vst.msk [vmem:[#allocation2 + $0x38] sm:$0xff] %vm177_vm2, %v313_v37  ;;  %v615_v36 = vld [vmem:[%s14993_s0 + $0x129] sm:$0x7f] }
  0x7e   :  { %551 = vst.msk [vmem:[#allocation2 + $0x3f] sm:$0x1] %vm547_vm4, %v15003_v2  ;;  %704 = vrot.lane.b32.xlu0 %v582_v34, %s8778_s25  ;;  %706 = vrot.lane.b32.xlu1 %v583_v35, %s8778_s25  ;;  %v614_v35 = vld [vmem:[%s14993_s0 + $0x121] sm:$0xff] }
  0x80   :  { %v315_v40 = vpop.permute.xlu0 %314  ;;  %v317_v41 = vpop.permute.xlu1 %316 }
  0x81   :  { %488 = vst.msk [vmem:[#allocation2 + $0x40] sm:$0xff] %vm177_vm2, %v315_v40  ;;  %489 = vst.msk [vmem:[#allocation2 + $0x48] sm:$0xff] %vm177_vm2, %v317_v41  ;;  %v617_v40 = vld [vmem:[%s14993_s0 + $0x139] sm:$0x7f] }
  0x82   :  { %552 = vst.msk [vmem:[#allocation2 + $0x4f] sm:$0x1] %vm547_vm4, %v15003_v2  ;;  %708 = vrot.lane.b32.xlu0 %v584_v38, %s8778_s25  ;;  %710 = vrot.lane.b32.xlu1 %v585_v39, %s8778_s25  ;;  %v616_v39 = vld [vmem:[%s14993_s0 + $0x131] sm:$0xff] }
  0x84   :  { %v319_v44 = vpop.permute.xlu0 %318  ;;  %v321_v45 = vpop.permute.xlu1 %320 }
  0x85   :  { %490 = vst.msk [vmem:[#allocation2 + $0x50] sm:$0xff] %vm177_vm2, %v319_v44  ;;  %491 = vst.msk [vmem:[#allocation2 + $0x58] sm:$0xff] %vm177_vm2, %v321_v45  ;;  %v619_v44 = vld [vmem:[%s14993_s0 + $0x149] sm:$0x7f] }
  0x86   :  { %553 = vst.msk [vmem:[#allocation2 + $0x5f] sm:$0x1] %vm547_vm4, %v15003_v2  ;;  %712 = vrot.lane.b32.xlu0 %v586_v42, %s8778_s25  ;;  %714 = vrot.lane.b32.xlu1 %v587_v43, %s8778_s25  ;;  %v618_v43 = vld [vmem:[%s14993_s0 + $0x141] sm:$0xff] }
  0x88   :  { %v323_v48 = vpop.permute.xlu0 %322  ;;  %v325_v49 = vpop.permute.xlu1 %324 }
  0x89   :  { %492 = vst.msk [vmem:[#allocation2 + $0x60] sm:$0xff] %vm177_vm2, %v323_v48  ;;  %493 = vst.msk [vmem:[#allocation2 + $0x68] sm:$0xff] %vm177_vm2, %v325_v49  ;;  %v621_v48 = vld [vmem:[%s14993_s0 + $0x159] sm:$0x7f] }
  0x8a   :  { %554 = vst.msk [vmem:[#allocation2 + $0x6f] sm:$0x1] %vm547_vm4, %v15003_v2  ;;  %716 = vrot.lane.b32.xlu0 %v588_v46, %s8778_s25  ;;  %718 = vrot.lane.b32.xlu1 %v589_v47, %s8778_s25  ;;  %v620_v47 = vld [vmem:[%s14993_s0 + $0x151] sm:$0xff] }
  0x8c   :  { %v327_v52 = vpop.permute.xlu0 %326  ;;  %v329_v53 = vpop.permute.xlu1 %328 }
  0x8d   :  { %494 = vst.msk [vmem:[#allocation2 + $0x70] sm:$0xff] %vm177_vm2, %v327_v52  ;;  %495 = vst.msk [vmem:[#allocation2 + $0x78] sm:$0xff] %vm177_vm2, %v329_v53  ;;  %v623_v52 = vld [vmem:[%s14993_s0 + $0x169] sm:$0x7f] }
  0x8e   :  { %555 = vst.msk [vmem:[#allocation2 + $0x7f] sm:$0x1] %vm547_vm4, %v15003_v2  ;;  %720 = vrot.lane.b32.xlu0 %v590_v50, %s8778_s25  ;;  %722 = vrot.lane.b32.xlu1 %v591_v51, %s8778_s25  ;;  %v622_v51 = vld [vmem:[%s14993_s0 + $0x161] sm:$0xff] }
  0x90   :  { %v331_v56 = vpop.permute.xlu0 %330  ;;  %v333_v57 = vpop.permute.xlu1 %332 }
  0x91   :  { %496 = vst.msk [vmem:[#allocation2 + $0x80] sm:$0xff] %vm177_vm2, %v331_v56  ;;  %497 = vst.msk [vmem:[#allocation2 + $0x88] sm:$0xff] %vm177_vm2, %v333_v57  ;;  %v625_v56 = vld [vmem:[%s14993_s0 + $0x179] sm:$0x7f] }
  0x92   :  { %556 = vst.msk [vmem:[#allocation2 + $0x8f] sm:$0x1] %vm547_vm4, %v15003_v2  ;;  %724 = vrot.lane.b32.xlu0 %v592_v54, %s8778_s25  ;;  %726 = vrot.lane.b32.xlu1 %v593_v55, %s8778_s25  ;;  %v624_v55 = vld [vmem:[%s14993_s0 + $0x171] sm:$0xff] }
  0x94   :  { %v335_v60 = vpop.permute.xlu0 %334  ;;  %v337_v61 = vpop.permute.xlu1 %336 }
  0x95   :  { %498 = vst.msk [vmem:[#allocation2 + $0x90] sm:$0xff] %vm177_vm2, %v335_v60  ;;  %499 = vst.msk [vmem:[#allocation2 + $0x98] sm:$0xff] %vm177_vm2, %v337_v61  ;;  %v627_v60 = vld [vmem:[%s14993_s0 + $0x189] sm:$0x7f] }
  0x96   :  { %557 = vst.msk [vmem:[#allocation2 + $0x9f] sm:$0x1] %vm547_vm4, %v15003_v2  ;;  %728 = vrot.lane.b32.xlu0 %v594_v58, %s8778_s25  ;;  %730 = vrot.lane.b32.xlu1 %v595_v59, %s8778_s25  ;;  %v626_v59 = vld [vmem:[%s14993_s0 + $0x181] sm:$0xff] }
  0x98   :  { %v339_v0 = vpop.permute.xlu0 %338  ;;  %v341_v1 = vpop.permute.xlu1 %340 }
  0x99   :  { %500 = vst.msk [vmem:[#allocation2 + $0xa0] sm:$0xff] %vm177_vm2, %v339_v0  ;;  %501 = vst.msk [vmem:[#allocation2 + $0xa8] sm:$0xff] %vm177_vm2, %v341_v1  ;;  %v629_v0 = vld [vmem:[%s14993_s0 + $0x199] sm:$0x7f] }
  0x9a   :  { %558 = vst.msk [vmem:[#allocation2 + $0xaf] sm:$0x1] %vm547_vm4, %v15003_v2  ;;  %732 = vrot.lane.b32.xlu0 %v596_v62, %s8778_s25  ;;  %734 = vrot.lane.b32.xlu1 %v597_v63, %s8778_s25  ;;  %v628_v63 = vld [vmem:[%s14993_s0 + $0x191] sm:$0xff] }
  0x9c   :  { %v343_v5 = vpop.permute.xlu0 %342  ;;  %v345_v6 = vpop.permute.xlu1 %344 }
  0x9d   :  { %502 = vst.msk [vmem:[#allocation2 + $0xb0] sm:$0xff] %vm177_vm2, %v343_v5  ;;  %503 = vst.msk [vmem:[#allocation2 + $0xb8] sm:$0xff] %vm177_vm2, %v345_v6  ;;  %v631_v5 = vld [vmem:[%s14993_s0 + $0x1a9] sm:$0x7f] }
  0x9e   :  { %559 = vst.msk [vmem:[#allocation2 + $0xbf] sm:$0x1] %vm547_vm4, %v15003_v2  ;;  %736 = vrot.lane.b32.xlu0 %v598_v3, %s8778_s25  ;;  %738 = vrot.lane.b32.xlu1 %v599_v4, %s8778_s25  ;;  %v630_v4 = vld [vmem:[%s14993_s0 + $0x1a1] sm:$0xff] }
  0xa0   :  { %v347_v9 = vpop.permute.xlu0 %346  ;;  %v349_v10 = vpop.permute.xlu1 %348 }
  0xa1   :  { %504 = vst.msk [vmem:[#allocation2 + $0xc0] sm:$0xff] %vm177_vm2, %v347_v9  ;;  %505 = vst.msk [vmem:[#allocation2 + $0xc8] sm:$0xff] %vm177_vm2, %v349_v10  ;;  %v633_v9 = vld [vmem:[%s14993_s0 + $0x1b9] sm:$0x7f] }
  0xa2   :  { %560 = vst.msk [vmem:[#allocation2 + $0xcf] sm:$0x1] %vm547_vm4, %v15003_v2  ;;  %740 = vrot.lane.b32.xlu0 %v600_v7, %s8778_s25  ;;  %742 = vrot.lane.b32.xlu1 %v601_v8, %s8778_s25  ;;  %v632_v8 = vld [vmem:[%s14993_s0 + $0x1b1] sm:$0xff] }
  0xa4   :  { %v351_v13 = vpop.permute.xlu0 %350  ;;  %v353_v14 = vpop.permute.xlu1 %352 }
  0xa5   :  { %506 = vst.msk [vmem:[#allocation2 + $0xd0] sm:$0xff] %vm177_vm2, %v351_v13  ;;  %507 = vst.msk [vmem:[#allocation2 + $0xd8] sm:$0xff] %vm177_vm2, %v353_v14  ;;  %v635_v13 = vld [vmem:[%s14993_s0 + $0x1c9] sm:$0x7f] }
  0xa6   :  { %561 = vst.msk [vmem:[#allocation2 + $0xdf] sm:$0x1] %vm547_vm4, %v15003_v2  ;;  %744 = vrot.lane.b32.xlu0 %v602_v11, %s8778_s25  ;;  %746 = vrot.lane.b32.xlu1 %v603_v12, %s8778_s25  ;;  %v634_v12 = vld [vmem:[%s14993_s0 + $0x1c1] sm:$0xff] }
  0xa8   :  { %v355_v17 = vpop.permute.xlu0 %354  ;;  %v357_v18 = vpop.permute.xlu1 %356 }
  0xa9   :  { %508 = vst.msk [vmem:[#allocation2 + $0xe0] sm:$0xff] %vm177_vm2, %v355_v17  ;;  %509 = vst.msk [vmem:[#allocation2 + $0xe8] sm:$0xff] %vm177_vm2, %v357_v18  ;;  %v637_v17 = vld [vmem:[%s14993_s0 + $0x1d9] sm:$0x7f] }
  0xaa   :  { %562 = vst.msk [vmem:[#allocation2 + $0xef] sm:$0x1] %vm547_vm4, %v15003_v2  ;;  %748 = vrot.lane.b32.xlu0 %v604_v15, %s8778_s25  ;;  %750 = vrot.lane.b32.xlu1 %v605_v16, %s8778_s25  ;;  %v636_v16 = vld [vmem:[%s14993_s0 + $0x1d1] sm:$0xff] }
  0xac   :  { %v359_v21 = vpop.permute.xlu0 %358  ;;  %v361_v22 = vpop.permute.xlu1 %360 }
  0xad   :  { %510 = vst.msk [vmem:[#allocation2 + $0xf0] sm:$0xff] %vm177_vm2, %v359_v21  ;;  %511 = vst.msk [vmem:[#allocation2 + $0xf8] sm:$0xff] %vm177_vm2, %v361_v22  ;;  %v639_v21 = vld [vmem:[%s14993_s0 + $0x1e9] sm:$0x7f] }
  0xae   :  { %563 = vst.msk [vmem:[#allocation2 + $0xff] sm:$0x1] %vm547_vm4, %v15003_v2  ;;  %752 = vrot.lane.b32.xlu0 %v606_v19, %s8778_s25  ;;  %754 = vrot.lane.b32.xlu1 %v607_v20, %s8778_s25  ;;  %v638_v20 = vld [vmem:[%s14993_s0 + $0x1e1] sm:$0xff] }
  0xb0   :  { %v363_v25 = vpop.permute.xlu0 %362  ;;  %v365_v26 = vpop.permute.xlu1 %364 }
  0xb1   :  { %512 = vst.msk [vmem:[#allocation2 + $0x110] sm:$0xff] %vm177_vm2, %v363_v25  ;;  %513 = vst.msk [vmem:[#allocation2 + $0x118] sm:$0xff] %vm177_vm2, %v365_v26  ;;  %v975_v25 = vld [vmem:[%s14993_s0 + $0x8] sm:$0x7f] }
  0xb2   :  { %565 = vst.msk [vmem:[#allocation2 + $0x11f] sm:$0x1] %vm547_vm4, %v15003_v2  ;;  %756 = vrot.lane.b32.xlu0 %v608_v23, %s8778_s25  ;;  %758 = vrot.lane.b32.xlu1 %v609_v24, %s8778_s25  ;;  %v9760_v24 = vld [vmem:[%s14993_s0] sm:$0xff] }
  0xb4   :  { %v367_v29 = vpop.permute.xlu0 %366  ;;  %v369_v30 = vpop.permute.xlu1 %368 }
  0xb5   :  { %514 = vst.msk [vmem:[#allocation2 + $0x120] sm:$0xff] %vm177_vm2, %v367_v29  ;;  %515 = vst.msk [vmem:[#allocation2 + $0x128] sm:$0xff] %vm177_vm2, %v369_v30  ;;  %v977_v29 = vld [vmem:[%s14993_s0 + $0x18] sm:$0x7f] }
  0xb6   :  { %566 = vst.msk [vmem:[#allocation2 + $0x12f] sm:$0x1] %vm547_vm4, %v15003_v2  ;;  %760 = vrot.lane.b32.xlu0 %v610_v27, %s8778_s25  ;;  %762 = vrot.lane.b32.xlu1 %v611_v28, %s8778_s25  ;;  %v9775_v28 = vld [vmem:[%s14993_s0 + $0x10] sm:$0xff] }
  0xb8   :  { %v371_v33 = vpop.permute.xlu0 %370  ;;  %v373_v34 = vpop.permute.xlu1 %372 }
  0xb9   :  { %516 = vst.msk [vmem:[#allocation2 + $0x130] sm:$0xff] %vm177_vm2, %v371_v33  ;;  %517 = vst.msk [vmem:[#allocation2 + $0x138] sm:$0xff] %vm177_vm2, %v373_v34  ;;  %v979_v33 = vld [vmem:[%s14993_s0 + $0x28] sm:$0x7f] }
  0xba   :  { %567 = vst.msk [vmem:[#allocation2 + $0x13f] sm:$0x1] %vm547_vm4, %v15003_v2  ;;  %764 = vrot.lane.b32.xlu0 %v612_v31, %s8778_s25  ;;  %766 = vrot.lane.b32.xlu1 %v613_v32, %s8778_s25  ;;  %v9790_v32 = vld [vmem:[%s14993_s0 + $0x20] sm:$0xff] }
  0xbc   :  { %v375_v37 = vpop.permute.xlu0 %374  ;;  %v377_v38 = vpop.permute.xlu1 %376 }
  0xbd   :  { %518 = vst.msk [vmem:[#allocation2 + $0x140] sm:$0xff] %vm177_vm2, %v375_v37  ;;  %519 = vst.msk [vmem:[#allocation2 + $0x148] sm:$0xff] %vm177_vm2, %v377_v38  ;;  %v981_v37 = vld [vmem:[%s14993_s0 + $0x38] sm:$0x7f] }
  0xbe   :  { %568 = vst.msk [vmem:[#allocation2 + $0x14f] sm:$0x1] %vm547_vm4, %v15003_v2  ;;  %768 = vrot.lane.b32.xlu0 %v614_v35, %s8778_s25  ;;  %770 = vrot.lane.b32.xlu1 %v615_v36, %s8778_s25  ;;  %v9805_v36 = vld [vmem:[%s14993_s0 + $0x30] sm:$0xff] }
  0xc0   :  { %v379_v41 = vpop.permute.xlu0 %378  ;;  %v381_v42 = vpop.permute.xlu1 %380 }
  0xc1   :  { %520 = vst.msk [vmem:[#allocation2 + $0x150] sm:$0xff] %vm177_vm2, %v379_v41  ;;  %521 = vst.msk [vmem:[#allocation2 + $0x158] sm:$0xff] %vm177_vm2, %v381_v42  ;;  %v983_v41 = vld [vmem:[%s14993_s0 + $0x48] sm:$0x7f] }
  0xc2   :  { %569 = vst.msk [vmem:[#allocation2 + $0x15f] sm:$0x1] %vm547_vm4, %v15003_v2  ;;  %772 = vrot.lane.b32.xlu0 %v616_v39, %s8778_s25  ;;  %774 = vrot.lane.b32.xlu1 %v617_v40, %s8778_s25  ;;  %v9820_v40 = vld [vmem:[%s14993_s0 + $0x40] sm:$0xff] }
  0xc4   :  { %v383_v45 = vpop.permute.xlu0 %382  ;;  %v385_v46 = vpop.permute.xlu1 %384 }
  0xc5   :  { %522 = vst.msk [vmem:[#allocation2 + $0x160] sm:$0xff] %vm177_vm2, %v383_v45  ;;  %523 = vst.msk [vmem:[#allocation2 + $0x168] sm:$0xff] %vm177_vm2, %v385_v46  ;;  %v985_v45 = vld [vmem:[%s14993_s0 + $0x58] sm:$0x7f] }
  0xc6   :  { %570 = vst.msk [vmem:[#allocation2 + $0x16f] sm:$0x1] %vm547_vm4, %v15003_v2  ;;  %776 = vrot.lane.b32.xlu0 %v618_v43, %s8778_s25  ;;  %778 = vrot.lane.b32.xlu1 %v619_v44, %s8778_s25  ;;  %v9835_v44 = vld [vmem:[%s14993_s0 + $0x50] sm:$0xff] }
  0xc8   :  { %v387_v49 = vpop.permute.xlu0 %386  ;;  %v389_v50 = vpop.permute.xlu1 %388 }
  0xc9   :  { %524 = vst.msk [vmem:[#allocation2 + $0x170] sm:$0xff] %vm177_vm2, %v387_v49  ;;  %525 = vst.msk [vmem:[#allocation2 + $0x178] sm:$0xff] %vm177_vm2, %v389_v50  ;;  %v987_v49 = vld [vmem:[%s14993_s0 + $0x68] sm:$0x7f] }
  0xca   :  { %571 = vst.msk [vmem:[#allocation2 + $0x17f] sm:$0x1] %vm547_vm4, %v15003_v2  ;;  %780 = vrot.lane.b32.xlu0 %v620_v47, %s8778_s25  ;;  %782 = vrot.lane.b32.xlu1 %v621_v48, %s8778_s25  ;;  %v9850_v48 = vld [vmem:[%s14993_s0 + $0x60] sm:$0xff] }
  0xcc   :  { %v391_v53 = vpop.permute.xlu0 %390  ;;  %v393_v54 = vpop.permute.xlu1 %392 }
  0xcd   :  { %526 = vst.msk [vmem:[#allocation2 + $0x180] sm:$0xff] %vm177_vm2, %v391_v53  ;;  %527 = vst.msk [vmem:[#allocation2 + $0x188] sm:$0xff] %vm177_vm2, %v393_v54  ;;  %v989_v53 = vld [vmem:[%s14993_s0 + $0x78] sm:$0x7f] }
  0xce   :  { %572 = vst.msk [vmem:[#allocation2 + $0x18f] sm:$0x1] %vm547_vm4, %v15003_v2  ;;  %784 = vrot.lane.b32.xlu0 %v622_v51, %s8778_s25  ;;  %786 = vrot.lane.b32.xlu1 %v623_v52, %s8778_s25  ;;  %v9865_v52 = vld [vmem:[%s14993_s0 + $0x70] sm:$0xff] }
  0xd0   :  { %v395_v57 = vpop.permute.xlu0 %394  ;;  %v397_v58 = vpop.permute.xlu1 %396 }
  0xd1   :  { %528 = vst.msk [vmem:[#allocation2 + $0x190] sm:$0xff] %vm177_vm2, %v395_v57  ;;  %529 = vst.msk [vmem:[#allocation2 + $0x198] sm:$0xff] %vm177_vm2, %v397_v58  ;;  %v991_v57 = vld [vmem:[%s14993_s0 + $0x88] sm:$0x7f] }
  0xd2   :  { %573 = vst.msk [vmem:[#allocation2 + $0x19f] sm:$0x1] %vm547_vm4, %v15003_v2  ;;  %788 = vrot.lane.b32.xlu0 %v624_v55, %s8778_s25  ;;  %790 = vrot.lane.b32.xlu1 %v625_v56, %s8778_s25  ;;  %v9880_v56 = vld [vmem:[%s14993_s0 + $0x80] sm:$0xff] }
  0xd4   :  { %v399_v61 = vpop.permute.xlu0 %398  ;;  %v401_v62 = vpop.permute.xlu1 %400 }
  0xd5   :  { %530 = vst.msk [vmem:[#allocation2 + $0x1a0] sm:$0xff] %vm177_vm2, %v399_v61  ;;  %531 = vst.msk [vmem:[#allocation2 + $0x1a8] sm:$0xff] %vm177_vm2, %v401_v62  ;;  %v993_v61 = vld [vmem:[%s14993_s0 + $0x98] sm:$0x7f] }
  0xd6   :  { %574 = vst.msk [vmem:[#allocation2 + $0x1af] sm:$0x1] %vm547_vm4, %v15003_v2  ;;  %792 = vrot.lane.b32.xlu0 %v626_v59, %s8778_s25  ;;  %794 = vrot.lane.b32.xlu1 %v627_v60, %s8778_s25  ;;  %v9895_v60 = vld [vmem:[%s14993_s0 + $0x90] sm:$0xff] }
  0xd8   :  { %v403_v1 = vpop.permute.xlu0 %402  ;;  %v405_v3 = vpop.permute.xlu1 %404 }
  0xd9   :  { %532 = vst.msk [vmem:[#allocation2 + $0x1b0] sm:$0xff] %vm177_vm2, %v403_v1  ;;  %533 = vst.msk [vmem:[#allocation2 + $0x1b8] sm:$0xff] %vm177_vm2, %v405_v3  ;;  %v995_v1 = vld [vmem:[%s14993_s0 + $0xa8] sm:$0x7f] }
  0xda   :  { %575 = vst.msk [vmem:[#allocation2 + $0x1bf] sm:$0x1] %vm547_vm4, %v15003_v2  ;;  %796 = vrot.lane.b32.xlu0 %v628_v63, %s8778_s25  ;;  %798 = vrot.lane.b32.xlu1 %v629_v0, %s8778_s25  ;;  %v9910_v0 = vld [vmem:[%s14993_s0 + $0xa0] sm:$0xff] }
  0xdc   :  { %v407_v6 = vpop.permute.xlu0 %406  ;;  %v409_v7 = vpop.permute.xlu1 %408 }
  0xdd   :  { %534 = vst.msk [vmem:[#allocation2 + $0x1c0] sm:$0xff] %vm177_vm2, %v407_v6  ;;  %535 = vst.msk [vmem:[#allocation2 + $0x1c8] sm:$0xff] %vm177_vm2, %v409_v7  ;;  %v997_v6 = vld [vmem:[%s14993_s0 + $0xb8] sm:$0x7f] }
  0xde   :  { %576 = vst.msk [vmem:[#allocation2 + $0x1cf] sm:$0x1] %vm547_vm4, %v15003_v2  ;;  %800 = vrot.lane.b32.xlu0 %v630_v4, %s8778_s25  ;;  %802 = vrot.lane.b32.xlu1 %v631_v5, %s8778_s25  ;;  %v9925_v5 = vld [vmem:[%s14993_s0 + $0xb0] sm:$0xff] }
  0xe0   :  { %v411_v10 = vpop.permute.xlu0 %410  ;;  %v413_v11 = vpop.permute.xlu1 %412 }
  0xe1   :  { %536 = vst.msk [vmem:[#allocation2 + $0x1d0] sm:$0xff] %vm177_vm2, %v411_v10  ;;  %537 = vst.msk [vmem:[#allocation2 + $0x1d8] sm:$0xff] %vm177_vm2, %v413_v11  ;;  %v999_v10 = vld [vmem:[%s14993_s0 + $0xc8] sm:$0x7f] }
  0xe2   :  { %577 = vst.msk [vmem:[#allocation2 + $0x1df] sm:$0x1] %vm547_vm4, %v15003_v2  ;;  %804 = vrot.lane.b32.xlu0 %v632_v8, %s8778_s25  ;;  %806 = vrot.lane.b32.xlu1 %v633_v9, %s8778_s25  ;;  %v9940_v9 = vld [vmem:[%s14993_s0 + $0xc0] sm:$0xff] }
  0xe4   :  { %v415_v14 = vpop.permute.xlu0 %414  ;;  %v417_v15 = vpop.permute.xlu1 %416 }
  0xe5   :  { %538 = vst.msk [vmem:[#allocation2 + $0x1e0] sm:$0xff] %vm177_vm2, %v415_v14  ;;  %539 = vst.msk [vmem:[#allocation2 + $0x1e8] sm:$0xff] %vm177_vm2, %v417_v15  ;;  %v1001_v14 = vld [vmem:[%s14993_s0 + $0xd8] sm:$0x7f] }
  0xe6   :  { %578 = vst.msk [vmem:[#allocation2 + $0x1ef] sm:$0x1] %vm547_vm4, %v15003_v2  ;;  %808 = vrot.lane.b32.xlu0 %v634_v12, %s8778_s25  ;;  %810 = vrot.lane.b32.xlu1 %v635_v13, %s8778_s25  ;;  %v9955_v13 = vld [vmem:[%s14993_s0 + $0xd0] sm:$0xff] }
  0xe8   :  { %v419_v18 = vpop.permute.xlu0 %418  ;;  %v421_v19 = vpop.permute.xlu1 %420 }
  0xe9   :  { %540 = vst.msk [vmem:[#allocation2 + $0x1f0] sm:$0xff] %vm177_vm2, %v419_v18  ;;  %541 = vst.msk [vmem:[#allocation2 + $0x1f8] sm:$0xff] %vm177_vm2, %v421_v19  ;;  %v1003_v18 = vld [vmem:[%s14993_s0 + $0xe8] sm:$0x7f] }
  0xea   :  { %579 = vst.msk [vmem:[#allocation2 + $0x1ff] sm:$0x1] %vm547_vm4, %v15003_v2  ;;  %812 = vrot.lane.b32.xlu0 %v636_v16, %s8778_s25  ;;  %814 = vrot.lane.b32.xlu1 %v637_v17, %s8778_s25  ;;  %v9970_v17 = vld [vmem:[%s14993_s0 + $0xe0] sm:$0xff] }
  0xec   :  { %v701_v22 = vpop.permute.xlu0 %700  ;;  %v703_v23 = vpop.permute.xlu1 %702 }
  0xed   :  { %880 = vst.msk [vmem:[#allocation2 + $0x10] sm:$0xff] %vm542_vm5, %v701_v22  ;;  %v1005_v22 = vld [vmem:[%s14993_s0 + $0xf8] sm:$0x7f] }
  0xee   :  { %882 = vst.msk [vmem:[#allocation2 + $0x18] sm:$0x7f] %vm881_vm7, %v703_v23  ;;  %816 = vrot.lane.b32.xlu0 %v638_v20, %s8778_s25  ;;  %818 = vrot.lane.b32.xlu1 %v639_v21, %s8778_s25  ;;  %v9985_v21 = vld [vmem:[%s14993_s0 + $0xf0] sm:$0xff] }
  0xef   :  { %943 = vst.msk [vmem:[#allocation2 + $0x10] sm:$0x1] %vm941_vm6, %v15003_v2 }
  0xf0   :  { %v705_v26 = vpop.permute.xlu0 %704  ;;  %v707_v27 = vpop.permute.xlu1 %706 }
  0xf1   :  { %883 = vst.msk [vmem:[#allocation2 + $0x20] sm:$0xff] %vm542_vm5, %v705_v26  ;;  %v10000_v26 = vld [vmem:[%s14993_s0 + $0x100] sm:$0xff] }
  0xf2   :  { %884 = vst.msk [vmem:[#allocation2 + $0x28] sm:$0x7f] %vm881_vm7, %v707_v27  ;;  %1102 = vrot.lane.b32.xlu0 %v9760_v24, %s8779_s26  ;;  %1104 = vrot.lane.b32.xlu1 %v975_v25, %s8779_s26  ;;  %v1007_v27 = vld [vmem:[%s14993_s0 + $0x108] sm:$0x7f] }
  0xf3   :  { %944 = vst.msk [vmem:[#allocation2 + $0x20] sm:$0x1] %vm941_vm6, %v15003_v2 }
  0xf4   :  { %v709_v30 = vpop.permute.xlu0 %708  ;;  %v711_v31 = vpop.permute.xlu1 %710 }
  0xf5   :  { %885 = vst.msk [vmem:[#allocation2 + $0x30] sm:$0xff] %vm542_vm5, %v709_v30 }
  0xf6   :  { %886 = vst.msk [vmem:[#allocation2 + $0x38] sm:$0x7f] %vm881_vm7, %v711_v31  ;;  %1106 = vrot.lane.b32.xlu0 %v9775_v28, %s8779_s26  ;;  %1108 = vrot.lane.b32.xlu1 %v977_v29, %s8779_s26  ;;  %v10015_v31 = vld [vmem:[%s14993_s0 + $0x110] sm:$0xff] }
  0xf7   :  { %945 = vst.msk [vmem:[#allocation2 + $0x30] sm:$0x1] %vm941_vm6, %v15003_v2 }
  0xf8   :  { %v713_v34 = vpop.permute.xlu0 %712  ;;  %v715_v35 = vpop.permute.xlu1 %714 }
  0xf9   :  { %887 = vst.msk [vmem:[#allocation2 + $0x40] sm:$0xff] %vm542_vm5, %v713_v34 }
  0xfa   :  { %888 = vst.msk [vmem:[#allocation2 + $0x48] sm:$0x7f] %vm881_vm7, %v715_v35  ;;  %1110 = vrot.lane.b32.xlu0 %v9790_v32, %s8779_s26  ;;  %1112 = vrot.lane.b32.xlu1 %v979_v33, %s8779_s26  ;;  %v1009_v33 = vld [vmem:[%s14993_s0 + $0x118] sm:$0x7f] }
  0xfb   :  { %946 = vst.msk [vmem:[#allocation2 + $0x40] sm:$0x1] %vm941_vm6, %v15003_v2 }
  0xfc   :  { %v717_v38 = vpop.permute.xlu0 %716  ;;  %v719_v39 = vpop.permute.xlu1 %718 }
  0xfd   :  { %889 = vst.msk [vmem:[#allocation2 + $0x50] sm:$0xff] %vm542_vm5, %v717_v38  ;;  %v1011_v38 = vld [vmem:[%s14993_s0 + $0x128] sm:$0x7f] }
  0xfe   :  { %890 = vst.msk [vmem:[#allocation2 + $0x58] sm:$0x7f] %vm881_vm7, %v719_v39  ;;  %1114 = vrot.lane.b32.xlu0 %v9805_v36, %s8779_s26  ;;  %1116 = vrot.lane.b32.xlu1 %v981_v37, %s8779_s26  ;;  %v10030_v37 = vld [vmem:[%s14993_s0 + $0x120] sm:$0xff] }
  0xff   :  { %947 = vst.msk [vmem:[#allocation2 + $0x50] sm:$0x1] %vm941_vm6, %v15003_v2 }
 0x100   :  { %v721_v42 = vpop.permute.xlu0 %720  ;;  %v723_v43 = vpop.permute.xlu1 %722 }
 0x101   :  { %891 = vst.msk [vmem:[#allocation2 + $0x60] sm:$0xff] %vm542_vm5, %v721_v42  ;;  %v10045_v42 = vld [vmem:[%s14993_s0 + $0x130] sm:$0xff] }
 0x102   :  { %892 = vst.msk [vmem:[#allocation2 + $0x68] sm:$0x7f] %vm881_vm7, %v723_v43  ;;  %1118 = vrot.lane.b32.xlu0 %v9820_v40, %s8779_s26  ;;  %1120 = vrot.lane.b32.xlu1 %v983_v41, %s8779_s26  ;;  %v1013_v43 = vld [vmem:[%s14993_s0 + $0x138] sm:$0x7f] }
 0x103   :  { %948 = vst.msk [vmem:[#allocation2 + $0x60] sm:$0x1] %vm941_vm6, %v15003_v2 }
 0x104   :  { %v725_v46 = vpop.permute.xlu0 %724  ;;  %v727_v47 = vpop.permute.xlu1 %726 }
 0x105   :  { %893 = vst.msk [vmem:[#allocation2 + $0x70] sm:$0xff] %vm542_vm5, %v725_v46 }
 0x106   :  { %894 = vst.msk [vmem:[#allocation2 + $0x78] sm:$0x7f] %vm881_vm7, %v727_v47  ;;  %1122 = vrot.lane.b32.xlu0 %v9835_v44, %s8779_s26  ;;  %1124 = vrot.lane.b32.xlu1 %v985_v45, %s8779_s26  ;;  %v10060_v47 = vld [vmem:[%s14993_s0 + $0x140] sm:$0xff] }
 0x107   :  { %949 = vst.msk [vmem:[#allocation2 + $0x70] sm:$0x1] %vm941_vm6, %v15003_v2 }
 0x108   :  { %v729_v50 = vpop.permute.xlu0 %728  ;;  %v731_v51 = vpop.permute.xlu1 %730 }
 0x109   :  { %895 = vst.msk [vmem:[#allocation2 + $0x80] sm:$0xff] %vm542_vm5, %v729_v50 }
 0x10a   :  { %896 = vst.msk [vmem:[#allocation2 + $0x88] sm:$0x7f] %vm881_vm7, %v731_v51  ;;  %1126 = vrot.lane.b32.xlu0 %v9850_v48, %s8779_s26  ;;  %1128 = vrot.lane.b32.xlu1 %v987_v49, %s8779_s26  ;;  %v1015_v49 = vld [vmem:[%s14993_s0 + $0x148] sm:$0x7f] }
 0x10b   :  { %950 = vst.msk [vmem:[#allocation2 + $0x80] sm:$0x1] %vm941_vm6, %v15003_v2 }
 0x10c   :  { %v733_v54 = vpop.permute.xlu0 %732  ;;  %v735_v55 = vpop.permute.xlu1 %734 }
 0x10d   :  { %897 = vst.msk [vmem:[#allocation2 + $0x90] sm:$0xff] %vm542_vm5, %v733_v54  ;;  %v1017_v54 = vld [vmem:[%s14993_s0 + $0x158] sm:$0x7f] }
 0x10e   :  { %898 = vst.msk [vmem:[#allocation2 + $0x98] sm:$0x7f] %vm881_vm7, %v735_v55  ;;  %1130 = vrot.lane.b32.xlu0 %v9865_v52, %s8779_s26  ;;  %1132 = vrot.lane.b32.xlu1 %v989_v53, %s8779_s26  ;;  %v10075_v53 = vld [vmem:[%s14993_s0 + $0x150] sm:$0xff] }
 0x10f   :  { %951 = vst.msk [vmem:[#allocation2 + $0x90] sm:$0x1] %vm941_vm6, %v15003_v2 }
 0x110   :  { %v737_v58 = vpop.permute.xlu0 %736  ;;  %v739_v59 = vpop.permute.xlu1 %738 }
 0x111   :  { %899 = vst.msk [vmem:[#allocation2 + $0xa0] sm:$0xff] %vm542_vm5, %v737_v58  ;;  %v10090_v58 = vld [vmem:[%s14993_s0 + $0x160] sm:$0xff] }
 0x112   :  { %900 = vst.msk [vmem:[#allocation2 + $0xa8] sm:$0x7f] %vm881_vm7, %v739_v59  ;;  %1134 = vrot.lane.b32.xlu0 %v9880_v56, %s8779_s26  ;;  %1136 = vrot.lane.b32.xlu1 %v991_v57, %s8779_s26  ;;  %v1019_v59 = vld [vmem:[%s14993_s0 + $0x168] sm:$0x7f] }
 0x113   :  { %952 = vst.msk [vmem:[#allocation2 + $0xa0] sm:$0x1] %vm941_vm6, %v15003_v2 }
 0x114   :  { %v741_v62 = vpop.permute.xlu0 %740  ;;  %v743_v63 = vpop.permute.xlu1 %742 }
 0x115   :  { %901 = vst.msk [vmem:[#allocation2 + $0xb0] sm:$0xff] %vm542_vm5, %v741_v62 }
 0x116   :  { %902 = vst.msk [vmem:[#allocation2 + $0xb8] sm:$0x7f] %vm881_vm7, %v743_v63  ;;  %1138 = vrot.lane.b32.xlu0 %v9895_v60, %s8779_s26  ;;  %1140 = vrot.lane.b32.xlu1 %v993_v61, %s8779_s26  ;;  %v10105_v63 = vld [vmem:[%s14993_s0 + $0x170] sm:$0xff] }
 0x117   :  { %953 = vst.msk [vmem:[#allocation2 + $0xb0] sm:$0x1] %vm941_vm6, %v15003_v2 }
 0x118   :  { %v745_v3 = vpop.permute.xlu0 %744  ;;  %v747_v4 = vpop.permute.xlu1 %746 }
 0x119   :  { %903 = vst.msk [vmem:[#allocation2 + $0xc0] sm:$0xff] %vm542_vm5, %v745_v3 }
 0x11a   :  { %904 = vst.msk [vmem:[#allocation2 + $0xc8] sm:$0x7f] %vm881_vm7, %v747_v4  ;;  %1142 = vrot.lane.b32.xlu0 %v9910_v0, %s8779_s26  ;;  %1144 = vrot.lane.b32.xlu1 %v995_v1, %s8779_s26  ;;  %v1021_v1 = vld [vmem:[%s14993_s0 + $0x178] sm:$0x7f] }
 0x11b   :  { %954 = vst.msk [vmem:[#allocation2 + $0xc0] sm:$0x1] %vm941_vm6, %v15003_v2 }
 0x11c   :  { %v749_v7 = vpop.permute.xlu0 %748  ;;  %v751_v8 = vpop.permute.xlu1 %750 }
 0x11d   :  { %905 = vst.msk [vmem:[#allocation2 + $0xd0] sm:$0xff] %vm542_vm5, %v749_v7  ;;  %v1023_v7 = vld [vmem:[%s14993_s0 + $0x188] sm:$0x7f] }
 0x11e   :  { %906 = vst.msk [vmem:[#allocation2 + $0xd8] sm:$0x7f] %vm881_vm7, %v751_v8  ;;  %1146 = vrot.lane.b32.xlu0 %v9925_v5, %s8779_s26  ;;  %1148 = vrot.lane.b32.xlu1 %v997_v6, %s8779_s26  ;;  %v10120_v6 = vld [vmem:[%s14993_s0 + $0x180] sm:$0xff] }
 0x11f   :  { %955 = vst.msk [vmem:[#allocation2 + $0xd0] sm:$0x1] %vm941_vm6, %v15003_v2 }
 0x120   :  { %v753_v11 = vpop.permute.xlu0 %752  ;;  %v755_v12 = vpop.permute.xlu1 %754 }
 0x121   :  { %907 = vst.msk [vmem:[#allocation2 + $0xe0] sm:$0xff] %vm542_vm5, %v753_v11  ;;  %v10135_v11 = vld [vmem:[%s14993_s0 + $0x190] sm:$0xff] }
 0x122   :  { %908 = vst.msk [vmem:[#allocation2 + $0xe8] sm:$0x7f] %vm881_vm7, %v755_v12  ;;  %1150 = vrot.lane.b32.xlu0 %v9940_v9, %s8779_s26  ;;  %1152 = vrot.lane.b32.xlu1 %v999_v10, %s8779_s26  ;;  %v1025_v12 = vld [vmem:[%s14993_s0 + $0x198] sm:$0x7f] }
 0x123   :  { %956 = vst.msk [vmem:[#allocation2 + $0xe0] sm:$0x1] %vm941_vm6, %v15003_v2 }
 0x124   :  { %v757_v15 = vpop.permute.xlu0 %756  ;;  %v759_v16 = vpop.permute.xlu1 %758 }
 0x125   :  { %909 = vst.msk [vmem:[#allocation2 + $0xf0] sm:$0xff] %vm542_vm5, %v757_v15 }
 0x126   :  { %910 = vst.msk [vmem:[#allocation2 + $0xf8] sm:$0x7f] %vm881_vm7, %v759_v16  ;;  %1154 = vrot.lane.b32.xlu0 %v9955_v13, %s8779_s26  ;;  %1156 = vrot.lane.b32.xlu1 %v1001_v14, %s8779_s26  ;;  %v10150_v16 = vld [vmem:[%s14993_s0 + $0x1a0] sm:$0xff] }
 0x127   :  { %957 = vst.msk [vmem:[#allocation2 + $0xf0] sm:$0x1] %vm941_vm6, %v15003_v2 }
 0x128   :  { %v761_v19 = vpop.permute.xlu0 %760  ;;  %v763_v20 = vpop.permute.xlu1 %762 }
 0x129   :  { %911 = vst.msk [vmem:[#allocation2 + $0x110] sm:$0xff] %vm542_vm5, %v761_v19 }
 0x12a   :  { %912 = vst.msk [vmem:[#allocation2 + $0x118] sm:$0x7f] %vm881_vm7, %v763_v20  ;;  %1158 = vrot.lane.b32.xlu0 %v9970_v17, %s8779_s26  ;;  %1160 = vrot.lane.b32.xlu1 %v1003_v18, %s8779_s26  ;;  %v1027_v18 = vld [vmem:[%s14993_s0 + $0x1a8] sm:$0x7f] }
 0x12b   :  { %959 = vst.msk [vmem:[#allocation2 + $0x110] sm:$0x1] %vm941_vm6, %v15003_v2 }
 0x12c   :  { %v765_v23 = vpop.permute.xlu0 %764  ;;  %v767_v25 = vpop.permute.xlu1 %766 }
 0x12d   :  { %913 = vst.msk [vmem:[#allocation2 + $0x120] sm:$0xff] %vm542_vm5, %v765_v23  ;;  %v1029_v23 = vld [vmem:[%s14993_s0 + $0x1b8] sm:$0x7f] }
 0x12e   :  { %914 = vst.msk [vmem:[#allocation2 + $0x128] sm:$0x7f] %vm881_vm7, %v767_v25  ;;  %1162 = vrot.lane.b32.xlu0 %v9985_v21, %s8779_s26  ;;  %1164 = vrot.lane.b32.xlu1 %v1005_v22, %s8779_s26  ;;  %v10165_v22 = vld [vmem:[%s14993_s0 + $0x1b0] sm:$0xff] }
 0x12f   :  { %960 = vst.msk [vmem:[#allocation2 + $0x120] sm:$0x1] %vm941_vm6, %v15003_v2 }
 0x130   :  { %v769_v29 = vpop.permute.xlu0 %768  ;;  %v771_v30 = vpop.permute.xlu1 %770 }
 0x131   :  { %915 = vst.msk [vmem:[#allocation2 + $0x130] sm:$0xff] %vm542_vm5, %v769_v29  ;;  %v10180_v29 = vld [vmem:[%s14993_s0 + $0x1c0] sm:$0xff] }
 0x132   :  { %916 = vst.msk [vmem:[#allocation2 + $0x138] sm:$0x7f] %vm881_vm7, %v771_v30  ;;  %1166 = vrot.lane.b32.xlu0 %v10000_v26, %s8779_s26  ;;  %1168 = vrot.lane.b32.xlu1 %v1007_v27, %s8779_s26  ;;  %v1031_v30 = vld [vmem:[%s14993_s0 + $0x1c8] sm:$0x7f] }
 0x133   :  { %961 = vst.msk [vmem:[#allocation2 + $0x130] sm:$0x1] %vm941_vm6, %v15003_v2 }
 0x134   :  { %v773_v34 = vpop.permute.xlu0 %772  ;;  %v775_v35 = vpop.permute.xlu1 %774 }
 0x135   :  { %917 = vst.msk [vmem:[#allocation2 + $0x140] sm:$0xff] %vm542_vm5, %v773_v34 }
 0x136   :  { %918 = vst.msk [vmem:[#allocation2 + $0x148] sm:$0x7f] %vm881_vm7, %v775_v35  ;;  %1170 = vrot.lane.b32.xlu0 %v10015_v31, %s8779_s26  ;;  %1172 = vrot.lane.b32.xlu1 %v1009_v33, %s8779_s26  ;;  %v10195_v35 = vld [vmem:[%s14993_s0 + $0x1d0] sm:$0xff] }
 0x137   :  { %962 = vst.msk [vmem:[#allocation2 + $0x140] sm:$0x1] %vm941_vm6, %v15003_v2 }
 0x138   :  { %v777_v39 = vpop.permute.xlu0 %776  ;;  %v779_v41 = vpop.permute.xlu1 %778 }
 0x139   :  { %919 = vst.msk [vmem:[#allocation2 + $0x150] sm:$0xff] %vm542_vm5, %v777_v39 }
 0x13a   :  { %920 = vst.msk [vmem:[#allocation2 + $0x158] sm:$0x7f] %vm881_vm7, %v779_v41  ;;  %1174 = vrot.lane.b32.xlu0 %v10030_v37, %s8779_s26  ;;  %1176 = vrot.lane.b32.xlu1 %v1011_v38, %s8779_s26  ;;  %v1033_v38 = vld [vmem:[%s14993_s0 + $0x1d8] sm:$0x7f] }
 0x13b   :  { %963 = vst.msk [vmem:[#allocation2 + $0x150] sm:$0x1] %vm941_vm6, %v15003_v2 }
 0x13c   :  { %v781_v45 = vpop.permute.xlu0 %780  ;;  %v783_v46 = vpop.permute.xlu1 %782 }
 0x13d   :  { %921 = vst.msk [vmem:[#allocation2 + $0x160] sm:$0xff] %vm542_vm5, %v781_v45  ;;  %v1035_v45 = vld [vmem:[%s14993_s0 + $0x1e8] sm:$0x7f] }
 0x13e   :  { %922 = vst.msk [vmem:[#allocation2 + $0x168] sm:$0x7f] %vm881_vm7, %v783_v46  ;;  %1178 = vrot.lane.b32.xlu0 %v10045_v42, %s8779_s26  ;;  %1180 = vrot.lane.b32.xlu1 %v1013_v43, %s8779_s26  ;;  %v10208_v43 = vld [vmem:[%s14993_s0 + $0x1e0] sm:$0xff] }
 0x13f   :  { %964 = vst.msk [vmem:[#allocation2 + $0x160] sm:$0x1] %vm941_vm6, %v15003_v2 }
 0x140   :  { %v785_v50 = vpop.permute.xlu0 %784  ;;  %v787_v51 = vpop.permute.xlu1 %786 }
 0x141   :  { %923 = vst.msk [vmem:[#allocation2 + $0x170] sm:$0xff] %vm542_vm5, %v785_v50  ;;  %v10221_v50 = vld [vmem:[%s14993_s0 + $0x1f0] sm:$0xff] }
 0x142   :  { %924 = vst.msk [vmem:[#allocation2 + $0x178] sm:$0x7f] %vm881_vm7, %v787_v51  ;;  %1182 = vrot.lane.b32.xlu0 %v10060_v47, %s8779_s26  ;;  %1184 = vrot.lane.b32.xlu1 %v1015_v49, %s8779_s26  ;;  %v1037_v51 = vld [vmem:[%s14993_s0 + $0x1f8] sm:$0x7f] }
 0x143   :  { %965 = vst.msk [vmem:[#allocation2 + $0x170] sm:$0x1] %vm941_vm6, %v15003_v2 }
 0x144   :  { %v789_v55 = vpop.permute.xlu0 %788  ;;  %v791_v57 = vpop.permute.xlu1 %790 }
 0x145   :  { %925 = vst.msk [vmem:[#allocation2 + $0x180] sm:$0xff] %vm542_vm5, %v789_v55 }
 0x146   :  { %926 = vst.msk [vmem:[#allocation2 + $0x188] sm:$0x7f] %vm881_vm7, %v791_v57  ;;  %1186 = vrot.lane.b32.xlu0 %v10075_v53, %s8779_s26  ;;  %1188 = vrot.lane.b32.xlu1 %v1017_v54, %s8779_s26  ;;  %v1361_v57 = vld [vmem:[%s14993_s0 + $0x8] sm:$0xff] }
 0x147   :  { %966 = vst.msk [vmem:[#allocation2 + $0x180] sm:$0x1] %vm941_vm6, %v15003_v2 }
 0x148   :  { %v793_v61 = vpop.permute.xlu0 %792  ;;  %v795_v62 = vpop.permute.xlu1 %794 }
 0x149   :  { %927 = vst.msk [vmem:[#allocation2 + $0x190] sm:$0xff] %vm542_vm5, %v793_v61 }
 0x14a   :  { %928 = vst.msk [vmem:[#allocation2 + $0x198] sm:$0x7f] %vm881_vm7, %v795_v62  ;;  %1190 = vrot.lane.b32.xlu0 %v10090_v58, %s8779_s26  ;;  %1192 = vrot.lane.b32.xlu1 %v1019_v59, %s8779_s26  ;;  %v1363_v62 = vld [vmem:[%s14993_s0 + $0x18] sm:$0xff] }
 0x14b   :  { %967 = vst.msk [vmem:[#allocation2 + $0x190] sm:$0x1] %vm941_vm6, %v15003_v2 }
 0x14c   :  { %v797_v3 = vpop.permute.xlu0 %796  ;;  %v799_v4 = vpop.permute.xlu1 %798 }
 0x14d   :  { %929 = vst.msk [vmem:[#allocation2 + $0x1a0] sm:$0xff] %vm542_vm5, %v797_v3 }
 0x14e   :  { %930 = vst.msk [vmem:[#allocation2 + $0x1a8] sm:$0x7f] %vm881_vm7, %v799_v4  ;;  %1194 = vrot.lane.b32.xlu0 %v10105_v63, %s8779_s26  ;;  %1196 = vrot.lane.b32.xlu1 %v1021_v1, %s8779_s26 }
 0x14f   :  { %968 = vst.msk [vmem:[#allocation2 + $0x1a0] sm:$0x1] %vm941_vm6, %v15003_v2 }
 0x150   :  { %v801_v8 = vpop.permute.xlu0 %800  ;;  %v803_v10 = vpop.permute.xlu1 %802 }
 0x151   :  { %931 = vst.msk [vmem:[#allocation2 + $0x1b0] sm:$0xff] %vm542_vm5, %v801_v8 }
 0x152   :  { %932 = vst.msk [vmem:[#allocation2 + $0x1b8] sm:$0x7f] %vm881_vm7, %v803_v10  ;;  %1198 = vrot.lane.b32.xlu0 %v10120_v6, %s8779_s26  ;;  %1200 = vrot.lane.b32.xlu1 %v1023_v7, %s8779_s26 }
 0x153   :  { %969 = vst.msk [vmem:[#allocation2 + $0x1b0] sm:$0x1] %vm941_vm6, %v15003_v2 }
 0x154   :  { %v805_v14 = vpop.permute.xlu0 %804  ;;  %v807_v15 = vpop.permute.xlu1 %806 }
 0x155   :  { %933 = vst.msk [vmem:[#allocation2 + $0x1c0] sm:$0xff] %vm542_vm5, %v805_v14 }
 0x156   :  { %934 = vst.msk [vmem:[#allocation2 + $0x1c8] sm:$0x7f] %vm881_vm7, %v807_v15  ;;  %1202 = vrot.lane.b32.xlu0 %v10135_v11, %s8779_s26  ;;  %1204 = vrot.lane.b32.xlu1 %v1025_v12, %s8779_s26 }
 0x157   :  { %970 = vst.msk [vmem:[#allocation2 + $0x1c0] sm:$0x1] %vm941_vm6, %v15003_v2 }
 0x158   :  { %v809_v19 = vpop.permute.xlu0 %808  ;;  %v811_v20 = vpop.permute.xlu1 %810 }
 0x159   :  { %935 = vst.msk [vmem:[#allocation2 + $0x1d0] sm:$0xff] %vm542_vm5, %v809_v19 }
 0x15a   :  { %936 = vst.msk [vmem:[#allocation2 + $0x1d8] sm:$0x7f] %vm881_vm7, %v811_v20  ;;  %1206 = vrot.lane.b32.xlu0 %v10150_v16, %s8779_s26  ;;  %1208 = vrot.lane.b32.xlu1 %v1027_v18, %s8779_s26 }
 0x15b   :  { %971 = vst.msk [vmem:[#allocation2 + $0x1d0] sm:$0x1] %vm941_vm6, %v15003_v2 }
 0x15c   :  { %v813_v25 = vpop.permute.xlu0 %812  ;;  %v815_v27 = vpop.permute.xlu1 %814 }
 0x15d   :  { %937 = vst.msk [vmem:[#allocation2 + $0x1e0] sm:$0xff] %vm542_vm5, %v813_v25 }
 0x15e   :  { %938 = vst.msk [vmem:[#allocation2 + $0x1e8] sm:$0x7f] %vm881_vm7, %v815_v27  ;;  %1210 = vrot.lane.b32.xlu0 %v10165_v22, %s8779_s26  ;;  %1212 = vrot.lane.b32.xlu1 %v1029_v23, %s8779_s26 }
 0x15f   :  { %972 = vst.msk [vmem:[#allocation2 + $0x1e0] sm:$0x1] %vm941_vm6, %v15003_v2 }
 0x160   :  { %v817_v33 = vpop.permute.xlu0 %816  ;;  %v819_v34 = vpop.permute.xlu1 %818 }
 0x161   :  { %939 = vst.msk [vmem:[#allocation2 + $0x1f0] sm:$0xff] %vm542_vm5, %v817_v33 }
 0x162   :  { %940 = vst.msk [vmem:[#allocation2 + $0x1f8] sm:$0x7f] %vm881_vm7, %v819_v34  ;;  %1214 = vrot.lane.b32.xlu0 %v10180_v29, %s8779_s26  ;;  %1216 = vrot.lane.b32.xlu1 %v1031_v30, %s8779_s26  ;;  %vm2565_vm7 = vcmask 261344  }
 0x163   :  { %973 = vst.msk [vmem:[#allocation2 + $0x1f0] sm:$0x1] %vm941_vm6, %v15003_v2 }
 0x164   :  { %v1103_v39 = vpop.permute.xlu0 %1102  ;;  %v1105_v41 = vpop.permute.xlu1 %1104 }
 0x165   :  { %1295 = vst.msk [vmem:[#allocation2 + $0x1] sm:$0xff] %vm15000_vm8, %v1103_v39 }
 0x166   :  { %1297 = vst.msk [vmem:[#allocation2 + $0x9] sm:$0x7f] %vm1296_vm9, %v1105_v41  ;;  %1218 = vrot.lane.b32.xlu0 %v10195_v35, %s8779_s26  ;;  %1220 = vrot.lane.b32.xlu1 %v1033_v38, %s8779_s26 }
 0x168   :  { %v1107_v46 = vpop.permute.xlu0 %1106  ;;  %v1109_v49 = vpop.permute.xlu1 %1108 }
 0x169   :  { %1298 = vst.msk [vmem:[#allocation2 + $0x11] sm:$0xff] %vm15000_vm8, %v1107_v46 }
 0x16a   :  { %1299 = vst.msk [vmem:[#allocation2 + $0x19] sm:$0x7f] %vm1296_vm9, %v1109_v49  ;;  %1222 = vrot.lane.b32.xlu0 %v10208_v43, %s8779_s26  ;;  %1224 = vrot.lane.b32.xlu1 %v1035_v45, %s8779_s26 }
 0x16c   :  { %v1111_v54 = vpop.permute.xlu0 %1110  ;;  %v1113_v55 = vpop.permute.xlu1 %1112 }
 0x16d   :  { %1300 = vst.msk [vmem:[#allocation2 + $0x21] sm:$0xff] %vm15000_vm8, %v1111_v54 }
 0x16e   :  { %1301 = vst.msk [vmem:[#allocation2 + $0x29] sm:$0x7f] %vm1296_vm9, %v1113_v55  ;;  %1226 = vrot.lane.b32.xlu0 %v10221_v50, %s8779_s26  ;;  %1228 = vrot.lane.b32.xlu1 %v1037_v51, %s8779_s26 }
 0x170   :  { %v1115_v59 = vpop.permute.xlu0 %1114  ;;  %v1117_v61 = vpop.permute.xlu1 %1116 }
 0x171   :  { %1302 = vst.msk [vmem:[#allocation2 + $0x31] sm:$0xff] %vm15000_vm8, %v1115_v59 }
 0x172   :  { %1303 = vst.msk [vmem:[#allocation2 + $0x39] sm:$0x7f] %vm1296_vm9, %v1117_v61  ;;  %1488 = vrot.lane.b32.xlu0 %v9760_v24, %s8780_s12  ;;  %1490 = vrot.lane.b32.xlu1 %v1361_v57, %s8780_s12  ;;  %v1365_v24 = vld [vmem:[%s14993_s0 + $0x28] sm:$0xff] }
 0x174   :  { %v1119_v1 = vpop.permute.xlu0 %1118  ;;  %v1121_v3 = vpop.permute.xlu1 %1120 }
 0x175   :  { %1304 = vst.msk [vmem:[#allocation2 + $0x41] sm:$0xff] %vm15000_vm8, %v1119_v1 }
 0x176   :  { %1305 = vst.msk [vmem:[#allocation2 + $0x49] sm:$0x7f] %vm1296_vm9, %v1121_v3  ;;  %1492 = vrot.lane.b32.xlu0 %v9775_v28, %s8780_s12  ;;  %1494 = vrot.lane.b32.xlu1 %v1363_v62, %s8780_s12  ;;  %v1367_v28 = vld [vmem:[%s14993_s0 + $0x38] sm:$0xff] }
 0x178   :  { %v1123_v4 = vpop.permute.xlu0 %1122  ;;  %v1125_v7 = vpop.permute.xlu1 %1124 }
 0x179   :  { %1306 = vst.msk [vmem:[#allocation2 + $0x51] sm:$0xff] %vm15000_vm8, %v1123_v4 }
 0x17a   :  { %1307 = vst.msk [vmem:[#allocation2 + $0x59] sm:$0x7f] %vm1296_vm9, %v1125_v7  ;;  %1496 = vrot.lane.b32.xlu0 %v9790_v32, %s8780_s12  ;;  %1498 = vrot.lane.b32.xlu1 %v1365_v24, %s8780_s12  ;;  %v1369_v32 = vld [vmem:[%s14993_s0 + $0x48] sm:$0xff] }
 0x17c   :  { %v1127_v8 = vpop.permute.xlu0 %1126  ;;  %v1129_v10 = vpop.permute.xlu1 %1128 }
 0x17d   :  { %1308 = vst.msk [vmem:[#allocation2 + $0x61] sm:$0xff] %vm15000_vm8, %v1127_v8 }
 0x17e   :  { %1309 = vst.msk [vmem:[#allocation2 + $0x69] sm:$0x7f] %vm1296_vm9, %v1129_v10  ;;  %1500 = vrot.lane.b32.xlu0 %v9805_v36, %s8780_s12  ;;  %1502 = vrot.lane.b32.xlu1 %v1367_v28, %s8780_s12  ;;  %v1371_v36 = vld [vmem:[%s14993_s0 + $0x58] sm:$0xff] }
 0x180   :  { %v1131_v12 = vpop.permute.xlu0 %1130  ;;  %v1133_v14 = vpop.permute.xlu1 %1132 }
 0x181   :  { %1310 = vst.msk [vmem:[#allocation2 + $0x71] sm:$0xff] %vm15000_vm8, %v1131_v12 }
 0x182   :  { %1311 = vst.msk [vmem:[#allocation2 + $0x79] sm:$0x7f] %vm1296_vm9, %v1133_v14  ;;  %1504 = vrot.lane.b32.xlu0 %v9820_v40, %s8780_s12  ;;  %1506 = vrot.lane.b32.xlu1 %v1369_v32, %s8780_s12  ;;  %v1373_v40 = vld [vmem:[%s14993_s0 + $0x68] sm:$0xff] }
 0x184   :  { %v1135_v15 = vpop.permute.xlu0 %1134  ;;  %v1137_v18 = vpop.permute.xlu1 %1136 }
 0x185   :  { %1312 = vst.msk [vmem:[#allocation2 + $0x81] sm:$0xff] %vm15000_vm8, %v1135_v15 }
 0x186   :  { %1313 = vst.msk [vmem:[#allocation2 + $0x89] sm:$0x7f] %vm1296_vm9, %v1137_v18  ;;  %1508 = vrot.lane.b32.xlu0 %v9835_v44, %s8780_s12  ;;  %1510 = vrot.lane.b32.xlu1 %v1371_v36, %s8780_s12  ;;  %v1375_v44 = vld [vmem:[%s14993_s0 + $0x78] sm:$0xff] }
 0x188   :  { %v1139_v19 = vpop.permute.xlu0 %1138  ;;  %v1141_v20 = vpop.permute.xlu1 %1140 }
 0x189   :  { %1314 = vst.msk [vmem:[#allocation2 + $0x91] sm:$0xff] %vm15000_vm8, %v1139_v19 }
 0x18a   :  { %1315 = vst.msk [vmem:[#allocation2 + $0x99] sm:$0x7f] %vm1296_vm9, %v1141_v20  ;;  %1512 = vrot.lane.b32.xlu0 %v9850_v48, %s8780_s12  ;;  %1514 = vrot.lane.b32.xlu1 %v1373_v40, %s8780_s12  ;;  %v1377_v48 = vld [vmem:[%s14993_s0 + $0x88] sm:$0xff] }
 0x18c   :  { %v1143_v23 = vpop.permute.xlu0 %1142  ;;  %v1145_v25 = vpop.permute.xlu1 %1144 }
 0x18d   :  { %1316 = vst.msk [vmem:[#allocation2 + $0xa1] sm:$0xff] %vm15000_vm8, %v1143_v23 }
 0x18e   :  { %1317 = vst.msk [vmem:[#allocation2 + $0xa9] sm:$0x7f] %vm1296_vm9, %v1145_v25  ;;  %1516 = vrot.lane.b32.xlu0 %v9865_v52, %s8780_s12  ;;  %1518 = vrot.lane.b32.xlu1 %v1375_v44, %s8780_s12  ;;  %v1379_v52 = vld [vmem:[%s14993_s0 + $0x98] sm:$0xff] }
 0x190   :  { %v1147_v27 = vpop.permute.xlu0 %1146  ;;  %v1149_v30 = vpop.permute.xlu1 %1148 }
 0x191   :  { %1318 = vst.msk [vmem:[#allocation2 + $0xb1] sm:$0xff] %vm15000_vm8, %v1147_v27 }
 0x192   :  { %1319 = vst.msk [vmem:[#allocation2 + $0xb9] sm:$0x7f] %vm1296_vm9, %v1149_v30  ;;  %1520 = vrot.lane.b32.xlu0 %v9880_v56, %s8780_s12  ;;  %1522 = vrot.lane.b32.xlu1 %v1377_v48, %s8780_s12  ;;  %v1381_v56 = vld [vmem:[%s14993_s0 + $0xa8] sm:$0xff] }
 0x194   :  { %v1151_v33 = vpop.permute.xlu0 %1150  ;;  %v1153_v34 = vpop.permute.xlu1 %1152 }
 0x195   :  { %1320 = vst.msk [vmem:[#allocation2 + $0xc1] sm:$0xff] %vm15000_vm8, %v1151_v33 }
 0x196   :  { %1321 = vst.msk [vmem:[#allocation2 + $0xc9] sm:$0x7f] %vm1296_vm9, %v1153_v34  ;;  %1524 = vrot.lane.b32.xlu0 %v9895_v60, %s8780_s12  ;;  %1526 = vrot.lane.b32.xlu1 %v1379_v52, %s8780_s12  ;;  %v1383_v60 = vld [vmem:[%s14993_s0 + $0xb8] sm:$0xff] }
 0x198   :  { %v1155_v38 = vpop.permute.xlu0 %1154  ;;  %v1157_v39 = vpop.permute.xlu1 %1156 }
 0x199   :  { %1322 = vst.msk [vmem:[#allocation2 + $0xd1] sm:$0xff] %vm15000_vm8, %v1155_v38 }
 0x19a   :  { %1323 = vst.msk [vmem:[#allocation2 + $0xd9] sm:$0x7f] %vm1296_vm9, %v1157_v39  ;;  %1528 = vrot.lane.b32.xlu0 %v9910_v0, %s8780_s12  ;;  %1530 = vrot.lane.b32.xlu1 %v1381_v56, %s8780_s12  ;;  %v1385_v0 = vld [vmem:[%s14993_s0 + $0xc8] sm:$0xff] }
 0x19c   :  { %v1159_v41 = vpop.permute.xlu0 %1158  ;;  %v1161_v45 = vpop.permute.xlu1 %1160 }
 0x19d   :  { %1324 = vst.msk [vmem:[#allocation2 + $0xe1] sm:$0xff] %vm15000_vm8, %v1159_v41 }
 0x19e   :  { %1325 = vst.msk [vmem:[#allocation2 + $0xe9] sm:$0x7f] %vm1296_vm9, %v1161_v45  ;;  %1532 = vrot.lane.b32.xlu0 %v9925_v5, %s8780_s12  ;;  %1534 = vrot.lane.b32.xlu1 %v1383_v60, %s8780_s12  ;;  %v1387_v5 = vld [vmem:[%s14993_s0 + $0xd8] sm:$0xff]  ;;  %v1779_v45 = vld [vmem:[%s14993_s0 + $0x9] sm:$0x7f] }
 0x1a0   :  { %v1163_v46 = vpop.permute.xlu0 %1162  ;;  %v1165_v49 = vpop.permute.xlu1 %1164 }
 0x1a1   :  { %1326 = vst.msk [vmem:[#allocation2 + $0xf1] sm:$0xff] %vm15000_vm8, %v1163_v46 }
 0x1a2   :  { %1327 = vst.msk [vmem:[#allocation2 + $0xf9] sm:$0x7f] %vm1296_vm9, %v1165_v49  ;;  %1536 = vrot.lane.b32.xlu0 %v9940_v9, %s8780_s12  ;;  %1538 = vrot.lane.b32.xlu1 %v1385_v0, %s8780_s12  ;;  %v1389_v9 = vld [vmem:[%s14993_s0 + $0xe8] sm:$0xff]  ;;  %v1781_v49 = vld [vmem:[%s14993_s0 + $0x19] sm:$0x7f] }
 0x1a4   :  { %v1167_v51 = vpop.permute.xlu0 %1166  ;;  %v1169_v54 = vpop.permute.xlu1 %1168 }
 0x1a5   :  { %1328 = vst.msk [vmem:[#allocation2 + $0x101] sm:$0xff] %vm15000_vm8, %v1167_v51 }
 0x1a6   :  { %1329 = vst.msk [vmem:[#allocation2 + $0x109] sm:$0x7f] %vm1296_vm9, %v1169_v54  ;;  %1540 = vrot.lane.b32.xlu0 %v9955_v13, %s8780_s12  ;;  %1542 = vrot.lane.b32.xlu1 %v1387_v5, %s8780_s12  ;;  %v1391_v13 = vld [vmem:[%s14993_s0 + $0xf8] sm:$0xff]  ;;  %v1782_v54 = vld [vmem:[%s14993_s0 + $0x21] sm:$0xff] }
 0x1a8   :  { %v1171_v55 = vpop.permute.xlu0 %1170  ;;  %v1173_v57 = vpop.permute.xlu1 %1172 }
 0x1a9   :  { %1330 = vst.msk [vmem:[#allocation2 + $0x111] sm:$0xff] %vm15000_vm8, %v1171_v55 }
 0x1aa   :  { %1331 = vst.msk [vmem:[#allocation2 + $0x119] sm:$0x7f] %vm1296_vm9, %v1173_v57  ;;  %1544 = vrot.lane.b32.xlu0 %v9970_v17, %s8780_s12  ;;  %1546 = vrot.lane.b32.xlu1 %v1389_v9, %s8780_s12  ;;  %v1393_v17 = vld [vmem:[%s14993_s0 + $0x108] sm:$0xff] }
 0x1ab   :  { %v1783_v9 = vld [vmem:[%s14993_s0 + $0x29] sm:$0x7f] }
 0x1ac   :  { %v1175_v59 = vpop.permute.xlu0 %1174  ;;  %v1177_v61 = vpop.permute.xlu1 %1176 }
 0x1ad   :  { %1332 = vst.msk [vmem:[#allocation2 + $0x121] sm:$0xff] %vm15000_vm8, %v1175_v59  ;;  %v1785_v59 = vld [vmem:[%s14993_s0 + $0x39] sm:$0x7f] }
 0x1ae   :  { %1333 = vst.msk [vmem:[#allocation2 + $0x129] sm:$0x7f] %vm1296_vm9, %v1177_v61  ;;  %1548 = vrot.lane.b32.xlu0 %v9985_v21, %s8780_s12  ;;  %1550 = vrot.lane.b32.xlu1 %v1391_v13, %s8780_s12  ;;  %v1395_v21 = vld [vmem:[%s14993_s0 + $0x118] sm:$0xff] }
 0x1af   :  { %v1784_v13 = vld [vmem:[%s14993_s0 + $0x31] sm:$0xff] }
 0x1b0   :  { %v1179_v62 = vpop.permute.xlu0 %1178  ;;  %v1181_v1 = vpop.permute.xlu1 %1180 }
 0x1b1   :  { %1334 = vst.msk [vmem:[#allocation2 + $0x131] sm:$0xff] %vm15000_vm8, %v1179_v62  ;;  %v1786_v62 = vld [vmem:[%s14993_s0 + $0x41] sm:$0xff] }
 0x1b2   :  { %1335 = vst.msk [vmem:[#allocation2 + $0x139] sm:$0x7f] %vm1296_vm9, %v1181_v1  ;;  %1552 = vrot.lane.b32.xlu0 %v10000_v26, %s8780_s12  ;;  %1554 = vrot.lane.b32.xlu1 %v1393_v17, %s8780_s12  ;;  %v1397_v26 = vld [vmem:[%s14993_s0 + $0x128] sm:$0xff] }
 0x1b3   :  { %v1787_v1 = vld [vmem:[%s14993_s0 + $0x49] sm:$0x7f] }
 0x1b4   :  { %v1183_v3 = vpop.permute.xlu0 %1182  ;;  %v1185_v24 = vpop.permute.xlu1 %1184 }
 0x1b5   :  { %1336 = vst.msk [vmem:[#allocation2 + $0x141] sm:$0xff] %vm15000_vm8, %v1183_v3 }
 0x1b6   :  { %1337 = vst.msk [vmem:[#allocation2 + $0x149] sm:$0x7f] %vm1296_vm9, %v1185_v24  ;;  %1556 = vrot.lane.b32.xlu0 %v10015_v31, %s8780_s12  ;;  %1558 = vrot.lane.b32.xlu1 %v1395_v21, %s8780_s12  ;;  %v1399_v31 = vld [vmem:[%s14993_s0 + $0x138] sm:$0xff] }
 0x1b7   :  { %v1788_v24 = vld [vmem:[%s14993_s0 + $0x51] sm:$0xff] }
 0x1b8   :  { %v1187_v4 = vpop.permute.xlu0 %1186  ;;  %v1189_v7 = vpop.permute.xlu1 %1188 }
 0x1b9   :  { %1338 = vst.msk [vmem:[#allocation2 + $0x151] sm:$0xff] %vm15000_vm8, %v1187_v4 }
 0x1ba   :  { %1339 = vst.msk [vmem:[#allocation2 + $0x159] sm:$0x7f] %vm1296_vm9, %v1189_v7  ;;  %1560 = vrot.lane.b32.xlu0 %v10030_v37, %s8780_s12  ;;  %1562 = vrot.lane.b32.xlu1 %v1397_v26, %s8780_s12  ;;  %v1401_v37 = vld [vmem:[%s14993_s0 + $0x148] sm:$0xff]  ;;  %v1789_v26 = vld [vmem:[%s14993_s0 + $0x59] sm:$0x7f] }
 0x1bc   :  { %v1191_v28 = vpop.permute.xlu0 %1190  ;;  %v1193_v8 = vpop.permute.xlu1 %1192 }
 0x1bd   :  { %1340 = vst.msk [vmem:[#allocation2 + $0x161] sm:$0xff] %vm15000_vm8, %v1191_v28  ;;  %v1791_v28 = vld [vmem:[%s14993_s0 + $0x69] sm:$0x7f] }
 0x1be   :  { %1341 = vst.msk [vmem:[#allocation2 + $0x169] sm:$0x7f] %vm1296_vm9, %v1193_v8  ;;  %1564 = vrot.lane.b32.xlu0 %v10045_v42, %s8780_s12  ;;  %1566 = vrot.lane.b32.xlu1 %v1399_v31, %s8780_s12  ;;  %v1403_v42 = vld [vmem:[%s14993_s0 + $0x158] sm:$0xff]  ;;  %v1790_v31 = vld [vmem:[%s14993_s0 + $0x61] sm:$0xff] }
 0x1c0   :  { %v1195_v10 = vpop.permute.xlu0 %1194  ;;  %v1197_v32 = vpop.permute.xlu1 %1196 }
 0x1c1   :  { %1342 = vst.msk [vmem:[#allocation2 + $0x171] sm:$0xff] %vm15000_vm8, %v1195_v10  ;;  %v1792_v10 = vld [vmem:[%s14993_s0 + $0x71] sm:$0xff] }
 0x1c2   :  { %1343 = vst.msk [vmem:[#allocation2 + $0x179] sm:$0x7f] %vm1296_vm9, %v1197_v32  ;;  %1568 = vrot.lane.b32.xlu0 %v10060_v47, %s8780_s12  ;;  %1570 = vrot.lane.b32.xlu1 %v1401_v37, %s8780_s12  ;;  %v1405_v47 = vld [vmem:[%s14993_s0 + $0x168] sm:$0xff]  ;;  %v1793_v32 = vld [vmem:[%s14993_s0 + $0x79] sm:$0x7f] }
 0x1c4   :  { %v1199_v12 = vpop.permute.xlu0 %1198  ;;  %v1201_v14 = vpop.permute.xlu1 %1200 }
 0x1c5   :  { %1344 = vst.msk [vmem:[#allocation2 + $0x181] sm:$0xff] %vm15000_vm8, %v1199_v12 }
 0x1c6   :  { %1345 = vst.msk [vmem:[#allocation2 + $0x189] sm:$0x7f] %vm1296_vm9, %v1201_v14  ;;  %1572 = vrot.lane.b32.xlu0 %v10075_v53, %s8780_s12  ;;  %1574 = vrot.lane.b32.xlu1 %v1403_v42, %s8780_s12  ;;  %v1407_v53 = vld [vmem:[%s14993_s0 + $0x178] sm:$0xff]  ;;  %v1794_v14 = vld [vmem:[%s14993_s0 + $0x81] sm:$0xff] }
 0x1c8   :  { %v1203_v36 = vpop.permute.xlu0 %1202  ;;  %v1205_v15 = vpop.permute.xlu1 %1204 }
 0x1c9   :  { %1346 = vst.msk [vmem:[#allocation2 + $0x191] sm:$0xff] %vm15000_vm8, %v1203_v36 }
 0x1ca   :  { %1347 = vst.msk [vmem:[#allocation2 + $0x199] sm:$0x7f] %vm1296_vm9, %v1205_v15  ;;  %1576 = vrot.lane.b32.xlu0 %v10090_v58, %s8780_s12  ;;  %1578 = vrot.lane.b32.xlu1 %v1405_v47, %s8780_s12  ;;  %v1409_v58 = vld [vmem:[%s14993_s0 + $0x188] sm:$0xff] }
 0x1cb   :  { %v1795_v47 = vld [vmem:[%s14993_s0 + $0x89] sm:$0x7f] }
 0x1cc   :  { %v1207_v18 = vpop.permute.xlu0 %1206  ;;  %v1209_v40 = vpop.permute.xlu1 %1208 }
 0x1cd   :  { %1348 = vst.msk [vmem:[#allocation2 + $0x1a1] sm:$0xff] %vm15000_vm8, %v1207_v18  ;;  %v1797_v18 = vld [vmem:[%s14993_s0 + $0x99] sm:$0x7f] }
 0x1ce   :  { %1349 = vst.msk [vmem:[#allocation2 + $0x1a9] sm:$0x7f] %vm1296_vm9, %v1209_v40  ;;  %1580 = vrot.lane.b32.xlu0 %v10105_v63, %s8780_s12  ;;  %1582 = vrot.lane.b32.xlu1 %v1407_v53, %s8780_s12  ;;  %v1411_v63 = vld [vmem:[%s14993_s0 + $0x198] sm:$0xff] }
 0x1cf   :  { %v1796_v53 = vld [vmem:[%s14993_s0 + $0x91] sm:$0xff] }
 0x1d0   :  { %v1211_v19 = vpop.permute.xlu0 %1210  ;;  %v1213_v20 = vpop.permute.xlu1 %1212 }
 0x1d1   :  { %1350 = vst.msk [vmem:[#allocation2 + $0x1b1] sm:$0xff] %vm15000_vm8, %v1211_v19  ;;  %v1798_v19 = vld [vmem:[%s14993_s0 + $0xa1] sm:$0xff] }
 0x1d2   :  { %1351 = vst.msk [vmem:[#allocation2 + $0x1b9] sm:$0x7f] %vm1296_vm9, %v1213_v20  ;;  %1584 = vrot.lane.b32.xlu0 %v10120_v6, %s8780_s12  ;;  %1586 = vrot.lane.b32.xlu1 %v1409_v58, %s8780_s12  ;;  %v1413_v6 = vld [vmem:[%s14993_s0 + $0x1a8] sm:$0xff] }
 0x1d3   :  { %v1799_v20 = vld [vmem:[%s14993_s0 + $0xa9] sm:$0x7f] }
 0x1d4   :  { %v1215_v44 = vpop.permute.xlu0 %1214  ;;  %v1217_v23 = vpop.permute.xlu1 %1216 }
 0x1d5   :  { %1352 = vst.msk [vmem:[#allocation2 + $0x1c1] sm:$0xff] %vm15000_vm8, %v1215_v44 }
 0x1d6   :  { %1353 = vst.msk [vmem:[#allocation2 + $0x1c9] sm:$0x7f] %vm1296_vm9, %v1217_v23  ;;  %1588 = vrot.lane.b32.xlu0 %v10135_v11, %s8780_s12  ;;  %1590 = vrot.lane.b32.xlu1 %v1411_v63, %s8780_s12  ;;  %v1415_v11 = vld [vmem:[%s14993_s0 + $0x1b8] sm:$0xff] }
 0x1d7   :  { %v1800_v23 = vld [vmem:[%s14993_s0 + $0xb1] sm:$0xff] }
 0x1d8   :  { %v1219_v25 = vpop.permute.xlu0 %1218  ;;  %v1221_v48 = vpop.permute.xlu1 %1220 }
 0x1d9   :  { %1354 = vst.msk [vmem:[#allocation2 + $0x1d1] sm:$0xff] %vm15000_vm8, %v1219_v25 }
 0x1da   :  { %1355 = vst.msk [vmem:[#allocation2 + $0x1d9] sm:$0x7f] %vm1296_vm9, %v1221_v48  ;;  %1592 = vrot.lane.b32.xlu0 %v10150_v16, %s8780_s12  ;;  %1594 = vrot.lane.b32.xlu1 %v1413_v6, %s8780_s12  ;;  %v1417_v16 = vld [vmem:[%s14993_s0 + $0x1c8] sm:$0xff]  ;;  %v1801_v6 = vld [vmem:[%s14993_s0 + $0xb9] sm:$0x7f] }
 0x1dc   :  { %v1223_v27 = vpop.permute.xlu0 %1222  ;;  %v1225_v30 = vpop.permute.xlu1 %1224 }
 0x1dd   :  { %1356 = vst.msk [vmem:[#allocation2 + $0x1e1] sm:$0xff] %vm15000_vm8, %v1223_v27  ;;  %v1803_v27 = vld [vmem:[%s14993_s0 + $0xc9] sm:$0x7f] }
 0x1de   :  { %1357 = vst.msk [vmem:[#allocation2 + $0x1e9] sm:$0x7f] %vm1296_vm9, %v1225_v30  ;;  %1596 = vrot.lane.b32.xlu0 %v10165_v22, %s8780_s12  ;;  %1598 = vrot.lane.b32.xlu1 %v1415_v11, %s8780_s12  ;;  %v1419_v22 = vld [vmem:[%s14993_s0 + $0x1d8] sm:$0xff]  ;;  %v1802_v11 = vld [vmem:[%s14993_s0 + $0xc1] sm:$0xff] }
 0x1e0   :  { %v1227_v52 = vpop.permute.xlu0 %1226  ;;  %v1229_v33 = vpop.permute.xlu1 %1228 }
 0x1e1   :  { %1358 = vst.msk [vmem:[#allocation2 + $0x1f1] sm:$0xff] %vm15000_vm8, %v1227_v52  ;;  %v1804_v52 = vld [vmem:[%s14993_s0 + $0xd1] sm:$0xff]  ;;  %vm15001_vm8 = vcmask 227520  }
 0x1e2   :  { %1359 = vst.msk [vmem:[#allocation2 + $0x1f9] sm:$0x7f] %vm1296_vm9, %v1229_v33  ;;  %1600 = vrot.lane.b32.xlu0 %v10180_v29, %s8780_s12  ;;  %1602 = vrot.lane.b32.xlu1 %v1417_v16, %s8780_s12  ;;  %v1421_v29 = vld [vmem:[%s14993_s0 + $0x1e8] sm:$0xff]  ;;  %v1805_v33 = vld [vmem:[%s14993_s0 + $0xd9] sm:$0x7f] }
 0x1e4   :  { %v1489_v34 = vpop.permute.xlu0 %1488  ;;  %v1491_v56 = vpop.permute.xlu1 %1490 }
 0x1e5   :  { %1681 = vst.msk [vmem:[#allocation2] sm:$0xff] %vm14999_vm10, %v1489_v34  ;;  %1682 = vst.msk [vmem:[#allocation2 + $0x8] sm:$0xff] %vm14999_vm10, %v1491_v56  ;;  %v1806_v56 = vld [vmem:[%s14993_s0 + $0xe1] sm:$0xff] }
 0x1e6   :  { %1746 = vst.msk [vmem:[#allocation2 + $0xf] sm:$0x1] %vm14998_vm11, %v15003_v2  ;;  %1604 = vrot.lane.b32.xlu0 %v10195_v35, %s8780_s12  ;;  %1606 = vrot.lane.b32.xlu1 %v1419_v22, %s8780_s12  ;;  %v1423_v35 = vld [vmem:[%s14993_s0 + $0x1f8] sm:$0xff] }
 0x1e8   :  { %v1493_v38 = vpop.permute.xlu0 %1492  ;;  %v1495_v39 = vpop.permute.xlu1 %1494 }
 0x1e9   :  { %1683 = vst.msk [vmem:[#allocation2 + $0x10] sm:$0xff] %vm14999_vm10, %v1493_v38  ;;  %1684 = vst.msk [vmem:[#allocation2 + $0x18] sm:$0xff] %vm14999_vm10, %v1495_v39 }
 0x1ea   :  { %1747 = vst.msk [vmem:[#allocation2 + $0x1f] sm:$0x1] %vm14998_vm11, %v15003_v2  ;;  %1608 = vrot.lane.b32.xlu0 %v10208_v43, %s8780_s12  ;;  %1610 = vrot.lane.b32.xlu1 %v1421_v29, %s8780_s12  ;;  %v1778_v43 = vld [vmem:[%s14993_s0 + $0x1] sm:$0xff]  ;;  %v1807_v29 = vld [vmem:[%s14993_s0 + $0xe9] sm:$0x7f] }
 0x1ec   :  { %v1497_v60 = vpop.permute.xlu0 %1496  ;;  %v1499_v41 = vpop.permute.xlu1 %1498 }
 0x1ed   :  { %1685 = vst.msk [vmem:[#allocation2 + $0x20] sm:$0xff] %vm14999_vm10, %v1497_v60  ;;  %1686 = vst.msk [vmem:[#allocation2 + $0x28] sm:$0xff] %vm14999_vm10, %v1499_v41  ;;  %v1809_v60 = vld [vmem:[%s14993_s0 + $0xf9] sm:$0x7f] }
 0x1ee   :  { %1748 = vst.msk [vmem:[#allocation2 + $0x2f] sm:$0x1] %vm14998_vm11, %v15003_v2  ;;  %1612 = vrot.lane.b32.xlu0 %v10221_v50, %s8780_s12  ;;  %1614 = vrot.lane.b32.xlu1 %v1423_v35, %s8780_s12  ;;  %v1780_v50 = vld [vmem:[%s14993_s0 + $0x11] sm:$0xff] }
 0x1ef   :  { %v1808_v35 = vld [vmem:[%s14993_s0 + $0xf1] sm:$0xff] }
 0x1f0   :  { %v1501_v0 = vpop.permute.xlu0 %1500  ;;  %v1503_v46 = vpop.permute.xlu1 %1502 }
 0x1f1   :  { %1687 = vst.msk [vmem:[#allocation2 + $0x30] sm:$0xff] %vm14999_vm10, %v1501_v0  ;;  %1688 = vst.msk [vmem:[#allocation2 + $0x38] sm:$0xff] %vm14999_vm10, %v1503_v46  ;;  %v1811_v0 = vld [vmem:[%s14993_s0 + $0x109] sm:$0x7f] }
 0x1f2   :  { %1749 = vst.msk [vmem:[#allocation2 + $0x3f] sm:$0x1] %vm14998_vm11, %v15003_v2  ;;  %1906 = vrot.lane.b32.xlu0 %v1778_v43, %s8781_s13  ;;  %1908 = vrot.lane.b32.xlu1 %v1779_v45, %s8781_s13  ;;  %v1810_v45 = vld [vmem:[%s14993_s0 + $0x101] sm:$0xff] }
 0x1f4   :  { %v1505_v5 = vpop.permute.xlu0 %1504  ;;  %v1507_v51 = vpop.permute.xlu1 %1506 }
 0x1f5   :  { %1689 = vst.msk [vmem:[#allocation2 + $0x40] sm:$0xff] %vm14999_vm10, %v1505_v5  ;;  %1690 = vst.msk [vmem:[#allocation2 + $0x48] sm:$0xff] %vm14999_vm10, %v1507_v51  ;;  %v1813_v5 = vld [vmem:[%s14993_s0 + $0x119] sm:$0x7f] }
 0x1f6   :  { %1750 = vst.msk [vmem:[#allocation2 + $0x4f] sm:$0x1] %vm14998_vm11, %v15003_v2  ;;  %1910 = vrot.lane.b32.xlu0 %v1780_v50, %s8781_s13  ;;  %1912 = vrot.lane.b32.xlu1 %v1781_v49, %s8781_s13  ;;  %v1812_v49 = vld [vmem:[%s14993_s0 + $0x111] sm:$0xff] }
 0x1f8   :  { %v1509_v55 = vpop.permute.xlu0 %1508  ;;  %v1511_v57 = vpop.permute.xlu1 %1510 }
 0x1f9   :  { %1691 = vst.msk [vmem:[#allocation2 + $0x50] sm:$0xff] %vm14999_vm10, %v1509_v55  ;;  %1692 = vst.msk [vmem:[#allocation2 + $0x58] sm:$0xff] %vm14999_vm10, %v1511_v57  ;;  %v1815_v55 = vld [vmem:[%s14993_s0 + $0x129] sm:$0x7f] }
 0x1fa   :  { %1751 = vst.msk [vmem:[#allocation2 + $0x5f] sm:$0x1] %vm14998_vm11, %v15003_v2  ;;  %1914 = vrot.lane.b32.xlu0 %v1782_v54, %s8781_s13  ;;  %1916 = vrot.lane.b32.xlu1 %v1783_v9, %s8781_s13  ;;  %v1814_v9 = vld [vmem:[%s14993_s0 + $0x121] sm:$0xff] }
 0x1fc   :  { %v1513_v61 = vpop.permute.xlu0 %1512  ;;  %v1515_v17 = vpop.permute.xlu1 %1514 }
 0x1fd   :  { %1693 = vst.msk [vmem:[#allocation2 + $0x60] sm:$0xff] %vm14999_vm10, %v1513_v61  ;;  %1694 = vst.msk [vmem:[#allocation2 + $0x68] sm:$0xff] %vm14999_vm10, %v1515_v17  ;;  %v1817_v61 = vld [vmem:[%s14993_s0 + $0x139] sm:$0x7f] }
 0x1fe   :  { %1752 = vst.msk [vmem:[#allocation2 + $0x6f] sm:$0x1] %vm14998_vm11, %v15003_v2  ;;  %1918 = vrot.lane.b32.xlu0 %v1784_v13, %s8781_s13  ;;  %1920 = vrot.lane.b32.xlu1 %v1785_v59, %s8781_s13  ;;  %v1816_v59 = vld [vmem:[%s14993_s0 + $0x131] sm:$0xff] }
 0x200   :  { %v1517_v21 = vpop.permute.xlu0 %1516  ;;  %v1519_v3 = vpop.permute.xlu1 %1518 }
 0x201   :  { %1695 = vst.msk [vmem:[#allocation2 + $0x70] sm:$0xff] %vm14999_vm10, %v1517_v21  ;;  %1696 = vst.msk [vmem:[#allocation2 + $0x78] sm:$0xff] %vm14999_vm10, %v1519_v3  ;;  %v1819_v21 = vld [vmem:[%s14993_s0 + $0x149] sm:$0x7f] }
 0x202   :  { %1753 = vst.msk [vmem:[#allocation2 + $0x7f] sm:$0x1] %vm14998_vm11, %v15003_v2  ;;  %1922 = vrot.lane.b32.xlu0 %v1786_v62, %s8781_s13  ;;  %1924 = vrot.lane.b32.xlu1 %v1787_v1, %s8781_s13  ;;  %v1818_v1 = vld [vmem:[%s14993_s0 + $0x141] sm:$0xff] }
 0x204   :  { %v1521_v4 = vpop.permute.xlu0 %1520  ;;  %v1523_v7 = vpop.permute.xlu1 %1522 }
 0x205   :  { %1697 = vst.msk [vmem:[#allocation2 + $0x80] sm:$0xff] %vm14999_vm10, %v1521_v4  ;;  %1698 = vst.msk [vmem:[#allocation2 + $0x88] sm:$0xff] %vm14999_vm10, %v1523_v7  ;;  %v1821_v4 = vld [vmem:[%s14993_s0 + $0x159] sm:$0x7f] }
 0x206   :  { %1754 = vst.msk [vmem:[#allocation2 + $0x8f] sm:$0x1] %vm14998_vm11, %v15003_v2  ;;  %1926 = vrot.lane.b32.xlu0 %v1788_v24, %s8781_s13  ;;  %1928 = vrot.lane.b32.xlu1 %v1789_v26, %s8781_s13  ;;  %v1820_v26 = vld [vmem:[%s14993_s0 + $0x151] sm:$0xff] }
 0x208   :  { %v1525_v8 = vpop.permute.xlu0 %1524  ;;  %v1527_v37 = vpop.permute.xlu1 %1526 }
 0x209   :  { %1699 = vst.msk [vmem:[#allocation2 + $0x90] sm:$0xff] %vm14999_vm10, %v1525_v8  ;;  %1700 = vst.msk [vmem:[#allocation2 + $0x98] sm:$0xff] %vm14999_vm10, %v1527_v37  ;;  %v1823_v8 = vld [vmem:[%s14993_s0 + $0x169] sm:$0x7f] }
 0x20a   :  { %1755 = vst.msk [vmem:[#allocation2 + $0x9f] sm:$0x1] %vm14998_vm11, %v15003_v2  ;;  %1930 = vrot.lane.b32.xlu0 %v1790_v31, %s8781_s13  ;;  %1932 = vrot.lane.b32.xlu1 %v1791_v28, %s8781_s13  ;;  %v1822_v28 = vld [vmem:[%s14993_s0 + $0x161] sm:$0xff] }
 0x20c   :  { %v1529_v42 = vpop.permute.xlu0 %1528  ;;  %v1531_v12 = vpop.permute.xlu1 %1530 }
 0x20d   :  { %1701 = vst.msk [vmem:[#allocation2 + $0xa0] sm:$0xff] %vm14999_vm10, %v1529_v42  ;;  %1702 = vst.msk [vmem:[#allocation2 + $0xa8] sm:$0xff] %vm14999_vm10, %v1531_v12  ;;  %v1825_v42 = vld [vmem:[%s14993_s0 + $0x179] sm:$0x7f] }
 0x20e   :  { %1756 = vst.msk [vmem:[#allocation2 + $0xaf] sm:$0x1] %vm14998_vm11, %v15003_v2  ;;  %1934 = vrot.lane.b32.xlu0 %v1792_v10, %s8781_s13  ;;  %1936 = vrot.lane.b32.xlu1 %v1793_v32, %s8781_s13  ;;  %v1824_v32 = vld [vmem:[%s14993_s0 + $0x171] sm:$0xff] }
 0x210   :  { %v1533_v36 = vpop.permute.xlu0 %1532  ;;  %v1535_v15 = vpop.permute.xlu1 %1534 }
 0x211   :  { %1703 = vst.msk [vmem:[#allocation2 + $0xb0] sm:$0xff] %vm14999_vm10, %v1533_v36  ;;  %1704 = vst.msk [vmem:[#allocation2 + $0xb8] sm:$0xff] %vm14999_vm10, %v1535_v15  ;;  %v1827_v36 = vld [vmem:[%s14993_s0 + $0x189] sm:$0x7f] }
 0x212   :  { %1757 = vst.msk [vmem:[#allocation2 + $0xbf] sm:$0x1] %vm14998_vm11, %v15003_v2  ;;  %1938 = vrot.lane.b32.xlu0 %v1794_v14, %s8781_s13  ;;  %1940 = vrot.lane.b32.xlu1 %v1795_v47, %s8781_s13  ;;  %v1826_v47 = vld [vmem:[%s14993_s0 + $0x181] sm:$0xff] }
 0x214   :  { %v1537_v40 = vpop.permute.xlu0 %1536  ;;  %v1539_v58 = vpop.permute.xlu1 %1538 }
 0x215   :  { %1705 = vst.msk [vmem:[#allocation2 + $0xc0] sm:$0xff] %vm14999_vm10, %v1537_v40  ;;  %1706 = vst.msk [vmem:[#allocation2 + $0xc8] sm:$0xff] %vm14999_vm10, %v1539_v58  ;;  %v1829_v40 = vld [vmem:[%s14993_s0 + $0x199] sm:$0x7f] }
 0x216   :  { %1758 = vst.msk [vmem:[#allocation2 + $0xcf] sm:$0x1] %vm14998_vm11, %v15003_v2  ;;  %1942 = vrot.lane.b32.xlu0 %v1796_v53, %s8781_s13  ;;  %1944 = vrot.lane.b32.xlu1 %v1797_v18, %s8781_s13  ;;  %v1828_v18 = vld [vmem:[%s14993_s0 + $0x191] sm:$0xff] }
 0x218   :  { %v1541_v63 = vpop.permute.xlu0 %1540  ;;  %v1543_v44 = vpop.permute.xlu1 %1542 }
 0x219   :  { %1707 = vst.msk [vmem:[#allocation2 + $0xd0] sm:$0xff] %vm14999_vm10, %v1541_v63  ;;  %1708 = vst.msk [vmem:[#allocation2 + $0xd8] sm:$0xff] %vm14999_vm10, %v1543_v44  ;;  %v1831_v63 = vld [vmem:[%s14993_s0 + $0x1a9] sm:$0x7f] }
 0x21a   :  { %1759 = vst.msk [vmem:[#allocation2 + $0xdf] sm:$0x1] %vm14998_vm11, %v15003_v2  ;;  %1946 = vrot.lane.b32.xlu0 %v1798_v19, %s8781_s13  ;;  %1948 = vrot.lane.b32.xlu1 %v1799_v20, %s8781_s13  ;;  %v1830_v20 = vld [vmem:[%s14993_s0 + $0x1a1] sm:$0xff] }
 0x21c   :  { %v1545_v25 = vpop.permute.xlu0 %1544  ;;  %v1547_v48 = vpop.permute.xlu1 %1546 }
 0x21d   :  { %1709 = vst.msk [vmem:[#allocation2 + $0xe0] sm:$0xff] %vm14999_vm10, %v1545_v25  ;;  %1710 = vst.msk [vmem:[#allocation2 + $0xe8] sm:$0xff] %vm14999_vm10, %v1547_v48  ;;  %v1833_v25 = vld [vmem:[%s14993_s0 + $0x1b9] sm:$0x7f] }
 0x21e   :  { %1760 = vst.msk [vmem:[#allocation2 + $0xef] sm:$0x1] %vm14998_vm11, %v15003_v2  ;;  %1950 = vrot.lane.b32.xlu0 %v1800_v23, %s8781_s13  ;;  %1952 = vrot.lane.b32.xlu1 %v1801_v6, %s8781_s13  ;;  %v1832_v6 = vld [vmem:[%s14993_s0 + $0x1b1] sm:$0xff] }
 0x220   :  { %v1549_v30 = vpop.permute.xlu0 %1548  ;;  %v1551_v16 = vpop.permute.xlu1 %1550 }
 0x221   :  { %1711 = vst.msk [vmem:[#allocation2 + $0xf0] sm:$0xff] %vm14999_vm10, %v1549_v30  ;;  %1712 = vst.msk [vmem:[#allocation2 + $0xf8] sm:$0xff] %vm14999_vm10, %v1551_v16  ;;  %v1835_v30 = vld [vmem:[%s14993_s0 + $0x1c9] sm:$0x7f] }
 0x222   :  { %1761 = vst.msk [vmem:[#allocation2 + $0xff] sm:$0x1] %vm14998_vm11, %v15003_v2  ;;  %1954 = vrot.lane.b32.xlu0 %v1802_v11, %s8781_s13  ;;  %1956 = vrot.lane.b32.xlu1 %v1803_v27, %s8781_s13  ;;  %v1834_v27 = vld [vmem:[%s14993_s0 + $0x1c1] sm:$0xff] }
 0x224   :  { %v1553_v22 = vpop.permute.xlu0 %1552  ;;  %v1555_v34 = vpop.permute.xlu1 %1554 }
 0x225   :  { %1713 = vst.msk [vmem:[#allocation2 + $0x100] sm:$0xff] %vm14999_vm10, %v1553_v22  ;;  %1714 = vst.msk [vmem:[#allocation2 + $0x108] sm:$0xff] %vm14999_vm10, %v1555_v34  ;;  %v1837_v22 = vld [vmem:[%s14993_s0 + $0x1d9] sm:$0x7f] }
 0x226   :  { %1762 = vst.msk [vmem:[#allocation2 + $0x10f] sm:$0x1] %vm14998_vm11, %v15003_v2  ;;  %1958 = vrot.lane.b32.xlu0 %v1804_v52, %s8781_s13  ;;  %1960 = vrot.lane.b32.xlu1 %v1805_v33, %s8781_s13  ;;  %v1836_v33 = vld [vmem:[%s14993_s0 + $0x1d1] sm:$0xff] }
 0x228   :  { %v1557_v38 = vpop.permute.xlu0 %1556  ;;  %v1559_v39 = vpop.permute.xlu1 %1558 }
 0x229   :  { %1715 = vst.msk [vmem:[#allocation2 + $0x110] sm:$0xff] %vm14999_vm10, %v1557_v38  ;;  %1716 = vst.msk [vmem:[#allocation2 + $0x118] sm:$0xff] %vm14999_vm10, %v1559_v39  ;;  %v1839_v38 = vld [vmem:[%s14993_s0 + $0x1e9] sm:$0x7f] }
 0x22a   :  { %1763 = vst.msk [vmem:[#allocation2 + $0x11f] sm:$0x1] %vm14998_vm11, %v15003_v2  ;;  %1962 = vrot.lane.b32.xlu0 %v1806_v56, %s8781_s13  ;;  %1964 = vrot.lane.b32.xlu1 %v1807_v29, %s8781_s13  ;;  %v1838_v29 = vld [vmem:[%s14993_s0 + $0x1e1] sm:$0xff] }
 0x22c   :  { %v1561_v41 = vpop.permute.xlu0 %1560  ;;  %v1563_v43 = vpop.permute.xlu1 %1562 }
 0x22d   :  { %1717 = vst.msk [vmem:[#allocation2 + $0x120] sm:$0xff] %vm14999_vm10, %v1561_v41  ;;  %1718 = vst.msk [vmem:[#allocation2 + $0x128] sm:$0xff] %vm14999_vm10, %v1563_v43  ;;  %v1841_v41 = vld [vmem:[%s14993_s0 + $0x1f9] sm:$0x7f] }
 0x22e   :  { %1764 = vst.msk [vmem:[#allocation2 + $0x12f] sm:$0x1] %vm14998_vm11, %v15003_v2  ;;  %1966 = vrot.lane.b32.xlu0 %v1808_v35, %s8781_s13  ;;  %1968 = vrot.lane.b32.xlu1 %v1809_v60, %s8781_s13  ;;  %v1840_v60 = vld [vmem:[%s14993_s0 + $0x1f1] sm:$0xff] }
 0x230   :  { %v1565_v46 = vpop.permute.xlu0 %1564  ;;  %v1567_v50 = vpop.permute.xlu1 %1566 }
 0x231   :  { %1719 = vst.msk [vmem:[#allocation2 + $0x130] sm:$0xff] %vm14999_vm10, %v1565_v46  ;;  %1720 = vst.msk [vmem:[#allocation2 + $0x138] sm:$0xff] %vm14999_vm10, %v1567_v50  ;;  %v7786_v46 = vld [vmem:[%s14993_s0 + $0x18] sm:$0x7f] }
 0x232   :  { %1765 = vst.msk [vmem:[#allocation2 + $0x13f] sm:$0x1] %vm14998_vm11, %v15003_v2  ;;  %1970 = vrot.lane.b32.xlu0 %v1810_v45, %s8781_s13  ;;  %1972 = vrot.lane.b32.xlu1 %v1811_v0, %s8781_s13  ;;  %v10880_v0 = vld [vmem:[%s14993_s0 + $0x10] sm:$0xff] }
 0x234   :  { %v1569_v51 = vpop.permute.xlu0 %1568  ;;  %v1571_v54 = vpop.permute.xlu1 %1570 }
 0x235   :  { %1721 = vst.msk [vmem:[#allocation2 + $0x140] sm:$0xff] %vm14999_vm10, %v1569_v51  ;;  %1722 = vst.msk [vmem:[#allocation2 + $0x148] sm:$0xff] %vm14999_vm10, %v1571_v54  ;;  %v7788_v51 = vld [vmem:[%s14993_s0 + $0x28] sm:$0x7f] }
 0x236   :  { %1766 = vst.msk [vmem:[#allocation2 + $0x14f] sm:$0x1] %vm14998_vm11, %v15003_v2  ;;  %1974 = vrot.lane.b32.xlu0 %v1812_v49, %s8781_s13  ;;  %1976 = vrot.lane.b32.xlu1 %v1813_v5, %s8781_s13  ;;  %v10895_v5 = vld [vmem:[%s14993_s0 + $0x20] sm:$0xff] }
 0x238   :  { %v1573_v57 = vpop.permute.xlu0 %1572  ;;  %v1575_v13 = vpop.permute.xlu1 %1574 }
 0x239   :  { %1723 = vst.msk [vmem:[#allocation2 + $0x150] sm:$0xff] %vm14999_vm10, %v1573_v57  ;;  %1724 = vst.msk [vmem:[#allocation2 + $0x158] sm:$0xff] %vm14999_vm10, %v1575_v13  ;;  %v7790_v57 = vld [vmem:[%s14993_s0 + $0x38] sm:$0x7f] }
 0x23a   :  { %1767 = vst.msk [vmem:[#allocation2 + $0x15f] sm:$0x1] %vm14998_vm11, %v15003_v2  ;;  %1978 = vrot.lane.b32.xlu0 %v1814_v9, %s8781_s13  ;;  %1980 = vrot.lane.b32.xlu1 %v1815_v55, %s8781_s13  ;;  %v10910_v55 = vld [vmem:[%s14993_s0 + $0x30] sm:$0xff] }
 0x23c   :  { %v1577_v17 = vpop.permute.xlu0 %1576  ;;  %v1579_v62 = vpop.permute.xlu1 %1578 }
 0x23d   :  { %1725 = vst.msk [vmem:[#allocation2 + $0x160] sm:$0xff] %vm14999_vm10, %v1577_v17  ;;  %1726 = vst.msk [vmem:[#allocation2 + $0x168] sm:$0xff] %vm14999_vm10, %v1579_v62  ;;  %v7792_v17 = vld [vmem:[%s14993_s0 + $0x48] sm:$0x7f] }
 0x23e   :  { %1768 = vst.msk [vmem:[#allocation2 + $0x16f] sm:$0x1] %vm14998_vm11, %v15003_v2  ;;  %1982 = vrot.lane.b32.xlu0 %v1816_v59, %s8781_s13  ;;  %1984 = vrot.lane.b32.xlu1 %v1817_v61, %s8781_s13  ;;  %v10925_v61 = vld [vmem:[%s14993_s0 + $0x40] sm:$0xff] }
 0x240   :  { %v1581_v3 = vpop.permute.xlu0 %1580  ;;  %v1583_v24 = vpop.permute.xlu1 %1582 }
 0x241   :  { %1727 = vst.msk [vmem:[#allocation2 + $0x170] sm:$0xff] %vm14999_vm10, %v1581_v3  ;;  %1728 = vst.msk [vmem:[#allocation2 + $0x178] sm:$0xff] %vm14999_vm10, %v1583_v24  ;;  %v7794_v3 = vld [vmem:[%s14993_s0 + $0x58] sm:$0x7f] }
 0x242   :  { %1769 = vst.msk [vmem:[#allocation2 + $0x17f] sm:$0x1] %vm14998_vm11, %v15003_v2  ;;  %1986 = vrot.lane.b32.xlu0 %v1818_v1, %s8781_s13  ;;  %1988 = vrot.lane.b32.xlu1 %v1819_v21, %s8781_s13  ;;  %v10940_v21 = vld [vmem:[%s14993_s0 + $0x50] sm:$0xff] }
 0x244   :  { %v1585_v7 = vpop.permute.xlu0 %1584  ;;  %v1587_v31 = vpop.permute.xlu1 %1586 }
 0x245   :  { %1729 = vst.msk [vmem:[#allocation2 + $0x180] sm:$0xff] %vm14999_vm10, %v1585_v7  ;;  %1730 = vst.msk [vmem:[#allocation2 + $0x188] sm:$0xff] %vm14999_vm10, %v1587_v31  ;;  %v7796_v7 = vld [vmem:[%s14993_s0 + $0x68] sm:$0x7f] }
 0x246   :  { %1770 = vst.msk [vmem:[#allocation2 + $0x18f] sm:$0x1] %vm14998_vm11, %v15003_v2  ;;  %1990 = vrot.lane.b32.xlu0 %v1820_v26, %s8781_s13  ;;  %1992 = vrot.lane.b32.xlu1 %v1821_v4, %s8781_s13  ;;  %v10955_v4 = vld [vmem:[%s14993_s0 + $0x60] sm:$0xff] }
 0x248   :  { %v1589_v37 = vpop.permute.xlu0 %1588  ;;  %v1591_v10 = vpop.permute.xlu1 %1590 }
 0x249   :  { %1731 = vst.msk [vmem:[#allocation2 + $0x190] sm:$0xff] %vm14999_vm10, %v1589_v37  ;;  %1732 = vst.msk [vmem:[#allocation2 + $0x198] sm:$0xff] %vm14999_vm10, %v1591_v10  ;;  %v7798_v37 = vld [vmem:[%s14993_s0 + $0x78] sm:$0x7f] }
 0x24a   :  { %1771 = vst.msk [vmem:[#allocation2 + $0x19f] sm:$0x1] %vm14998_vm11, %v15003_v2  ;;  %1994 = vrot.lane.b32.xlu0 %v1822_v28, %s8781_s13  ;;  %1996 = vrot.lane.b32.xlu1 %v1823_v8, %s8781_s13  ;;  %v10970_v8 = vld [vmem:[%s14993_s0 + $0x70] sm:$0xff] }
 0x24c   :  { %v1593_v12 = vpop.permute.xlu0 %1592  ;;  %v1595_v14 = vpop.permute.xlu1 %1594 }
 0x24d   :  { %1733 = vst.msk [vmem:[#allocation2 + $0x1a0] sm:$0xff] %vm14999_vm10, %v1593_v12  ;;  %1734 = vst.msk [vmem:[#allocation2 + $0x1a8] sm:$0xff] %vm14999_vm10, %v1595_v14  ;;  %v7800_v12 = vld [vmem:[%s14993_s0 + $0x88] sm:$0x7f] }
 0x24e   :  { %1772 = vst.msk [vmem:[#allocation2 + $0x1af] sm:$0x1] %vm14998_vm11, %v15003_v2  ;;  %1998 = vrot.lane.b32.xlu0 %v1824_v32, %s8781_s13  ;;  %2000 = vrot.lane.b32.xlu1 %v1825_v42, %s8781_s13  ;;  %v10985_v42 = vld [vmem:[%s14993_s0 + $0x80] sm:$0xff] }
 0x250   :  { %v1597_v15 = vpop.permute.xlu0 %1596  ;;  %v1599_v53 = vpop.permute.xlu1 %1598 }
 0x251   :  { %1735 = vst.msk [vmem:[#allocation2 + $0x1b0] sm:$0xff] %vm14999_vm10, %v1597_v15  ;;  %1736 = vst.msk [vmem:[#allocation2 + $0x1b8] sm:$0xff] %vm14999_vm10, %v1599_v53  ;;  %v7802_v15 = vld [vmem:[%s14993_s0 + $0x98] sm:$0x7f] }
 0x252   :  { %1773 = vst.msk [vmem:[#allocation2 + $0x1bf] sm:$0x1] %vm14998_vm11, %v15003_v2  ;;  %2002 = vrot.lane.b32.xlu0 %v1826_v47, %s8781_s13  ;;  %2004 = vrot.lane.b32.xlu1 %v1827_v36, %s8781_s13  ;;  %v11000_v36 = vld [vmem:[%s14993_s0 + $0x90] sm:$0xff] }
 0x254   :  { %v1601_v58 = vpop.permute.xlu0 %1600  ;;  %v1603_v19 = vpop.permute.xlu1 %1602 }
 0x255   :  { %1737 = vst.msk [vmem:[#allocation2 + $0x1c0] sm:$0xff] %vm14999_vm10, %v1601_v58  ;;  %1738 = vst.msk [vmem:[#allocation2 + $0x1c8] sm:$0xff] %vm14999_vm10, %v1603_v19  ;;  %v7804_v58 = vld [vmem:[%s14993_s0 + $0xa8] sm:$0x7f] }
 0x256   :  { %1774 = vst.msk [vmem:[#allocation2 + $0x1cf] sm:$0x1] %vm14998_vm11, %v15003_v2  ;;  %2006 = vrot.lane.b32.xlu0 %v1828_v18, %s8781_s13  ;;  %2008 = vrot.lane.b32.xlu1 %v1829_v40, %s8781_s13  ;;  %v11015_v40 = vld [vmem:[%s14993_s0 + $0xa0] sm:$0xff] }
 0x258   :  { %v1605_v44 = vpop.permute.xlu0 %1604  ;;  %v1607_v23 = vpop.permute.xlu1 %1606 }
 0x259   :  { %1739 = vst.msk [vmem:[#allocation2 + $0x1d0] sm:$0xff] %vm14999_vm10, %v1605_v44  ;;  %1740 = vst.msk [vmem:[#allocation2 + $0x1d8] sm:$0xff] %vm14999_vm10, %v1607_v23  ;;  %v7806_v44 = vld [vmem:[%s14993_s0 + $0xb8] sm:$0x7f] }
 0x25a   :  { %1775 = vst.msk [vmem:[#allocation2 + $0x1df] sm:$0x1] %vm14998_vm11, %v15003_v2  ;;  %2010 = vrot.lane.b32.xlu0 %v1830_v20, %s8781_s13  ;;  %2012 = vrot.lane.b32.xlu1 %v1831_v63, %s8781_s13  ;;  %v11030_v63 = vld [vmem:[%s14993_s0 + $0xb0] sm:$0xff] }
 0x25c   :  { %v1609_v48 = vpop.permute.xlu0 %1608  ;;  %v1611_v11 = vpop.permute.xlu1 %1610 }
 0x25d   :  { %1741 = vst.msk [vmem:[#allocation2 + $0x1e0] sm:$0xff] %vm14999_vm10, %v1609_v48  ;;  %1742 = vst.msk [vmem:[#allocation2 + $0x1e8] sm:$0xff] %vm14999_vm10, %v1611_v11  ;;  %v7808_v48 = vld [vmem:[%s14993_s0 + $0xc8] sm:$0x7f] }
 0x25e   :  { %1776 = vst.msk [vmem:[#allocation2 + $0x1ef] sm:$0x1] %vm14998_vm11, %v15003_v2  ;;  %2014 = vrot.lane.b32.xlu0 %v1832_v6, %s8781_s13  ;;  %2016 = vrot.lane.b32.xlu1 %v1833_v25, %s8781_s13  ;;  %v11045_v25 = vld [vmem:[%s14993_s0 + $0xc0] sm:$0xff] }
 0x260   :  { %v1613_v16 = vpop.permute.xlu0 %1612  ;;  %v1615_v52 = vpop.permute.xlu1 %1614 }
 0x261   :  { %1743 = vst.msk [vmem:[#allocation2 + $0x1f0] sm:$0xff] %vm14999_vm10, %v1613_v16  ;;  %1744 = vst.msk [vmem:[#allocation2 + $0x1f8] sm:$0xff] %vm14999_vm10, %v1615_v52  ;;  %v7810_v16 = vld [vmem:[%s14993_s0 + $0xd8] sm:$0x7f]  ;;  %vm15002_vm10 = vcmask 286976  }
 0x262   :  { %1777 = vst.msk [vmem:[#allocation2 + $0x1ff] sm:$0x1] %vm14998_vm11, %v15003_v2  ;;  %2018 = vrot.lane.b32.xlu0 %v1834_v27, %s8781_s13  ;;  %2020 = vrot.lane.b32.xlu1 %v1835_v30, %s8781_s13  ;;  %v11060_v30 = vld [vmem:[%s14993_s0 + $0xd0] sm:$0xff]  ;;  %vm2930_vm11 = vcmask 294144  }
 0x264   :  { %v1907_v34 = vpop.permute.xlu0 %1906  ;;  %v1909_v56 = vpop.permute.xlu1 %1908 }
 0x265   :  { %2099 = vst.msk [vmem:[#allocation2] sm:$0xff] %vm2098_vm12, %v1907_v34  ;;  %v7812_v34 = vld [vmem:[%s14993_s0 + $0xe8] sm:$0x7f] }
 0x266   :  { %2101 = vst.msk [vmem:[#allocation2 + $0x8] sm:$0x7f] %vm2100_vm13, %v1909_v56  ;;  %2022 = vrot.lane.b32.xlu0 %v1836_v33, %s8781_s13  ;;  %2024 = vrot.lane.b32.xlu1 %v1837_v22, %s8781_s13  ;;  %v11081_v22 = vld [vmem:[%s14993_s0 + $0xe0] sm:$0xff] }
 0x267   :  { %2171 = vst.msk [vmem:[#allocation2] sm:$0x1] %vm2170_vm14, %v15003_v2 }
 0x268   :  { %v1911_v39 = vpop.permute.xlu0 %1910  ;;  %v1913_v35 = vpop.permute.xlu1 %1912 }
 0x269   :  { %2102 = vst.msk [vmem:[#allocation2 + $0x10] sm:$0xff] %vm2098_vm12, %v1911_v39  ;;  %v7814_v39 = vld [vmem:[%s14993_s0 + $0xf8] sm:$0x7f] }
 0x26a   :  { %2103 = vst.msk [vmem:[#allocation2 + $0x18] sm:$0x7f] %vm2100_vm13, %v1913_v35  ;;  %2026 = vrot.lane.b32.xlu0 %v1838_v29, %s8781_s13  ;;  %2028 = vrot.lane.b32.xlu1 %v1839_v38, %s8781_s13  ;;  %v11104_v38 = vld [vmem:[%s14993_s0 + $0xf0] sm:$0xff] }
 0x26b   :  { %2172 = vst.msk [vmem:[#allocation2 + $0x10] sm:$0x1] %vm2170_vm14, %v15003_v2 }
 0x26c   :  { %v1915_v43 = vpop.permute.xlu0 %1914  ;;  %v1917_v45 = vpop.permute.xlu1 %1916 }
 0x26d   :  { %2104 = vst.msk [vmem:[#allocation2 + $0x20] sm:$0xff] %vm2098_vm12, %v1915_v43  ;;  %v7816_v43 = vld [vmem:[%s14993_s0 + $0x118] sm:$0x7f] }
 0x26e   :  { %2105 = vst.msk [vmem:[#allocation2 + $0x28] sm:$0x7f] %vm2100_vm13, %v1917_v45  ;;  %2030 = vrot.lane.b32.xlu0 %v1840_v60, %s8781_s13  ;;  %2032 = vrot.lane.b32.xlu1 %v1841_v41, %s8781_s13  ;;  %v11119_v41 = vld [vmem:[%s14993_s0 + $0x110] sm:$0xff] }
 0x26f   :  { %2173 = vst.msk [vmem:[#allocation2 + $0x20] sm:$0x1] %vm2170_vm14, %v15003_v2 }
 0x270   :  { %v1919_v50 = vpop.permute.xlu0 %1918  ;;  %v1921_v49 = vpop.permute.xlu1 %1920 }
 0x271   :  { %2106 = vst.msk [vmem:[#allocation2 + $0x30] sm:$0xff] %vm2098_vm12, %v1919_v50  ;;  %v11134_v50 = vld [vmem:[%s14993_s0 + $0x120] sm:$0xff] }
 0x272   :  { %2107 = vst.msk [vmem:[#allocation2 + $0x38] sm:$0x7f] %vm2100_vm13, %v1921_v49  ;;  %2324 = vrot.lane.b32.xlu0 %v10880_v0, %s8782_s16  ;;  %2326 = vrot.lane.b32.xlu1 %v7786_v46, %s8782_s16  ;;  %v7818_v49 = vld [vmem:[%s14993_s0 + $0x128] sm:$0x7f] }
 0x273   :  { %2174 = vst.msk [vmem:[#allocation2 + $0x30] sm:$0x1] %vm2170_vm14, %v15003_v2 }
 0x274   :  { %v1923_v54 = vpop.permute.xlu0 %1922  ;;  %v1925_v9 = vpop.permute.xlu1 %1924 }
 0x275   :  { %2108 = vst.msk [vmem:[#allocation2 + $0x40] sm:$0xff] %vm2098_vm12, %v1923_v54 }
 0x276   :  { %2109 = vst.msk [vmem:[#allocation2 + $0x48] sm:$0x7f] %vm2100_vm13, %v1925_v9  ;;  %2328 = vrot.lane.b32.xlu0 %v10895_v5, %s8782_s16  ;;  %2330 = vrot.lane.b32.xlu1 %v7788_v51, %s8782_s16  ;;  %v11149_v9 = vld [vmem:[%s14993_s0 + $0x130] sm:$0xff] }
 0x277   :  { %2175 = vst.msk [vmem:[#allocation2 + $0x40] sm:$0x1] %vm2170_vm14, %v15003_v2 }
 0x278   :  { %v1927_v13 = vpop.permute.xlu0 %1926  ;;  %v1929_v59 = vpop.permute.xlu1 %1928 }
 0x279   :  { %2110 = vst.msk [vmem:[#allocation2 + $0x50] sm:$0xff] %vm2098_vm12, %v1927_v13 }
 0x27a   :  { %2111 = vst.msk [vmem:[#allocation2 + $0x58] sm:$0x7f] %vm2100_vm13, %v1929_v59  ;;  %2332 = vrot.lane.b32.xlu0 %v10910_v55, %s8782_s16  ;;  %2334 = vrot.lane.b32.xlu1 %v7790_v57, %s8782_s16  ;;  %v7820_v57 = vld [vmem:[%s14993_s0 + $0x138] sm:$0x7f] }
 0x27b   :  { %2176 = vst.msk [vmem:[#allocation2 + $0x50] sm:$0x1] %vm2170_vm14, %v15003_v2 }
 0x27c   :  { %v1931_v62 = vpop.permute.xlu0 %1930  ;;  %v1933_v1 = vpop.permute.xlu1 %1932 }
 0x27d   :  { %2112 = vst.msk [vmem:[#allocation2 + $0x60] sm:$0xff] %vm2098_vm12, %v1931_v62  ;;  %v7822_v62 = vld [vmem:[%s14993_s0 + $0x148] sm:$0x7f] }
 0x27e   :  { %2113 = vst.msk [vmem:[#allocation2 + $0x68] sm:$0x7f] %vm2100_vm13, %v1933_v1  ;;  %2336 = vrot.lane.b32.xlu0 %v10925_v61, %s8782_s16  ;;  %2338 = vrot.lane.b32.xlu1 %v7792_v17, %s8782_s16  ;;  %v11164_v17 = vld [vmem:[%s14993_s0 + $0x140] sm:$0xff] }
 0x27f   :  { %2177 = vst.msk [vmem:[#allocation2 + $0x60] sm:$0x1] %vm2170_vm14, %v15003_v2 }
 0x280   :  { %v1935_v24 = vpop.permute.xlu0 %1934  ;;  %v1937_v26 = vpop.permute.xlu1 %1936 }
 0x281   :  { %2114 = vst.msk [vmem:[#allocation2 + $0x70] sm:$0xff] %vm2098_vm12, %v1935_v24  ;;  %v11179_v24 = vld [vmem:[%s14993_s0 + $0x150] sm:$0xff] }
 0x282   :  { %2115 = vst.msk [vmem:[#allocation2 + $0x78] sm:$0x7f] %vm2100_vm13, %v1937_v26  ;;  %2340 = vrot.lane.b32.xlu0 %v10940_v21, %s8782_s16  ;;  %2342 = vrot.lane.b32.xlu1 %v7794_v3, %s8782_s16  ;;  %v7824_v26 = vld [vmem:[%s14993_s0 + $0x158] sm:$0x7f] }
 0x283   :  { %2178 = vst.msk [vmem:[#allocation2 + $0x70] sm:$0x1] %vm2170_vm14, %v15003_v2 }
 0x284   :  { %v1939_v31 = vpop.permute.xlu0 %1938  ;;  %v1941_v28 = vpop.permute.xlu1 %1940 }
 0x285   :  { %2116 = vst.msk [vmem:[#allocation2 + $0x80] sm:$0xff] %vm2098_vm12, %v1939_v31 }
 0x286   :  { %2117 = vst.msk [vmem:[#allocation2 + $0x88] sm:$0x7f] %vm2100_vm13, %v1941_v28  ;;  %2344 = vrot.lane.b32.xlu0 %v10955_v4, %s8782_s16  ;;  %2346 = vrot.lane.b32.xlu1 %v7796_v7, %s8782_s16  ;;  %v11194_v28 = vld [vmem:[%s14993_s0 + $0x160] sm:$0xff] }
 0x287   :  { %2179 = vst.msk [vmem:[#allocation2 + $0x80] sm:$0x1] %vm2170_vm14, %v15003_v2 }
 0x288   :  { %v1943_v10 = vpop.permute.xlu0 %1942  ;;  %v1945_v32 = vpop.permute.xlu1 %1944 }
 0x289   :  { %2118 = vst.msk [vmem:[#allocation2 + $0x90] sm:$0xff] %vm2098_vm12, %v1943_v10 }
 0x28a   :  { %2119 = vst.msk [vmem:[#allocation2 + $0x98] sm:$0x7f] %vm2100_vm13, %v1945_v32  ;;  %2348 = vrot.lane.b32.xlu0 %v10970_v8, %s8782_s16  ;;  %2350 = vrot.lane.b32.xlu1 %v7798_v37, %s8782_s16  ;;  %v7826_v37 = vld [vmem:[%s14993_s0 + $0x168] sm:$0x7f] }
 0x28b   :  { %2180 = vst.msk [vmem:[#allocation2 + $0x90] sm:$0x1] %vm2170_vm14, %v15003_v2 }
 0x28c   :  { %v1947_v14 = vpop.permute.xlu0 %1946  ;;  %v1949_v47 = vpop.permute.xlu1 %1948 }
 0x28d   :  { %2120 = vst.msk [vmem:[#allocation2 + $0xa0] sm:$0xff] %vm2098_vm12, %v1947_v14  ;;  %v7828_v14 = vld [vmem:[%s14993_s0 + $0x178] sm:$0x7f] }
 0x28e   :  { %2121 = vst.msk [vmem:[#allocation2 + $0xa8] sm:$0x7f] %vm2100_vm13, %v1949_v47  ;;  %2352 = vrot.lane.b32.xlu0 %v10985_v42, %s8782_s16  ;;  %2354 = vrot.lane.b32.xlu1 %v7800_v12, %s8782_s16  ;;  %v11209_v12 = vld [vmem:[%s14993_s0 + $0x170] sm:$0xff] }
 0x28f   :  { %2181 = vst.msk [vmem:[#allocation2 + $0xa0] sm:$0x1] %vm2170_vm14, %v15003_v2 }
 0x290   :  { %v1951_v53 = vpop.permute.xlu0 %1950  ;;  %v1953_v18 = vpop.permute.xlu1 %1952 }
 0x291   :  { %2122 = vst.msk [vmem:[#allocation2 + $0xb0] sm:$0xff] %vm2098_vm12, %v1951_v53  ;;  %v11224_v53 = vld [vmem:[%s14993_s0 + $0x180] sm:$0xff] }
 0x292   :  { %2123 = vst.msk [vmem:[#allocation2 + $0xb8] sm:$0x7f] %vm2100_vm13, %v1953_v18  ;;  %2356 = vrot.lane.b32.xlu0 %v11000_v36, %s8782_s16  ;;  %2358 = vrot.lane.b32.xlu1 %v7802_v15, %s8782_s16  ;;  %v7830_v18 = vld [vmem:[%s14993_s0 + $0x188] sm:$0x7f] }
 0x293   :  { %2182 = vst.msk [vmem:[#allocation2 + $0xb0] sm:$0x1] %vm2170_vm14, %v15003_v2 }
 0x294   :  { %v1955_v19 = vpop.permute.xlu0 %1954  ;;  %v1957_v20 = vpop.permute.xlu1 %1956 }
 0x295   :  { %2124 = vst.msk [vmem:[#allocation2 + $0xc0] sm:$0xff] %vm2098_vm12, %v1955_v19 }
 0x296   :  { %2125 = vst.msk [vmem:[#allocation2 + $0xc8] sm:$0x7f] %vm2100_vm13, %v1957_v20  ;;  %2360 = vrot.lane.b32.xlu0 %v11015_v40, %s8782_s16  ;;  %2362 = vrot.lane.b32.xlu1 %v7804_v58, %s8782_s16  ;;  %v11239_v20 = vld [vmem:[%s14993_s0 + $0x190] sm:$0xff] }
 0x297   :  { %2183 = vst.msk [vmem:[#allocation2 + $0xc0] sm:$0x1] %vm2170_vm14, %v15003_v2 }
 0x298   :  { %v1959_v23 = vpop.permute.xlu0 %1958  ;;  %v1961_v6 = vpop.permute.xlu1 %1960 }
 0x299   :  { %2126 = vst.msk [vmem:[#allocation2 + $0xd0] sm:$0xff] %vm2098_vm12, %v1959_v23 }
 0x29a   :  { %2127 = vst.msk [vmem:[#allocation2 + $0xd8] sm:$0x7f] %vm2100_vm13, %v1961_v6  ;;  %2364 = vrot.lane.b32.xlu0 %v11030_v63, %s8782_s16  ;;  %2366 = vrot.lane.b32.xlu1 %v7806_v44, %s8782_s16  ;;  %v7832_v44 = vld [vmem:[%s14993_s0 + $0x198] sm:$0x7f] }
 0x29b   :  { %2184 = vst.msk [vmem:[#allocation2 + $0xd0] sm:$0x1] %vm2170_vm14, %v15003_v2 }
 0x29c   :  { %v1963_v11 = vpop.permute.xlu0 %1962  ;;  %v1965_v27 = vpop.permute.xlu1 %1964 }
 0x29d   :  { %2128 = vst.msk [vmem:[#allocation2 + $0xe0] sm:$0xff] %vm2098_vm12, %v1963_v11  ;;  %v7834_v11 = vld [vmem:[%s14993_s0 + $0x1a8] sm:$0x7f] }
 0x29e   :  { %2129 = vst.msk [vmem:[#allocation2 + $0xe8] sm:$0x7f] %vm2100_vm13, %v1965_v27  ;;  %2368 = vrot.lane.b32.xlu0 %v11045_v25, %s8782_s16  ;;  %2370 = vrot.lane.b32.xlu1 %v7808_v48, %s8782_s16  ;;  %v11254_v48 = vld [vmem:[%s14993_s0 + $0x1a0] sm:$0xff] }
 0x29f   :  { %2185 = vst.msk [vmem:[#allocation2 + $0xe0] sm:$0x1] %vm2170_vm14, %v15003_v2 }
 0x2a0   :  { %v1967_v52 = vpop.permute.xlu0 %1966  ;;  %v1969_v33 = vpop.permute.xlu1 %1968 }
 0x2a1   :  { %2130 = vst.msk [vmem:[#allocation2 + $0xf0] sm:$0xff] %vm2098_vm12, %v1967_v52  ;;  %v11269_v52 = vld [vmem:[%s14993_s0 + $0x1b0] sm:$0xff] }
 0x2a2   :  { %2131 = vst.msk [vmem:[#allocation2 + $0xf8] sm:$0x7f] %vm2100_vm13, %v1969_v33  ;;  %2372 = vrot.lane.b32.xlu0 %v11060_v30, %s8782_s16  ;;  %2374 = vrot.lane.b32.xlu1 %v7810_v16, %s8782_s16  ;;  %v7836_v33 = vld [vmem:[%s14993_s0 + $0x1b8] sm:$0x7f] }
 0x2a3   :  { %2166 = vst.msk [vmem:[#allocation2 + $0xf0] sm:$0xff] %vm2165_vm15, %v15003_v2  ;;  %2167 = vst.msk [vmem:[#allocation2 + $0xf8] sm:$0xff] %vm2165_vm15, %v15003_v2 }
 0x2a4   :  { %2186 = vst.msk [vmem:[#allocation2 + $0xf0] sm:$0x1] %vm2170_vm14, %v15003_v2  ;;  %v1971_v56 = vpop.permute.xlu0 %1970  ;;  %v1973_v29 = vpop.permute.xlu1 %1972 }
 0x2a5   :  { %2567 = vst.msk [vmem:[#allocation2 + $0xf8] sm:$0xff] %vm2565_vm7, %v15003_v2  ;;  %2566 = vst.msk [vmem:[#allocation2 + $0xf0] sm:$0xff] %vm2565_vm7, %v15003_v2 }
 0x2a6   :  { %2932 = vst.msk [vmem:[#allocation2 + $0xf8] sm:$0xff] %vm2930_vm11, %v15003_v2  ;;  %2931 = vst.msk [vmem:[#allocation2 + $0xf0] sm:$0xff] %vm2930_vm11, %v15003_v2  ;;  %2376 = vrot.lane.b32.xlu0 %v11081_v22, %s8782_s16  ;;  %2378 = vrot.lane.b32.xlu1 %v7812_v34, %s8782_s16 }
 0x2a7   :  { %2951 = vst.msk [vmem:[#allocation2 + $0xff] sm:$0x1] %vm15002_vm10, %v15003_v2 }
 0x2a8   :  { %2132 = vst.msk [vmem:[#allocation2 + $0x100] sm:$0xff] %vm2098_vm12, %v1971_v56  ;;  %v1975_v35 = vpop.permute.xlu0 %1974  ;;  %v1977_v60 = vpop.permute.xlu1 %1976 }
 0x2a9   :  { %2133 = vst.msk [vmem:[#allocation2 + $0x108] sm:$0x7f] %vm2100_vm13, %v1973_v29  ;;  %2135 = vst.msk [vmem:[#allocation2 + $0x118] sm:$0x7f] %vm2100_vm13, %v1977_v60  ;;  %v11284_v29 = vld [vmem:[%s14993_s0 + $0x1c0] sm:$0xff] }
 0x2aa   :  { %2187 = vst.msk [vmem:[#allocation2 + $0x100] sm:$0x1] %vm2170_vm14, %v15003_v2  ;;  %2380 = vrot.lane.b32.xlu0 %v11104_v38, %s8782_s16  ;;  %2382 = vrot.lane.b32.xlu1 %v7814_v39, %s8782_s16  ;;  %v7838_v39 = vld [vmem:[%s14993_s0 + $0x1c8] sm:$0x7f] }
 0x2ab   :  { %2134 = vst.msk [vmem:[#allocation2 + $0x110] sm:$0xff] %vm2098_vm12, %v1975_v35 }
 0x2ac   :  { %2188 = vst.msk [vmem:[#allocation2 + $0x110] sm:$0x1] %vm2170_vm14, %v15003_v2  ;;  %v1979_v45 = vpop.permute.xlu0 %1978  ;;  %v1981_v46 = vpop.permute.xlu1 %1980 }
 0x2ad   :  { %2136 = vst.msk [vmem:[#allocation2 + $0x120] sm:$0xff] %vm2098_vm12, %v1979_v45  ;;  %v7840_v45 = vld [vmem:[%s14993_s0 + $0x1d8] sm:$0x7f] }
 0x2ae   :  { %2137 = vst.msk [vmem:[#allocation2 + $0x128] sm:$0x7f] %vm2100_vm13, %v1981_v46  ;;  %2384 = vrot.lane.b32.xlu0 %v11119_v41, %s8782_s16  ;;  %2386 = vrot.lane.b32.xlu1 %v7816_v43, %s8782_s16  ;;  %v11299_v43 = vld [vmem:[%s14993_s0 + $0x1d0] sm:$0xff] }
 0x2af   :  { %2189 = vst.msk [vmem:[#allocation2 + $0x120] sm:$0x1] %vm2170_vm14, %v15003_v2 }
 0x2b0   :  { %v1983_v51 = vpop.permute.xlu0 %1982  ;;  %v1985_v54 = vpop.permute.xlu1 %1984 }
 0x2b1   :  { %2138 = vst.msk [vmem:[#allocation2 + $0x130] sm:$0xff] %vm2098_vm12, %v1983_v51  ;;  %v11314_v51 = vld [vmem:[%s14993_s0 + $0x1e0] sm:$0xff] }
 0x2b2   :  { %2139 = vst.msk [vmem:[#allocation2 + $0x138] sm:$0x7f] %vm2100_vm13, %v1985_v54  ;;  %2388 = vrot.lane.b32.xlu0 %v11134_v50, %s8782_s16  ;;  %2390 = vrot.lane.b32.xlu1 %v7818_v49, %s8782_s16  ;;  %v7842_v54 = vld [vmem:[%s14993_s0 + $0x1e8] sm:$0x7f] }
 0x2b3   :  { %2190 = vst.msk [vmem:[#allocation2 + $0x130] sm:$0x1] %vm2170_vm14, %v15003_v2 }
 0x2b4   :  { %v1987_v13 = vpop.permute.xlu0 %1986  ;;  %v1989_v59 = vpop.permute.xlu1 %1988 }
 0x2b5   :  { %2140 = vst.msk [vmem:[#allocation2 + $0x140] sm:$0xff] %vm2098_vm12, %v1987_v13 }
 0x2b6   :  { %2141 = vst.msk [vmem:[#allocation2 + $0x148] sm:$0x7f] %vm2100_vm13, %v1989_v59  ;;  %2392 = vrot.lane.b32.xlu0 %v11149_v9, %s8782_s16  ;;  %2394 = vrot.lane.b32.xlu1 %v7820_v57, %s8782_s16  ;;  %v11335_v59 = vld [vmem:[%s14993_s0 + $0x1f0] sm:$0xff] }
 0x2b7   :  { %2191 = vst.msk [vmem:[#allocation2 + $0x140] sm:$0x1] %vm2170_vm14, %v15003_v2 }
 0x2b8   :  { %v1991_v1 = vpop.permute.xlu0 %1990  ;;  %v1993_v3 = vpop.permute.xlu1 %1992 }
 0x2b9   :  { %2142 = vst.msk [vmem:[#allocation2 + $0x150] sm:$0xff] %vm2098_vm12, %v1991_v1 }
 0x2ba   :  { %2143 = vst.msk [vmem:[#allocation2 + $0x158] sm:$0x7f] %vm2100_vm13, %v1993_v3  ;;  %2396 = vrot.lane.b32.xlu0 %v11164_v17, %s8782_s16  ;;  %2398 = vrot.lane.b32.xlu1 %v7822_v62, %s8782_s16  ;;  %v7844_v62 = vld [vmem:[%s14993_s0 + $0x1f8] sm:$0x7f] }
 0x2bb   :  { %2192 = vst.msk [vmem:[#allocation2 + $0x150] sm:$0x1] %vm2170_vm14, %v15003_v2 }
 0x2bc   :  { %v1995_v7 = vpop.permute.xlu0 %1994  ;;  %v1997_v31 = vpop.permute.xlu1 %1996 }
 0x2bd   :  { %2144 = vst.msk [vmem:[#allocation2 + $0x160] sm:$0xff] %vm2098_vm12, %v1995_v7 }
 0x2be   :  { %2145 = vst.msk [vmem:[#allocation2 + $0x168] sm:$0x7f] %vm2100_vm13, %v1997_v31  ;;  %2400 = vrot.lane.b32.xlu0 %v11179_v24, %s8782_s16  ;;  %2402 = vrot.lane.b32.xlu1 %v7824_v26, %s8782_s16  ;;  %v7846_v26 = vld [vmem:[%s14993_s0 + $0x18] sm:$0xff] }
 0x2bf   :  { %2193 = vst.msk [vmem:[#allocation2 + $0x160] sm:$0x1] %vm2170_vm14, %v15003_v2 }
 0x2c0   :  { %v1999_v10 = vpop.permute.xlu0 %1998  ;;  %v2001_v32 = vpop.permute.xlu1 %2000 }
 0x2c1   :  { %2146 = vst.msk [vmem:[#allocation2 + $0x170] sm:$0xff] %vm2098_vm12, %v1999_v10 }
 0x2c2   :  { %2147 = vst.msk [vmem:[#allocation2 + $0x178] sm:$0x7f] %vm2100_vm13, %v2001_v32  ;;  %2404 = vrot.lane.b32.xlu0 %v11194_v28, %s8782_s16  ;;  %2406 = vrot.lane.b32.xlu1 %v7826_v37, %s8782_s16  ;;  %v7848_v37 = vld [vmem:[%s14993_s0 + $0x28] sm:$0xff] }
 0x2c3   :  { %2194 = vst.msk [vmem:[#allocation2 + $0x170] sm:$0x1] %vm2170_vm14, %v15003_v2 }
 0x2c4   :  { %v2003_v47 = vpop.permute.xlu0 %2002  ;;  %v2005_v15 = vpop.permute.xlu1 %2004 }
 0x2c5   :  { %2148 = vst.msk [vmem:[#allocation2 + $0x180] sm:$0xff] %vm2098_vm12, %v2003_v47 }
 0x2c6   :  { %2149 = vst.msk [vmem:[#allocation2 + $0x188] sm:$0x7f] %vm2100_vm13, %v2005_v15  ;;  %2408 = vrot.lane.b32.xlu0 %v11209_v12, %s8782_s16  ;;  %2410 = vrot.lane.b32.xlu1 %v7828_v14, %s8782_s16 }
 0x2c7   :  { %2195 = vst.msk [vmem:[#allocation2 + $0x180] sm:$0x1] %vm2170_vm14, %v15003_v2 }
 0x2c8   :  { %v2007_v58 = vpop.permute.xlu0 %2006  ;;  %v2009_v19 = vpop.permute.xlu1 %2008 }
 0x2c9   :  { %2150 = vst.msk [vmem:[#allocation2 + $0x190] sm:$0xff] %vm2098_vm12, %v2007_v58 }
 0x2ca   :  { %2151 = vst.msk [vmem:[#allocation2 + $0x198] sm:$0x7f] %vm2100_vm13, %v2009_v19  ;;  %2412 = vrot.lane.b32.xlu0 %v11224_v53, %s8782_s16  ;;  %2414 = vrot.lane.b32.xlu1 %v7830_v18, %s8782_s16 }
 0x2cb   :  { %2196 = vst.msk [vmem:[#allocation2 + $0x190] sm:$0x1] %vm2170_vm14, %v15003_v2 }
 0x2cc   :  { %v2011_v23 = vpop.permute.xlu0 %2010  ;;  %v2013_v6 = vpop.permute.xlu1 %2012 }
 0x2cd   :  { %2152 = vst.msk [vmem:[#allocation2 + $0x1a0] sm:$0xff] %vm2098_vm12, %v2011_v23 }
 0x2ce   :  { %2153 = vst.msk [vmem:[#allocation2 + $0x1a8] sm:$0x7f] %vm2100_vm13, %v2013_v6  ;;  %2416 = vrot.lane.b32.xlu0 %v11239_v20, %s8782_s16  ;;  %2418 = vrot.lane.b32.xlu1 %v7832_v44, %s8782_s16 }
 0x2cf   :  { %2197 = vst.msk [vmem:[#allocation2 + $0x1a0] sm:$0x1] %vm2170_vm14, %v15003_v2 }
 0x2d0   :  { %v2015_v27 = vpop.permute.xlu0 %2014  ;;  %v2017_v16 = vpop.permute.xlu1 %2016 }
 0x2d1   :  { %2154 = vst.msk [vmem:[#allocation2 + $0x1b0] sm:$0xff] %vm2098_vm12, %v2015_v27 }
 0x2d2   :  { %2155 = vst.msk [vmem:[#allocation2 + $0x1b8] sm:$0x7f] %vm2100_vm13, %v2017_v16  ;;  %2420 = vrot.lane.b32.xlu0 %v11254_v48, %s8782_s16  ;;  %2422 = vrot.lane.b32.xlu1 %v7834_v11, %s8782_s16 }
 0x2d3   :  { %2198 = vst.msk [vmem:[#allocation2 + $0x1b0] sm:$0x1] %vm2170_vm14, %v15003_v2 }
 0x2d4   :  { %v2019_v34 = vpop.permute.xlu0 %2018  ;;  %v2021_v56 = vpop.permute.xlu1 %2020 }
 0x2d5   :  { %2156 = vst.msk [vmem:[#allocation2 + $0x1c0] sm:$0xff] %vm2098_vm12, %v2019_v34 }
 0x2d6   :  { %2157 = vst.msk [vmem:[#allocation2 + $0x1c8] sm:$0x7f] %vm2100_vm13, %v2021_v56  ;;  %2424 = vrot.lane.b32.xlu0 %v11269_v52, %s8782_s16  ;;  %2426 = vrot.lane.b32.xlu1 %v7836_v33, %s8782_s16 }
 0x2d7   :  { %2199 = vst.msk [vmem:[#allocation2 + $0x1c0] sm:$0x1] %vm2170_vm14, %v15003_v2 }
 0x2d8   :  { %v2023_v35 = vpop.permute.xlu0 %2022  ;;  %v2025_v60 = vpop.permute.xlu1 %2024 }
 0x2d9   :  { %2158 = vst.msk [vmem:[#allocation2 + $0x1d0] sm:$0xff] %vm2098_vm12, %v2023_v35 }
 0x2da   :  { %2159 = vst.msk [vmem:[#allocation2 + $0x1d8] sm:$0x7f] %vm2100_vm13, %v2025_v60  ;;  %2428 = vrot.lane.b32.xlu0 %v11284_v29, %s8782_s16  ;;  %2430 = vrot.lane.b32.xlu1 %v7838_v39, %s8782_s16 }
 0x2db   :  { %2200 = vst.msk [vmem:[#allocation2 + $0x1d0] sm:$0x1] %vm2170_vm14, %v15003_v2 }
 0x2dc   :  { %v2027_v46 = vpop.permute.xlu0 %2026  ;;  %v2029_v49 = vpop.permute.xlu1 %2028 }
 0x2dd   :  { %2160 = vst.msk [vmem:[#allocation2 + $0x1e0] sm:$0xff] %vm2098_vm12, %v2027_v46 }
 0x2de   :  { %2161 = vst.msk [vmem:[#allocation2 + $0x1e8] sm:$0x7f] %vm2100_vm13, %v2029_v49  ;;  %2432 = vrot.lane.b32.xlu0 %v11299_v43, %s8782_s16  ;;  %2434 = vrot.lane.b32.xlu1 %v7840_v45, %s8782_s16 }
 0x2df   :  { %2201 = vst.msk [vmem:[#allocation2 + $0x1e0] sm:$0x1] %vm2170_vm14, %v15003_v2 }
 0x2e0   :  { %v2031_v57 = vpop.permute.xlu0 %2030  ;;  %v2033_v13 = vpop.permute.xlu1 %2032 }
 0x2e1   :  { %2162 = vst.msk [vmem:[#allocation2 + $0x1f0] sm:$0xff] %vm2098_vm12, %v2031_v57 }
 0x2e2   :  { %2163 = vst.msk [vmem:[#allocation2 + $0x1f8] sm:$0x7f] %vm2100_vm13, %v2033_v13  ;;  %2436 = vrot.lane.b32.xlu0 %v11314_v51, %s8782_s16  ;;  %2438 = vrot.lane.b32.xlu1 %v7842_v54, %s8782_s16  ;;  %vm3591_vm13 = vcmask 1043456  }
 0x2e3   :  { %2168 = vst.msk [vmem:[#allocation2 + $0x1f0] sm:$0xff] %vm2165_vm15, %v15003_v2  ;;  %2169 = vst.msk [vmem:[#allocation2 + $0x1f8] sm:$0xff] %vm2165_vm15, %v15003_v2 }
 0x2e4   :  { %2202 = vst.msk [vmem:[#allocation2 + $0x1f0] sm:$0x1] %vm2170_vm14, %v15003_v2  ;;  %v2325_v1 = vpop.permute.xlu0 %2324  ;;  %v2327_v3 = vpop.permute.xlu1 %2326 }
 0x2e5   :  { %2569 = vst.msk [vmem:[#allocation2 + $0x1f8] sm:$0xff] %vm2565_vm7, %v15003_v2  ;;  %2568 = vst.msk [vmem:[#allocation2 + $0x1f0] sm:$0xff] %vm2565_vm7, %v15003_v2 }
 0x2e6   :  { %2934 = vst.msk [vmem:[#allocation2 + $0x1f8] sm:$0xff] %vm2930_vm11, %v15003_v2  ;;  %2933 = vst.msk [vmem:[#allocation2 + $0x1f0] sm:$0xff] %vm2930_vm11, %v15003_v2  ;;  %2440 = vrot.lane.b32.xlu0 %v11335_v59, %s8782_s16  ;;  %2442 = vrot.lane.b32.xlu1 %v7844_v62, %s8782_s16 }
 0x2e7   :  { %2967 = vst.msk [vmem:[#allocation2 + $0x1ff] sm:$0x1] %vm15002_vm10, %v15003_v2 }
 0x2e8   :  { %2504 = vst.msk [vmem:[#allocation2 + $0x1] sm:$0xff] %vm2165_vm15, %v2325_v1  ;;  %v2329_v7 = vpop.permute.xlu0 %2328  ;;  %v2331_v31 = vpop.permute.xlu1 %2330 }
 0x2e9   :  { %2506 = vst.msk [vmem:[#allocation2 + $0x9] sm:$0x7f] %vm15001_vm8, %v2327_v3  ;;  %2508 = vst.msk [vmem:[#allocation2 + $0x19] sm:$0x7f] %vm15001_vm8, %v2331_v31 }
 0x2ea   :  { %2507 = vst.msk [vmem:[#allocation2 + $0x11] sm:$0xff] %vm2165_vm15, %v2329_v7  ;;  %2690 = vrot.lane.b32.xlu0 %v10880_v0, %s8783_s14  ;;  %2692 = vrot.lane.b32.xlu1 %v7846_v26, %s8783_s14  ;;  %v7850_v0 = vld [vmem:[%s14993_s0 + $0x38] sm:$0xff] }
 0x2ec   :  { %v2333_v10 = vpop.permute.xlu0 %2332  ;;  %v2335_v32 = vpop.permute.xlu1 %2334 }
 0x2ed   :  { %2509 = vst.msk [vmem:[#allocation2 + $0x21] sm:$0xff] %vm2165_vm15, %v2333_v10 }
 0x2ee   :  { %2510 = vst.msk [vmem:[#allocation2 + $0x29] sm:$0x7f] %vm15001_vm8, %v2335_v32  ;;  %2694 = vrot.lane.b32.xlu0 %v10895_v5, %s8783_s14  ;;  %2696 = vrot.lane.b32.xlu1 %v7848_v37, %s8783_s14  ;;  %v7852_v5 = vld [vmem:[%s14993_s0 + $0x48] sm:$0xff] }
 0x2f0   :  { %v2337_v14 = vpop.permute.xlu0 %2336  ;;  %v2339_v47 = vpop.permute.xlu1 %2338 }
 0x2f1   :  { %2511 = vst.msk [vmem:[#allocation2 + $0x31] sm:$0xff] %vm2165_vm15, %v2337_v14 }
 0x2f2   :  { %2512 = vst.msk [vmem:[#allocation2 + $0x39] sm:$0x7f] %vm15001_vm8, %v2339_v47  ;;  %2698 = vrot.lane.b32.xlu0 %v10910_v55, %s8783_s14  ;;  %2700 = vrot.lane.b32.xlu1 %v7850_v0, %s8783_s14  ;;  %v7854_v55 = vld [vmem:[%s14993_s0 + $0x58] sm:$0xff] }
 0x2f4   :  { %v2341_v15 = vpop.permute.xlu0 %2340  ;;  %v2343_v18 = vpop.permute.xlu1 %2342 }
 0x2f5   :  { %2513 = vst.msk [vmem:[#allocation2 + $0x41] sm:$0xff] %vm2165_vm15, %v2341_v15 }
 0x2f6   :  { %2514 = vst.msk [vmem:[#allocation2 + $0x49] sm:$0x7f] %vm15001_vm8, %v2343_v18  ;;  %2702 = vrot.lane.b32.xlu0 %v10925_v61, %s8783_s14  ;;  %2704 = vrot.lane.b32.xlu1 %v7852_v5, %s8783_s14  ;;  %v7856_v61 = vld [vmem:[%s14993_s0 + $0x68] sm:$0xff] }
 0x2f8   :  { %v2345_v58 = vpop.permute.xlu0 %2344  ;;  %v2347_v19 = vpop.permute.xlu1 %2346 }
 0x2f9   :  { %2515 = vst.msk [vmem:[#allocation2 + $0x51] sm:$0xff] %vm2165_vm15, %v2345_v58 }
 0x2fa   :  { %2516 = vst.msk [vmem:[#allocation2 + $0x59] sm:$0x7f] %vm15001_vm8, %v2347_v19  ;;  %2706 = vrot.lane.b32.xlu0 %v10940_v21, %s8783_s14  ;;  %2708 = vrot.lane.b32.xlu1 %v7854_v55, %s8783_s14  ;;  %v7858_v21 = vld [vmem:[%s14993_s0 + $0x78] sm:$0xff] }
 0x2fc   :  { %v2349_v44 = vpop.permute.xlu0 %2348  ;;  %v2351_v23 = vpop.permute.xlu1 %2350 }
 0x2fd   :  { %2517 = vst.msk [vmem:[#allocation2 + $0x61] sm:$0xff] %vm2165_vm15, %v2349_v44 }
 0x2fe   :  { %2518 = vst.msk [vmem:[#allocation2 + $0x69] sm:$0x7f] %vm15001_vm8, %v2351_v23  ;;  %2710 = vrot.lane.b32.xlu0 %v10955_v4, %s8783_s14  ;;  %2712 = vrot.lane.b32.xlu1 %v7856_v61, %s8783_s14  ;;  %v7860_v4 = vld [vmem:[%s14993_s0 + $0x88] sm:$0xff] }
 0x300   :  { %v2353_v6 = vpop.permute.xlu0 %2352  ;;  %v2355_v11 = vpop.permute.xlu1 %2354 }
 0x301   :  { %2519 = vst.msk [vmem:[#allocation2 + $0x71] sm:$0xff] %vm2165_vm15, %v2353_v6 }
 0x302   :  { %2520 = vst.msk [vmem:[#allocation2 + $0x79] sm:$0x7f] %vm15001_vm8, %v2355_v11  ;;  %2714 = vrot.lane.b32.xlu0 %v10970_v8, %s8783_s14  ;;  %2716 = vrot.lane.b32.xlu1 %v7858_v21, %s8783_s14  ;;  %v7862_v8 = vld [vmem:[%s14993_s0 + $0x98] sm:$0xff] }
 0x304   :  { %v2357_v27 = vpop.permute.xlu0 %2356  ;;  %v2359_v16 = vpop.permute.xlu1 %2358 }
 0x305   :  { %2521 = vst.msk [vmem:[#allocation2 + $0x81] sm:$0xff] %vm2165_vm15, %v2357_v27 }
 0x306   :  { %2522 = vst.msk [vmem:[#allocation2 + $0x89] sm:$0x7f] %vm15001_vm8, %v2359_v16  ;;  %2718 = vrot.lane.b32.xlu0 %v10985_v42, %s8783_s14  ;;  %2720 = vrot.lane.b32.xlu1 %v7860_v4, %s8783_s14  ;;  %v7864_v42 = vld [vmem:[%s14993_s0 + $0xa8] sm:$0xff]  ;;  %v3397_v16 = vld [vmem:[%s14994_s1 + $0x20] sm:$0xf] }
 0x307   :  { %8298 = vmatprep.subr.msk.mxu0 %vm3591_vm13, %v3397_v16 }
 0x308   :  { %v2361_v33 = vpop.permute.xlu0 %2360  ;;  %v2363_v34 = vpop.permute.xlu1 %2362  ;;  %8299 = vmatpush3.msk.msra.mxu0 %vm3591_vm13, %v3397_v16 }
 0x309   :  { %2523 = vst.msk [vmem:[#allocation2 + $0x91] sm:$0xff] %vm2165_vm15, %v2361_v33 }
 0x30a   :  { %2524 = vst.msk [vmem:[#allocation2 + $0x99] sm:$0x7f] %vm15001_vm8, %v2363_v34  ;;  %2722 = vrot.lane.b32.xlu0 %v11000_v36, %s8783_s14  ;;  %2724 = vrot.lane.b32.xlu1 %v7862_v8, %s8783_s14  ;;  %v7866_v36 = vld [vmem:[%s14993_s0 + $0xb8] sm:$0xff]  ;;  %v3395_v34 = vld [vmem:[%s14994_s1 + $0x10] sm:$0xff] }
 0x30c   :  { %v2365_v56 = vpop.permute.xlu0 %2364  ;;  %v2367_v39 = vpop.permute.xlu1 %2366 }
 0x30d   :  { %2525 = vst.msk [vmem:[#allocation2 + $0xa1] sm:$0xff] %vm2165_vm15, %v2365_v56 }
 0x30e   :  { %2526 = vst.msk [vmem:[#allocation2 + $0xa9] sm:$0x7f] %vm15001_vm8, %v2367_v39  ;;  %2726 = vrot.lane.b32.xlu0 %v11015_v40, %s8783_s14  ;;  %2728 = vrot.lane.b32.xlu1 %v7864_v42, %s8783_s14  ;;  %v7868_v40 = vld [vmem:[%s14993_s0 + $0xc8] sm:$0xff] }
 0x30f   :  { %v7902_v42 = vld [vmem:[%s14993_s0 + $0x1e8] sm:$0xff] }
 0x310   :  { %v2369_v35 = vpop.permute.xlu0 %2368  ;;  %v2371_v60 = vpop.permute.xlu1 %2370 }
 0x311   :  { %2527 = vst.msk [vmem:[#allocation2 + $0xb1] sm:$0xff] %vm2165_vm15, %v2369_v35 }
 0x312   :  { %2528 = vst.msk [vmem:[#allocation2 + $0xb9] sm:$0x7f] %vm15001_vm8, %v2371_v60  ;;  %2730 = vrot.lane.b32.xlu0 %v11030_v63, %s8783_s14  ;;  %2732 = vrot.lane.b32.xlu1 %v7866_v36, %s8783_s14  ;;  %v7870_v63 = vld [vmem:[%s14993_s0 + $0xd8] sm:$0xff] }
 0x313   :  { %v7904_v36 = vld [vmem:[%s14993_s0 + $0x1f8] sm:$0xff] }
 0x314   :  { %v2373_v45 = vpop.permute.xlu0 %2372  ;;  %v2375_v46 = vpop.permute.xlu1 %2374 }
 0x315   :  { %2529 = vst.msk [vmem:[#allocation2 + $0xc1] sm:$0xff] %vm2165_vm15, %v2373_v45  ;;  %v7906_v45 = vld [vmem:[%s14993_s0 + $0x19] sm:$0x7f] }
 0x316   :  { %2530 = vst.msk [vmem:[#allocation2 + $0xc9] sm:$0x7f] %vm15001_vm8, %v2375_v46  ;;  %2734 = vrot.lane.b32.xlu0 %v11045_v25, %s8783_s14  ;;  %2736 = vrot.lane.b32.xlu1 %v7868_v40, %s8783_s14  ;;  %v7872_v25 = vld [vmem:[%s14993_s0 + $0xe8] sm:$0xff]  ;;  %v3393_v40 = vld [vmem:[%s14994_s1] sm:$0xff] }
 0x318   :  { %v2377_v49 = vpop.permute.xlu0 %2376  ;;  %v2379_v54 = vpop.permute.xlu1 %2378 }
 0x319   :  { %2531 = vst.msk [vmem:[#allocation2 + $0xd1] sm:$0xff] %vm2165_vm15, %v2377_v49  ;;  %v7908_v49 = vld [vmem:[%s14993_s0 + $0x29] sm:$0x7f] }
 0x31a   :  { %2532 = vst.msk [vmem:[#allocation2 + $0xd9] sm:$0x7f] %vm15001_vm8, %v2379_v54  ;;  %2738 = vrot.lane.b32.xlu0 %v11060_v30, %s8783_s14  ;;  %2740 = vrot.lane.b32.xlu1 %v7870_v63, %s8783_s14  ;;  %v7874_v30 = vld [vmem:[%s14993_s0 + $0xf8] sm:$0xff] }
 0x31c   :  { %v2381_v57 = vpop.permute.xlu0 %2380  ;;  %v2383_v13 = vpop.permute.xlu1 %2382 }
 0x31d   :  { %2533 = vst.msk [vmem:[#allocation2 + $0xe1] sm:$0xff] %vm2165_vm15, %v2381_v57  ;;  %v7909_v57 = vld [vmem:[%s14993_s0 + $0x31] sm:$0xff] }
 0x31e   :  { %2534 = vst.msk [vmem:[#allocation2 + $0xe9] sm:$0x7f] %vm15001_vm8, %v2383_v13  ;;  %2742 = vrot.lane.b32.xlu0 %v11081_v22, %s8783_s14  ;;  %2744 = vrot.lane.b32.xlu1 %v7872_v25, %s8783_s14  ;;  %v7876_v22 = vld [vmem:[%s14993_s0 + $0x118] sm:$0xff] }
 0x31f   :  { %v7910_v13 = vld [vmem:[%s14993_s0 + $0x39] sm:$0x7f] }
 0x320   :  { %v2385_v62 = vpop.permute.xlu0 %2384  ;;  %v2387_v1 = vpop.permute.xlu1 %2386 }
 0x321   :  { %2535 = vst.msk [vmem:[#allocation2 + $0x101] sm:$0xff] %vm2165_vm15, %v2385_v62 }
 0x322   :  { %2536 = vst.msk [vmem:[#allocation2 + $0x109] sm:$0x7f] %vm15001_vm8, %v2387_v1  ;;  %2746 = vrot.lane.b32.xlu0 %v11104_v38, %s8783_s14  ;;  %2748 = vrot.lane.b32.xlu1 %v7874_v30, %s8783_s14  ;;  %v7878_v38 = vld [vmem:[%s14993_s0 + $0x128] sm:$0xff] }
 0x323   :  { %v7911_v1 = vld [vmem:[%s14993_s0 + $0x41] sm:$0xff] }
 0x324   :  { %v2389_v3 = vpop.permute.xlu0 %2388  ;;  %v2391_v26 = vpop.permute.xlu1 %2390 }
 0x325   :  { %2537 = vst.msk [vmem:[#allocation2 + $0x111] sm:$0xff] %vm2165_vm15, %v2389_v3 }
 0x326   :  { %2538 = vst.msk [vmem:[#allocation2 + $0x119] sm:$0x7f] %vm15001_vm8, %v2391_v26  ;;  %2750 = vrot.lane.b32.xlu0 %v11119_v41, %s8783_s14  ;;  %2752 = vrot.lane.b32.xlu1 %v7876_v22, %s8783_s14  ;;  %v7880_v41 = vld [vmem:[%s14993_s0 + $0x138] sm:$0xff]  ;;  %v7912_v22 = vld [vmem:[%s14993_s0 + $0x49] sm:$0x7f] }
 0x328   :  { %v2393_v7 = vpop.permute.xlu0 %2392  ;;  %v2395_v31 = vpop.permute.xlu1 %2394 }
 0x329   :  { %2539 = vst.msk [vmem:[#allocation2 + $0x121] sm:$0xff] %vm2165_vm15, %v2393_v7  ;;  %v7914_v7 = vld [vmem:[%s14993_s0 + $0x59] sm:$0x7f] }
 0x32a   :  { %2540 = vst.msk [vmem:[#allocation2 + $0x129] sm:$0x7f] %vm15001_vm8, %v2395_v31  ;;  %2754 = vrot.lane.b32.xlu0 %v11134_v50, %s8783_s14  ;;  %2756 = vrot.lane.b32.xlu1 %v7878_v38, %s8783_s14  ;;  %v7882_v50 = vld [vmem:[%s14993_s0 + $0x148] sm:$0xff]  ;;  %v7913_v38 = vld [vmem:[%s14993_s0 + $0x51] sm:$0xff] }
 0x32c   :  { %v2397_v37 = vpop.permute.xlu0 %2396  ;;  %v2399_v10 = vpop.permute.xlu1 %2398 }
 0x32d   :  { %2541 = vst.msk [vmem:[#allocation2 + $0x131] sm:$0xff] %vm2165_vm15, %v2397_v37  ;;  %v7915_v37 = vld [vmem:[%s14993_s0 + $0x61] sm:$0xff] }
 0x32e   :  { %2542 = vst.msk [vmem:[#allocation2 + $0x139] sm:$0x7f] %vm15001_vm8, %v2399_v10  ;;  %2758 = vrot.lane.b32.xlu0 %v11149_v9, %s8783_s14  ;;  %2760 = vrot.lane.b32.xlu1 %v7880_v41, %s8783_s14  ;;  %v7884_v9 = vld [vmem:[%s14993_s0 + $0x158] sm:$0xff]  ;;  %v7916_v10 = vld [vmem:[%s14993_s0 + $0x69] sm:$0x7f] }
 0x330   :  { %v2401_v32 = vpop.permute.xlu0 %2400  ;;  %v2403_v0 = vpop.permute.xlu1 %2402 }
 0x331   :  { %2543 = vst.msk [vmem:[#allocation2 + $0x141] sm:$0xff] %vm2165_vm15, %v2401_v32 }
 0x332   :  { %2544 = vst.msk [vmem:[#allocation2 + $0x149] sm:$0x7f] %vm15001_vm8, %v2403_v0  ;;  %2762 = vrot.lane.b32.xlu0 %v11164_v17, %s8783_s14  ;;  %2764 = vrot.lane.b32.xlu1 %v7882_v50, %s8783_s14  ;;  %v7886_v17 = vld [vmem:[%s14993_s0 + $0x168] sm:$0xff]  ;;  %v7917_v0 = vld [vmem:[%s14993_s0 + $0x71] sm:$0xff] }
 0x334   :  { %v2405_v14 = vpop.permute.xlu0 %2404  ;;  %v2407_v47 = vpop.permute.xlu1 %2406 }
 0x335   :  { %2545 = vst.msk [vmem:[#allocation2 + $0x151] sm:$0xff] %vm2165_vm15, %v2405_v14 }
 0x336   :  { %2546 = vst.msk [vmem:[#allocation2 + $0x159] sm:$0x7f] %vm15001_vm8, %v2407_v47  ;;  %2766 = vrot.lane.b32.xlu0 %v11179_v24, %s8783_s14  ;;  %2768 = vrot.lane.b32.xlu1 %v7884_v9, %s8783_s14  ;;  %v7888_v24 = vld [vmem:[%s14993_s0 + $0x178] sm:$0xff] }
 0x337   :  { %v7918_v9 = vld [vmem:[%s14993_s0 + $0x79] sm:$0x7f] }
 0x338   :  { %v2409_v5 = vpop.permute.xlu0 %2408  ;;  %v2411_v15 = vpop.permute.xlu1 %2410 }
 0x339   :  { %2547 = vst.msk [vmem:[#allocation2 + $0x161] sm:$0xff] %vm2165_vm15, %v2409_v5  ;;  %v7920_v5 = vld [vmem:[%s14993_s0 + $0x89] sm:$0x7f] }
 0x33a   :  { %2548 = vst.msk [vmem:[#allocation2 + $0x169] sm:$0x7f] %vm15001_vm8, %v2411_v15  ;;  %2770 = vrot.lane.b32.xlu0 %v11194_v28, %s8783_s14  ;;  %2772 = vrot.lane.b32.xlu1 %v7886_v17, %s8783_s14  ;;  %v7890_v28 = vld [vmem:[%s14993_s0 + $0x188] sm:$0xff] }
 0x33b   :  { %v7919_v17 = vld [vmem:[%s14993_s0 + $0x81] sm:$0xff] }
 0x33c   :  { %v2413_v18 = vpop.permute.xlu0 %2412  ;;  %v2415_v55 = vpop.permute.xlu1 %2414 }
 0x33d   :  { %2549 = vst.msk [vmem:[#allocation2 + $0x171] sm:$0xff] %vm2165_vm15, %v2413_v18  ;;  %v7921_v18 = vld [vmem:[%s14993_s0 + $0x91] sm:$0xff] }
 0x33e   :  { %2550 = vst.msk [vmem:[#allocation2 + $0x179] sm:$0x7f] %vm15001_vm8, %v2415_v55  ;;  %2774 = vrot.lane.b32.xlu0 %v11209_v12, %s8783_s14  ;;  %2776 = vrot.lane.b32.xlu1 %v7888_v24, %s8783_s14  ;;  %v7892_v12 = vld [vmem:[%s14993_s0 + $0x198] sm:$0xff] }
 0x33f   :  { %v7922_v55 = vld [vmem:[%s14993_s0 + $0x99] sm:$0x7f] }
 0x340   :  { %v2417_v58 = vpop.permute.xlu0 %2416  ;;  %v2419_v19 = vpop.permute.xlu1 %2418 }
 0x341   :  { %2551 = vst.msk [vmem:[#allocation2 + $0x181] sm:$0xff] %vm2165_vm15, %v2417_v58 }
 0x342   :  { %2552 = vst.msk [vmem:[#allocation2 + $0x189] sm:$0x7f] %vm15001_vm8, %v2419_v19  ;;  %2778 = vrot.lane.b32.xlu0 %v11224_v53, %s8783_s14  ;;  %2780 = vrot.lane.b32.xlu1 %v7890_v28, %s8783_s14  ;;  %v7894_v53 = vld [vmem:[%s14993_s0 + $0x1a8] sm:$0xff] }
 0x343   :  { %v7923_v19 = vld [vmem:[%s14993_s0 + $0xa1] sm:$0xff] }
 0x344   :  { %v2421_v61 = vpop.permute.xlu0 %2420  ;;  %v2423_v44 = vpop.permute.xlu1 %2422 }
 0x345   :  { %2553 = vst.msk [vmem:[#allocation2 + $0x191] sm:$0xff] %vm2165_vm15, %v2421_v61 }
 0x346   :  { %2554 = vst.msk [vmem:[#allocation2 + $0x199] sm:$0x7f] %vm15001_vm8, %v2423_v44  ;;  %2782 = vrot.lane.b32.xlu0 %v11239_v20, %s8783_s14  ;;  %2784 = vrot.lane.b32.xlu1 %v7892_v12, %s8783_s14  ;;  %v7896_v20 = vld [vmem:[%s14993_s0 + $0x1b8] sm:$0xff]  ;;  %v7924_v12 = vld [vmem:[%s14993_s0 + $0xa9] sm:$0x7f] }
 0x348   :  { %v2425_v23 = vpop.permute.xlu0 %2424  ;;  %v2427_v21 = vpop.permute.xlu1 %2426 }
 0x349   :  { %2555 = vst.msk [vmem:[#allocation2 + $0x1a1] sm:$0xff] %vm2165_vm15, %v2425_v23  ;;  %v7926_v23 = vld [vmem:[%s14993_s0 + $0xb9] sm:$0x7f] }
 0x34a   :  { %2556 = vst.msk [vmem:[#allocation2 + $0x1a9] sm:$0x7f] %vm15001_vm8, %v2427_v21  ;;  %2786 = vrot.lane.b32.xlu0 %v11254_v48, %s8783_s14  ;;  %2788 = vrot.lane.b32.xlu1 %v7894_v53, %s8783_s14  ;;  %v7898_v48 = vld [vmem:[%s14993_s0 + $0x1c8] sm:$0xff]  ;;  %v7925_v53 = vld [vmem:[%s14993_s0 + $0xb1] sm:$0xff] }
 0x34c   :  { %v2429_v6 = vpop.permute.xlu0 %2428  ;;  %v2431_v11 = vpop.permute.xlu1 %2430 }
 0x34d   :  { %2557 = vst.msk [vmem:[#allocation2 + $0x1b1] sm:$0xff] %vm2165_vm15, %v2429_v6  ;;  %v7927_v6 = vld [vmem:[%s14993_s0 + $0xc1] sm:$0xff] }
 0x34e   :  { %2558 = vst.msk [vmem:[#allocation2 + $0x1b9] sm:$0x7f] %vm15001_vm8, %v2431_v11  ;;  %2790 = vrot.lane.b32.xlu0 %v11269_v52, %s8783_s14  ;;  %2792 = vrot.lane.b32.xlu1 %v7896_v20, %s8783_s14  ;;  %v7900_v52 = vld [vmem:[%s14993_s0 + $0x1d8] sm:$0xff]  ;;  %v7928_v11 = vld [vmem:[%s14993_s0 + $0xc9] sm:$0x7f] }
 0x350   :  { %v2433_v4 = vpop.permute.xlu0 %2432  ;;  %v2435_v27 = vpop.permute.xlu1 %2434 }
 0x351   :  { %2559 = vst.msk [vmem:[#allocation2 + $0x1c1] sm:$0xff] %vm2165_vm15, %v2433_v4 }
 0x352   :  { %2560 = vst.msk [vmem:[#allocation2 + $0x1c9] sm:$0x7f] %vm15001_vm8, %v2435_v27  ;;  %2794 = vrot.lane.b32.xlu0 %v11284_v29, %s8783_s14  ;;  %2796 = vrot.lane.b32.xlu1 %v7898_v48, %s8783_s14  ;;  %v3396_v29 = vld [vmem:[%s14994_s1 + $0x18] sm:$0xff] }
 0x353   :  { %8300 = vmatprep.subr.mxu0 %v3396_v29  ;;  %v7929_v27 = vld [vmem:[%s14993_s0 + $0xd1] sm:$0xff] }
 0x354   :  { %v2437_v8 = vpop.permute.xlu0 %2436  ;;  %v2439_v33 = vpop.permute.xlu1 %2438  ;;  %8301 = vmatpush3.msra.mxu0 %v3396_v29  ;;  %v7932_v29 = vld [vmem:[%s14993_s0 + $0xe9] sm:$0x7f] }
 0x355   :  { %2561 = vst.msk [vmem:[#allocation2 + $0x1d1] sm:$0xff] %vm2165_vm15, %v2437_v8  ;;  %8302 = vmatprep.subr.mxu0 %v3395_v34 }
 0x356   :  { %2562 = vst.msk [vmem:[#allocation2 + $0x1d9] sm:$0x7f] %vm15001_vm8, %v2439_v33  ;;  %2798 = vrot.lane.b32.xlu0 %v11299_v43, %s8783_s14  ;;  %2800 = vrot.lane.b32.xlu1 %v7900_v52, %s8783_s14  ;;  %v3394_v43 = vld [vmem:[%s14994_s1 + $0x8] sm:$0xff]  ;;  %s8784_s1 = smov 32   ;;  %v7930_v52 = vld [vmem:[%s14993_s0 + $0xd9] sm:$0x7f] }
 0x357   :  { %8303 = vmatpush3.msra.mxu0 %v3395_v34  ;;  %v7931_v33 = vld [vmem:[%s14993_s0 + $0xe1] sm:$0xff] }
 0x358   :  { %v2441_v56 = vpop.permute.xlu0 %2440  ;;  %v2443_v39 = vpop.permute.xlu1 %2442  ;;  %8304 = vmatprep.subr.mxu0 %v3394_v43 }
 0x359   :  { %2563 = vst.msk [vmem:[#allocation2 + $0x1e1] sm:$0xff] %vm2165_vm15, %v2441_v56  ;;  %8305 = vmatpush3.msra.mxu0 %v3394_v43  ;;  %v11780_v56 = vld [vmem:[#allocation2 + $0xf0] sm:$0xff]  ;;  %v7934_v43 = vld [vmem:[%s14993_s0 + $0xf9] sm:$0x7f] }
 0x35a   :  { %2564 = vst.msk [vmem:[#allocation2 + $0x1e9] sm:$0x7f] %vm15001_vm8, %v2443_v39  ;;  %2802 = vrot.lane.b32.xlu0 %v11314_v51, %s8783_s14  ;;  %2804 = vrot.lane.b32.xlu1 %v7902_v42, %s8783_s14  ;;  %v7905_v51 = vld [vmem:[%s14993_s0 + $0x11] sm:$0xff]  ;;  %vm3269_vm8 = vcmask 293120  }
 0x35b   :  { %8306 = vmatprep.subr.mxu0 %v3393_v40  ;;  %v7933_v39 = vld [vmem:[%s14993_s0 + $0xf1] sm:$0xff]  ;;  %4776 = vst.msk [vmem:[#allocation2 + $0xf0] sm:$0x1] %vm22_vm1, %v15003_v2 }
 0x35c   :  { %v2691_v35 = vpop.permute.xlu0 %2690  ;;  %v2693_v60 = vpop.permute.xlu1 %2692  ;;  %8307 = vmatpush3.msra.mxu0 %v3393_v40  ;;  %v7936_v40 = vld [vmem:[%s14993_s0 + $0x119] sm:$0x7f] }
 0x35d   :  { %2870 = vst.msk [vmem:[#allocation2] sm:$0xff] %vm2565_vm7, %v2691_v35  ;;  %2871 = vst.msk [vmem:[#allocation2 + $0x8] sm:$0xff] %vm2565_vm7, %v2693_v60  ;;  %v7935_v60 = vld [vmem:[%s14993_s0 + $0x111] sm:$0xff] }
 0x35e   :  { %2936 = vst.msk [vmem:[#allocation2 + $0xf] sm:$0x1] %vm15002_vm10, %v15003_v2  ;;  %2806 = vrot.lane.b32.xlu0 %v11335_v59, %s8783_s14  ;;  %2808 = vrot.lane.b32.xlu1 %v7904_v36, %s8783_s14  ;;  %v7907_v59 = vld [vmem:[%s14993_s0 + $0x21] sm:$0xff] }
 0x360   :  { %v2695_v46 = vpop.permute.xlu0 %2694  ;;  %v2697_v63 = vpop.permute.xlu1 %2696 }
 0x361   :  { %2872 = vst.msk [vmem:[#allocation2 + $0x10] sm:$0xff] %vm2565_vm7, %v2695_v46  ;;  %2873 = vst.msk [vmem:[#allocation2 + $0x18] sm:$0xff] %vm2565_vm7, %v2697_v63  ;;  %v7937_v46 = vld [vmem:[%s14993_s0 + $0x121] sm:$0xff]  ;;  %v7938_v63 = vld [vmem:[%s14993_s0 + $0x129] sm:$0x7f] }
 0x362   :  { %2937 = vst.msk [vmem:[#allocation2 + $0x1f] sm:$0x1] %vm15002_vm10, %v15003_v2  ;;  %3088 = vrot.lane.b32.xlu0 %v7905_v51, %s8784_s1  ;;  %3090 = vrot.lane.b32.xlu1 %v7906_v45, %s8784_s1 }
 0x364   :  { %v2699_v54 = vpop.permute.xlu0 %2698  ;;  %v2701_v25 = vpop.permute.xlu1 %2700 }
 0x365   :  { %2874 = vst.msk [vmem:[#allocation2 + $0x20] sm:$0xff] %vm2565_vm7, %v2699_v54  ;;  %2875 = vst.msk [vmem:[#allocation2 + $0x28] sm:$0xff] %vm2565_vm7, %v2701_v25  ;;  %v7939_v54 = vld [vmem:[%s14993_s0 + $0x131] sm:$0xff]  ;;  %v7940_v25 = vld [vmem:[%s14993_s0 + $0x139] sm:$0x7f] }
 0x366   :  { %2938 = vst.msk [vmem:[#allocation2 + $0x2f] sm:$0x1] %vm15002_vm10, %v15003_v2  ;;  %3092 = vrot.lane.b32.xlu0 %v7907_v59, %s8784_s1  ;;  %3094 = vrot.lane.b32.xlu1 %v7908_v49, %s8784_s1 }
 0x368   :  { %v2703_v30 = vpop.permute.xlu0 %2702  ;;  %v2705_v62 = vpop.permute.xlu1 %2704 }
 0x369   :  { %2876 = vst.msk [vmem:[#allocation2 + $0x30] sm:$0xff] %vm2565_vm7, %v2703_v30  ;;  %2877 = vst.msk [vmem:[#allocation2 + $0x38] sm:$0xff] %vm2565_vm7, %v2705_v62  ;;  %v7941_v30 = vld [vmem:[%s14993_s0 + $0x141] sm:$0xff]  ;;  %v7942_v62 = vld [vmem:[%s14993_s0 + $0x149] sm:$0x7f] }
 0x36a   :  { %2939 = vst.msk [vmem:[#allocation2 + $0x3f] sm:$0x1] %vm15002_vm10, %v15003_v2  ;;  %3096 = vrot.lane.b32.xlu0 %v7909_v57, %s8784_s1  ;;  %3098 = vrot.lane.b32.xlu1 %v7910_v13, %s8784_s1 }
 0x36c   :  { %v2707_v3 = vpop.permute.xlu0 %2706  ;;  %v2709_v26 = vpop.permute.xlu1 %2708 }
 0x36d   :  { %2878 = vst.msk [vmem:[#allocation2 + $0x40] sm:$0xff] %vm2565_vm7, %v2707_v3  ;;  %2879 = vst.msk [vmem:[#allocation2 + $0x48] sm:$0xff] %vm2565_vm7, %v2709_v26  ;;  %v7943_v3 = vld [vmem:[%s14993_s0 + $0x151] sm:$0xff]  ;;  %v7944_v26 = vld [vmem:[%s14993_s0 + $0x159] sm:$0x7f] }
 0x36e   :  { %2940 = vst.msk [vmem:[#allocation2 + $0x4f] sm:$0x1] %vm15002_vm10, %v15003_v2  ;;  %3100 = vrot.lane.b32.xlu0 %v7911_v1, %s8784_s1  ;;  %3102 = vrot.lane.b32.xlu1 %v7912_v22, %s8784_s1 }
 0x370   :  { %v2711_v31 = vpop.permute.xlu0 %2710  ;;  %v2713_v41 = vpop.permute.xlu1 %2712 }
 0x371   :  { %2880 = vst.msk [vmem:[#allocation2 + $0x50] sm:$0xff] %vm2565_vm7, %v2711_v31  ;;  %2881 = vst.msk [vmem:[#allocation2 + $0x58] sm:$0xff] %vm2565_vm7, %v2713_v41  ;;  %v7945_v31 = vld [vmem:[%s14993_s0 + $0x161] sm:$0xff]  ;;  %v7946_v41 = vld [vmem:[%s14993_s0 + $0x169] sm:$0x7f] }
 0x372   :  { %2941 = vst.msk [vmem:[#allocation2 + $0x5f] sm:$0x1] %vm15002_vm10, %v15003_v2  ;;  %3104 = vrot.lane.b32.xlu0 %v7913_v38, %s8784_s1  ;;  %3106 = vrot.lane.b32.xlu1 %v7914_v7, %s8784_s1 }
 0x374   :  { %v2715_v50 = vpop.permute.xlu0 %2714  ;;  %v2717_v32 = vpop.permute.xlu1 %2716 }
 0x375   :  { %2882 = vst.msk [vmem:[#allocation2 + $0x60] sm:$0xff] %vm2565_vm7, %v2715_v50  ;;  %2883 = vst.msk [vmem:[#allocation2 + $0x68] sm:$0xff] %vm2565_vm7, %v2717_v32  ;;  %v7947_v50 = vld [vmem:[%s14993_s0 + $0x171] sm:$0xff]  ;;  %v7948_v32 = vld [vmem:[%s14993_s0 + $0x179] sm:$0x7f] }
 0x376   :  { %2942 = vst.msk [vmem:[#allocation2 + $0x6f] sm:$0x1] %vm15002_vm10, %v15003_v2  ;;  %3108 = vrot.lane.b32.xlu0 %v7915_v37, %s8784_s1  ;;  %3110 = vrot.lane.b32.xlu1 %v7916_v10, %s8784_s1 }
 0x378   :  { %v2719_v14 = vpop.permute.xlu0 %2718  ;;  %v2721_v47 = vpop.permute.xlu1 %2720 }
 0x379   :  { %2884 = vst.msk [vmem:[#allocation2 + $0x70] sm:$0xff] %vm2565_vm7, %v2719_v14  ;;  %2885 = vst.msk [vmem:[#allocation2 + $0x78] sm:$0xff] %vm2565_vm7, %v2721_v47  ;;  %v7949_v14 = vld [vmem:[%s14993_s0 + $0x181] sm:$0xff]  ;;  %v7950_v47 = vld [vmem:[%s14993_s0 + $0x189] sm:$0x7f] }
 0x37a   :  { %2943 = vst.msk [vmem:[#allocation2 + $0x7f] sm:$0x1] %vm15002_vm10, %v15003_v2  ;;  %3112 = vrot.lane.b32.xlu0 %v7917_v0, %s8784_s1  ;;  %3114 = vrot.lane.b32.xlu1 %v7918_v9, %s8784_s1 }
 0x37c   :  { %v2723_v15 = vpop.permute.xlu0 %2722  ;;  %v2725_v24 = vpop.permute.xlu1 %2724 }
 0x37d   :  { %2886 = vst.msk [vmem:[#allocation2 + $0x80] sm:$0xff] %vm2565_vm7, %v2723_v15  ;;  %2887 = vst.msk [vmem:[#allocation2 + $0x88] sm:$0xff] %vm2565_vm7, %v2725_v24  ;;  %v7951_v15 = vld [vmem:[%s14993_s0 + $0x191] sm:$0xff]  ;;  %v7952_v24 = vld [vmem:[%s14993_s0 + $0x199] sm:$0x7f] }
 0x37e   :  { %2944 = vst.msk [vmem:[#allocation2 + $0x8f] sm:$0x1] %vm15002_vm10, %v15003_v2  ;;  %3116 = vrot.lane.b32.xlu0 %v7919_v17, %s8784_s1  ;;  %3118 = vrot.lane.b32.xlu1 %v7920_v5, %s8784_s1 }
 0x380   :  { %v2727_v28 = vpop.permute.xlu0 %2726  ;;  %v2729_v58 = vpop.permute.xlu1 %2728 }
 0x381   :  { %2888 = vst.msk [vmem:[#allocation2 + $0x90] sm:$0xff] %vm2565_vm7, %v2727_v28  ;;  %2889 = vst.msk [vmem:[#allocation2 + $0x98] sm:$0xff] %vm2565_vm7, %v2729_v58  ;;  %v7953_v28 = vld [vmem:[%s14993_s0 + $0x1a1] sm:$0xff]  ;;  %v7954_v58 = vld [vmem:[%s14993_s0 + $0x1a9] sm:$0x7f] }
 0x382   :  { %2945 = vst.msk [vmem:[#allocation2 + $0x9f] sm:$0x1] %vm15002_vm10, %v15003_v2  ;;  %3120 = vrot.lane.b32.xlu0 %v7921_v18, %s8784_s1  ;;  %3122 = vrot.lane.b32.xlu1 %v7922_v55, %s8784_s1 }
 0x384   :  { %v2731_v61 = vpop.permute.xlu0 %2730  ;;  %v2733_v44 = vpop.permute.xlu1 %2732 }
 0x385   :  { %2890 = vst.msk [vmem:[#allocation2 + $0xa0] sm:$0xff] %vm2565_vm7, %v2731_v61  ;;  %2891 = vst.msk [vmem:[#allocation2 + $0xa8] sm:$0xff] %vm2565_vm7, %v2733_v44  ;;  %v7955_v61 = vld [vmem:[%s14993_s0 + $0x1b1] sm:$0xff]  ;;  %v7956_v44 = vld [vmem:[%s14993_s0 + $0x1b9] sm:$0x7f] }
 0x386   :  { %2946 = vst.msk [vmem:[#allocation2 + $0xaf] sm:$0x1] %vm15002_vm10, %v15003_v2  ;;  %3124 = vrot.lane.b32.xlu0 %v7923_v19, %s8784_s1  ;;  %3126 = vrot.lane.b32.xlu1 %v7924_v12, %s8784_s1 }
 0x388   :  { %v2735_v21 = vpop.permute.xlu0 %2734  ;;  %v2737_v20 = vpop.permute.xlu1 %2736 }
 0x389   :  { %2892 = vst.msk [vmem:[#allocation2 + $0xb0] sm:$0xff] %vm2565_vm7, %v2735_v21  ;;  %2893 = vst.msk [vmem:[#allocation2 + $0xb8] sm:$0xff] %vm2565_vm7, %v2737_v20  ;;  %v7957_v21 = vld [vmem:[%s14993_s0 + $0x1c1] sm:$0xff]  ;;  %v7958_v20 = vld [vmem:[%s14993_s0 + $0x1c9] sm:$0x7f] }
 0x38a   :  { %2947 = vst.msk [vmem:[#allocation2 + $0xbf] sm:$0x1] %vm15002_vm10, %v15003_v2  ;;  %3128 = vrot.lane.b32.xlu0 %v7925_v53, %s8784_s1  ;;  %3130 = vrot.lane.b32.xlu1 %v7926_v23, %s8784_s1 }
 0x38c   :  { %v2739_v48 = vpop.permute.xlu0 %2738  ;;  %v2741_v4 = vpop.permute.xlu1 %2740 }
 0x38d   :  { %2894 = vst.msk [vmem:[#allocation2 + $0xc0] sm:$0xff] %vm2565_vm7, %v2739_v48  ;;  %2895 = vst.msk [vmem:[#allocation2 + $0xc8] sm:$0xff] %vm2565_vm7, %v2741_v4  ;;  %v7959_v48 = vld [vmem:[%s14993_s0 + $0x1d1] sm:$0xff]  ;;  %v7960_v4 = vld [vmem:[%s14993_s0 + $0x1d9] sm:$0x7f] }
 0x38e   :  { %2948 = vst.msk [vmem:[#allocation2 + $0xcf] sm:$0x1] %vm15002_vm10, %v15003_v2  ;;  %3132 = vrot.lane.b32.xlu0 %v7927_v6, %s8784_s1  ;;  %3134 = vrot.lane.b32.xlu1 %v7928_v11, %s8784_s1 }
 0x390   :  { %v2743_v16 = vpop.permute.xlu0 %2742  ;;  %v2745_v8 = vpop.permute.xlu1 %2744 }
 0x391   :  { %2896 = vst.msk [vmem:[#allocation2 + $0xd0] sm:$0xff] %vm2565_vm7, %v2743_v16  ;;  %2897 = vst.msk [vmem:[#allocation2 + $0xd8] sm:$0xff] %vm2565_vm7, %v2745_v8  ;;  %v7961_v16 = vld [vmem:[%s14993_s0 + $0x1e1] sm:$0xff]  ;;  %v7962_v8 = vld [vmem:[%s14993_s0 + $0x1e9] sm:$0x7f] }
 0x392   :  { %2949 = vst.msk [vmem:[#allocation2 + $0xdf] sm:$0x1] %vm15002_vm10, %v15003_v2  ;;  %3136 = vrot.lane.b32.xlu0 %v7929_v27, %s8784_s1  ;;  %3138 = vrot.lane.b32.xlu1 %v7930_v52, %s8784_s1 }
 0x394   :  { %v2747_v34 = vpop.permute.xlu0 %2746  ;;  %v2749_v42 = vpop.permute.xlu1 %2748 }
 0x395   :  { %2898 = vst.msk [vmem:[#allocation2 + $0xe0] sm:$0xff] %vm2565_vm7, %v2747_v34  ;;  %2899 = vst.msk [vmem:[#allocation2 + $0xe8] sm:$0xff] %vm2565_vm7, %v2749_v42  ;;  %v7963_v34 = vld [vmem:[%s14993_s0 + $0x1f1] sm:$0xff]  ;;  %v7964_v42 = vld [vmem:[%s14993_s0 + $0x1f9] sm:$0x7f]  ;;  %s8785_s0 = smov 124  }
 0x396   :  { %2950 = vst.msk [vmem:[#allocation2 + $0xef] sm:$0x1] %vm15002_vm10, %v15003_v2  ;;  %3140 = vrot.lane.b32.xlu0 %v7931_v33, %s8784_s1  ;;  %3142 = vrot.lane.b32.xlu1 %v7932_v29, %s8784_s1 }
 0x398   :  { %v2751_v36 = vpop.permute.xlu0 %2750  ;;  %v2753_v35 = vpop.permute.xlu1 %2752 }
 0x399   :  { %2900 = vst.msk [vmem:[#allocation2 + $0x100] sm:$0xff] %vm2565_vm7, %v2751_v36  ;;  %2901 = vst.msk [vmem:[#allocation2 + $0x108] sm:$0xff] %vm2565_vm7, %v2753_v35  ;;  %v11974_v36 = vld [vmem:[#allocation2 + $0x1f0] sm:$0xff]  ;;  %v8030_v35 = vld [vmem:[%s14995_s2] ss:$0 sm:$0xff] }
 0x39a   :  { %2952 = vst.msk [vmem:[#allocation2 + $0x10f] sm:$0x1] %vm15002_vm10, %v15003_v2  ;;  %3144 = vrot.lane.b32.xlu0 %v7933_v39, %s8784_s1  ;;  %3146 = vrot.lane.b32.xlu1 %v7934_v43, %s8784_s1 }
 0x39b   :  { %4792 = vst.msk [vmem:[#allocation2 + $0x1f0] sm:$0x1] %vm22_vm1, %v15003_v2 }
 0x39c   :  { %v2755_v51 = vpop.permute.xlu0 %2754  ;;  %v2757_v45 = vpop.permute.xlu1 %2756 }
 0x39d   :  { %2902 = vst.msk [vmem:[#allocation2 + $0x110] sm:$0xff] %vm2565_vm7, %v2755_v51  ;;  %2903 = vst.msk [vmem:[#allocation2 + $0x118] sm:$0xff] %vm2565_vm7, %v2757_v45 }
 0x39e   :  { %2953 = vst.msk [vmem:[#allocation2 + $0x11f] sm:$0x1] %vm15002_vm10, %v15003_v2  ;;  %3148 = vrot.lane.b32.xlu0 %v7935_v60, %s8784_s1  ;;  %3150 = vrot.lane.b32.xlu1 %v7936_v40, %s8784_s1 }
 0x3a0   :  { %v2759_v59 = vpop.permute.xlu0 %2758  ;;  %v2761_v49 = vpop.permute.xlu1 %2760 }
 0x3a1   :  { %2904 = vst.msk [vmem:[#allocation2 + $0x120] sm:$0xff] %vm2565_vm7, %v2759_v59  ;;  %2905 = vst.msk [vmem:[#allocation2 + $0x128] sm:$0xff] %vm2565_vm7, %v2761_v49 }
 0x3a2   :  { %2954 = vst.msk [vmem:[#allocation2 + $0x12f] sm:$0x1] %vm15002_vm10, %v15003_v2  ;;  %3152 = vrot.lane.b32.xlu0 %v7937_v46, %s8784_s1  ;;  %3154 = vrot.lane.b32.xlu1 %v7938_v63, %s8784_s1 }
 0x3a4   :  { %v2763_v57 = vpop.permute.xlu0 %2762  ;;  %v2765_v13 = vpop.permute.xlu1 %2764 }
 0x3a5   :  { %2906 = vst.msk [vmem:[#allocation2 + $0x130] sm:$0xff] %vm2565_vm7, %v2763_v57  ;;  %2907 = vst.msk [vmem:[#allocation2 + $0x138] sm:$0xff] %vm2565_vm7, %v2765_v13 }
 0x3a6   :  { %2955 = vst.msk [vmem:[#allocation2 + $0x13f] sm:$0x1] %vm15002_vm10, %v15003_v2  ;;  %3156 = vrot.lane.b32.xlu0 %v7939_v54, %s8784_s1  ;;  %3158 = vrot.lane.b32.xlu1 %v7940_v25, %s8784_s1 }
 0x3a8   :  { %v2767_v1 = vpop.permute.xlu0 %2766  ;;  %v2769_v22 = vpop.permute.xlu1 %2768 }
 0x3a9   :  { %2908 = vst.msk [vmem:[#allocation2 + $0x140] sm:$0xff] %vm2565_vm7, %v2767_v1  ;;  %2909 = vst.msk [vmem:[#allocation2 + $0x148] sm:$0xff] %vm2565_vm7, %v2769_v22 }
 0x3aa   :  { %2956 = vst.msk [vmem:[#allocation2 + $0x14f] sm:$0x1] %vm15002_vm10, %v15003_v2  ;;  %3160 = vrot.lane.b32.xlu0 %v7941_v30, %s8784_s1  ;;  %3162 = vrot.lane.b32.xlu1 %v7942_v62, %s8784_s1 }
 0x3ac   :  { %v2771_v38 = vpop.permute.xlu0 %2770  ;;  %v2773_v7 = vpop.permute.xlu1 %2772 }
 0x3ad   :  { %2910 = vst.msk [vmem:[#allocation2 + $0x150] sm:$0xff] %vm2565_vm7, %v2771_v38  ;;  %2911 = vst.msk [vmem:[#allocation2 + $0x158] sm:$0xff] %vm2565_vm7, %v2773_v7 }
 0x3ae   :  { %2957 = vst.msk [vmem:[#allocation2 + $0x15f] sm:$0x1] %vm15002_vm10, %v15003_v2  ;;  %3164 = vrot.lane.b32.xlu0 %v7943_v3, %s8784_s1  ;;  %3166 = vrot.lane.b32.xlu1 %v7944_v26, %s8784_s1 }
 0x3b0   :  { %v2775_v37 = vpop.permute.xlu0 %2774  ;;  %v2777_v10 = vpop.permute.xlu1 %2776 }
 0x3b1   :  { %2912 = vst.msk [vmem:[#allocation2 + $0x160] sm:$0xff] %vm2565_vm7, %v2775_v37  ;;  %2913 = vst.msk [vmem:[#allocation2 + $0x168] sm:$0xff] %vm2565_vm7, %v2777_v10 }
 0x3b2   :  { %2958 = vst.msk [vmem:[#allocation2 + $0x16f] sm:$0x1] %vm15002_vm10, %v15003_v2  ;;  %3168 = vrot.lane.b32.xlu0 %v7945_v31, %s8784_s1  ;;  %3170 = vrot.lane.b32.xlu1 %v7946_v41, %s8784_s1 }
 0x3b4   :  { %v2779_v0 = vpop.permute.xlu0 %2778  ;;  %v2781_v9 = vpop.permute.xlu1 %2780 }
 0x3b5   :  { %2914 = vst.msk [vmem:[#allocation2 + $0x170] sm:$0xff] %vm2565_vm7, %v2779_v0  ;;  %2915 = vst.msk [vmem:[#allocation2 + $0x178] sm:$0xff] %vm2565_vm7, %v2781_v9 }
 0x3b6   :  { %2959 = vst.msk [vmem:[#allocation2 + $0x17f] sm:$0x1] %vm15002_vm10, %v15003_v2  ;;  %3172 = vrot.lane.b32.xlu0 %v7947_v50, %s8784_s1  ;;  %3174 = vrot.lane.b32.xlu1 %v7948_v32, %s8784_s1 }
 0x3b8   :  { %v2783_v17 = vpop.permute.xlu0 %2782  ;;  %v2785_v5 = vpop.permute.xlu1 %2784 }
 0x3b9   :  { %2916 = vst.msk [vmem:[#allocation2 + $0x180] sm:$0xff] %vm2565_vm7, %v2783_v17  ;;  %2917 = vst.msk [vmem:[#allocation2 + $0x188] sm:$0xff] %vm2565_vm7, %v2785_v5 }
 0x3ba   :  { %2960 = vst.msk [vmem:[#allocation2 + $0x18f] sm:$0x1] %vm15002_vm10, %v15003_v2  ;;  %3176 = vrot.lane.b32.xlu0 %v7949_v14, %s8784_s1  ;;  %3178 = vrot.lane.b32.xlu1 %v7950_v47, %s8784_s1 }
 0x3bc   :  { %v2787_v18 = vpop.permute.xlu0 %2786  ;;  %v2789_v55 = vpop.permute.xlu1 %2788 }
 0x3bd   :  { %2918 = vst.msk [vmem:[#allocation2 + $0x190] sm:$0xff] %vm2565_vm7, %v2787_v18  ;;  %2919 = vst.msk [vmem:[#allocation2 + $0x198] sm:$0xff] %vm2565_vm7, %v2789_v55 }
 0x3be   :  { %2961 = vst.msk [vmem:[#allocation2 + $0x19f] sm:$0x1] %vm15002_vm10, %v15003_v2  ;;  %3180 = vrot.lane.b32.xlu0 %v7951_v15, %s8784_s1  ;;  %3182 = vrot.lane.b32.xlu1 %v7952_v24, %s8784_s1 }
 0x3c0   :  { %v2791_v19 = vpop.permute.xlu0 %2790  ;;  %v2793_v12 = vpop.permute.xlu1 %2792 }
 0x3c1   :  { %2920 = vst.msk [vmem:[#allocation2 + $0x1a0] sm:$0xff] %vm2565_vm7, %v2791_v19  ;;  %2921 = vst.msk [vmem:[#allocation2 + $0x1a8] sm:$0xff] %vm2565_vm7, %v2793_v12 }
 0x3c2   :  { %2962 = vst.msk [vmem:[#allocation2 + $0x1af] sm:$0x1] %vm15002_vm10, %v15003_v2  ;;  %3184 = vrot.lane.b32.xlu0 %v7953_v28, %s8784_s1  ;;  %3186 = vrot.lane.b32.xlu1 %v7954_v58, %s8784_s1 }
 0x3c4   :  { %v2795_v53 = vpop.permute.xlu0 %2794  ;;  %v2797_v23 = vpop.permute.xlu1 %2796 }
 0x3c5   :  { %2922 = vst.msk [vmem:[#allocation2 + $0x1b0] sm:$0xff] %vm2565_vm7, %v2795_v53  ;;  %2923 = vst.msk [vmem:[#allocation2 + $0x1b8] sm:$0xff] %vm2565_vm7, %v2797_v23 }
 0x3c6   :  { %2963 = vst.msk [vmem:[#allocation2 + $0x1bf] sm:$0x1] %vm15002_vm10, %v15003_v2  ;;  %3188 = vrot.lane.b32.xlu0 %v7955_v61, %s8784_s1  ;;  %3190 = vrot.lane.b32.xlu1 %v7956_v44, %s8784_s1 }
 0x3c8   :  { %v2799_v6 = vpop.permute.xlu0 %2798  ;;  %v2801_v11 = vpop.permute.xlu1 %2800 }
 0x3c9   :  { %2924 = vst.msk [vmem:[#allocation2 + $0x1c0] sm:$0xff] %vm2565_vm7, %v2799_v6  ;;  %2925 = vst.msk [vmem:[#allocation2 + $0x1c8] sm:$0xff] %vm2565_vm7, %v2801_v11 }
 0x3ca   :  { %2964 = vst.msk [vmem:[#allocation2 + $0x1cf] sm:$0x1] %vm15002_vm10, %v15003_v2  ;;  %3192 = vrot.lane.b32.xlu0 %v7957_v21, %s8784_s1  ;;  %3194 = vrot.lane.b32.xlu1 %v7958_v20, %s8784_s1 }
 0x3cc   :  { %v2803_v27 = vpop.permute.xlu0 %2802  ;;  %v2805_v52 = vpop.permute.xlu1 %2804 }
 0x3cd   :  { %2926 = vst.msk [vmem:[#allocation2 + $0x1d0] sm:$0xff] %vm2565_vm7, %v2803_v27  ;;  %2927 = vst.msk [vmem:[#allocation2 + $0x1d8] sm:$0xff] %vm2565_vm7, %v2805_v52 }
 0x3ce   :  { %2965 = vst.msk [vmem:[#allocation2 + $0x1df] sm:$0x1] %vm15002_vm10, %v15003_v2  ;;  %3196 = vrot.lane.b32.xlu0 %v7959_v48, %s8784_s1  ;;  %3198 = vrot.lane.b32.xlu1 %v7960_v4, %s8784_s1 }
 0x3d0   :  { %v2807_v33 = vpop.permute.xlu0 %2806  ;;  %v2809_v29 = vpop.permute.xlu1 %2808 }
 0x3d1   :  { %2928 = vst.msk [vmem:[#allocation2 + $0x1e0] sm:$0xff] %vm2565_vm7, %v2807_v33  ;;  %2929 = vst.msk [vmem:[#allocation2 + $0x1e8] sm:$0xff] %vm2565_vm7, %v2809_v29 }
 0x3d2   :  { %2966 = vst.msk [vmem:[#allocation2 + $0x1ef] sm:$0x1] %vm15002_vm10, %v15003_v2  ;;  %3200 = vrot.lane.b32.xlu0 %v7961_v16, %s8784_s1  ;;  %3202 = vrot.lane.b32.xlu1 %v7962_v8, %s8784_s1  ;;  %vm3398_vm10 = vcmask 293888  }
 0x3d4   :  { %v3089_v39 = vpop.permute.xlu0 %3088  ;;  %v3091_v43 = vpop.permute.xlu1 %3090 }
 0x3d5   :  { %3268 = vst.msk [vmem:[#allocation2] sm:$0xff] %vm2930_vm11, %v3089_v39 }
 0x3d6   :  { %3270 = vst.msk [vmem:[#allocation2 + $0x8] sm:$0x7f] %vm3269_vm8, %v3091_v43  ;;  %3204 = vrot.lane.b32.xlu0 %v7963_v34, %s8784_s1  ;;  %3206 = vrot.lane.b32.xlu1 %v7964_v42, %s8784_s1 }
 0x3d8   :  { %v3093_v60 = vpop.permute.xlu0 %3092  ;;  %v3095_v40 = vpop.permute.xlu1 %3094 }
 0x3d9   :  { %3271 = vst.msk [vmem:[#allocation2 + $0x10] sm:$0xff] %vm2930_vm11, %v3093_v60 }
 0x3da   :  { %3272 = vst.msk [vmem:[#allocation2 + $0x18] sm:$0x7f] %vm3269_vm8, %v3095_v40  ;;  %3986 = vrot.lane.b32.xlu0 %v8030_v35, %s8777_s19  ;;  %v3360_v40 = vld [vmem:[#allocation2 + $0xf8] sm:$0xff] }
 0x3dc   :  { %v3097_v51 = vpop.permute.xlu0 %3096  ;;  %v3099_v45 = vpop.permute.xlu1 %3098  ;;  %v3329_v46 = vld [vmem:[#allocation2] sm:$0xff] }
 0x3dd   :  { %v3330_v63 = vld [vmem:[#allocation2 + $0x8] sm:$0xff]  ;;  %3273 = vst.msk [vmem:[#allocation2 + $0x20] sm:$0xff] %vm2930_vm11, %v3097_v51  ;;  %8308 = vmatprep.mubr.msk.f32.mxu0 %vm3398_vm10, %v3329_v46 }
 0x3de   :  { %3274 = vst.msk [vmem:[#allocation2 + $0x28] sm:$0x7f] %vm3269_vm8, %v3099_v45  ;;  %8309 = vmatmul.mubr.msk.f32.vlgmr.msra.gmra.mxu0 %vm3398_vm10, %v3330_v63 }
 0x3df   :  { %4757 = vst.msk [vmem:[#allocation2] sm:$0xff] %vm17_vm0, %v15003_v2  ;;  %4758 = vst.msk [vmem:[#allocation2 + $0x8] sm:$0xff] %vm17_vm0, %v15003_v2 }
 0x3e0   :  { %4761 = vst.msk [vmem:[#allocation2] sm:$0x1] %vm22_vm1, %v15003_v2  ;;  %v3101_v59 = vpop.permute.xlu0 %3100  ;;  %v3103_v49 = vpop.permute.xlu1 %3102  ;;  %v3331_v54 = vld [vmem:[#allocation2 + $0x10] sm:$0xff] }
 0x3e1   :  { %4854 = vst.msk [vmem:[#allocation2 + $0x8] sm:$0xff] %vm177_vm2, %v15003_v2  ;;  %4853 = vst.msk [vmem:[#allocation2] sm:$0xff] %vm177_vm2, %v15003_v2  ;;  %v3332_v25 = vld [vmem:[#allocation2 + $0x18] sm:$0xff]  ;;  %8311 = vmatprep.mubr.msk.f32.mxu0 %vm3398_vm10, %v3331_v54 }
 0x3e2   :  { %5158 = vst.msk [vmem:[#allocation2 + $0x8] sm:$0xff] %vm542_vm5, %v15003_v2  ;;  %5157 = vst.msk [vmem:[#allocation2] sm:$0xff] %vm542_vm5, %v15003_v2  ;;  %8312 = vmatmul.mubr.msk.f32.gmra.mxu0 %vm3398_vm10, %v3332_v25 }
 0x3e3   :  { %5161 = vst.msk [vmem:[#allocation2 + $0xf] sm:$0x1] %vm547_vm4, %v15003_v2 }
 0x3e4   :  { %5434 = vst.msk [vmem:[#allocation2] sm:$0x1] %vm941_vm6, %v15003_v2  ;;  %v3105_v57 = vpop.permute.xlu0 %3104  ;;  %v3107_v13 = vpop.permute.xlu1 %3106  ;;  %v3333_v30 = vld [vmem:[#allocation2 + $0x20] sm:$0xff] }
 0x3e5   :  { %3275 = vst.msk [vmem:[#allocation2 + $0x30] sm:$0xff] %vm2930_vm11, %v3101_v59  ;;  %v3334_v62 = vld [vmem:[#allocation2 + $0x28] sm:$0xff]  ;;  %3277 = vst.msk [vmem:[#allocation2 + $0x40] sm:$0xff] %vm2930_vm11, %v3105_v57  ;;  %8314 = vmatprep.mubr.msk.f32.mxu0 %vm3398_vm10, %v3333_v30 }
 0x3e6   :  { %3276 = vst.msk [vmem:[#allocation2 + $0x38] sm:$0x7f] %vm3269_vm8, %v3103_v49  ;;  %3278 = vst.msk [vmem:[#allocation2 + $0x48] sm:$0x7f] %vm3269_vm8, %v3107_v13  ;;  %8315 = vmatmul.mubr.msk.f32.gmra.mxu0 %vm3398_vm10, %v3334_v62 }
 0x3e7   :  { %4762 = vst.msk [vmem:[#allocation2 + $0x10] sm:$0x1] %vm22_vm1, %v15003_v2  ;;  %4763 = vst.msk [vmem:[#allocation2 + $0x20] sm:$0x1] %vm22_vm1, %v15003_v2 }
 0x3e8   :  { %v3109_v1 = vpop.permute.xlu0 %3108  ;;  %v3111_v22 = vpop.permute.xlu1 %3110 }
 0x3e9   :  { %3279 = vst.msk [vmem:[#allocation2 + $0x50] sm:$0xff] %vm2930_vm11, %v3109_v1 }
 0x3ea   :  { %3280 = vst.msk [vmem:[#allocation2 + $0x58] sm:$0x7f] %vm3269_vm8, %v3111_v22 }
 0x3ec   :  { %v3335_v3 = vld [vmem:[#allocation2 + $0x30] sm:$0xff]  ;;  %v3113_v38 = vpop.permute.xlu0 %3112  ;;  %v3115_v7 = vpop.permute.xlu1 %3114  ;;  %v3337_v31 = vld [vmem:[#allocation2 + $0x40] sm:$0xff] }
 0x3ed   :  { %v3336_v26 = vld [vmem:[#allocation2 + $0x38] sm:$0xff]  ;;  %8317 = vmatprep.mubr.msk.f32.mxu0 %vm3398_vm10, %v3335_v3  ;;  %4764 = vst.msk [vmem:[#allocation2 + $0x30] sm:$0x1] %vm22_vm1, %v15003_v2  ;;  %v3338_v41 = vld [vmem:[#allocation2 + $0x48] sm:$0xff]  ;;  %4765 = vst.msk [vmem:[#allocation2 + $0x40] sm:$0x1] %vm22_vm1, %v15003_v2 }
 0x3ee   :  { %8318 = vmatmul.mubr.msk.f32.gmra.mxu0 %vm3398_vm10, %v3336_v26  ;;  %3281 = vst.msk [vmem:[#allocation2 + $0x60] sm:$0xff] %vm2930_vm11, %v3113_v38 }
 0x3ef   :  { %3282 = vst.msk [vmem:[#allocation2 + $0x68] sm:$0x7f] %vm3269_vm8, %v3115_v7  ;;  %8320 = vmatprep.mubr.msk.f32.mxu0 %vm3398_vm10, %v3337_v31 }
 0x3f0   :  { %v3117_v37 = vpop.permute.xlu0 %3116  ;;  %v3119_v10 = vpop.permute.xlu1 %3118  ;;  %v3339_v50 = vld [vmem:[#allocation2 + $0x50] sm:$0xff] }
 0x3f1   :  { %v3340_v32 = vld [vmem:[#allocation2 + $0x58] sm:$0xff]  ;;  %3283 = vst.msk [vmem:[#allocation2 + $0x70] sm:$0xff] %vm2930_vm11, %v3117_v37 }
 0x3f2   :  { %8321 = vmatmul.mubr.msk.f32.gmra.mxu0 %vm3398_vm10, %v3338_v41  ;;  %3284 = vst.msk [vmem:[#allocation2 + $0x78] sm:$0x7f] %vm3269_vm8, %v3119_v10 }
 0x3f3   :  { %8323 = vmatprep.mubr.msk.f32.mxu0 %vm3398_vm10, %v3339_v50  ;;  %4766 = vst.msk [vmem:[#allocation2 + $0x50] sm:$0x1] %vm22_vm1, %v15003_v2 }
 0x3f4   :  { %v3121_v0 = vpop.permute.xlu0 %3120  ;;  %v3123_v9 = vpop.permute.xlu1 %3122 }
 0x3f5   :  { %v3341_v14 = vld [vmem:[#allocation2 + $0x60] sm:$0xff]  ;;  %3285 = vst.msk [vmem:[#allocation2 + $0x80] sm:$0xff] %vm2930_vm11, %v3121_v0 }
 0x3f6   :  { %8324 = vmatmul.mubr.msk.f32.gmra.mxu0 %vm3398_vm10, %v3340_v32  ;;  %v3342_v47 = vld [vmem:[#allocation2 + $0x68] sm:$0xff]  ;;  %3286 = vst.msk [vmem:[#allocation2 + $0x88] sm:$0x7f] %vm3269_vm8, %v3123_v9 }
 0x3f7   :  { %8326 = vmatprep.mubr.msk.f32.mxu0 %vm3398_vm10, %v3341_v14  ;;  %4767 = vst.msk [vmem:[#allocation2 + $0x60] sm:$0x1] %vm22_vm1, %v15003_v2 }
 0x3f8   :  { %v3125_v17 = vpop.permute.xlu0 %3124  ;;  %v3127_v5 = vpop.permute.xlu1 %3126  ;;  %v3343_v15 = vld [vmem:[#allocation2 + $0x70] sm:$0xff] }
 0x3f9   :  { %v3344_v24 = vld [vmem:[#allocation2 + $0x78] sm:$0xff]  ;;  %3287 = vst.msk [vmem:[#allocation2 + $0x90] sm:$0xff] %vm2930_vm11, %v3125_v17 }
 0x3fa   :  { %8327 = vmatmul.mubr.msk.f32.gmra.mxu0 %vm3398_vm10, %v3342_v47  ;;  %3288 = vst.msk [vmem:[#allocation2 + $0x98] sm:$0x7f] %vm3269_vm8, %v3127_v5 }
 0x3fb   :  { %8329 = vmatprep.mubr.msk.f32.mxu0 %vm3398_vm10, %v3343_v15  ;;  %4768 = vst.msk [vmem:[#allocation2 + $0x70] sm:$0x1] %vm22_vm1, %v15003_v2 }
 0x3fc   :  { %v3129_v18 = vpop.permute.xlu0 %3128  ;;  %v3131_v55 = vpop.permute.xlu1 %3130  ;;  %v3345_v28 = vld [vmem:[#allocation2 + $0x80] sm:$0xff] }
 0x3fd   :  { %v3346_v58 = vld [vmem:[#allocation2 + $0x88] sm:$0xff]  ;;  %3289 = vst.msk [vmem:[#allocation2 + $0xa0] sm:$0xff] %vm2930_vm11, %v3129_v18 }
 0x3fe   :  { %8330 = vmatmul.mubr.msk.f32.gmra.mxu0 %vm3398_vm10, %v3344_v24  ;;  %3290 = vst.msk [vmem:[#allocation2 + $0xa8] sm:$0x7f] %vm3269_vm8, %v3131_v55 }
 0x3ff   :  { %8332 = vmatprep.mubr.msk.f32.mxu0 %vm3398_vm10, %v3345_v28  ;;  %4769 = vst.msk [vmem:[#allocation2 + $0x80] sm:$0x1] %vm22_vm1, %v15003_v2 }
 0x400   :  { %v3133_v19 = vpop.permute.xlu0 %3132  ;;  %v3135_v12 = vpop.permute.xlu1 %3134  ;;  %v3347_v61 = vld [vmem:[#allocation2 + $0x90] sm:$0xff] }
 0x401   :  { %v3348_v44 = vld [vmem:[#allocation2 + $0x98] sm:$0xff]  ;;  %3291 = vst.msk [vmem:[#allocation2 + $0xb0] sm:$0xff] %vm2930_vm11, %v3133_v19 }
 0x402   :  { %8333 = vmatmul.mubr.msk.f32.gmra.mxu0 %vm3398_vm10, %v3346_v58  ;;  %3292 = vst.msk [vmem:[#allocation2 + $0xb8] sm:$0x7f] %vm3269_vm8, %v3135_v12 }
 0x403   :  { %8335 = vmatprep.mubr.msk.f32.mxu0 %vm3398_vm10, %v3347_v61  ;;  %4770 = vst.msk [vmem:[#allocation2 + $0x90] sm:$0x1] %vm22_vm1, %v15003_v2 }
 0x404   :  { %v3137_v53 = vpop.permute.xlu0 %3136  ;;  %v3139_v23 = vpop.permute.xlu1 %3138  ;;  %v3349_v21 = vld [vmem:[#allocation2 + $0xa0] sm:$0xff] }
 0x405   :  { %v3350_v20 = vld [vmem:[#allocation2 + $0xa8] sm:$0xff]  ;;  %3293 = vst.msk [vmem:[#allocation2 + $0xc0] sm:$0xff] %vm2930_vm11, %v3137_v53 }
 0x406   :  { %8336 = vmatmul.mubr.msk.f32.gmra.mxu0 %vm3398_vm10, %v3348_v44  ;;  %3294 = vst.msk [vmem:[#allocation2 + $0xc8] sm:$0x7f] %vm3269_vm8, %v3139_v23 }
 0x407   :  { %8338 = vmatprep.mubr.msk.f32.mxu0 %vm3398_vm10, %v3349_v21  ;;  %4771 = vst.msk [vmem:[#allocation2 + $0xa0] sm:$0x1] %vm22_vm1, %v15003_v2 }
 0x408   :  { %v3141_v6 = vpop.permute.xlu0 %3140  ;;  %v3143_v11 = vpop.permute.xlu1 %3142  ;;  %v3351_v48 = vld [vmem:[#allocation2 + $0xb0] sm:$0xff] }
 0x409   :  { %v3352_v4 = vld [vmem:[#allocation2 + $0xb8] sm:$0xff]  ;;  %3295 = vst.msk [vmem:[#allocation2 + $0xd0] sm:$0xff] %vm2930_vm11, %v3141_v6 }
 0x40a   :  { %8339 = vmatmul.mubr.msk.f32.gmra.mxu0 %vm3398_vm10, %v3350_v20  ;;  %3296 = vst.msk [vmem:[#allocation2 + $0xd8] sm:$0x7f] %vm3269_vm8, %v3143_v11 }
 0x40b   :  { %8341 = vmatprep.mubr.msk.f32.mxu0 %vm3398_vm10, %v3351_v48  ;;  %4772 = vst.msk [vmem:[#allocation2 + $0xb0] sm:$0x1] %vm22_vm1, %v15003_v2 }
 0x40c   :  { %v3145_v27 = vpop.permute.xlu0 %3144  ;;  %v3147_v52 = vpop.permute.xlu1 %3146  ;;  %v3353_v16 = vld [vmem:[#allocation2 + $0xc0] sm:$0xff] }
 0x40d   :  { %v3354_v8 = vld [vmem:[#allocation2 + $0xc8] sm:$0xff]  ;;  %3297 = vst.msk [vmem:[#allocation2 + $0xe0] sm:$0xff] %vm2930_vm11, %v3145_v27 }
 0x40e   :  { %8342 = vmatmul.mubr.msk.f32.gmra.mxu0 %vm3398_vm10, %v3352_v4  ;;  %3298 = vst.msk [vmem:[#allocation2 + $0xe8] sm:$0x7f] %vm3269_vm8, %v3147_v52 }
 0x40f   :  { %8344 = vmatprep.mubr.msk.f32.mxu0 %vm3398_vm10, %v3353_v16  ;;  %4773 = vst.msk [vmem:[#allocation2 + $0xc0] sm:$0x1] %vm22_vm1, %v15003_v2 }
 0x410   :  { %v3355_v33 = vld [vmem:[#allocation2 + $0xd0] sm:$0xff]  ;;  %v3149_v34 = vpop.permute.xlu0 %3148  ;;  %v3151_v42 = vpop.permute.xlu1 %3150 }
 0x411   :  { %v3356_v29 = vld [vmem:[#allocation2 + $0xd8] sm:$0xff]  ;;  %4774 = vst.msk [vmem:[#allocation2 + $0xd0] sm:$0x1] %vm22_vm1, %v15003_v2 }
 0x412   :  { %8345 = vmatmul.mubr.msk.f32.gmra.mxu0 %vm3398_vm10, %v3354_v8  ;;  %3299 = vst.msk [vmem:[#allocation2 + $0x100] sm:$0xff] %vm2930_vm11, %v3149_v34 }
 0x413   :  { %8347 = vmatprep.mubr.msk.f32.mxu0 %vm3398_vm10, %v3355_v33  ;;  %3300 = vst.msk [vmem:[#allocation2 + $0x108] sm:$0x7f] %vm3269_vm8, %v3151_v42  ;;  %v3392_v42 = vld [vmem:[#allocation2 + $0x1f8] sm:$0xff] }
 0x414   :  { %v3357_v39 = vld [vmem:[#allocation2 + $0xe0] sm:$0xff]  ;;  %v3153_v35 = vpop.permute.xlu0 %3152  ;;  %v3155_v60 = vpop.permute.xlu1 %3154 }
 0x415   :  { %v3358_v43 = vld [vmem:[#allocation2 + $0xe8] sm:$0xff]  ;;  %4775 = vst.msk [vmem:[#allocation2 + $0xe0] sm:$0x1] %vm22_vm1, %v15003_v2 }
 0x416   :  { %8348 = vmatmul.mubr.msk.f32.gmra.mxu0 %vm3398_vm10, %v3356_v29  ;;  %3301 = vst.msk [vmem:[#allocation2 + $0x110] sm:$0xff] %vm2930_vm11, %v3153_v35 }
 0x417   :  { %8350 = vmatprep.mubr.msk.f32.mxu0 %vm3398_vm10, %v3357_v39  ;;  %3302 = vst.msk [vmem:[#allocation2 + $0x118] sm:$0x7f] %vm3269_vm8, %v3155_v60 }
 0x418   :  { %v3157_v51 = vpop.permute.xlu0 %3156  ;;  %v3159_v45 = vpop.permute.xlu1 %3158 }
 0x419   :  { %v3361_v46 = vld [vmem:[#allocation2 + $0x100] sm:$0xff]  ;;  %3303 = vst.msk [vmem:[#allocation2 + $0x120] sm:$0xff] %vm2930_vm11, %v3157_v51 }
 0x41a   :  { %8351 = vmatmul.mubr.msk.f32.gmra.mxu0 %vm3398_vm10, %v3358_v43  ;;  %v3362_v63 = vld [vmem:[#allocation2 + $0x108] sm:$0xff]  ;;  %3304 = vst.msk [vmem:[#allocation2 + $0x128] sm:$0x7f] %vm3269_vm8, %v3159_v45 }
 0x41b   :  { %8353 = vmatprep.mubr.msk.f32.mxu0 %vm3398_vm10, %v11780_v56  ;;  %4759 = vst.msk [vmem:[#allocation2 + $0x100] sm:$0xff] %vm17_vm0, %v15003_v2  ;;  %4760 = vst.msk [vmem:[#allocation2 + $0x108] sm:$0xff] %vm17_vm0, %v15003_v2 }
 0x41c   :  { %4777 = vst.msk [vmem:[#allocation2 + $0x100] sm:$0x1] %vm22_vm1, %v15003_v2  ;;  %v3161_v56 = vpop.permute.xlu0 %3160  ;;  %v3163_v59 = vpop.permute.xlu1 %3162 }
 0x41d   :  { %4856 = vst.msk [vmem:[#allocation2 + $0x108] sm:$0xff] %vm177_vm2, %v15003_v2  ;;  %4855 = vst.msk [vmem:[#allocation2 + $0x100] sm:$0xff] %vm177_vm2, %v15003_v2  ;;  %v3363_v49 = vld [vmem:[#allocation2 + $0x110] sm:$0xff] }
 0x41e   :  { %8354 = vmatmul.mubr.msk.f32.gmra.mxu0 %vm3398_vm10, %v3360_v40  ;;  %5160 = vst.msk [vmem:[#allocation2 + $0x108] sm:$0xff] %vm542_vm5, %v15003_v2  ;;  %5159 = vst.msk [vmem:[#allocation2 + $0x100] sm:$0xff] %vm542_vm5, %v15003_v2  ;;  %v3364_v54 = vld [vmem:[#allocation2 + $0x118] sm:$0xff] }
 0x41f   :  { %8356 = vmatprep.mubr.msk.f32.mxu0 %vm3398_vm10, %v3361_v46  ;;  %5177 = vst.msk [vmem:[#allocation2 + $0x10f] sm:$0x1] %vm547_vm4, %v15003_v2 }
 0x420   :  { %3305 = vst.msk [vmem:[#allocation2 + $0x130] sm:$0xff] %vm2930_vm11, %v3161_v56  ;;  %v3165_v25 = vpop.permute.xlu0 %3164  ;;  %v3167_v57 = vpop.permute.xlu1 %3166  ;;  %v3365_v13 = vld [vmem:[#allocation2 + $0x120] sm:$0xff] }
 0x421   :  { %5450 = vst.msk [vmem:[#allocation2 + $0x100] sm:$0x1] %vm941_vm6, %v15003_v2  ;;  %v3366_v30 = vld [vmem:[#allocation2 + $0x128] sm:$0xff] }
 0x422   :  { %3306 = vst.msk [vmem:[#allocation2 + $0x138] sm:$0x7f] %vm3269_vm8, %v3163_v59  ;;  %8357 = vmatmul.mubr.msk.f32.gmra.mxu0 %vm3398_vm10, %v3362_v63  ;;  %3308 = vst.msk [vmem:[#allocation2 + $0x148] sm:$0x7f] %vm3269_vm8, %v3167_v57 }
 0x423   :  { %4778 = vst.msk [vmem:[#allocation2 + $0x110] sm:$0x1] %vm22_vm1, %v15003_v2  ;;  %8359 = vmatprep.mubr.msk.f32.mxu0 %vm3398_vm10, %v3363_v49  ;;  %4779 = vst.msk [vmem:[#allocation2 + $0x120] sm:$0x1] %vm22_vm1, %v15003_v2 }
 0x424   :  { %3307 = vst.msk [vmem:[#allocation2 + $0x140] sm:$0xff] %vm2930_vm11, %v3165_v25  ;;  %v3169_v62 = vpop.permute.xlu0 %3168  ;;  %v3171_v1 = vpop.permute.xlu1 %3170 }
 0x425   :  { %3309 = vst.msk [vmem:[#allocation2 + $0x150] sm:$0xff] %vm2930_vm11, %v3169_v62 }
 0x426   :  { %8360 = vmatmul.mubr.msk.f32.gmra.mxu0 %vm3398_vm10, %v3364_v54  ;;  %3310 = vst.msk [vmem:[#allocation2 + $0x158] sm:$0x7f] %vm3269_vm8, %v3171_v1 }
 0x427   :  { %8362 = vmatprep.mubr.msk.f32.mxu0 %vm3398_vm10, %v3365_v13  ;;  %v3367_v22 = vld [vmem:[#allocation2 + $0x130] sm:$0xff] }
 0x428   :  { %4780 = vst.msk [vmem:[#allocation2 + $0x130] sm:$0x1] %vm22_vm1, %v15003_v2  ;;  %v3173_v26 = vpop.permute.xlu0 %3172  ;;  %v3175_v38 = vpop.permute.xlu1 %3174 }
 0x429   :  { %v3368_v3 = vld [vmem:[#allocation2 + $0x138] sm:$0xff]  ;;  %3311 = vst.msk [vmem:[#allocation2 + $0x160] sm:$0xff] %vm2930_vm11, %v3173_v26  ;;  %v3370_v31 = vld [vmem:[#allocation2 + $0x148] sm:$0xff] }
 0x42a   :  { %8363 = vmatmul.mubr.msk.f32.gmra.mxu0 %vm3398_vm10, %v3366_v30  ;;  %3312 = vst.msk [vmem:[#allocation2 + $0x168] sm:$0x7f] %vm3269_vm8, %v3175_v38 }
 0x42b   :  { %8365 = vmatprep.mubr.msk.f32.mxu0 %vm3398_vm10, %v3367_v22  ;;  %v3369_v7 = vld [vmem:[#allocation2 + $0x140] sm:$0xff] }
 0x42c   :  { %4781 = vst.msk [vmem:[#allocation2 + $0x140] sm:$0x1] %vm22_vm1, %v15003_v2  ;;  %v3177_v41 = vpop.permute.xlu0 %3176  ;;  %v3179_v37 = vpop.permute.xlu1 %3178  ;;  %v3371_v10 = vld [vmem:[#allocation2 + $0x150] sm:$0xff] }
 0x42d   :  { %3313 = vst.msk [vmem:[#allocation2 + $0x170] sm:$0xff] %vm2930_vm11, %v3177_v41  ;;  %v3372_v50 = vld [vmem:[#allocation2 + $0x158] sm:$0xff] }
 0x42e   :  { %8366 = vmatmul.mubr.msk.f32.gmra.mxu0 %vm3398_vm10, %v3368_v3  ;;  %3314 = vst.msk [vmem:[#allocation2 + $0x178] sm:$0x7f] %vm3269_vm8, %v3179_v37 }
 0x42f   :  { %8368 = vmatprep.mubr.msk.f32.mxu0 %vm3398_vm10, %v3369_v7  ;;  %4782 = vst.msk [vmem:[#allocation2 + $0x150] sm:$0x1] %vm22_vm1, %v15003_v2 }
 0x430   :  { %v3181_v32 = vpop.permute.xlu0 %3180  ;;  %v3183_v0 = vpop.permute.xlu1 %3182  ;;  %v3373_v9 = vld [vmem:[#allocation2 + $0x160] sm:$0xff] }
 0x431   :  { %3315 = vst.msk [vmem:[#allocation2 + $0x180] sm:$0xff] %vm2930_vm11, %v3181_v32  ;;  %v3374_v14 = vld [vmem:[#allocation2 + $0x168] sm:$0xff] }
 0x432   :  { %8369 = vmatmul.mubr.msk.f32.gmra.mxu0 %vm3398_vm10, %v3370_v31  ;;  %3316 = vst.msk [vmem:[#allocation2 + $0x188] sm:$0x7f] %vm3269_vm8, %v3183_v0 }
 0x433   :  { %8371 = vmatprep.mubr.msk.f32.mxu0 %vm3398_vm10, %v3371_v10  ;;  %4783 = vst.msk [vmem:[#allocation2 + $0x160] sm:$0x1] %vm22_vm1, %v15003_v2 }
 0x434   :  { %v3185_v47 = vpop.permute.xlu0 %3184  ;;  %v3187_v17 = vpop.permute.xlu1 %3186  ;;  %v3375_v5 = vld [vmem:[#allocation2 + $0x170] sm:$0xff] }
 0x435   :  { %3317 = vst.msk [vmem:[#allocation2 + $0x190] sm:$0xff] %vm2930_vm11, %v3185_v47  ;;  %v3376_v15 = vld [vmem:[#allocation2 + $0x178] sm:$0xff] }
 0x436   :  { %8372 = vmatmul.mubr.msk.f32.gmra.mxu0 %vm3398_vm10, %v3372_v50  ;;  %3318 = vst.msk [vmem:[#allocation2 + $0x198] sm:$0x7f] %vm3269_vm8, %v3187_v17 }
 0x437   :  { %8374 = vmatprep.mubr.msk.f32.mxu0 %vm3398_vm10, %v3373_v9  ;;  %4784 = vst.msk [vmem:[#allocation2 + $0x170] sm:$0x1] %vm22_vm1, %v15003_v2 }
 0x438   :  { %v3189_v24 = vpop.permute.xlu0 %3188  ;;  %v3191_v18 = vpop.permute.xlu1 %3190  ;;  %v3377_v55 = vld [vmem:[#allocation2 + $0x180] sm:$0xff] }
 0x439   :  { %3319 = vst.msk [vmem:[#allocation2 + $0x1a0] sm:$0xff] %vm2930_vm11, %v3189_v24  ;;  %v3378_v28 = vld [vmem:[#allocation2 + $0x188] sm:$0xff] }
 0x43a   :  { %8375 = vmatmul.mubr.msk.f32.gmra.mxu0 %vm3398_vm10, %v3374_v14  ;;  %3320 = vst.msk [vmem:[#allocation2 + $0x1a8] sm:$0x7f] %vm3269_vm8, %v3191_v18 }
 0x43b   :  { %8377 = vmatprep.mubr.msk.f32.mxu0 %vm3398_vm10, %v3375_v5  ;;  %4785 = vst.msk [vmem:[#allocation2 + $0x180] sm:$0x1] %vm22_vm1, %v15003_v2 }
 0x43c   :  { %v3193_v58 = vpop.permute.xlu0 %3192  ;;  %v3195_v19 = vpop.permute.xlu1 %3194  ;;  %v3379_v12 = vld [vmem:[#allocation2 + $0x190] sm:$0xff] }
 0x43d   :  { %3321 = vst.msk [vmem:[#allocation2 + $0x1b0] sm:$0xff] %vm2930_vm11, %v3193_v58  ;;  %v3380_v61 = vld [vmem:[#allocation2 + $0x198] sm:$0xff] }
 0x43e   :  { %8378 = vmatmul.mubr.msk.f32.gmra.mxu0 %vm3398_vm10, %v3376_v15  ;;  %3322 = vst.msk [vmem:[#allocation2 + $0x1b8] sm:$0x7f] %vm3269_vm8, %v3195_v19 }
 0x43f   :  { %8380 = vmatprep.mubr.msk.f32.mxu0 %vm3398_vm10, %v3377_v55  ;;  %4786 = vst.msk [vmem:[#allocation2 + $0x190] sm:$0x1] %vm22_vm1, %v15003_v2 }
 0x440   :  { %v3197_v44 = vpop.permute.xlu0 %3196  ;;  %v3199_v53 = vpop.permute.xlu1 %3198  ;;  %v3381_v23 = vld [vmem:[#allocation2 + $0x1a0] sm:$0xff] }
 0x441   :  { %3323 = vst.msk [vmem:[#allocation2 + $0x1c0] sm:$0xff] %vm2930_vm11, %v3197_v44  ;;  %v3382_v21 = vld [vmem:[#allocation2 + $0x1a8] sm:$0xff] }
 0x442   :  { %8381 = vmatmul.mubr.msk.f32.gmra.mxu0 %vm3398_vm10, %v3378_v28  ;;  %3324 = vst.msk [vmem:[#allocation2 + $0x1c8] sm:$0x7f] %vm3269_vm8, %v3199_v53 }
 0x443   :  { %8383 = vmatprep.mubr.msk.f32.mxu0 %vm3398_vm10, %v3379_v12  ;;  %4787 = vst.msk [vmem:[#allocation2 + $0x1a0] sm:$0x1] %vm22_vm1, %v15003_v2 }
 0x444   :  { %v3201_v20 = vpop.permute.xlu0 %3200  ;;  %v3203_v6 = vpop.permute.xlu1 %3202  ;;  %v3383_v11 = vld [vmem:[#allocation2 + $0x1b0] sm:$0xff] }
 0x445   :  { %3325 = vst.msk [vmem:[#allocation2 + $0x1d0] sm:$0xff] %vm2930_vm11, %v3201_v20  ;;  %v3384_v48 = vld [vmem:[#allocation2 + $0x1b8] sm:$0xff] }
 0x446   :  { %8384 = vmatmul.mubr.msk.f32.gmra.mxu0 %vm3398_vm10, %v3380_v61  ;;  %3326 = vst.msk [vmem:[#allocation2 + $0x1d8] sm:$0x7f] %vm3269_vm8, %v3203_v6 }
 0x447   :  { %8386 = vmatprep.mubr.msk.f32.mxu0 %vm3398_vm10, %v3381_v23  ;;  %4788 = vst.msk [vmem:[#allocation2 + $0x1b0] sm:$0x1] %vm22_vm1, %v15003_v2 }
 0x448   :  { %v3205_v4 = vpop.permute.xlu0 %3204  ;;  %v3207_v27 = vpop.permute.xlu1 %3206  ;;  %v3385_v52 = vld [vmem:[#allocation2 + $0x1c0] sm:$0xff] }
 0x449   :  { %3327 = vst.msk [vmem:[#allocation2 + $0x1e0] sm:$0xff] %vm2930_vm11, %v3205_v4  ;;  %v3386_v16 = vld [vmem:[#allocation2 + $0x1c8] sm:$0xff] }
 0x44a   :  { %8387 = vmatmul.mubr.msk.f32.gmra.mxu0 %vm3398_vm10, %v3382_v21  ;;  %3328 = vst.msk [vmem:[#allocation2 + $0x1e8] sm:$0x7f] %vm3269_vm8, %v3207_v27 }
 0x44b   :  { %8389 = vmatprep.mubr.msk.f32.mxu0 %vm3398_vm10, %v3383_v11  ;;  %4789 = vst.msk [vmem:[#allocation2 + $0x1c0] sm:$0x1] %vm22_vm1, %v15003_v2 }
 0x44c   :  { %v3387_v8 = vld [vmem:[#allocation2 + $0x1d0] sm:$0xff]  ;;  %v12198_v39 = vpop.permute.xlu0 %3986 }
 0x44d   :  { %4790 = vst.msk [vmem:[#allocation2 + $0x1d0] sm:$0x1] %vm22_vm1, %v15003_v2  ;;  %v3388_v33 = vld [vmem:[#allocation2 + $0x1d8] sm:$0xff] }
 0x44e   :  { %8390 = vmatmul.mubr.msk.f32.gmra.mxu0 %vm3398_vm10, %v3384_v48 }
 0x44f   :  { %8392 = vmatprep.mubr.msk.f32.mxu0 %vm3398_vm10, %v3385_v52 }
 0x450   :  { %v3389_v29 = vld [vmem:[#allocation2 + $0x1e0] sm:$0xff] }
 0x451   :  { %4791 = vst.msk [vmem:[#allocation2 + $0x1e0] sm:$0x1] %vm22_vm1, %v15003_v2  ;;  %v3390_v34 = vld [vmem:[#allocation2 + $0x1e8] sm:$0xff]  ;;  %vm5373_vm1 = vcmask 97345  }
 0x452   :  { %8393 = vmatmul.mubr.msk.f32.gmra.mxu0 %vm3398_vm10, %v3386_v16 }
 0x453   :  { %8395 = vmatprep.mubr.msk.f32.mxu0 %vm3398_vm10, %v3387_v8 }
 0x456   :  { %8396 = vmatmul.mubr.msk.f32.gmra.mxu0 %vm3398_vm10, %v3388_v33 }
 0x457   :  { %8398 = vmatprep.mubr.msk.f32.mxu0 %vm3398_vm10, %v3389_v29 }
 0x45a   :  { %8399 = vmatmul.mubr.msk.f32.gmra.mxu0 %vm3398_vm10, %v3390_v34 }
 0x45b   :  { %8401 = vmatprep.mubr.msk.f32.mxu0 %vm3398_vm10, %v11974_v36 }
 0x45e   :  { %8402 = vmatmul.mubr.msk.f32.gmra.mxu0 %vm3398_vm10, %v3392_v42 }
 0x49e   :  { %v12200_v43 = vpop.f32.mrf.mxu0 }
 0x49f   :  { %v3990_v35 = vadd.f32 %v12200_v43, %v12198_v39 }
 0x4a0   :  { %v12204_v60 = vpop.f32.mrf.mxu0 }
 0x4a1   :  { %v3989_v40 = vadd.f32 %v12198_v39, %v12204_v60  ;;  %v8032_v51 = vmul.f32 -1.442695, %v3990_v35 }
 0x4a2   :  { %v12208_v45 = vpop.f32.mrf.mxu0 }
 0x4a3   :  { %v8031_v46 = vmul.f32 -1.442695, %v3989_v40  ;;  %v3992_v36 = vadd.f32 %v12208_v45, %v12198_v39  ;;  %8520 = vpow2.f32 %v8032_v51 }
 0x4a4   :  { %v12212_v63 = vpop.f32.mrf.mxu0 }
 0x4a5   :  { %8522 = vpow2.f32 %v8031_v46  ;;  %v8034_v56 = vmul.f32 -1.442695, %v3992_v36  ;;  %v3991_v59 = vadd.f32 %v12198_v39, %v12212_v63 }
 0x4a6   :  { %v12216_v49 = vpop.f32.mrf.mxu0 }
 0x4a7   :  { %8524 = vpow2.f32 %v8034_v56  ;;  %v8033_v54 = vmul.f32 -1.442695, %v3991_v59  ;;  %v3994_v25 = vadd.f32 %v12216_v49, %v12198_v39 }
 0x4a8   :  { %v12220_v57 = vpop.f32.mrf.mxu0 }
 0x4a9   :  { %8526 = vpow2.f32 %v8033_v54  ;;  %v8036_v13 = vmul.f32 -1.442695, %v3994_v25  ;;  %v3993_v30 = vadd.f32 %v12198_v39, %v12220_v57 }
 0x4ab   :  { %8528 = vpow2.f32 %v8036_v13  ;;  %v8035_v1 = vmul.f32 -1.442695, %v3993_v30 }
 0x4ad   :  { %8530 = vpow2.f32 %v8035_v1 }
 0x4ae   :  { %v12224_v62 = vpop.f32.mrf.mxu0 }
 0x4af   :  { %v3996_v22 = vadd.f32 %v12224_v62, %v12198_v39 }
 0x4b0   :  { %v12228_v3 = vpop.f32.mrf.mxu0  ;;  %v8521_v37 = vpop.eup %8520 }
 0x4b1   :  { %v8038_v26 = vmul.f32 -1.442695, %v3996_v22  ;;  %v3995_v38 = vadd.f32 %v12198_v39, %v12228_v3  ;;  %v4246_v0 = vadd.f32 1.0, %v8521_v37 }
 0x4b2   :  { %v12232_v7 = vpop.f32.mrf.mxu0  ;;  %v8523_v9 = vpop.eup %8522 }
 0x4b3   :  { %8532 = vpow2.f32 %v8038_v26  ;;  %v8037_v31 = vmul.f32 -1.442695, %v3995_v38  ;;  %v3998_v41 = vadd.f32 %v12232_v7, %v12198_v39  ;;  %v4245_v47 = vadd.f32 1.0, %v8523_v9 }
 0x4b4   :  { %v12236_v10 = vpop.f32.mrf.mxu0  ;;  %v8525_v15 = vpop.eup %8524 }
 0x4b5   :  { %8534 = vpow2.f32 %v8037_v31  ;;  %v8040_v50 = vmul.f32 -1.442695, %v3998_v41  ;;  %v3997_v32 = vadd.f32 %v12198_v39, %v12236_v10  ;;  %v4248_v18 = vadd.f32 1.0, %v8525_v15 }
 0x4b6   :  { %v12240_v14 = vpop.f32.mrf.mxu0  ;;  %v8527_v58 = vpop.eup %8526 }
 0x4b7   :  { %8536 = vpow2.f32 %v8040_v50  ;;  %v8039_v17 = vmul.f32 -1.442695, %v3997_v32  ;;  %v4000_v5 = vadd.f32 %v12240_v14, %v12198_v39  ;;  %v4247_v12 = vadd.f32 1.0, %v8527_v58 }
 0x4b8   :  { %v12244_v24 = vpop.f32.mrf.mxu0  ;;  %8538 = vrcp.f32 %v4246_v0  ;;  %v8529_v53 = vpop.eup %8528 }
 0x4b9   :  { %8540 = vrcp.f32 %v4245_v47  ;;  %v8042_v55 = vmul.f32 -1.442695, %v4000_v5  ;;  %v3999_v28 = vadd.f32 %v12198_v39, %v12244_v24  ;;  %v4250_v21 = vadd.f32 1.0, %v8529_v53 }
 0x4ba   :  { %8542 = vpow2.f32 %v8039_v17  ;;  %v12248_v19 = vpop.f32.mrf.mxu0  ;;  %v8531_v11 = vpop.eup %8530 }
 0x4bb   :  { %8544 = vrcp.f32 %v4248_v18  ;;  %v8041_v61 = vmul.f32 -1.442695, %v3999_v28  ;;  %v4002_v44 = vadd.f32 %v12248_v19, %v12198_v39  ;;  %v4249_v4 = vadd.f32 1.0, %v8531_v11 }
 0x4bc   :  { %8546 = vpow2.f32 %v8042_v55  ;;  %v12252_v23 = vpop.f32.mrf.mxu0 }
 0x4bd   :  { %8548 = vrcp.f32 %v4247_v12  ;;  %v8044_v20 = vmul.f32 -1.442695, %v4002_v44  ;;  %v4001_v6 = vadd.f32 %v12198_v39, %v12252_v23 }
 0x4be   :  { %8550 = vpow2.f32 %v8041_v61  ;;  %v12256_v48 = vpop.f32.mrf.mxu0 }
 0x4bf   :  { %8552 = vrcp.f32 %v4250_v21  ;;  %v8043_v27 = vmul.f32 -1.442695, %v4001_v6  ;;  %v4004_v52 = vadd.f32 %v12256_v48, %v12198_v39 }
 0x4c0   :  { %v8533_v16 = vpop.eup %8532  ;;  %8554 = vpow2.f32 %v8044_v20  ;;  %v12260_v8 = vpop.f32.mrf.mxu0 }
 0x4c1   :  { %8556 = vrcp.f32 %v4249_v4  ;;  %v4252_v33 = vadd.f32 1.0, %v8533_v16  ;;  %v8046_v29 = vmul.f32 -1.442695, %v4004_v52  ;;  %v4003_v34 = vadd.f32 %v12198_v39, %v12260_v8 }
 0x4c2   :  { %v8535_v42 = vpop.eup %8534  ;;  %8558 = vpow2.f32 %v8043_v27  ;;  %v12264_v35 = vpop.f32.mrf.mxu0 }
 0x4c3   :  { %8560 = vrcp.f32 %v4252_v33  ;;  %v4251_v40 = vadd.f32 1.0, %v8535_v42  ;;  %v8045_v51 = vmul.f32 -1.442695, %v4003_v34  ;;  %v4006_v46 = vadd.f32 %v12264_v35, %v12198_v39 }
 0x4c4   :  { %v8537_v36 = vpop.eup %8536  ;;  %8562 = vpow2.f32 %v8046_v29  ;;  %v12268_v56 = vpop.f32.mrf.mxu0 }
 0x4c5   :  { %v8539_v59 = vpop.eup %8538  ;;  %8564 = vrcp.f32 %v4251_v40  ;;  %v4254_v54 = vadd.f32 1.0, %v8537_v36  ;;  %v8048_v25 = vmul.f32 -1.442695, %v4006_v46  ;;  %v4005_v13 = vadd.f32 %v12198_v39, %v12268_v56 }
 0x4c6   :  { %v8541_v30 = vpop.eup %8540  ;;  %8566 = vpow2.f32 %v8045_v51  ;;  %4503 = vrot.lane.b32.xlu0 %v8539_v59, %s8785_s0  ;;  %v12273_v1 = vpop.f32.mrf.mxu0 }
 0x4c7   :  { %v8543_v22 = vpop.eup %8542  ;;  %8568 = vrcp.f32 %v4254_v54  ;;  %v8047_v26 = vmul.f32 -1.442695, %v4005_v13  ;;  %v4008_v38 = vadd.f32 %v12273_v1, %v12198_v39  ;;  %4501 = vrot.lane.b32.xlu1 %v8541_v30, %s8785_s0 }
 0x4c8   :  { %v8545_v31 = vpop.eup %8544  ;;  %v4253_v41 = vadd.f32 1.0, %v8543_v22  ;;  %8570 = vpow2.f32 %v8048_v25  ;;  %v12278_v37 = vpop.f32.mrf.mxu0 }
 0x4c9   :  { %v8547_v50 = vpop.eup %8546  ;;  %8572 = vpow2.f32 %v8047_v26  ;;  %v8050_v32 = vmul.f32 -1.442695, %v4008_v38  ;;  %v4007_v0 = vadd.f32 %v12198_v39, %v12278_v37 }
 0x4ca   :  { %v8549_v9 = vpop.eup %8548  ;;  %8574 = vrcp.f32 %v4253_v41  ;;  %v4256_v47 = vadd.f32 1.0, %v8547_v50  ;;  %4507 = vrot.lane.b32.xlu0 %v8545_v31, %s8785_s0  ;;  %v12283_v17 = vpop.f32.mrf.mxu0 }
 0x4cb   :  { %v8551_v5 = vpop.eup %8550  ;;  %8576 = vpow2.f32 %v8050_v32  ;;  %v8049_v15 = vmul.f32 -1.442695, %v4007_v0  ;;  %v4010_v18 = vadd.f32 %v12283_v17, %v12198_v39  ;;  %4505 = vrot.lane.b32.xlu1 %v8549_v9, %s8785_s0 }
 0x4cc   :  { %v8553_v55 = vpop.eup %8552  ;;  %8578 = vrcp.f32 %v4256_v47  ;;  %v4255_v28 = vadd.f32 1.0, %v8551_v5  ;;  %v12288_v58 = vpop.f32.mrf.mxu0 }
 0x4cd   :  { %v8555_v12 = vpop.eup %8554  ;;  %8580 = vpow2.f32 %v8049_v15  ;;  %v8052_v61 = vmul.f32 -1.442695, %v4010_v18  ;;  %v4009_v44 = vadd.f32 %v12198_v39, %v12288_v58 }
 0x4ce   :  { %v8557_v53 = vpop.eup %8556  ;;  %8582 = vrcp.f32 %v4255_v28  ;;  %v4258_v21 = vadd.f32 1.0, %v8555_v12  ;;  %4511 = vrot.lane.b32.xlu0 %v8553_v55, %s8785_s0  ;;  %v12293_v20 = vpop.f32.mrf.mxu0 }
 0x4cf   :  { %v8559_v6 = vpop.eup %8558  ;;  %8584 = vpow2.f32 %v8052_v61  ;;  %v8051_v11 = vmul.f32 -1.442695, %v4009_v44  ;;  %v4012_v4 = vadd.f32 %v12293_v20, %v12198_v39  ;;  %4509 = vrot.lane.b32.xlu1 %v8557_v53, %s8785_s0 }
 0x4d0   :  { %v8561_v27 = vpop.eup %8560  ;;  %8586 = vrcp.f32 %v4258_v21  ;;  %v4257_v52 = vadd.f32 1.0, %v8559_v6  ;;  %v12298_v16 = vpop.f32.mrf.mxu0 }
 0x4d1   :  { %v8563_v33 = vpop.eup %8562  ;;  %8588 = vpow2.f32 %v8051_v11  ;;  %v8054_v29 = vmul.f32 -1.442695, %v4012_v4  ;;  %v4011_v34 = vadd.f32 %v12198_v39, %v12298_v16 }
 0x4d2   :  { %v8565_v42 = vpop.eup %8564  ;;  %8590 = vrcp.f32 %v4257_v52  ;;  %v4260_v40 = vadd.f32 1.0, %v8563_v33  ;;  %4515 = vrot.lane.b32.xlu0 %v8561_v27, %s8785_s0  ;;  %v12303_v51 = vpop.f32.mrf.mxu0 }
 0x4d3   :  { %v8567_v46 = vpop.eup %8566  ;;  %8592 = vpow2.f32 %v8054_v29  ;;  %v8053_v36 = vmul.f32 -1.442695, %v4011_v34  ;;  %v4014_v59 = vadd.f32 %v12303_v51, %v12198_v39  ;;  %4513 = vrot.lane.b32.xlu1 %v8565_v42, %s8785_s0 }
 0x4d4   :  { %v8569_v54 = vpop.eup %8568  ;;  %8594 = vrcp.f32 %v4260_v40  ;;  %v4259_v25 = vadd.f32 1.0, %v8567_v46  ;;  %v12308_v13 = vpop.f32.mrf.mxu0 }
 0x4d5   :  { %v8571_v30 = vpop.eup %8570  ;;  %8596 = vpow2.f32 %v8053_v36  ;;  %v8056_v22 = vmul.f32 -1.442695, %v4014_v59  ;;  %v4013_v26 = vadd.f32 %v12198_v39, %v12308_v13 }
 0x4d6   :  { %v8573_v38 = vpop.eup %8572  ;;  %8598 = vrcp.f32 %v4259_v25  ;;  %v4262_v31 = vadd.f32 1.0, %v8571_v30  ;;  %4519 = vrot.lane.b32.xlu0 %v8569_v54, %s8785_s0  ;;  %v12313_v41 = vpop.f32.mrf.mxu0 }
 0x4d7   :  { %v8575_v50 = vpop.eup %8574  ;;  %v4261_v32 = vadd.f32 1.0, %v8573_v38  ;;  %8600 = vpow2.f32 %v8056_v22  ;;  %v8055_v0 = vmul.f32 -1.442695, %v4013_v26  ;;  %v4016_v9 = vadd.f32 %v12313_v41, %v12198_v39 }
 0x4d8   :  { %v8577_v47 = vpop.eup %8576  ;;  %8602 = vrcp.f32 %v4262_v31  ;;  %4517 = vrot.lane.b32.xlu1 %v8575_v50, %s8785_s0  ;;  %v12318_v5 = vpop.f32.mrf.mxu0 }
 0x4d9   :  { %v8579_v15 = vpop.eup %8578  ;;  %8604 = vrcp.f32 %v4261_v32  ;;  %v4264_v18 = vadd.f32 1.0, %v8577_v47  ;;  %v8058_v55 = vmul.f32 -1.442695, %v4016_v9  ;;  %v4015_v28 = vadd.f32 %v12198_v39, %v12318_v5 }
 0x4da   :  { %v8581_v12 = vpop.eup %8580  ;;  %8606 = vpow2.f32 %v8055_v0  ;;  %4523 = vrot.lane.b32.xlu0 %v8579_v15, %s8785_s0  ;;  %v12323_v61 = vpop.f32.mrf.mxu0 }
 0x4db   :  { %v8583_v44 = vpop.eup %8582  ;;  %8608 = vrcp.f32 %v4264_v18  ;;  %v4263_v53 = vadd.f32 1.0, %v8581_v12  ;;  %v8057_v21 = vmul.f32 -1.442695, %v4015_v28  ;;  %v4018_v6 = vadd.f32 %v12323_v61, %v12198_v39 }
 0x4dc   :  { %v8585_v11 = vpop.eup %8584  ;;  %8610 = vpow2.f32 %v8058_v55  ;;  %4521 = vrot.lane.b32.xlu1 %v8583_v44, %s8785_s0  ;;  %v12328_v4 = vpop.f32.mrf.mxu0 }
 0x4dd   :  { %v8587_v27 = vpop.eup %8586  ;;  %8612 = vrcp.f32 %v4263_v53  ;;  %v4266_v52 = vadd.f32 1.0, %v8585_v11  ;;  %v8060_v33 = vmul.f32 -1.442695, %v4018_v6  ;;  %v4017_v29 = vadd.f32 %v12198_v39, %v12328_v4 }
 0x4de   :  { %v8589_v34 = vpop.eup %8588  ;;  %8614 = vpow2.f32 %v8057_v21  ;;  %4527 = vrot.lane.b32.xlu0 %v8587_v27, %s8785_s0  ;;  %v12333_v42 = vpop.f32.mrf.mxu0 }
 0x4df   :  { %15048 = vst [vmem:[#allocation3_spill] sm:$0xff] %v12333_v42  ;;  %v8591_v40 = vpop.eup %8590  ;;  %8616 = vrcp.f32 %v4266_v52  ;;  %v4265_v46 = vadd.f32 1.0, %v8589_v34  ;;  %v8059_v36 = vmul.f32 -1.442695, %v4017_v29  ;;  %v4020_v59 = vadd.f32 %v12333_v42, %v12198_v39 }
 0x4e0   :  { %v8593_v54 = vpop.eup %8592  ;;  %8618 = vpow2.f32 %v8060_v33  ;;  %4525 = vrot.lane.b32.xlu1 %v8591_v40, %s8785_s0  ;;  %v12338_v25 = vpop.f32.mrf.mxu0 }
 0x4e1   :  { %15049 = vst [vmem:[#allocation4_spill] sm:$0xff] %v12338_v25  ;;  %v8595_v30 = vpop.eup %8594  ;;  %8620 = vrcp.f32 %v4265_v46  ;;  %v4268_v22 = vadd.f32 1.0, %v8593_v54  ;;  %v8062_v26 = vmul.f32 -1.442695, %v4020_v59  ;;  %v4019_v38 = vadd.f32 %v12198_v39, %v12338_v25 }
 0x4e2   :  { %v8597_v31 = vpop.eup %8596  ;;  %8622 = vpow2.f32 %v8059_v36  ;;  %4531 = vrot.lane.b32.xlu0 %v8595_v30, %s8785_s0  ;;  %v12343_v50 = vpop.f32.mrf.mxu0 }
 0x4e3   :  { %v8599_v32 = vpop.eup %8598  ;;  %8624 = vrcp.f32 %v4268_v22  ;;  %v4267_v0 = vadd.f32 1.0, %v8597_v31  ;;  %v8061_v9 = vmul.f32 -1.442695, %v4019_v38  ;;  %v4022_v47 = vadd.f32 %v12343_v50, %v12198_v39 }
 0x4e4   :  { %v8601_v15 = vpop.eup %8600  ;;  %8626 = vpow2.f32 %v8062_v26  ;;  %4529 = vrot.lane.b32.xlu1 %v8599_v32, %s8785_s0  ;;  %v12348_v18 = vpop.f32.mrf.mxu0 }
 0x4e5   :  { %v8603_v55 = vpop.eup %8602  ;;  %8628 = vrcp.f32 %v4267_v0  ;;  %v4270_v28 = vadd.f32 1.0, %v8601_v15  ;;  %v8064_v12 = vmul.f32 -1.442695, %v4022_v47  ;;  %v4021_v44 = vadd.f32 %v12198_v39, %v12348_v18 }
 0x4e6   :  { %v8605_v53 = vpop.eup %8604  ;;  %8630 = vpow2.f32 %v8061_v9  ;;  %4535 = vrot.lane.b32.xlu0 %v8603_v55, %s8785_s0  ;;  %v12353_v21 = vpop.f32.mrf.mxu0 }
 0x4e7   :  { %v8607_v6 = vpop.eup %8606  ;;  %8632 = vrcp.f32 %v4270_v28  ;;  %v8063_v11 = vmul.f32 -1.442695, %v4021_v44  ;;  %v4024_v27 = vadd.f32 %v12353_v21, %v12198_v39 }
 0x4e8   :  { %v8609_v52 = vpop.eup %8608  ;;  %v4269_v33 = vadd.f32 1.0, %v8607_v6  ;;  %8634 = vpow2.f32 %v8064_v12  ;;  %4533 = vrot.lane.b32.xlu1 %v8605_v53, %s8785_s0  ;;  %v12358_v29 = vpop.f32.mrf.mxu0 }
 0x4e9   :  { %v8611_v34 = vpop.eup %8610  ;;  %8636 = vpow2.f32 %v8063_v11  ;;  %v8066_v40 = vmul.f32 -1.442695, %v4024_v27  ;;  %v4023_v46 = vadd.f32 %v12198_v39, %v12358_v29 }
 0x4ea   :  { %v8613_v36 = vpop.eup %8612  ;;  %8638 = vrcp.f32 %v4269_v33  ;;  %v4272_v59 = vadd.f32 1.0, %v8611_v34  ;;  %4539 = vrot.lane.b32.xlu0 %v8609_v52, %s8785_s0  ;;  %v12363_v54 = vpop.f32.mrf.mxu0 }
 0x4eb   :  { %v8615_v30 = vpop.eup %8614  ;;  %8640 = vpow2.f32 %v8066_v40  ;;  %v8065_v22 = vmul.f32 -1.442695, %v4023_v46  ;;  %v4026_v26 = vadd.f32 %v12363_v54, %v12198_v39 }
 0x4ec   :  { %v8617_v38 = vpop.eup %8616  ;;  %8642 = vrcp.f32 %v4272_v59  ;;  %v4271_v31 = vadd.f32 1.0, %v8615_v30  ;;  %4537 = vrot.lane.b32.xlu1 %v8613_v36, %s8785_s0  ;;  %v12368_v32 = vpop.f32.mrf.mxu0 }
 0x4ed   :  { %v8619_v0 = vpop.eup %8618  ;;  %8644 = vpow2.f32 %v8065_v22  ;;  %v8068_v9 = vmul.f32 -1.442695, %v4026_v26  ;;  %v4025_v47 = vadd.f32 %v12198_v39, %v12368_v32 }
 0x4ee   :  { %v8621_v15 = vpop.eup %8620  ;;  %8646 = vrcp.f32 %v4271_v31  ;;  %v4274_v55 = vadd.f32 1.0, %v8619_v0  ;;  %4543 = vrot.lane.b32.xlu0 %v8617_v38, %s8785_s0  ;;  %v12373_v28 = vpop.f32.mrf.mxu0 }
 0x4ef   :  { %v8623_v12 = vpop.eup %8622  ;;  %8648 = vpow2.f32 %v8068_v9  ;;  %v8067_v44 = vmul.f32 -1.442695, %v4025_v47  ;;  %v4028_v53 = vadd.f32 %v12373_v28, %v12198_v39 }
 0x4f0   :  { %v8625_v6 = vpop.eup %8624  ;;  %8650 = vrcp.f32 %v4274_v55  ;;  %v4273_v11 = vadd.f32 1.0, %v8623_v12  ;;  %4541 = vrot.lane.b32.xlu1 %v8621_v15, %s8785_s0  ;;  %v12378_v27 = vpop.f32.mrf.mxu0 }
 0x4f1   :  { %v8627_v52 = vpop.eup %8626  ;;  %8652 = vpow2.f32 %v8067_v44  ;;  %v8070_v33 = vmul.f32 -1.442695, %v4028_v53  ;;  %v4027_v34 = vadd.f32 %v12198_v39, %v12378_v27 }
 0x4f2   :  { %v8629_v40 = vpop.eup %8628  ;;  %8654 = vrcp.f32 %v4273_v11  ;;  %v4276_v46 = vadd.f32 1.0, %v8627_v52  ;;  %4547 = vrot.lane.b32.xlu0 %v8625_v6, %s8785_s0  ;;  %v12383_v36 = vpop.f32.mrf.mxu0 }
 0x4f3   :  { %v8631_v59 = vpop.eup %8630  ;;  %8656 = vpow2.f32 %v8070_v33  ;;  %v8069_v30 = vmul.f32 -1.442695, %v4027_v34  ;;  %v4030_v22 = vadd.f32 %v12383_v36, %v12198_v39 }
 0x4f4   :  { %v8633_v26 = vpop.eup %8632  ;;  %8658 = vrcp.f32 %v4276_v46  ;;  %v4275_v38 = vadd.f32 1.0, %v8631_v59  ;;  %4545 = vrot.lane.b32.xlu1 %v8629_v40, %s8785_s0  ;;  %v12388_v31 = vpop.f32.mrf.mxu0 }
 0x4f5   :  { %v8635_v0 = vpop.eup %8634  ;;  %8660 = vpow2.f32 %v8069_v30  ;;  %v8072_v9 = vmul.f32 -1.442695, %v4030_v22  ;;  %v4029_v47 = vadd.f32 %v12198_v39, %v12388_v31 }
 0x4f6   :  { %v8637_v15 = vpop.eup %8636  ;;  %8662 = vrcp.f32 %v4275_v38  ;;  %v4278_v55 = vadd.f32 1.0, %v8635_v0  ;;  %4551 = vrot.lane.b32.xlu0 %v8633_v26, %s8785_s0  ;;  %v12393_v12 = vpop.f32.mrf.mxu0 }
 0x4f7   :  { %v8639_v44 = vpop.eup %8638  ;;  %v4277_v53 = vadd.f32 1.0, %v8637_v15  ;;  %8664 = vpow2.f32 %v8072_v9  ;;  %v8071_v6 = vmul.f32 -1.442695, %v4029_v47  ;;  %v4032_v11 = vadd.f32 %v12393_v12, %v12198_v39 }
 0x4f8   :  { %v8641_v52 = vpop.eup %8640  ;;  %8666 = vrcp.f32 %v4278_v55  ;;  %4549 = vrot.lane.b32.xlu1 %v8639_v44, %s8785_s0  ;;  %v12398_v33 = vpop.f32.mrf.mxu0 }
 0x4f9   :  { %v8643_v34 = vpop.eup %8642  ;;  %8668 = vrcp.f32 %v4277_v53  ;;  %v4280_v40 = vadd.f32 1.0, %v8641_v52  ;;  %v8074_v46 = vmul.f32 -1.442695, %v4032_v11  ;;  %v4031_v59 = vadd.f32 %v12198_v39, %v12398_v33 }
 0x4fa   :  { %v8645_v30 = vpop.eup %8644  ;;  %8670 = vpow2.f32 %v8071_v6  ;;  %4555 = vrot.lane.b32.xlu0 %v8643_v34, %s8785_s0  ;;  %v12403_v22 = vpop.f32.mrf.mxu0 }
 0x4fb   :  { %v8647_v26 = vpop.eup %8646  ;;  %8672 = vrcp.f32 %v4280_v40  ;;  %v4279_v38 = vadd.f32 1.0, %v8645_v30  ;;  %v8073_v0 = vmul.f32 -1.442695, %v4031_v59  ;;  %v4034_v9 = vadd.f32 %v12403_v22, %v12198_v39 }
 0x4fc   :  { %v8649_v47 = vpop.eup %8648  ;;  %8674 = vpow2.f32 %v8074_v46  ;;  %4553 = vrot.lane.b32.xlu1 %v8647_v26, %s8785_s0  ;;  %v12408_v15 = vpop.f32.mrf.mxu0 }
 0x4fd   :  { %v8651_v55 = vpop.eup %8650  ;;  %8676 = vrcp.f32 %v4279_v38  ;;  %v4282_v44 = vadd.f32 1.0, %v8649_v47  ;;  %v8076_v53 = vmul.f32 -1.442695, %v4034_v9  ;;  %v4033_v6 = vadd.f32 %v12198_v39, %v12408_v15 }
 0x4fe   :  { %v8653_v11 = vpop.eup %8652  ;;  %8678 = vpow2.f32 %v8073_v0  ;;  %4559 = vrot.lane.b32.xlu0 %v8651_v55, %s8785_s0  ;;  %v12413_v52 = vpop.f32.mrf.mxu0 }
 0x4ff   :  { %v8655_v34 = vpop.eup %8654  ;;  %8680 = vrcp.f32 %v4282_v44  ;;  %v4281_v40 = vadd.f32 1.0, %v8653_v11  ;;  %v8075_v46 = vmul.f32 -1.442695, %v4033_v6  ;;  %v4036_v59 = vadd.f32 %v12413_v52, %v12198_v39 }
 0x500   :  { %v8657_v30 = vpop.eup %8656  ;;  %8682 = vpow2.f32 %v8076_v53  ;;  %4557 = vrot.lane.b32.xlu1 %v8655_v34, %s8785_s0  ;;  %v12418_v26 = vpop.f32.mrf.mxu0 }
 0x501   :  { %v8659_v38 = vpop.eup %8658  ;;  %8684 = vrcp.f32 %v4281_v40  ;;  %v4284_v0 = vadd.f32 1.0, %v8657_v30  ;;  %v8078_v9 = vmul.f32 -1.442695, %v4036_v59  ;;  %v4035_v47 = vadd.f32 %v12198_v39, %v12418_v26 }
 0x502   :  { %v8661_v55 = vpop.eup %8660  ;;  %8686 = vpow2.f32 %v8075_v46  ;;  %4563 = vrot.lane.b32.xlu0 %v8659_v38, %s8785_s0  ;;  %v12423_v44 = vpop.f32.mrf.mxu0 }
 0x503   :  { %v8663_v6 = vpop.eup %8662  ;;  %8688 = vrcp.f32 %v4284_v0  ;;  %v4283_v53 = vadd.f32 1.0, %v8661_v55  ;;  %v8077_v11 = vmul.f32 -1.442695, %v4035_v47  ;;  %v4038_v34 = vadd.f32 %v12423_v44, %v12198_v39 }
 0x504   :  { %v8665_v2 = vpop.eup %8664  ;;  %8690 = vpow2.f32 %v8078_v9  ;;  %4561 = vrot.lane.b32.xlu1 %v8663_v6, %s8785_s0  ;;  %v12428_v40 = vpop.f32.mrf.mxu0 }
 0x505   :  { %15050 = vst [vmem:[#allocation5_spill] sm:$0xff] %v12428_v40  ;;  %v8667_v59 = vpop.eup %8666  ;;  %8692 = vrcp.f32 %v4283_v53  ;;  %v4286_v46 = vadd.f32 1.0, %v8665_v2  ;;  %v8080_v30 = vmul.f32 -1.442695, %v4038_v34  ;;  %v4037_v38 = vadd.f32 %v12198_v39, %v12428_v40 }
 0x506   :  { %v8669_v25 = vpop.eup %8668  ;;  %8694 = vpow2.f32 %v8077_v11  ;;  %4567 = vrot.lane.b32.xlu0 %v8667_v59, %s8785_s0  ;;  %v12433_v0 = vpop.f32.mrf.mxu0 }
 0x507   :  { %15051 = vst [vmem:[#allocation6_spill] sm:$0xff] %v12433_v0  ;;  %v8671_v47 = vpop.eup %8670  ;;  %8696 = vrcp.f32 %v4286_v46  ;;  %v8079_v9 = vmul.f32 -1.442695, %v4037_v38  ;;  %v4040_v55 = vadd.f32 %v12433_v0, %v12198_v39 }
 0x508   :  { %v8673_v6 = vpop.eup %8672  ;;  %v4285_v42 = vadd.f32 1.0, %v8671_v47  ;;  %8698 = vpow2.f32 %v8080_v30  ;;  %4565 = vrot.lane.b32.xlu1 %v8669_v25, %s8785_s0  ;;  %v12438_v2 = vpop.f32.mrf.mxu0 }
 0x509   :  { %15052 = vst [vmem:[#allocation7_spill] sm:$0xff] %v12438_v2  ;;  %v8675_v53 = vpop.eup %8674  ;;  %8700 = vpow2.f32 %v8079_v9  ;;  %v8082_v11 = vmul.f32 -1.442695, %v4040_v55  ;;  %v4039_v34 = vadd.f32 %v12198_v39, %v12438_v2 }
 0x50a   :  { %v8677_v59 = vpop.eup %8676  ;;  %8702 = vrcp.f32 %v4285_v42  ;;  %v4288_v46 = vadd.f32 1.0, %v8675_v53  ;;  %4571 = vrot.lane.b32.xlu0 %v8673_v6, %s8785_s0  ;;  %v12443_v38 = vpop.f32.mrf.mxu0 }
 0x50b   :  { %15053 = vst [vmem:[#allocation8_spill] sm:$0xff] %v12443_v38  ;;  %v8679_v0 = vpop.eup %8678  ;;  %8704 = vpow2.f32 %v8082_v11  ;;  %v8081_v30 = vmul.f32 -1.442695, %v4039_v34  ;;  %v4042_v25 = vadd.f32 %v12443_v38, %v12198_v39 }
 0x50c   :  { %v8681_v47 = vpop.eup %8680  ;;  %8706 = vrcp.f32 %v4288_v46  ;;  %v4287_v9 = vadd.f32 1.0, %v8679_v0  ;;  %4569 = vrot.lane.b32.xlu1 %v8677_v59, %s8785_s0  ;;  %v12448_v55 = vpop.f32.mrf.mxu0 }
 0x50d   :  { %15054 = vst [vmem:[#allocation9_spill] sm:$0xff] %v12448_v55  ;;  %v8683_v2 = vpop.eup %8682  ;;  %8708 = vpow2.f32 %v8081_v30  ;;  %v8084_v42 = vmul.f32 -1.442695, %v4042_v25  ;;  %v4041_v6 = vadd.f32 %v12198_v39, %v12448_v55 }
 0x50e   :  { %v8685_v53 = vpop.eup %8684  ;;  %8710 = vrcp.f32 %v4287_v9  ;;  %v4290_v11 = vadd.f32 1.0, %v8683_v2  ;;  %4575 = vrot.lane.b32.xlu0 %v8681_v47, %s8785_s0  ;;  %v12453_v34 = vpop.f32.mrf.mxu0 }
 0x50f   :  { %15055 = vst [vmem:[#allocation10_spill] sm:$0xff] %v12453_v34  ;;  %v8687_v38 = vpop.eup %8686  ;;  %8712 = vpow2.f32 %v8084_v42  ;;  %v8083_v0 = vmul.f32 -1.442695, %v4041_v6  ;;  %v4044_v59 = vadd.f32 %v12453_v34, %v12198_v39 }
 0x510   :  { %v8689_v46 = vpop.eup %8688  ;;  %8714 = vrcp.f32 %v4290_v11  ;;  %v4289_v30 = vadd.f32 1.0, %v8687_v38  ;;  %4573 = vrot.lane.b32.xlu1 %v8685_v53, %s8785_s0  ;;  %v12458_v25 = vpop.f32.mrf.mxu0 }
 0x511   :  { %15056 = vst [vmem:[#allocation11_spill] sm:$0xff] %v12458_v25  ;;  %v8691_v55 = vpop.eup %8690  ;;  %8716 = vpow2.f32 %v8083_v0  ;;  %v8086_v2 = vmul.f32 -1.442695, %v4044_v59  ;;  %v4043_v47 = vadd.f32 %v12198_v39, %v12458_v25 }
 0x512   :  { %v8693_v9 = vpop.eup %8692  ;;  %8718 = vrcp.f32 %v4289_v30  ;;  %v4292_v42 = vadd.f32 1.0, %v8691_v55  ;;  %4579 = vrot.lane.b32.xlu0 %v8689_v46, %s8785_s0  ;;  %v12463_v6 = vpop.f32.mrf.mxu0 }
 0x513   :  { %15057 = vst [vmem:[#allocation12_spill] sm:$0xff] %v12463_v6  ;;  %v8695_v34 = vpop.eup %8694  ;;  %8720 = vpow2.f32 %v8086_v2  ;;  %v8085_v38 = vmul.f32 -1.442695, %v4043_v47  ;;  %v4046_v53 = vadd.f32 %v12463_v6, %v12198_v39 }
 0x514   :  { %v8697_v11 = vpop.eup %8696  ;;  %8722 = vrcp.f32 %v4292_v42  ;;  %v4291_v0 = vadd.f32 1.0, %v8695_v34  ;;  %4577 = vrot.lane.b32.xlu1 %v8693_v9, %s8785_s0  ;;  %v12468_v59 = vpop.f32.mrf.mxu0 }
 0x515   :  { %15058 = vst [vmem:[#allocation13_spill] sm:$0xff] %v12468_v59  ;;  %v8699_v25 = vpop.eup %8698  ;;  %8724 = vpow2.f32 %v8085_v38  ;;  %v8088_v55 = vmul.f32 -1.442695, %v4046_v53  ;;  %v4045_v46 = vadd.f32 %v12198_v39, %v12468_v59 }
 0x516   :  { %v8701_v30 = vpop.eup %8700  ;;  %8726 = vrcp.f32 %v4291_v0  ;;  %v4294_v2 = vadd.f32 1.0, %v8699_v25  ;;  %4583 = vrot.lane.b32.xlu0 %v8697_v11, %s8785_s0  ;;  %v12473_v47 = vpop.f32.mrf.mxu0 }
 0x517   :  { %15059 = vst [vmem:[#allocation14_spill] sm:$0xff] %v12473_v47  ;;  %v8703_v6 = vpop.eup %8702  ;;  %v4293_v42 = vadd.f32 1.0, %v8701_v30  ;;  %8728 = vpow2.f32 %v8088_v55  ;;  %v8087_v34 = vmul.f32 -1.442695, %v4045_v46  ;;  %v4048_v9 = vadd.f32 %v12473_v47, %v12198_v39 }
 0x518   :  { %v8705_v40 = vpop.eup %8704  ;;  %8730 = vrcp.f32 %v4294_v2  ;;  %4581 = vrot.lane.b32.xlu1 %v8703_v6, %s8785_s0  ;;  %v12478_v38 = vpop.f32.mrf.mxu0 }
 0x519   :  { %15060 = vst [vmem:[#allocation15_spill] sm:$0xff] %v12478_v38  ;;  %v8707_v53 = vpop.eup %8706  ;;  %8732 = vrcp.f32 %v4293_v42  ;;  %v4296_v25 = vadd.f32 1.0, %v8705_v40  ;;  %v8090_v0 = vmul.f32 -1.442695, %v4048_v9  ;;  %v4047_v11 = vadd.f32 %v12198_v39, %v12478_v38 }
 0x51a   :  { %v8709_v59 = vpop.eup %8708  ;;  %8734 = vpow2.f32 %v8087_v34  ;;  %4587 = vrot.lane.b32.xlu0 %v8707_v53, %s8785_s0  ;;  %v12483_v55 = vpop.f32.mrf.mxu0 }
 0x51b   :  { %15061 = vst [vmem:[#allocation16_spill] sm:$0xff] %v12483_v55  ;;  %v8711_v46 = vpop.eup %8710  ;;  %8736 = vrcp.f32 %v4296_v25  ;;  %v4295_v30 = vadd.f32 1.0, %v8709_v59  ;;  %v8089_v2 = vmul.f32 -1.442695, %v4047_v11  ;;  %v4050_v6 = vadd.f32 %v12483_v55, %v12198_v39 }
 0x51c   :  { %v8713_v47 = vpop.eup %8712  ;;  %8738 = vpow2.f32 %v8090_v0  ;;  %4585 = vrot.lane.b32.xlu1 %v8711_v46, %s8785_s0  ;;  %v12488_v40 = vpop.f32.mrf.mxu0 }
 0x51d   :  { %15062 = vst [vmem:[#allocation17_spill] sm:$0xff] %v12488_v40  ;;  %v8715_v42 = vpop.eup %8714  ;;  %8740 = vrcp.f32 %v4295_v30  ;;  %v4298_v34 = vadd.f32 1.0, %v8713_v47  ;;  %v8092_v9 = vmul.f32 -1.442695, %v4050_v6  ;;  %v4049_v53 = vadd.f32 %v12198_v39, %v12488_v40 }
 0x51e   :  { %v8717_v38 = vpop.eup %8716  ;;  %8742 = vpow2.f32 %v8089_v2  ;;  %4591 = vrot.lane.b32.xlu0 %v8715_v42, %s8785_s0  ;;  %v12493_v59 = vpop.f32.mrf.mxu0 }
 0x51f   :  { %15063 = vst [vmem:[#allocation18_spill] sm:$0xff] %v12493_v59  ;;  %v8719_v25 = vpop.eup %8718  ;;  %8744 = vrcp.f32 %v4298_v34  ;;  %v4297_v0 = vadd.f32 1.0, %v8717_v38  ;;  %v8091_v11 = vmul.f32 -1.442695, %v4049_v53  ;;  %v4052_v46 = vadd.f32 %v12493_v59, %v12198_v39  ;;  %v15086_v59 = vld [vmem:[#allocation14_spill] sm:$0xff] }
 0x520   :  { %v8721_v55 = vpop.eup %8720  ;;  %8746 = vpow2.f32 %v8092_v9  ;;  %4589 = vrot.lane.b32.xlu1 %v8719_v25, %s8785_s0  ;;  %v12498_v47 = vpop.f32.mrf.mxu0 }
 0x521   :  { %15064 = vst [vmem:[#allocation19_spill] sm:$0xff] %v12498_v47  ;;  %v8723_v30 = vpop.eup %8722  ;;  %8748 = vrcp.f32 %v4297_v0  ;;  %v4300_v2 = vadd.f32 1.0, %v8721_v55  ;;  %v8094_v6 = vmul.f32 -1.442695, %v4052_v46  ;;  %v4051_v42 = vadd.f32 %v12198_v39, %v12498_v47  ;;  %v15084_v47 = vld [vmem:[#allocation13_spill] sm:$0xff] }
 0x522   :  { %v8725_v40 = vpop.eup %8724  ;;  %8750 = vpow2.f32 %v8091_v11  ;;  %4595 = vrot.lane.b32.xlu0 %v8723_v30, %s8785_s0 }
 0x523   :  { %v8727_v38 = vpop.eup %8726  ;;  %8752 = vrcp.f32 %v4300_v2  ;;  %v4299_v34 = vadd.f32 1.0, %v8725_v40  ;;  %v8093_v53 = vmul.f32 -1.442695, %v4051_v42 }
 0x524   :  { %v8729_v9 = vpop.eup %8728  ;;  %8754 = vpow2.f32 %v8094_v6  ;;  %4593 = vrot.lane.b32.xlu1 %v8727_v38, %s8785_s0 }
 0x525   :  { %v8731_v25 = vpop.eup %8730  ;;  %8756 = vrcp.f32 %v4299_v34  ;;  %v4302_v0 = vadd.f32 1.0, %v8729_v9 }
 0x526   :  { %v8733_v55 = vpop.eup %8732  ;;  %8758 = vpow2.f32 %v8093_v53  ;;  %4599 = vrot.lane.b32.xlu0 %v8731_v25, %s8785_s0 }
 0x527   :  { %v8735_v39 = vpop.eup %8734  ;;  %8760 = vrcp.f32 %v4302_v0 }
 0x528   :  { %v8737_v11 = vpop.eup %8736  ;;  %v4301_v46 = vadd.f32 1.0, %v8735_v39  ;;  %4597 = vrot.lane.b32.xlu1 %v8733_v55, %s8785_s0 }
 0x529   :  { %v8739_v30 = vpop.eup %8738 }
 0x52a   :  { %v8741_v40 = vpop.eup %8740  ;;  %8762 = vrcp.f32 %v4301_v46  ;;  %v4304_v2 = vadd.f32 1.0, %v8739_v30  ;;  %4603 = vrot.lane.b32.xlu0 %v8737_v11, %s8785_s0 }
 0x52b   :  { %v8743_v6 = vpop.eup %8742 }
 0x52c   :  { %v8745_v42 = vpop.eup %8744  ;;  %8764 = vrcp.f32 %v4304_v2  ;;  %v4303_v38 = vadd.f32 1.0, %v8743_v6  ;;  %4601 = vrot.lane.b32.xlu1 %v8741_v40, %s8785_s0 }
 0x52d   :  { %v8747_v34 = vpop.eup %8746 }
 0x52e   :  { %v8749_v53 = vpop.eup %8748  ;;  %8766 = vrcp.f32 %v4303_v38  ;;  %v4306_v9 = vadd.f32 1.0, %v8747_v34  ;;  %4607 = vrot.lane.b32.xlu0 %v8745_v42, %s8785_s0 }
 0x52f   :  { %v8751_v25 = vpop.eup %8750 }
 0x530   :  { %v8753_v0 = vpop.eup %8752  ;;  %8768 = vrcp.f32 %v4306_v9  ;;  %v4305_v55 = vadd.f32 1.0, %v8751_v25  ;;  %4605 = vrot.lane.b32.xlu1 %v8749_v53, %s8785_s0 }
 0x531   :  { %v8755_v39 = vpop.eup %8754 }
 0x532   :  { %v8757_v11 = vpop.eup %8756  ;;  %8770 = vrcp.f32 %v4305_v55  ;;  %v4308_v46 = vadd.f32 1.0, %v8755_v39  ;;  %4611 = vrot.lane.b32.xlu0 %v8753_v0, %s8785_s0 }
 0x533   :  { %v8759_v30 = vpop.eup %8758 }
 0x534   :  { %v8761_v40 = vpop.eup %8760  ;;  %8772 = vrcp.f32 %v4308_v46  ;;  %v4307_v2 = vadd.f32 1.0, %v8759_v30  ;;  %4609 = vrot.lane.b32.xlu1 %v8757_v11, %s8785_s0 }
 0x536   :  { %8774 = vrcp.f32 %v4307_v2  ;;  %4615 = vrot.lane.b32.xlu0 %v8761_v40, %s8785_s0 }
 0x537   :  { %v8763_v6 = vpop.eup %8762 }
 0x538   :  { %v4504_v42 = vpop.permute.xlu0 %4503  ;;  %4613 = vrot.lane.b32.xlu1 %v8763_v6, %s8785_s0 }
 0x539   :  { %v8765_v38 = vpop.eup %8764  ;;  %v12515_v34 = vmul.f32 %v12200_v43, %v4504_v42  ;;  %v4502_v53 = vpop.permute.xlu1 %4501 }
 0x53a   :  { %v12518_v9 = vmul.f32 %v4502_v53, %v12204_v60  ;;  %4619 = vrot.lane.b32.xlu0 %v8765_v38, %s8785_s0 }
 0x53b   :  { %v8767_v25 = vpop.eup %8766  ;;  %4794 = vst.msk [vmem:[#allocation2 + $0x19] sm:$0x7f] %vm117_vm3, %v12515_v34 }
 0x53c   :  { %4793 = vst.msk [vmem:[#allocation2 + $0x11] sm:$0xff] %vm17_vm0, %v12518_v9  ;;  %v4508_v0 = vpop.permute.xlu0 %4507  ;;  %4617 = vrot.lane.b32.xlu1 %v8767_v25, %s8785_s0 }
 0x53d   :  { %v8769_v55 = vpop.eup %8768  ;;  %v12527_v43 = vmul.f32 %v12208_v45, %v4508_v0  ;;  %v4506_v39 = vpop.permute.xlu1 %4505 }
 0x53e   :  { %v12530_v60 = vmul.f32 %v4506_v39, %v12212_v63  ;;  %4623 = vrot.lane.b32.xlu0 %v8769_v55, %s8785_s0 }
 0x53f   :  { %v8771_v11 = vpop.eup %8770  ;;  %4796 = vst.msk [vmem:[#allocation2 + $0x29] sm:$0x7f] %vm117_vm3, %v12527_v43 }
 0x540   :  { %4795 = vst.msk [vmem:[#allocation2 + $0x21] sm:$0xff] %vm17_vm0, %v12530_v60  ;;  %v4512_v46 = vpop.permute.xlu0 %4511  ;;  %4621 = vrot.lane.b32.xlu1 %v8771_v11, %s8785_s0 }
 0x541   :  { %v8773_v30 = vpop.eup %8772  ;;  %v12539_v45 = vmul.f32 %v12216_v49, %v4512_v46  ;;  %v4510_v40 = vpop.permute.xlu1 %4509 }
 0x542   :  { %v12542_v63 = vmul.f32 %v4510_v40, %v12220_v57  ;;  %4627 = vrot.lane.b32.xlu0 %v8773_v30, %s8785_s0 }
 0x543   :  { %v8775_v2 = vpop.eup %8774  ;;  %4798 = vst.msk [vmem:[#allocation2 + $0x39] sm:$0x7f] %vm117_vm3, %v12539_v45 }
 0x544   :  { %4797 = vst.msk [vmem:[#allocation2 + $0x31] sm:$0xff] %vm17_vm0, %v12542_v63  ;;  %v4516_v6 = vpop.permute.xlu0 %4515  ;;  %4625 = vrot.lane.b32.xlu1 %v8775_v2, %s8785_s0 }
 0x545   :  { %v12551_v42 = vmul.f32 %v12224_v62, %v4516_v6  ;;  %v4514_v49 = vpop.permute.xlu1 %4513 }
 0x546   :  { %v12554_v38 = vmul.f32 %v4514_v49, %v12228_v3  ;;  %4919 = vrot.lane.b32.xlu0 %v12515_v34, %s8777_s19 }
 0x547   :  { %4800 = vst.msk [vmem:[#allocation2 + $0x49] sm:$0x7f] %vm117_vm3, %v12551_v42 }
 0x548   :  { %4799 = vst.msk [vmem:[#allocation2 + $0x41] sm:$0xff] %vm17_vm0, %v12554_v38  ;;  %v4520_v57 = vpop.permute.xlu0 %4519  ;;  %4917 = vrot.lane.b32.xlu1 %v12518_v9, %s8777_s19 }
 0x549   :  { %v12565_v62 = vmul.f32 %v12232_v7, %v4520_v57 }
 0x54a   :  { %v4518_v53 = vpop.permute.xlu1 %4517  ;;  %4923 = vrot.lane.b32.xlu0 %v12527_v43, %s8777_s19 }
 0x54b   :  { %4802 = vst.msk [vmem:[#allocation2 + $0x59] sm:$0x7f] %vm117_vm3, %v12565_v62  ;;  %v12572_v3 = vmul.f32 %v4518_v53, %v12236_v10 }
 0x54c   :  { %v4524_v25 = vpop.permute.xlu0 %4523  ;;  %4921 = vrot.lane.b32.xlu1 %v12530_v60, %s8777_s19 }
 0x54d   :  { %4801 = vst.msk [vmem:[#allocation2 + $0x51] sm:$0xff] %vm17_vm0, %v12572_v3  ;;  %v12579_v7 = vmul.f32 %v12240_v14, %v4524_v25 }
 0x54e   :  { %v4522_v0 = vpop.permute.xlu1 %4521  ;;  %4927 = vrot.lane.b32.xlu0 %v12539_v45, %s8777_s19 }
 0x54f   :  { %4804 = vst.msk [vmem:[#allocation2 + $0x69] sm:$0x7f] %vm117_vm3, %v12579_v7  ;;  %v12586_v10 = vmul.f32 %v4522_v0, %v12244_v24 }
 0x550   :  { %v4528_v55 = vpop.permute.xlu0 %4527  ;;  %4925 = vrot.lane.b32.xlu1 %v12542_v63, %s8777_s19 }
 0x551   :  { %4803 = vst.msk [vmem:[#allocation2 + $0x61] sm:$0xff] %vm17_vm0, %v12586_v10  ;;  %v12593_v14 = vmul.f32 %v12248_v19, %v4528_v55 }
 0x552   :  { %v4526_v39 = vpop.permute.xlu1 %4525  ;;  %4931 = vrot.lane.b32.xlu0 %v12551_v42, %s8777_s19 }
 0x553   :  { %4806 = vst.msk [vmem:[#allocation2 + $0x79] sm:$0x7f] %vm117_vm3, %v12593_v14  ;;  %v12600_v24 = vmul.f32 %v4526_v39, %v12252_v23 }
 0x554   :  { %v4532_v11 = vpop.permute.xlu0 %4531  ;;  %4929 = vrot.lane.b32.xlu1 %v12554_v38, %s8777_s19 }
 0x555   :  { %4805 = vst.msk [vmem:[#allocation2 + $0x71] sm:$0xff] %vm17_vm0, %v12600_v24  ;;  %v12607_v19 = vmul.f32 %v12256_v48, %v4532_v11 }
 0x556   :  { %v4530_v46 = vpop.permute.xlu1 %4529  ;;  %4935 = vrot.lane.b32.xlu0 %v12565_v62, %s8777_s19 }
 0x557   :  { %4808 = vst.msk [vmem:[#allocation2 + $0x89] sm:$0x7f] %vm117_vm3, %v12607_v19  ;;  %v12614_v23 = vmul.f32 %v4530_v46, %v12260_v8 }
 0x558   :  { %v4536_v30 = vpop.permute.xlu0 %4535  ;;  %4933 = vrot.lane.b32.xlu1 %v12572_v3, %s8777_s19 }
 0x559   :  { %4807 = vst.msk [vmem:[#allocation2 + $0x81] sm:$0xff] %vm17_vm0, %v12614_v23  ;;  %v12621_v48 = vmul.f32 %v12264_v35, %v4536_v30 }
 0x55a   :  { %v4534_v40 = vpop.permute.xlu1 %4533  ;;  %4939 = vrot.lane.b32.xlu0 %v12579_v7, %s8777_s19 }
 0x55b   :  { %4810 = vst.msk [vmem:[#allocation2 + $0x99] sm:$0x7f] %vm117_vm3, %v12621_v48  ;;  %v12628_v8 = vmul.f32 %v4534_v40, %v12268_v56 }
 0x55c   :  { %v4540_v2 = vpop.permute.xlu0 %4539  ;;  %4937 = vrot.lane.b32.xlu1 %v12586_v10, %s8777_s19 }
 0x55d   :  { %4809 = vst.msk [vmem:[#allocation2 + $0x91] sm:$0xff] %vm17_vm0, %v12628_v8  ;;  %v12635_v35 = vmul.f32 %v12273_v1, %v4540_v2 }
 0x55e   :  { %v4538_v6 = vpop.permute.xlu1 %4537  ;;  %4943 = vrot.lane.b32.xlu0 %v12593_v14, %s8777_s19 }
 0x55f   :  { %4812 = vst.msk [vmem:[#allocation2 + $0xa9] sm:$0x7f] %vm117_vm3, %v12635_v35  ;;  %v12642_v56 = vmul.f32 %v4538_v6, %v12278_v37 }
 0x560   :  { %v4544_v49 = vpop.permute.xlu0 %4543  ;;  %4941 = vrot.lane.b32.xlu1 %v12600_v24, %s8777_s19 }
 0x561   :  { %4811 = vst.msk [vmem:[#allocation2 + $0xa1] sm:$0xff] %vm17_vm0, %v12642_v56  ;;  %v12649_v1 = vmul.f32 %v12283_v17, %v4544_v49 }
 0x562   :  { %v4542_v57 = vpop.permute.xlu1 %4541  ;;  %4947 = vrot.lane.b32.xlu0 %v12607_v19, %s8777_s19 }
 0x563   :  { %4814 = vst.msk [vmem:[#allocation2 + $0xb9] sm:$0x7f] %vm117_vm3, %v12649_v1  ;;  %v12656_v37 = vmul.f32 %v4542_v57, %v12288_v58 }
 0x564   :  { %v4548_v53 = vpop.permute.xlu0 %4547  ;;  %4945 = vrot.lane.b32.xlu1 %v12614_v23, %s8777_s19 }
 0x565   :  { %4813 = vst.msk [vmem:[#allocation2 + $0xb1] sm:$0xff] %vm17_vm0, %v12656_v37  ;;  %v12663_v17 = vmul.f32 %v12293_v20, %v4548_v53 }
 0x566   :  { %v4546_v25 = vpop.permute.xlu1 %4545  ;;  %4951 = vrot.lane.b32.xlu0 %v12621_v48, %s8777_s19 }
 0x567   :  { %4816 = vst.msk [vmem:[#allocation2 + $0xc9] sm:$0x7f] %vm117_vm3, %v12663_v17  ;;  %v12670_v58 = vmul.f32 %v4546_v25, %v12298_v16 }
 0x568   :  { %v4552_v0 = vpop.permute.xlu0 %4551  ;;  %4949 = vrot.lane.b32.xlu1 %v12628_v8, %s8777_s19 }
 0x569   :  { %15065 = vst [vmem:[#allocation20_spill] sm:$0xff] %v12670_v58  ;;  %4815 = vst.msk [vmem:[#allocation2 + $0xc1] sm:$0xff] %vm17_vm0, %v12670_v58  ;;  %v12677_v20 = vmul.f32 %v12303_v51, %v4552_v0 }
 0x56a   :  { %v4550_v55 = vpop.permute.xlu1 %4549  ;;  %4955 = vrot.lane.b32.xlu0 %v12635_v35, %s8777_s19 }
 0x56b   :  { %15066 = vst [vmem:[#allocation21_spill] sm:$0xff] %v12677_v20  ;;  %4818 = vst.msk [vmem:[#allocation2 + $0xd9] sm:$0x7f] %vm117_vm3, %v12677_v20  ;;  %v12684_v16 = vmul.f32 %v4550_v55, %v12308_v13 }
 0x56c   :  { %v4556_v39 = vpop.permute.xlu0 %4555  ;;  %4953 = vrot.lane.b32.xlu1 %v12642_v56, %s8777_s19 }
 0x56d   :  { %15067 = vst [vmem:[#allocation22_spill] sm:$0xff] %v12684_v16  ;;  %4817 = vst.msk [vmem:[#allocation2 + $0xd1] sm:$0xff] %vm17_vm0, %v12684_v16  ;;  %v12691_v51 = vmul.f32 %v12313_v41, %v4556_v39 }
 0x56e   :  { %v4554_v11 = vpop.permute.xlu1 %4553  ;;  %4959 = vrot.lane.b32.xlu0 %v12649_v1, %s8777_s19 }
 0x56f   :  { %15068 = vst [vmem:[#allocation23_spill] sm:$0xff] %v12691_v51  ;;  %4820 = vst.msk [vmem:[#allocation2 + $0xe9] sm:$0x7f] %vm117_vm3, %v12691_v51  ;;  %v12698_v13 = vmul.f32 %v4554_v11, %v12318_v5 }
 0x570   :  { %v4560_v46 = vpop.permute.xlu0 %4559  ;;  %4957 = vrot.lane.b32.xlu1 %v12656_v37, %s8777_s19 }
 0x571   :  { %15069 = vst [vmem:[#allocation24_spill] sm:$0xff] %v12698_v13  ;;  %4819 = vst.msk [vmem:[#allocation2 + $0xe1] sm:$0xff] %vm17_vm0, %v12698_v13  ;;  %v12705_v41 = vmul.f32 %v12323_v61, %v4560_v46 }
 0x572   :  { %v4558_v30 = vpop.permute.xlu1 %4557  ;;  %4963 = vrot.lane.b32.xlu0 %v12663_v17, %s8777_s19 }
 0x573   :  { %4822 = vst.msk [vmem:[#allocation2 + $0xf9] sm:$0x7f] %vm117_vm3, %v12705_v41  ;;  %v12712_v5 = vmul.f32 %v4558_v30, %v12328_v4 }
 0x574   :  { %v12714_v40 = vpop.permute.xlu0 %4563  ;;  %4961 = vrot.lane.b32.xlu1 %v12670_v58, %s8777_s19 }
 0x575   :  { %15070 = vst [vmem:[#allocation25_spill] sm:$0xff] %v12714_v40  ;;  %4821 = vst.msk [vmem:[#allocation2 + $0xf1] sm:$0xff] %vm17_vm0, %v12712_v5  ;;  %v15090_v40 = vld [vmem:[#allocation16_spill] sm:$0xff] }
 0x576   :  { %v12720_v61 = vpop.permute.xlu1 %4561  ;;  %4967 = vrot.lane.b32.xlu0 %v12677_v20, %s8777_s19 }
 0x577   :  { %15071 = vst [vmem:[#allocation26_spill] sm:$0xff] %v12720_v61  ;;  %v15088_v61 = vld [vmem:[#allocation15_spill] sm:$0xff] }
 0x578   :  { %v4568_v2 = vpop.permute.xlu0 %4567  ;;  %4965 = vrot.lane.b32.xlu1 %v12684_v16, %s8777_s19 }
 0x579   :  { %v12727_v4 = vmul.f32 %v12343_v50, %v4568_v2 }
 0x57a   :  { %v4566_v6 = vpop.permute.xlu1 %4565  ;;  %4971 = vrot.lane.b32.xlu0 %v12691_v51, %s8777_s19 }
 0x57b   :  { %4824 = vst.msk [vmem:[#allocation2 + $0x119] sm:$0x7f] %vm117_vm3, %v12727_v4  ;;  %v12734_v49 = vmul.f32 %v4566_v6, %v12348_v18 }
 0x57c   :  { %v4572_v57 = vpop.permute.xlu0 %4571  ;;  %4969 = vrot.lane.b32.xlu1 %v12698_v13, %s8777_s19 }
 0x57d   :  { %4823 = vst.msk [vmem:[#allocation2 + $0x111] sm:$0xff] %vm17_vm0, %v12734_v49  ;;  %v12741_v50 = vmul.f32 %v12353_v21, %v4572_v57 }
 0x57e   :  { %v4570_v53 = vpop.permute.xlu1 %4569  ;;  %4975 = vrot.lane.b32.xlu0 %v12705_v41, %s8777_s19 }
 0x57f   :  { %4826 = vst.msk [vmem:[#allocation2 + $0x129] sm:$0x7f] %vm117_vm3, %v12741_v50  ;;  %v12748_v18 = vmul.f32 %v4570_v53, %v12358_v29 }
 0x580   :  { %v4576_v25 = vpop.permute.xlu0 %4575  ;;  %4973 = vrot.lane.b32.xlu1 %v12712_v5, %s8777_s19 }
 0x581   :  { %4825 = vst.msk [vmem:[#allocation2 + $0x121] sm:$0xff] %vm17_vm0, %v12748_v18  ;;  %v12755_v21 = vmul.f32 %v12363_v54, %v4576_v25 }
 0x582   :  { %v4574_v0 = vpop.permute.xlu1 %4573  ;;  %4979 = vrot.lane.b32.xlu0 %v12727_v4, %s8777_s19 }
 0x583   :  { %4828 = vst.msk [vmem:[#allocation2 + $0x139] sm:$0x7f] %vm117_vm3, %v12755_v21  ;;  %v12762_v29 = vmul.f32 %v4574_v0, %v12368_v32 }
 0x584   :  { %v4580_v55 = vpop.permute.xlu0 %4579  ;;  %4977 = vrot.lane.b32.xlu1 %v12734_v49, %s8777_s19 }
 0x585   :  { %4827 = vst.msk [vmem:[#allocation2 + $0x131] sm:$0xff] %vm17_vm0, %v12762_v29  ;;  %v12769_v54 = vmul.f32 %v12373_v28, %v4580_v55 }
 0x586   :  { %v4578_v39 = vpop.permute.xlu1 %4577  ;;  %4983 = vrot.lane.b32.xlu0 %v12741_v50, %s8777_s19 }
 0x587   :  { %4830 = vst.msk [vmem:[#allocation2 + $0x149] sm:$0x7f] %vm117_vm3, %v12769_v54  ;;  %v12776_v32 = vmul.f32 %v4578_v39, %v12378_v27  ;;  %v15072_v39 = vld [vmem:[#allocation5_spill] sm:$0xff] }
 0x588   :  { %v4584_v11 = vpop.permute.xlu0 %4583  ;;  %4981 = vrot.lane.b32.xlu1 %v12748_v18, %s8777_s19 }
 0x589   :  { %4829 = vst.msk [vmem:[#allocation2 + $0x141] sm:$0xff] %vm17_vm0, %v12776_v32  ;;  %v12783_v28 = vmul.f32 %v12383_v36, %v4584_v11 }
 0x58a   :  { %v4582_v46 = vpop.permute.xlu1 %4581  ;;  %4987 = vrot.lane.b32.xlu0 %v12755_v21, %s8777_s19 }
 0x58b   :  { %4832 = vst.msk [vmem:[#allocation2 + $0x159] sm:$0x7f] %vm117_vm3, %v12783_v28  ;;  %v12790_v27 = vmul.f32 %v4582_v46, %v12388_v31  ;;  %v15073_v46 = vld [vmem:[#allocation6_spill] sm:$0xff] }
 0x58c   :  { %v4588_v30 = vpop.permute.xlu0 %4587  ;;  %4985 = vrot.lane.b32.xlu1 %v12762_v29, %s8777_s19 }
 0x58d   :  { %4831 = vst.msk [vmem:[#allocation2 + $0x151] sm:$0xff] %vm17_vm0, %v12790_v27  ;;  %v12797_v36 = vmul.f32 %v12393_v12, %v4588_v30 }
 0x58e   :  { %v4586_v2 = vpop.permute.xlu1 %4585  ;;  %4991 = vrot.lane.b32.xlu0 %v12769_v54, %s8777_s19 }
 0x58f   :  { %4834 = vst.msk [vmem:[#allocation2 + $0x169] sm:$0x7f] %vm117_vm3, %v12797_v36  ;;  %v12804_v31 = vmul.f32 %v4586_v2, %v12398_v33  ;;  %v15074_v2 = vld [vmem:[#allocation7_spill] sm:$0xff] }
 0x590   :  { %v4592_v6 = vpop.permute.xlu0 %4591  ;;  %4989 = vrot.lane.b32.xlu1 %v12776_v32, %s8777_s19 }
 0x591   :  { %4833 = vst.msk [vmem:[#allocation2 + $0x161] sm:$0xff] %vm17_vm0, %v12804_v31  ;;  %v12811_v12 = vmul.f32 %v12403_v22, %v4592_v6 }
 0x592   :  { %v4590_v57 = vpop.permute.xlu1 %4589  ;;  %4995 = vrot.lane.b32.xlu0 %v12783_v28, %s8777_s19 }
 0x593   :  { %4836 = vst.msk [vmem:[#allocation2 + $0x179] sm:$0x7f] %vm117_vm3, %v12811_v12  ;;  %v12818_v33 = vmul.f32 %v4590_v57, %v12408_v15 }
 0x594   :  { %v4596_v53 = vpop.permute.xlu0 %4595  ;;  %4993 = vrot.lane.b32.xlu1 %v12790_v27, %s8777_s19 }
 0x595   :  { %4835 = vst.msk [vmem:[#allocation2 + $0x171] sm:$0xff] %vm17_vm0, %v12818_v33  ;;  %v12825_v22 = vmul.f32 %v12413_v52, %v4596_v53  ;;  %v15076_v53 = vld [vmem:[#allocation8_spill] sm:$0xff] }
 0x596   :  { %v4594_v25 = vpop.permute.xlu1 %4593  ;;  %4999 = vrot.lane.b32.xlu0 %v12797_v36, %s8777_s19 }
 0x597   :  { %4838 = vst.msk [vmem:[#allocation2 + $0x189] sm:$0x7f] %vm117_vm3, %v12825_v22  ;;  %v12832_v15 = vmul.f32 %v4594_v25, %v12418_v26 }
 0x598   :  { %v4600_v0 = vpop.permute.xlu0 %4599  ;;  %4997 = vrot.lane.b32.xlu1 %v12804_v31, %s8777_s19 }
 0x599   :  { %4837 = vst.msk [vmem:[#allocation2 + $0x181] sm:$0xff] %vm17_vm0, %v12832_v15  ;;  %v12839_v52 = vmul.f32 %v12423_v44, %v4600_v0 }
 0x59a   :  { %v4598_v55 = vpop.permute.xlu1 %4597  ;;  %5003 = vrot.lane.b32.xlu0 %v12811_v12, %s8777_s19 }
 0x59b   :  { %4840 = vst.msk [vmem:[#allocation2 + $0x199] sm:$0x7f] %vm117_vm3, %v12839_v52  ;;  %v12846_v26 = vmul.f32 %v4598_v55, %v15072_v39  ;;  %v15077_v55 = vld [vmem:[#allocation9_spill] sm:$0xff] }
 0x59c   :  { %v4604_v11 = vpop.permute.xlu0 %4603  ;;  %5001 = vrot.lane.b32.xlu1 %v12818_v33, %s8777_s19 }
 0x59d   :  { %4839 = vst.msk [vmem:[#allocation2 + $0x191] sm:$0xff] %vm17_vm0, %v12846_v26  ;;  %v12853_v44 = vmul.f32 %v15073_v46, %v4604_v11  ;;  %v15078_v46 = vld [vmem:[#allocation10_spill] sm:$0xff] }
 0x59e   :  { %v4602_v30 = vpop.permute.xlu1 %4601  ;;  %5007 = vrot.lane.b32.xlu0 %v12825_v22, %s8777_s19 }
 0x59f   :  { %4842 = vst.msk [vmem:[#allocation2 + $0x1a9] sm:$0x7f] %vm117_vm3, %v12853_v44  ;;  %v12860_v6 = vmul.f32 %v4602_v30, %v15074_v2 }
 0x5a0   :  { %v4608_v57 = vpop.permute.xlu0 %4607  ;;  %5005 = vrot.lane.b32.xlu1 %v12832_v15, %s8777_s19 }
 0x5a1   :  { %15075 = vst [vmem:[#allocation5_spill] sm:$0xff] %v12860_v6  ;;  %4841 = vst.msk [vmem:[#allocation2 + $0x1a1] sm:$0xff] %vm17_vm0, %v12860_v6  ;;  %v12867_v25 = vmul.f32 %v15076_v53, %v4608_v57  ;;  %v15080_v57 = vld [vmem:[#allocation11_spill] sm:$0xff] }
 0x5a2   :  { %v4606_v0 = vpop.permute.xlu1 %4605  ;;  %5011 = vrot.lane.b32.xlu0 %v12839_v52, %s8777_s19 }
 0x5a3   :  { %4844 = vst.msk [vmem:[#allocation2 + $0x1b9] sm:$0x7f] %vm117_vm3, %v12867_v25  ;;  %v12874_v39 = vmul.f32 %v4606_v0, %v15077_v55  ;;  %v15082_v55 = vld [vmem:[#allocation12_spill] sm:$0xff] }
 0x5a4   :  { %v4612_v11 = vpop.permute.xlu0 %4611  ;;  %5009 = vrot.lane.b32.xlu1 %v12846_v26, %s8777_s19 }
 0x5a5   :  { %4843 = vst.msk [vmem:[#allocation2 + $0x1b1] sm:$0xff] %vm17_vm0, %v12874_v39  ;;  %v12881_v30 = vmul.f32 %v15078_v46, %v4612_v11 }
 0x5a6   :  { %v4610_v2 = vpop.permute.xlu1 %4609  ;;  %5015 = vrot.lane.b32.xlu0 %v12853_v44, %s8777_s19 }
 0x5a7   :  { %15079 = vst [vmem:[#allocation6_spill] sm:$0xff] %v12881_v30  ;;  %4846 = vst.msk [vmem:[#allocation2 + $0x1c9] sm:$0x7f] %vm117_vm3, %v12881_v30  ;;  %v12888_v53 = vmul.f32 %v4610_v2, %v15080_v57 }
 0x5a8   :  { %v4616_v0 = vpop.permute.xlu0 %4615  ;;  %5013 = vrot.lane.b32.xlu1 %v12860_v6, %s8777_s19 }
 0x5a9   :  { %15081 = vst [vmem:[#allocation7_spill] sm:$0xff] %v12888_v53  ;;  %4845 = vst.msk [vmem:[#allocation2 + $0x1c1] sm:$0xff] %vm17_vm0, %v12888_v53  ;;  %v12895_v11 = vmul.f32 %v15082_v55, %v4616_v0 }
 0x5aa   :  { %v4614_v46 = vpop.permute.xlu1 %4613  ;;  %5019 = vrot.lane.b32.xlu0 %v12867_v25, %s8777_s19 }
 0x5ab   :  { %15083 = vst [vmem:[#allocation8_spill] sm:$0xff] %v12895_v11  ;;  %4848 = vst.msk [vmem:[#allocation2 + $0x1d9] sm:$0x7f] %vm117_vm3, %v12895_v11  ;;  %v12902_v2 = vmul.f32 %v4614_v46, %v15084_v47 }
 0x5ac   :  { %v4620_v57 = vpop.permute.xlu0 %4619  ;;  %5017 = vrot.lane.b32.xlu1 %v12874_v39, %s8777_s19 }
 0x5ad   :  { %15085 = vst [vmem:[#allocation9_spill] sm:$0xff] %v12902_v2  ;;  %4847 = vst.msk [vmem:[#allocation2 + $0x1d1] sm:$0xff] %vm17_vm0, %v12902_v2  ;;  %v12909_v0 = vmul.f32 %v15086_v59, %v4620_v57 }
 0x5ae   :  { %v4618_v55 = vpop.permute.xlu1 %4617  ;;  %5023 = vrot.lane.b32.xlu0 %v12881_v30, %s8777_s19  ;;  %v15091_v30 = vld [vmem:[#allocation17_spill] sm:$0xff] }
 0x5af   :  { %15087 = vst [vmem:[#allocation10_spill] sm:$0xff] %v12909_v0  ;;  %4850 = vst.msk [vmem:[#allocation2 + $0x1e9] sm:$0x7f] %vm117_vm3, %v12909_v0  ;;  %v12916_v47 = vmul.f32 %v4618_v55, %v15088_v61 }
 0x5b0   :  { %v4624_v46 = vpop.permute.xlu0 %4623  ;;  %5021 = vrot.lane.b32.xlu1 %v12888_v53, %s8777_s19 }
 0x5b1   :  { %15089 = vst [vmem:[#allocation11_spill] sm:$0xff] %v12916_v47  ;;  %4849 = vst.msk [vmem:[#allocation2 + $0x1e1] sm:$0xff] %vm17_vm0, %v12916_v47  ;;  %v12923_v59 = vmul.f32 %v15090_v40, %v4624_v46 }
 0x5b2   :  { %v4622_v57 = vpop.permute.xlu1 %4621  ;;  %5027 = vrot.lane.b32.xlu0 %v12895_v11, %s8777_s19 }
 0x5b3   :  { %4852 = vst.msk [vmem:[#allocation2 + $0x1f9] sm:$0x7f] %vm117_vm3, %v12923_v59  ;;  %v12930_v61 = vmul.f32 %v4622_v57, %v15091_v30  ;;  %v15094_v30 = vmov 0.0  }
 0x5b4   :  { %v12932_v55 = vpop.permute.xlu0 %4627  ;;  %5025 = vrot.lane.b32.xlu1 %v12902_v2, %s8777_s19 }
 0x5b5   :  { %15092 = vst [vmem:[#allocation12_spill] sm:$0xff] %v12932_v55  ;;  %4851 = vst.msk [vmem:[#allocation2 + $0x1f1] sm:$0xff] %vm17_vm0, %v12930_v61 }
 0x5b6   :  { %5031 = vrot.lane.b32.xlu0 %v12909_v0, %s8777_s19  ;;  %v12940_v40 = vpop.permute.xlu1 %4625 }
 0x5b7   :  { %15093 = vst [vmem:[#allocation13_spill] sm:$0xff] %v12940_v40 }
 0x5b8   :  { %v4920_v46 = vpop.permute.xlu0 %4919  ;;  %5029 = vrot.lane.b32.xlu1 %v12916_v47, %s8777_s19 }
 0x5b9   :  { %5098 = vst.msk [vmem:[#allocation2 + $0x18] sm:$0xff] %vm177_vm2, %v4920_v46 }
 0x5ba   :  { %5162 = vst.msk [vmem:[#allocation2 + $0x1f] sm:$0x1] %vm547_vm4, %v15094_v30  ;;  %5035 = vrot.lane.b32.xlu0 %v12923_v59, %s8777_s19  ;;  %v4918_v57 = vpop.permute.xlu1 %4917 }
 0x5bb   :  { %5097 = vst.msk [vmem:[#allocation2 + $0x10] sm:$0xff] %vm177_vm2, %v4918_v57 }
 0x5bc   :  { %v4924_v55 = vpop.permute.xlu0 %4923  ;;  %5033 = vrot.lane.b32.xlu1 %v12930_v61, %s8777_s19 }
 0x5bd   :  { %5100 = vst.msk [vmem:[#allocation2 + $0x28] sm:$0xff] %vm177_vm2, %v4924_v55 }
 0x5be   :  { %5163 = vst.msk [vmem:[#allocation2 + $0x2f] sm:$0x1] %vm547_vm4, %v15094_v30  ;;  %5195 = vrot.lane.b32.xlu0 %v12515_v34, %s8778_s25  ;;  %v4922_v46 = vpop.permute.xlu1 %4921 }
 0x5bf   :  { %5099 = vst.msk [vmem:[#allocation2 + $0x20] sm:$0xff] %vm177_vm2, %v4922_v46 }
 0x5c0   :  { %v4928_v40 = vpop.permute.xlu0 %4927  ;;  %5193 = vrot.lane.b32.xlu1 %v12518_v9, %s8778_s25 }
 0x5c1   :  { %5102 = vst.msk [vmem:[#allocation2 + $0x38] sm:$0xff] %vm177_vm2, %v4928_v40 }
 0x5c2   :  { %5164 = vst.msk [vmem:[#allocation2 + $0x3f] sm:$0x1] %vm547_vm4, %v15094_v30  ;;  %5199 = vrot.lane.b32.xlu0 %v12527_v43, %s8778_s25  ;;  %v4926_v55 = vpop.permute.xlu1 %4925 }
 0x5c3   :  { %5101 = vst.msk [vmem:[#allocation2 + $0x30] sm:$0xff] %vm177_vm2, %v4926_v55 }
 0x5c4   :  { %v4932_v57 = vpop.permute.xlu0 %4931  ;;  %5197 = vrot.lane.b32.xlu1 %v12530_v60, %s8778_s25 }
 0x5c5   :  { %5104 = vst.msk [vmem:[#allocation2 + $0x48] sm:$0xff] %vm177_vm2, %v4932_v57 }
 0x5c6   :  { %5165 = vst.msk [vmem:[#allocation2 + $0x4f] sm:$0x1] %vm547_vm4, %v15094_v30  ;;  %5203 = vrot.lane.b32.xlu0 %v12539_v45, %s8778_s25  ;;  %v4930_v40 = vpop.permute.xlu1 %4929 }
 0x5c7   :  { %5103 = vst.msk [vmem:[#allocation2 + $0x40] sm:$0xff] %vm177_vm2, %v4930_v40 }
 0x5c8   :  { %v4936_v46 = vpop.permute.xlu0 %4935  ;;  %5201 = vrot.lane.b32.xlu1 %v12542_v63, %s8778_s25 }
 0x5c9   :  { %5106 = vst.msk [vmem:[#allocation2 + $0x58] sm:$0xff] %vm177_vm2, %v4936_v46 }
 0x5ca   :  { %5166 = vst.msk [vmem:[#allocation2 + $0x5f] sm:$0x1] %vm547_vm4, %v15094_v30  ;;  %5207 = vrot.lane.b32.xlu0 %v12551_v42, %s8778_s25  ;;  %v4934_v55 = vpop.permute.xlu1 %4933 }
 0x5cb   :  { %5105 = vst.msk [vmem:[#allocation2 + $0x50] sm:$0xff] %vm177_vm2, %v4934_v55 }
 0x5cc   :  { %v4940_v57 = vpop.permute.xlu0 %4939  ;;  %5205 = vrot.lane.b32.xlu1 %v12554_v38, %s8778_s25 }
 0x5cd   :  { %5108 = vst.msk [vmem:[#allocation2 + $0x68] sm:$0xff] %vm177_vm2, %v4940_v57 }
 0x5ce   :  { %5167 = vst.msk [vmem:[#allocation2 + $0x6f] sm:$0x1] %vm547_vm4, %v15094_v30  ;;  %5211 = vrot.lane.b32.xlu0 %v12565_v62, %s8778_s25  ;;  %v4938_v40 = vpop.permute.xlu1 %4937 }
 0x5cf   :  { %5107 = vst.msk [vmem:[#allocation2 + $0x60] sm:$0xff] %vm177_vm2, %v4938_v40 }
 0x5d0   :  { %v4944_v46 = vpop.permute.xlu0 %4943  ;;  %5209 = vrot.lane.b32.xlu1 %v12572_v3, %s8778_s25 }
 0x5d1   :  { %5110 = vst.msk [vmem:[#allocation2 + $0x78] sm:$0xff] %vm177_vm2, %v4944_v46 }
 0x5d2   :  { %5168 = vst.msk [vmem:[#allocation2 + $0x7f] sm:$0x1] %vm547_vm4, %v15094_v30  ;;  %5215 = vrot.lane.b32.xlu0 %v12579_v7, %s8778_s25  ;;  %v4942_v55 = vpop.permute.xlu1 %4941 }
 0x5d3   :  { %5109 = vst.msk [vmem:[#allocation2 + $0x70] sm:$0xff] %vm177_vm2, %v4942_v55 }
 0x5d4   :  { %v4948_v57 = vpop.permute.xlu0 %4947  ;;  %5213 = vrot.lane.b32.xlu1 %v12586_v10, %s8778_s25 }
 0x5d5   :  { %5112 = vst.msk [vmem:[#allocation2 + $0x88] sm:$0xff] %vm177_vm2, %v4948_v57 }
 0x5d6   :  { %5169 = vst.msk [vmem:[#allocation2 + $0x8f] sm:$0x1] %vm547_vm4, %v15094_v30  ;;  %5219 = vrot.lane.b32.xlu0 %v12593_v14, %s8778_s25  ;;  %v4946_v40 = vpop.permute.xlu1 %4945 }
 0x5d7   :  { %5111 = vst.msk [vmem:[#allocation2 + $0x80] sm:$0xff] %vm177_vm2, %v4946_v40 }
 0x5d8   :  { %v4952_v46 = vpop.permute.xlu0 %4951  ;;  %5217 = vrot.lane.b32.xlu1 %v12600_v24, %s8778_s25 }
 0x5d9   :  { %5114 = vst.msk [vmem:[#allocation2 + $0x98] sm:$0xff] %vm177_vm2, %v4952_v46 }
 0x5da   :  { %5170 = vst.msk [vmem:[#allocation2 + $0x9f] sm:$0x1] %vm547_vm4, %v15094_v30  ;;  %5223 = vrot.lane.b32.xlu0 %v12607_v19, %s8778_s25  ;;  %v4950_v55 = vpop.permute.xlu1 %4949 }
 0x5db   :  { %5113 = vst.msk [vmem:[#allocation2 + $0x90] sm:$0xff] %vm177_vm2, %v4950_v55 }
 0x5dc   :  { %v4956_v57 = vpop.permute.xlu0 %4955  ;;  %5221 = vrot.lane.b32.xlu1 %v12614_v23, %s8778_s25 }
 0x5dd   :  { %5116 = vst.msk [vmem:[#allocation2 + $0xa8] sm:$0xff] %vm177_vm2, %v4956_v57 }
 0x5de   :  { %5171 = vst.msk [vmem:[#allocation2 + $0xaf] sm:$0x1] %vm547_vm4, %v15094_v30  ;;  %5227 = vrot.lane.b32.xlu0 %v12621_v48, %s8778_s25  ;;  %v4954_v40 = vpop.permute.xlu1 %4953 }
 0x5df   :  { %5115 = vst.msk [vmem:[#allocation2 + $0xa0] sm:$0xff] %vm177_vm2, %v4954_v40 }
 0x5e0   :  { %v4960_v46 = vpop.permute.xlu0 %4959  ;;  %5225 = vrot.lane.b32.xlu1 %v12628_v8, %s8778_s25 }
 0x5e1   :  { %5118 = vst.msk [vmem:[#allocation2 + $0xb8] sm:$0xff] %vm177_vm2, %v4960_v46 }
 0x5e2   :  { %5172 = vst.msk [vmem:[#allocation2 + $0xbf] sm:$0x1] %vm547_vm4, %v15094_v30  ;;  %5231 = vrot.lane.b32.xlu0 %v12635_v35, %s8778_s25  ;;  %v4958_v55 = vpop.permute.xlu1 %4957 }
 0x5e3   :  { %5117 = vst.msk [vmem:[#allocation2 + $0xb0] sm:$0xff] %vm177_vm2, %v4958_v55 }
 0x5e4   :  { %v4964_v57 = vpop.permute.xlu0 %4963  ;;  %5229 = vrot.lane.b32.xlu1 %v12642_v56, %s8778_s25 }
 0x5e5   :  { %5120 = vst.msk [vmem:[#allocation2 + $0xc8] sm:$0xff] %vm177_vm2, %v4964_v57 }
 0x5e6   :  { %5173 = vst.msk [vmem:[#allocation2 + $0xcf] sm:$0x1] %vm547_vm4, %v15094_v30  ;;  %5235 = vrot.lane.b32.xlu0 %v12649_v1, %s8778_s25  ;;  %v4962_v40 = vpop.permute.xlu1 %4961 }
 0x5e7   :  { %5119 = vst.msk [vmem:[#allocation2 + $0xc0] sm:$0xff] %vm177_vm2, %v4962_v40 }
 0x5e8   :  { %v4968_v46 = vpop.permute.xlu0 %4967  ;;  %5233 = vrot.lane.b32.xlu1 %v12656_v37, %s8778_s25 }
 0x5e9   :  { %5122 = vst.msk [vmem:[#allocation2 + $0xd8] sm:$0xff] %vm177_vm2, %v4968_v46 }
 0x5ea   :  { %5174 = vst.msk [vmem:[#allocation2 + $0xdf] sm:$0x1] %vm547_vm4, %v15094_v30  ;;  %5239 = vrot.lane.b32.xlu0 %v12663_v17, %s8778_s25  ;;  %v4966_v55 = vpop.permute.xlu1 %4965 }
 0x5eb   :  { %5121 = vst.msk [vmem:[#allocation2 + $0xd0] sm:$0xff] %vm177_vm2, %v4966_v55 }
 0x5ec   :  { %v4972_v57 = vpop.permute.xlu0 %4971  ;;  %5237 = vrot.lane.b32.xlu1 %v12670_v58, %s8778_s25 }
 0x5ed   :  { %5124 = vst.msk [vmem:[#allocation2 + $0xe8] sm:$0xff] %vm177_vm2, %v4972_v57 }
 0x5ee   :  { %5175 = vst.msk [vmem:[#allocation2 + $0xef] sm:$0x1] %vm547_vm4, %v15094_v30  ;;  %5243 = vrot.lane.b32.xlu0 %v12677_v20, %s8778_s25  ;;  %v4970_v40 = vpop.permute.xlu1 %4969 }
 0x5ef   :  { %5123 = vst.msk [vmem:[#allocation2 + $0xe0] sm:$0xff] %vm177_vm2, %v4970_v40 }
 0x5f0   :  { %v4976_v46 = vpop.permute.xlu0 %4975  ;;  %5241 = vrot.lane.b32.xlu1 %v12684_v16, %s8778_s25 }
 0x5f1   :  { %5126 = vst.msk [vmem:[#allocation2 + $0xf8] sm:$0xff] %vm177_vm2, %v4976_v46 }
 0x5f2   :  { %5176 = vst.msk [vmem:[#allocation2 + $0xff] sm:$0x1] %vm547_vm4, %v15094_v30  ;;  %5247 = vrot.lane.b32.xlu0 %v12691_v51, %s8778_s25  ;;  %v4974_v55 = vpop.permute.xlu1 %4973 }
 0x5f3   :  { %5125 = vst.msk [vmem:[#allocation2 + $0xf0] sm:$0xff] %vm177_vm2, %v4974_v55 }
 0x5f4   :  { %v4980_v57 = vpop.permute.xlu0 %4979  ;;  %5245 = vrot.lane.b32.xlu1 %v12698_v13, %s8778_s25 }
 0x5f5   :  { %5128 = vst.msk [vmem:[#allocation2 + $0x118] sm:$0xff] %vm177_vm2, %v4980_v57 }
 0x5f6   :  { %5178 = vst.msk [vmem:[#allocation2 + $0x11f] sm:$0x1] %vm547_vm4, %v15094_v30  ;;  %5251 = vrot.lane.b32.xlu0 %v12705_v41, %s8778_s25  ;;  %v4978_v40 = vpop.permute.xlu1 %4977 }
 0x5f7   :  { %5127 = vst.msk [vmem:[#allocation2 + $0x110] sm:$0xff] %vm177_vm2, %v4978_v40 }
 0x5f8   :  { %v4984_v46 = vpop.permute.xlu0 %4983  ;;  %5249 = vrot.lane.b32.xlu1 %v12712_v5, %s8778_s25 }
 0x5f9   :  { %5130 = vst.msk [vmem:[#allocation2 + $0x128] sm:$0xff] %vm177_vm2, %v4984_v46 }
 0x5fa   :  { %5179 = vst.msk [vmem:[#allocation2 + $0x12f] sm:$0x1] %vm547_vm4, %v15094_v30  ;;  %5255 = vrot.lane.b32.xlu0 %v12727_v4, %s8778_s25  ;;  %v4982_v55 = vpop.permute.xlu1 %4981 }
 0x5fb   :  { %5129 = vst.msk [vmem:[#allocation2 + $0x120] sm:$0xff] %vm177_vm2, %v4982_v55 }
 0x5fc   :  { %v4988_v57 = vpop.permute.xlu0 %4987  ;;  %5253 = vrot.lane.b32.xlu1 %v12734_v49, %s8778_s25 }
 0x5fd   :  { %5132 = vst.msk [vmem:[#allocation2 + $0x138] sm:$0xff] %vm177_vm2, %v4988_v57 }
 0x5fe   :  { %5180 = vst.msk [vmem:[#allocation2 + $0x13f] sm:$0x1] %vm547_vm4, %v15094_v30  ;;  %5259 = vrot.lane.b32.xlu0 %v12741_v50, %s8778_s25  ;;  %v4986_v40 = vpop.permute.xlu1 %4985 }
 0x5ff   :  { %5131 = vst.msk [vmem:[#allocation2 + $0x130] sm:$0xff] %vm177_vm2, %v4986_v40 }
 0x600   :  { %v4992_v46 = vpop.permute.xlu0 %4991  ;;  %5257 = vrot.lane.b32.xlu1 %v12748_v18, %s8778_s25 }
 0x601   :  { %5134 = vst.msk [vmem:[#allocation2 + $0x148] sm:$0xff] %vm177_vm2, %v4992_v46 }
 0x602   :  { %5181 = vst.msk [vmem:[#allocation2 + $0x14f] sm:$0x1] %vm547_vm4, %v15094_v30  ;;  %5263 = vrot.lane.b32.xlu0 %v12755_v21, %s8778_s25  ;;  %v4990_v55 = vpop.permute.xlu1 %4989 }
 0x603   :  { %5133 = vst.msk [vmem:[#allocation2 + $0x140] sm:$0xff] %vm177_vm2, %v4990_v55 }
 0x604   :  { %v4996_v57 = vpop.permute.xlu0 %4995  ;;  %5261 = vrot.lane.b32.xlu1 %v12762_v29, %s8778_s25 }
 0x605   :  { %5136 = vst.msk [vmem:[#allocation2 + $0x158] sm:$0xff] %vm177_vm2, %v4996_v57 }
 0x606   :  { %5182 = vst.msk [vmem:[#allocation2 + $0x15f] sm:$0x1] %vm547_vm4, %v15094_v30  ;;  %5267 = vrot.lane.b32.xlu0 %v12769_v54, %s8778_s25  ;;  %v4994_v40 = vpop.permute.xlu1 %4993 }
 0x607   :  { %5135 = vst.msk [vmem:[#allocation2 + $0x150] sm:$0xff] %vm177_vm2, %v4994_v40 }
 0x608   :  { %v5000_v46 = vpop.permute.xlu0 %4999  ;;  %5265 = vrot.lane.b32.xlu1 %v12776_v32, %s8778_s25 }
 0x609   :  { %5138 = vst.msk [vmem:[#allocation2 + $0x168] sm:$0xff] %vm177_vm2, %v5000_v46 }
 0x60a   :  { %5183 = vst.msk [vmem:[#allocation2 + $0x16f] sm:$0x1] %vm547_vm4, %v15094_v30  ;;  %5271 = vrot.lane.b32.xlu0 %v12783_v28, %s8778_s25  ;;  %v4998_v55 = vpop.permute.xlu1 %4997 }
 0x60b   :  { %5137 = vst.msk [vmem:[#allocation2 + $0x160] sm:$0xff] %vm177_vm2, %v4998_v55 }
 0x60c   :  { %v5004_v57 = vpop.permute.xlu0 %5003  ;;  %5269 = vrot.lane.b32.xlu1 %v12790_v27, %s8778_s25 }
 0x60d   :  { %5140 = vst.msk [vmem:[#allocation2 + $0x178] sm:$0xff] %vm177_vm2, %v5004_v57 }
 0x60e   :  { %5184 = vst.msk [vmem:[#allocation2 + $0x17f] sm:$0x1] %vm547_vm4, %v15094_v30  ;;  %5275 = vrot.lane.b32.xlu0 %v12797_v36, %s8778_s25  ;;  %v5002_v40 = vpop.permute.xlu1 %5001 }
 0x60f   :  { %5139 = vst.msk [vmem:[#allocation2 + $0x170] sm:$0xff] %vm177_vm2, %v5002_v40 }
 0x610   :  { %v5008_v46 = vpop.permute.xlu0 %5007  ;;  %5273 = vrot.lane.b32.xlu1 %v12804_v31, %s8778_s25 }
 0x611   :  { %5142 = vst.msk [vmem:[#allocation2 + $0x188] sm:$0xff] %vm177_vm2, %v5008_v46 }
 0x612   :  { %5185 = vst.msk [vmem:[#allocation2 + $0x18f] sm:$0x1] %vm547_vm4, %v15094_v30  ;;  %5279 = vrot.lane.b32.xlu0 %v12811_v12, %s8778_s25  ;;  %v5006_v55 = vpop.permute.xlu1 %5005 }
 0x613   :  { %5141 = vst.msk [vmem:[#allocation2 + $0x180] sm:$0xff] %vm177_vm2, %v5006_v55 }
 0x614   :  { %v5012_v57 = vpop.permute.xlu0 %5011  ;;  %5277 = vrot.lane.b32.xlu1 %v12818_v33, %s8778_s25 }
 0x615   :  { %5144 = vst.msk [vmem:[#allocation2 + $0x198] sm:$0xff] %vm177_vm2, %v5012_v57 }
 0x616   :  { %5186 = vst.msk [vmem:[#allocation2 + $0x19f] sm:$0x1] %vm547_vm4, %v15094_v30  ;;  %5283 = vrot.lane.b32.xlu0 %v12825_v22, %s8778_s25  ;;  %v5010_v40 = vpop.permute.xlu1 %5009 }
 0x617   :  { %5143 = vst.msk [vmem:[#allocation2 + $0x190] sm:$0xff] %vm177_vm2, %v5010_v40 }
 0x618   :  { %v5016_v46 = vpop.permute.xlu0 %5015  ;;  %5281 = vrot.lane.b32.xlu1 %v12832_v15, %s8778_s25 }
 0x619   :  { %5146 = vst.msk [vmem:[#allocation2 + $0x1a8] sm:$0xff] %vm177_vm2, %v5016_v46 }
 0x61a   :  { %5187 = vst.msk [vmem:[#allocation2 + $0x1af] sm:$0x1] %vm547_vm4, %v15094_v30  ;;  %5287 = vrot.lane.b32.xlu0 %v12839_v52, %s8778_s25  ;;  %v5014_v55 = vpop.permute.xlu1 %5013 }
 0x61b   :  { %5145 = vst.msk [vmem:[#allocation2 + $0x1a0] sm:$0xff] %vm177_vm2, %v5014_v55 }
 0x61c   :  { %v5020_v57 = vpop.permute.xlu0 %5019  ;;  %5285 = vrot.lane.b32.xlu1 %v12846_v26, %s8778_s25 }
 0x61d   :  { %5148 = vst.msk [vmem:[#allocation2 + $0x1b8] sm:$0xff] %vm177_vm2, %v5020_v57 }
 0x61e   :  { %5188 = vst.msk [vmem:[#allocation2 + $0x1bf] sm:$0x1] %vm547_vm4, %v15094_v30  ;;  %5291 = vrot.lane.b32.xlu0 %v12853_v44, %s8778_s25  ;;  %v5018_v40 = vpop.permute.xlu1 %5017 }
 0x61f   :  { %5147 = vst.msk [vmem:[#allocation2 + $0x1b0] sm:$0xff] %vm177_vm2, %v5018_v40  ;;  %v15095_v40 = vld [vmem:[#allocation6_spill] sm:$0xff] }
 0x620   :  { %v5024_v46 = vpop.permute.xlu0 %5023  ;;  %5289 = vrot.lane.b32.xlu1 %v12860_v6, %s8778_s25 }
 0x621   :  { %5150 = vst.msk [vmem:[#allocation2 + $0x1c8] sm:$0xff] %vm177_vm2, %v5024_v46 }
 0x622   :  { %5189 = vst.msk [vmem:[#allocation2 + $0x1cf] sm:$0x1] %vm547_vm4, %v15094_v30  ;;  %5295 = vrot.lane.b32.xlu0 %v12867_v25, %s8778_s25  ;;  %v5022_v55 = vpop.permute.xlu1 %5021 }
 0x623   :  { %5149 = vst.msk [vmem:[#allocation2 + $0x1c0] sm:$0xff] %vm177_vm2, %v5022_v55 }
 0x624   :  { %v5028_v57 = vpop.permute.xlu0 %5027  ;;  %5293 = vrot.lane.b32.xlu1 %v12874_v39, %s8778_s25 }
 0x625   :  { %5152 = vst.msk [vmem:[#allocation2 + $0x1d8] sm:$0xff] %vm177_vm2, %v5028_v57 }
 0x626   :  { %5190 = vst.msk [vmem:[#allocation2 + $0x1df] sm:$0x1] %vm547_vm4, %v15094_v30  ;;  %5299 = vrot.lane.b32.xlu0 %v15095_v40, %s8778_s25  ;;  %v5026_v46 = vpop.permute.xlu1 %5025 }
 0x627   :  { %5151 = vst.msk [vmem:[#allocation2 + $0x1d0] sm:$0xff] %vm177_vm2, %v5026_v46 }
 0x628   :  { %v5032_v6 = vpop.permute.xlu0 %5031  ;;  %5297 = vrot.lane.b32.xlu1 %v12888_v53, %s8778_s25 }
 0x629   :  { %5154 = vst.msk [vmem:[#allocation2 + $0x1e8] sm:$0xff] %vm177_vm2, %v5032_v6 }
 0x62a   :  { %5191 = vst.msk [vmem:[#allocation2 + $0x1ef] sm:$0x1] %vm547_vm4, %v15094_v30  ;;  %5303 = vrot.lane.b32.xlu0 %v12895_v11, %s8778_s25  ;;  %v5030_v55 = vpop.permute.xlu1 %5029 }
 0x62b   :  { %5153 = vst.msk [vmem:[#allocation2 + $0x1e0] sm:$0xff] %vm177_vm2, %v5030_v55 }
 0x62c   :  { %v5036_v57 = vpop.permute.xlu0 %5035  ;;  %5301 = vrot.lane.b32.xlu1 %v12902_v2, %s8778_s25 }
 0x62d   :  { %5156 = vst.msk [vmem:[#allocation2 + $0x1f8] sm:$0xff] %vm177_vm2, %v5036_v57 }
 0x62e   :  { %5192 = vst.msk [vmem:[#allocation2 + $0x1ff] sm:$0x1] %vm547_vm4, %v15094_v30  ;;  %5307 = vrot.lane.b32.xlu0 %v12909_v0, %s8778_s25  ;;  %v5034_v6 = vpop.permute.xlu1 %5033 }
 0x62f   :  { %5155 = vst.msk [vmem:[#allocation2 + $0x1f0] sm:$0xff] %vm177_vm2, %v5034_v6  ;;  %vm15101_vm2 = vcmask 130144  }
 0x630   :  { %v5196_v46 = vpop.permute.xlu0 %5195  ;;  %5305 = vrot.lane.b32.xlu1 %v12916_v47, %s8778_s25  ;;  %vm15102_vm3 = vmmov %vm15101_vm2 }
 0x631   :  { %5375 = vst.msk [vmem:[#allocation2 + $0x17] sm:$0xff] %vm542_vm5, %v5196_v46  ;;  %vm15107_vm4 = vmmov %vm15101_vm2 }
 0x632   :  { %5311 = vrot.lane.b32.xlu0 %v12923_v59, %s8778_s25  ;;  %v5194_v55 = vpop.permute.xlu1 %5193  ;;  %vm15110_vm8 = vmmov %vm15101_vm2 }
 0x633   :  { %5374 = vst.msk [vmem:[#allocation2 + $0xf] sm:$0xfe] %vm5373_vm1, %v5194_v55 }
 0x634   :  { %5435 = vst.msk [vmem:[#allocation2 + $0x10] sm:$0x1] %vm941_vm6, %v15094_v30  ;;  %v5200_v57 = vpop.permute.xlu0 %5199  ;;  %5309 = vrot.lane.b32.xlu1 %v12930_v61, %s8778_s25 }
 0x635   :  { %5377 = vst.msk [vmem:[#allocation2 + $0x27] sm:$0xff] %vm542_vm5, %v5200_v57 }
 0x636   :  { %5472 = vrot.lane.b32.xlu0 %v12515_v34, %s8779_s26  ;;  %v5198_v6 = vpop.permute.xlu1 %5197 }
 0x637   :  { %5376 = vst.msk [vmem:[#allocation2 + $0x1f] sm:$0xfe] %vm5373_vm1, %v5198_v6 }
 0x638   :  { %5436 = vst.msk [vmem:[#allocation2 + $0x20] sm:$0x1] %vm941_vm6, %v15094_v30  ;;  %v5204_v46 = vpop.permute.xlu0 %5203  ;;  %5470 = vrot.lane.b32.xlu1 %v12518_v9, %s8779_s26 }
 0x639   :  { %5379 = vst.msk [vmem:[#allocation2 + $0x37] sm:$0xff] %vm542_vm5, %v5204_v46 }
 0x63a   :  { %5476 = vrot.lane.b32.xlu0 %v12527_v43, %s8779_s26  ;;  %v5202_v55 = vpop.permute.xlu1 %5201 }
 0x63b   :  { %5378 = vst.msk [vmem:[#allocation2 + $0x2f] sm:$0xfe] %vm5373_vm1, %v5202_v55 }
 0x63c   :  { %5437 = vst.msk [vmem:[#allocation2 + $0x30] sm:$0x1] %vm941_vm6, %v15094_v30  ;;  %v5208_v57 = vpop.permute.xlu0 %5207  ;;  %5474 = vrot.lane.b32.xlu1 %v12530_v60, %s8779_s26 }
 0x63d   :  { %5381 = vst.msk [vmem:[#allocation2 + $0x47] sm:$0xff] %vm542_vm5, %v5208_v57 }
 0x63e   :  { %5480 = vrot.lane.b32.xlu0 %v12539_v45, %s8779_s26  ;;  %v5206_v6 = vpop.permute.xlu1 %5205 }
 0x63f   :  { %5380 = vst.msk [vmem:[#allocation2 + $0x3f] sm:$0xfe] %vm5373_vm1, %v5206_v6 }
 0x640   :  { %5438 = vst.msk [vmem:[#allocation2 + $0x40] sm:$0x1] %vm941_vm6, %v15094_v30  ;;  %v5212_v46 = vpop.permute.xlu0 %5211  ;;  %5478 = vrot.lane.b32.xlu1 %v12542_v63, %s8779_s26 }
 0x641   :  { %5383 = vst.msk [vmem:[#allocation2 + $0x57] sm:$0xff] %vm542_vm5, %v5212_v46 }
 0x642   :  { %5484 = vrot.lane.b32.xlu0 %v12551_v42, %s8779_s26  ;;  %v5210_v55 = vpop.permute.xlu1 %5209 }
 0x643   :  { %5382 = vst.msk [vmem:[#allocation2 + $0x4f] sm:$0xfe] %vm5373_vm1, %v5210_v55 }
 0x644   :  { %5439 = vst.msk [vmem:[#allocation2 + $0x50] sm:$0x1] %vm941_vm6, %v15094_v30  ;;  %v5216_v57 = vpop.permute.xlu0 %5215  ;;  %5482 = vrot.lane.b32.xlu1 %v12554_v38, %s8779_s26 }
 0x645   :  { %5385 = vst.msk [vmem:[#allocation2 + $0x67] sm:$0xff] %vm542_vm5, %v5216_v57 }
 0x646   :  { %5488 = vrot.lane.b32.xlu0 %v12565_v62, %s8779_s26  ;;  %v5214_v6 = vpop.permute.xlu1 %5213 }
 0x647   :  { %5384 = vst.msk [vmem:[#allocation2 + $0x5f] sm:$0xfe] %vm5373_vm1, %v5214_v6 }
 0x648   :  { %5440 = vst.msk [vmem:[#allocation2 + $0x60] sm:$0x1] %vm941_vm6, %v15094_v30  ;;  %v5220_v46 = vpop.permute.xlu0 %5219  ;;  %5486 = vrot.lane.b32.xlu1 %v12572_v3, %s8779_s26 }
 0x649   :  { %5387 = vst.msk [vmem:[#allocation2 + $0x77] sm:$0xff] %vm542_vm5, %v5220_v46 }
 0x64a   :  { %5492 = vrot.lane.b32.xlu0 %v12579_v7, %s8779_s26  ;;  %v5218_v55 = vpop.permute.xlu1 %5217 }
 0x64b   :  { %5386 = vst.msk [vmem:[#allocation2 + $0x6f] sm:$0xfe] %vm5373_vm1, %v5218_v55 }
 0x64c   :  { %5441 = vst.msk [vmem:[#allocation2 + $0x70] sm:$0x1] %vm941_vm6, %v15094_v30  ;;  %v5224_v57 = vpop.permute.xlu0 %5223  ;;  %5490 = vrot.lane.b32.xlu1 %v12586_v10, %s8779_s26 }
 0x64d   :  { %5389 = vst.msk [vmem:[#allocation2 + $0x87] sm:$0xff] %vm542_vm5, %v5224_v57 }
 0x64e   :  { %5496 = vrot.lane.b32.xlu0 %v12593_v14, %s8779_s26  ;;  %v5222_v6 = vpop.permute.xlu1 %5221 }
 0x64f   :  { %5388 = vst.msk [vmem:[#allocation2 + $0x7f] sm:$0xfe] %vm5373_vm1, %v5222_v6 }
 0x650   :  { %5442 = vst.msk [vmem:[#allocation2 + $0x80] sm:$0x1] %vm941_vm6, %v15094_v30  ;;  %v5228_v46 = vpop.permute.xlu0 %5227  ;;  %5494 = vrot.lane.b32.xlu1 %v12600_v24, %s8779_s26 }
 0x651   :  { %5391 = vst.msk [vmem:[#allocation2 + $0x97] sm:$0xff] %vm542_vm5, %v5228_v46 }
 0x652   :  { %5500 = vrot.lane.b32.xlu0 %v12607_v19, %s8779_s26  ;;  %v5226_v55 = vpop.permute.xlu1 %5225 }
 0x653   :  { %5390 = vst.msk [vmem:[#allocation2 + $0x8f] sm:$0xfe] %vm5373_vm1, %v5226_v55 }
 0x654   :  { %5443 = vst.msk [vmem:[#allocation2 + $0x90] sm:$0x1] %vm941_vm6, %v15094_v30  ;;  %v5232_v57 = vpop.permute.xlu0 %5231  ;;  %5498 = vrot.lane.b32.xlu1 %v12614_v23, %s8779_s26 }
 0x655   :  { %5393 = vst.msk [vmem:[#allocation2 + $0xa7] sm:$0xff] %vm542_vm5, %v5232_v57 }
 0x656   :  { %5504 = vrot.lane.b32.xlu0 %v12621_v48, %s8779_s26  ;;  %v5230_v6 = vpop.permute.xlu1 %5229 }
 0x657   :  { %5392 = vst.msk [vmem:[#allocation2 + $0x9f] sm:$0xfe] %vm5373_vm1, %v5230_v6 }
 0x658   :  { %5444 = vst.msk [vmem:[#allocation2 + $0xa0] sm:$0x1] %vm941_vm6, %v15094_v30  ;;  %v5236_v46 = vpop.permute.xlu0 %5235  ;;  %5502 = vrot.lane.b32.xlu1 %v12628_v8, %s8779_s26 }
 0x659   :  { %5395 = vst.msk [vmem:[#allocation2 + $0xb7] sm:$0xff] %vm542_vm5, %v5236_v46 }
 0x65a   :  { %5508 = vrot.lane.b32.xlu0 %v12635_v35, %s8779_s26  ;;  %v5234_v55 = vpop.permute.xlu1 %5233 }
 0x65b   :  { %5394 = vst.msk [vmem:[#allocation2 + $0xaf] sm:$0xfe] %vm5373_vm1, %v5234_v55 }
 0x65c   :  { %5445 = vst.msk [vmem:[#allocation2 + $0xb0] sm:$0x1] %vm941_vm6, %v15094_v30  ;;  %v5240_v57 = vpop.permute.xlu0 %5239  ;;  %5506 = vrot.lane.b32.xlu1 %v12642_v56, %s8779_s26 }
 0x65d   :  { %5397 = vst.msk [vmem:[#allocation2 + $0xc7] sm:$0xff] %vm542_vm5, %v5240_v57 }
 0x65e   :  { %5512 = vrot.lane.b32.xlu0 %v12649_v1, %s8779_s26  ;;  %v5238_v6 = vpop.permute.xlu1 %5237 }
 0x65f   :  { %5396 = vst.msk [vmem:[#allocation2 + $0xbf] sm:$0xfe] %vm5373_vm1, %v5238_v6 }
 0x660   :  { %5446 = vst.msk [vmem:[#allocation2 + $0xc0] sm:$0x1] %vm941_vm6, %v15094_v30  ;;  %v5244_v46 = vpop.permute.xlu0 %5243  ;;  %5510 = vrot.lane.b32.xlu1 %v12656_v37, %s8779_s26 }
 0x661   :  { %5399 = vst.msk [vmem:[#allocation2 + $0xd7] sm:$0xff] %vm542_vm5, %v5244_v46 }
 0x662   :  { %5516 = vrot.lane.b32.xlu0 %v12663_v17, %s8779_s26  ;;  %v5242_v55 = vpop.permute.xlu1 %5241 }
 0x663   :  { %5398 = vst.msk [vmem:[#allocation2 + $0xcf] sm:$0xfe] %vm5373_vm1, %v5242_v55 }
 0x664   :  { %5447 = vst.msk [vmem:[#allocation2 + $0xd0] sm:$0x1] %vm941_vm6, %v15094_v30  ;;  %v5248_v57 = vpop.permute.xlu0 %5247  ;;  %5514 = vrot.lane.b32.xlu1 %v12670_v58, %s8779_s26 }
 0x665   :  { %5401 = vst.msk [vmem:[#allocation2 + $0xe7] sm:$0xff] %vm542_vm5, %v5248_v57 }
 0x666   :  { %5520 = vrot.lane.b32.xlu0 %v12677_v20, %s8779_s26  ;;  %v5246_v6 = vpop.permute.xlu1 %5245 }
 0x667   :  { %5400 = vst.msk [vmem:[#allocation2 + $0xdf] sm:$0xfe] %vm5373_vm1, %v5246_v6 }
 0x668   :  { %5448 = vst.msk [vmem:[#allocation2 + $0xe0] sm:$0x1] %vm941_vm6, %v15094_v30  ;;  %v5252_v46 = vpop.permute.xlu0 %5251  ;;  %5518 = vrot.lane.b32.xlu1 %v12684_v16, %s8779_s26 }
 0x669   :  { %5403 = vst.msk [vmem:[#allocation2 + $0xf7] sm:$0xff] %vm542_vm5, %v5252_v46  ;;  %v15096_v46 = vld [vmem:[#allocation25_spill] sm:$0xff] }
 0x66a   :  { %5524 = vrot.lane.b32.xlu0 %v12691_v51, %s8779_s26  ;;  %v5250_v55 = vpop.permute.xlu1 %5249  ;;  %v15097_v51 = vld [vmem:[#allocation3_spill] sm:$0xff] }
 0x66b   :  { %5402 = vst.msk [vmem:[#allocation2 + $0xef] sm:$0xfe] %vm5373_vm1, %v5250_v55  ;;  %v13310_v16 = vmul.f32 %v15097_v51, %v15096_v46 }
 0x66c   :  { %5449 = vst.msk [vmem:[#allocation2 + $0xf0] sm:$0x1] %vm941_vm6, %v15094_v30  ;;  %v5256_v57 = vpop.permute.xlu0 %5255  ;;  %5522 = vrot.lane.b32.xlu1 %v12698_v13, %s8779_s26  ;;  %v15099_v13 = vld [vmem:[#allocation26_spill] sm:$0xff] }
 0x66d   :  { %5405 = vst.msk [vmem:[#allocation2 + $0x117] sm:$0xff] %vm542_vm5, %v5256_v57  ;;  %v15098_v57 = vld [vmem:[#allocation4_spill] sm:$0xff] }
 0x66e   :  { %5528 = vrot.lane.b32.xlu0 %v12705_v41, %s8779_s26  ;;  %v5254_v6 = vpop.permute.xlu1 %5253  ;;  %v13319_v20 = vmul.f32 %v15099_v13, %v15098_v57 }
 0x66f   :  { %5404 = vst.msk [vmem:[#allocation2 + $0x10f] sm:$0xfe] %vm5373_vm1, %v5254_v6 }
 0x670   :  { %5451 = vst.msk [vmem:[#allocation2 + $0x110] sm:$0x1] %vm941_vm6, %v15094_v30  ;;  %v5260_v55 = vpop.permute.xlu0 %5259  ;;  %5526 = vrot.lane.b32.xlu1 %v12712_v5, %s8779_s26 }
 0x671   :  { %5407 = vst.msk [vmem:[#allocation2 + $0x127] sm:$0xff] %vm542_vm5, %v5260_v55 }
 0x672   :  { %5532 = vrot.lane.b32.xlu0 %v13310_v16, %s8779_s26  ;;  %v5258_v6 = vpop.permute.xlu1 %5257 }
 0x673   :  { %5406 = vst.msk [vmem:[#allocation2 + $0x11f] sm:$0xfe] %vm5373_vm1, %v5258_v6 }
 0x674   :  { %5452 = vst.msk [vmem:[#allocation2 + $0x120] sm:$0x1] %vm941_vm6, %v15094_v30  ;;  %v5264_v51 = vpop.permute.xlu0 %5263  ;;  %5530 = vrot.lane.b32.xlu1 %v13319_v20, %s8779_s26 }
 0x675   :  { %5409 = vst.msk [vmem:[#allocation2 + $0x137] sm:$0xff] %vm542_vm5, %v5264_v51 }
 0x676   :  { %5536 = vrot.lane.b32.xlu0 %v12727_v4, %s8779_s26  ;;  %v5262_v13 = vpop.permute.xlu1 %5261 }
 0x677   :  { %5408 = vst.msk [vmem:[#allocation2 + $0x12f] sm:$0xfe] %vm5373_vm1, %v5262_v13 }
 0x678   :  { %5453 = vst.msk [vmem:[#allocation2 + $0x130] sm:$0x1] %vm941_vm6, %v15094_v30  ;;  %v5268_v46 = vpop.permute.xlu0 %5267  ;;  %5534 = vrot.lane.b32.xlu1 %v12734_v49, %s8779_s26 }
 0x679   :  { %5411 = vst.msk [vmem:[#allocation2 + $0x147] sm:$0xff] %vm542_vm5, %v5268_v46 }
 0x67a   :  { %5540 = vrot.lane.b32.xlu0 %v12741_v50, %s8779_s26  ;;  %v5266_v55 = vpop.permute.xlu1 %5265 }
 0x67b   :  { %5410 = vst.msk [vmem:[#allocation2 + $0x13f] sm:$0xfe] %vm5373_vm1, %v5266_v55 }
 0x67c   :  { %5454 = vst.msk [vmem:[#allocation2 + $0x140] sm:$0x1] %vm941_vm6, %v15094_v30  ;;  %v5272_v57 = vpop.permute.xlu0 %5271  ;;  %5538 = vrot.lane.b32.xlu1 %v12748_v18, %s8779_s26 }
 0x67d   :  { %5413 = vst.msk [vmem:[#allocation2 + $0x157] sm:$0xff] %vm542_vm5, %v5272_v57 }
 0x67e   :  { %5544 = vrot.lane.b32.xlu0 %v12755_v21, %s8779_s26  ;;  %v5270_v6 = vpop.permute.xlu1 %5269 }
 0x67f   :  { %5412 = vst.msk [vmem:[#allocation2 + $0x14f] sm:$0xfe] %vm5373_vm1, %v5270_v6 }
 0x680   :  { %5455 = vst.msk [vmem:[#allocation2 + $0x150] sm:$0x1] %vm941_vm6, %v15094_v30  ;;  %v5276_v51 = vpop.permute.xlu0 %5275  ;;  %5542 = vrot.lane.b32.xlu1 %v12762_v29, %s8779_s26 }
 0x681   :  { %5415 = vst.msk [vmem:[#allocation2 + $0x167] sm:$0xff] %vm542_vm5, %v5276_v51 }
 0x682   :  { %5548 = vrot.lane.b32.xlu0 %v12769_v54, %s8779_s26  ;;  %v5274_v13 = vpop.permute.xlu1 %5273 }
 0x683   :  { %5414 = vst.msk [vmem:[#allocation2 + $0x15f] sm:$0xfe] %vm5373_vm1, %v5274_v13 }
 0x684   :  { %5456 = vst.msk [vmem:[#allocation2 + $0x160] sm:$0x1] %vm941_vm6, %v15094_v30  ;;  %v5280_v46 = vpop.permute.xlu0 %5279  ;;  %5546 = vrot.lane.b32.xlu1 %v12776_v32, %s8779_s26 }
 0x685   :  { %5417 = vst.msk [vmem:[#allocation2 + $0x177] sm:$0xff] %vm542_vm5, %v5280_v46 }
 0x686   :  { %5552 = vrot.lane.b32.xlu0 %v12783_v28, %s8779_s26  ;;  %v5278_v55 = vpop.permute.xlu1 %5277 }
 0x687   :  { %5416 = vst.msk [vmem:[#allocation2 + $0x16f] sm:$0xfe] %vm5373_vm1, %v5278_v55 }
 0x688   :  { %5457 = vst.msk [vmem:[#allocation2 + $0x170] sm:$0x1] %vm941_vm6, %v15094_v30  ;;  %v5284_v57 = vpop.permute.xlu0 %5283  ;;  %5550 = vrot.lane.b32.xlu1 %v12790_v27, %s8779_s26 }
 0x689   :  { %5419 = vst.msk [vmem:[#allocation2 + $0x187] sm:$0xff] %vm542_vm5, %v5284_v57 }
 0x68a   :  { %5556 = vrot.lane.b32.xlu0 %v12797_v36, %s8779_s26  ;;  %v5282_v6 = vpop.permute.xlu1 %5281 }
 0x68b   :  { %5418 = vst.msk [vmem:[#allocation2 + $0x17f] sm:$0xfe] %vm5373_vm1, %v5282_v6 }
 0x68c   :  { %5458 = vst.msk [vmem:[#allocation2 + $0x180] sm:$0x1] %vm941_vm6, %v15094_v30  ;;  %v5288_v51 = vpop.permute.xlu0 %5287  ;;  %5554 = vrot.lane.b32.xlu1 %v12804_v31, %s8779_s26 }
 0x68d   :  { %5421 = vst.msk [vmem:[#allocation2 + $0x197] sm:$0xff] %vm542_vm5, %v5288_v51 }
 0x68e   :  { %5560 = vrot.lane.b32.xlu0 %v12811_v12, %s8779_s26  ;;  %v5286_v13 = vpop.permute.xlu1 %5285 }
 0x68f   :  { %5420 = vst.msk [vmem:[#allocation2 + $0x18f] sm:$0xfe] %vm5373_vm1, %v5286_v13 }
 0x690   :  { %5459 = vst.msk [vmem:[#allocation2 + $0x190] sm:$0x1] %vm941_vm6, %v15094_v30  ;;  %v5292_v46 = vpop.permute.xlu0 %5291  ;;  %5558 = vrot.lane.b32.xlu1 %v12818_v33, %s8779_s26 }
 0x691   :  { %5423 = vst.msk [vmem:[#allocation2 + $0x1a7] sm:$0xff] %vm542_vm5, %v5292_v46 }
 0x692   :  { %5564 = vrot.lane.b32.xlu0 %v12825_v22, %s8779_s26  ;;  %v5290_v55 = vpop.permute.xlu1 %5289 }
 0x693   :  { %5422 = vst.msk [vmem:[#allocation2 + $0x19f] sm:$0xfe] %vm5373_vm1, %v5290_v55  ;;  %v15100_v55 = vld [vmem:[#allocation5_spill] sm:$0xff] }
 0x694   :  { %5460 = vst.msk [vmem:[#allocation2 + $0x1a0] sm:$0x1] %vm941_vm6, %v15094_v30  ;;  %v5296_v57 = vpop.permute.xlu0 %5295  ;;  %5562 = vrot.lane.b32.xlu1 %v12832_v15, %s8779_s26 }
 0x695   :  { %5425 = vst.msk [vmem:[#allocation2 + $0x1b7] sm:$0xff] %vm542_vm5, %v5296_v57 }
 0x696   :  { %5568 = vrot.lane.b32.xlu0 %v12839_v52, %s8779_s26  ;;  %v5294_v6 = vpop.permute.xlu1 %5293 }
 0x697   :  { %5424 = vst.msk [vmem:[#allocation2 + $0x1af] sm:$0xfe] %vm5373_vm1, %v5294_v6 }
 0x698   :  { %5461 = vst.msk [vmem:[#allocation2 + $0x1b0] sm:$0x1] %vm941_vm6, %v15094_v30  ;;  %v5300_v51 = vpop.permute.xlu0 %5299  ;;  %5566 = vrot.lane.b32.xlu1 %v12846_v26, %s8779_s26 }
 0x699   :  { %5427 = vst.msk [vmem:[#allocation2 + $0x1c7] sm:$0xff] %vm542_vm5, %v5300_v51 }
 0x69a   :  { %5572 = vrot.lane.b32.xlu0 %v12853_v44, %s8779_s26  ;;  %v5298_v13 = vpop.permute.xlu1 %5297 }
 0x69b   :  { %5426 = vst.msk [vmem:[#allocation2 + $0x1bf] sm:$0xfe] %vm5373_vm1, %v5298_v13 }
 0x69c   :  { %5462 = vst.msk [vmem:[#allocation2 + $0x1c0] sm:$0x1] %vm941_vm6, %v15094_v30  ;;  %v5304_v46 = vpop.permute.xlu0 %5303  ;;  %5570 = vrot.lane.b32.xlu1 %v15100_v55, %s8779_s26 }
 0x69d   :  { %5429 = vst.msk [vmem:[#allocation2 + $0x1d7] sm:$0xff] %vm542_vm5, %v5304_v46 }
 0x69e   :  { %5576 = vrot.lane.b32.xlu0 %v12867_v25, %s8779_s26  ;;  %v5302_v57 = vpop.permute.xlu1 %5301 }
 0x69f   :  { %5428 = vst.msk [vmem:[#allocation2 + $0x1cf] sm:$0xfe] %vm5373_vm1, %v5302_v57 }
 0x6a0   :  { %5463 = vst.msk [vmem:[#allocation2 + $0x1d0] sm:$0x1] %vm941_vm6, %v15094_v30  ;;  %v5308_v6 = vpop.permute.xlu0 %5307  ;;  %5574 = vrot.lane.b32.xlu1 %v12874_v39, %s8779_s26 }
 0x6a1   :  { %5431 = vst.msk [vmem:[#allocation2 + $0x1e7] sm:$0xff] %vm542_vm5, %v5308_v6 }
 0x6a2   :  { %5580 = vrot.lane.b32.xlu0 %v15095_v40, %s8779_s26  ;;  %v5306_v51 = vpop.permute.xlu1 %5305 }
 0x6a3   :  { %5430 = vst.msk [vmem:[#allocation2 + $0x1df] sm:$0xfe] %vm5373_vm1, %v5306_v51 }
 0x6a4   :  { %5464 = vst.msk [vmem:[#allocation2 + $0x1e0] sm:$0x1] %vm941_vm6, %v15094_v30  ;;  %v5312_v13 = vpop.permute.xlu0 %5311  ;;  %5578 = vrot.lane.b32.xlu1 %v12888_v53, %s8779_s26 }
 0x6a5   :  { %5433 = vst.msk [vmem:[#allocation2 + $0x1f7] sm:$0xff] %vm542_vm5, %v5312_v13  ;;  %vm15108_vm5 = vmmov %vm15101_vm2 }
 0x6a6   :  { %5584 = vrot.lane.b32.xlu0 %v12895_v11, %s8779_s26  ;;  %v5310_v46 = vpop.permute.xlu1 %5309 }
 0x6a7   :  { %5432 = vst.msk [vmem:[#allocation2 + $0x1ef] sm:$0xfe] %vm5373_vm1, %v5310_v46  ;;  %v15103_v46 = vld [vmem:[#allocation12_spill] sm:$0xff]  ;;  %vm15111_vm1 = vmmov %vm15101_vm2 }
 0x6a8   :  { %5465 = vst.msk [vmem:[#allocation2 + $0x1f0] sm:$0x1] %vm941_vm6, %v15094_v30  ;;  %v5473_v57 = vpop.permute.xlu0 %5472  ;;  %5582 = vrot.lane.b32.xlu1 %v12902_v2, %s8779_s26  ;;  %vm15109_vm6 = vmmov %vm15101_vm2 }
 0x6a9   :  { %5663 = vst.msk [vmem:[#allocation2 + $0x9] sm:$0x7f] %vm1296_vm9, %v5473_v57  ;;  %v15104_v57 = vld [vmem:[#allocation18_spill] sm:$0xff] }
 0x6aa   :  { %5588 = vrot.lane.b32.xlu0 %v12909_v0, %s8779_s26  ;;  %v5471_v6 = vpop.permute.xlu1 %5470  ;;  %v13444_v30 = vmul.f32 %v15104_v57, %v15103_v46 }
 0x6ab   :  { %5662 = vst.msk [vmem:[#allocation2 + $0x1] sm:$0xff] %vm15101_vm2, %v5471_v6  ;;  %v15105_v6 = vld [vmem:[#allocation19_spill] sm:$0xff]  ;;  %vm15112_vm2 = vmmov %vm15111_vm1 }
 0x6ac   :  { %v5477_v51 = vpop.permute.xlu0 %5476  ;;  %5586 = vrot.lane.b32.xlu1 %v12916_v47, %s8779_s26  ;;  %v15106_v47 = vld [vmem:[#allocation13_spill] sm:$0xff] }
 0x6ad   :  { %5665 = vst.msk [vmem:[#allocation2 + $0x19] sm:$0x7f] %vm1296_vm9, %v5477_v51  ;;  %v13451_v2 = vmul.f32 %v15106_v47, %v15105_v6 }
 0x6ae   :  { %5592 = vrot.lane.b32.xlu0 %v12923_v59, %s8779_s26  ;;  %v5475_v13 = vpop.permute.xlu1 %5474 }
 0x6af   :  { %5664 = vst.msk [vmem:[#allocation2 + $0x11] sm:$0xff] %vm15102_vm3, %v5475_v13  ;;  %vm15113_vm3 = vmmov %vm15111_vm1 }
 0x6b0   :  { %v5481_v0 = vpop.permute.xlu0 %5480  ;;  %5590 = vrot.lane.b32.xlu1 %v12930_v61, %s8779_s26 }
 0x6b1   :  { %5667 = vst.msk [vmem:[#allocation2 + $0x29] sm:$0x7f] %vm1296_vm9, %v5481_v0 }
 0x6b2   :  { %5596 = vrot.lane.b32.xlu0 %v13444_v30, %s8779_s26  ;;  %v5479_v51 = vpop.permute.xlu1 %5478 }
 0x6b3   :  { %5666 = vst.msk [vmem:[#allocation2 + $0x21] sm:$0xff] %vm15107_vm4, %v5479_v51  ;;  %vm15114_vm4 = vmmov %vm15111_vm1 }
 0x6b4   :  { %v5485_v13 = vpop.permute.xlu0 %5484  ;;  %5594 = vrot.lane.b32.xlu1 %v13451_v2, %s8779_s26 }
 0x6b5   :  { %5669 = vst.msk [vmem:[#allocation2 + $0x39] sm:$0x7f] %vm1296_vm9, %v5485_v13 }
 0x6b6   :  { %5728 = vrot.lane.b32.xlu0 %v12515_v34, %s8780_s12  ;;  %v5483_v0 = vpop.permute.xlu1 %5482 }
 0x6b7   :  { %5668 = vst.msk [vmem:[#allocation2 + $0x31] sm:$0xff] %vm15108_vm5, %v5483_v0  ;;  %vm15115_vm5 = vmmov %vm15111_vm1 }
 0x6b8   :  { %v5489_v47 = vpop.permute.xlu0 %5488  ;;  %5726 = vrot.lane.b32.xlu1 %v12518_v9, %s8780_s12 }
 0x6b9   :  { %5671 = vst.msk [vmem:[#allocation2 + $0x49] sm:$0x7f] %vm1296_vm9, %v5489_v47 }
 0x6ba   :  { %5732 = vrot.lane.b32.xlu0 %v12527_v43, %s8780_s12  ;;  %v5487_v46 = vpop.permute.xlu1 %5486 }
 0x6bb   :  { %5670 = vst.msk [vmem:[#allocation2 + $0x41] sm:$0xff] %vm15109_vm6, %v5487_v46  ;;  %vm15116_vm6 = vmmov %vm15111_vm1 }
 0x6bc   :  { %v5493_v57 = vpop.permute.xlu0 %5492  ;;  %5730 = vrot.lane.b32.xlu1 %v12530_v60, %s8780_s12 }
 0x6bd   :  { %5673 = vst.msk [vmem:[#allocation2 + $0x59] sm:$0x7f] %vm1296_vm9, %v5493_v57 }
 0x6be   :  { %5736 = vrot.lane.b32.xlu0 %v12539_v45, %s8780_s12  ;;  %v5491_v6 = vpop.permute.xlu1 %5490 }
 0x6bf   :  { %5672 = vst.msk [vmem:[#allocation2 + $0x51] sm:$0xff] %vm15110_vm8, %v5491_v6  ;;  %vm15117_vm8 = vmmov %vm15111_vm1 }
 0x6c0   :  { %v5497_v51 = vpop.permute.xlu0 %5496  ;;  %5734 = vrot.lane.b32.xlu1 %v12542_v63, %s8780_s12 }
 0x6c1   :  { %5675 = vst.msk [vmem:[#allocation2 + $0x69] sm:$0x7f] %vm1296_vm9, %v5497_v51 }
 0x6c2   :  { %5740 = vrot.lane.b32.xlu0 %v12551_v42, %s8780_s12  ;;  %v5495_v13 = vpop.permute.xlu1 %5494 }
 0x6c3   :  { %5674 = vst.msk [vmem:[#allocation2 + $0x61] sm:$0xff] %vm15111_vm1, %v5495_v13 }
 0x6c4   :  { %v5501_v0 = vpop.permute.xlu0 %5500  ;;  %5738 = vrot.lane.b32.xlu1 %v12554_v38, %s8780_s12 }
 0x6c5   :  { %5677 = vst.msk [vmem:[#allocation2 + $0x79] sm:$0x7f] %vm1296_vm9, %v5501_v0 }
 0x6c6   :  { %5744 = vrot.lane.b32.xlu0 %v12565_v62, %s8780_s12  ;;  %v5499_v47 = vpop.permute.xlu1 %5498 }
 0x6c7   :  { %5676 = vst.msk [vmem:[#allocation2 + $0x71] sm:$0xff] %vm15112_vm2, %v5499_v47  ;;  %vm15118_vm2 = vmmov %vm15111_vm1 }
 0x6c8   :  { %v5505_v46 = vpop.permute.xlu0 %5504  ;;  %5742 = vrot.lane.b32.xlu1 %v12572_v3, %s8780_s12 }
 0x6c9   :  { %5679 = vst.msk [vmem:[#allocation2 + $0x89] sm:$0x7f] %vm1296_vm9, %v5505_v46 }
 0x6ca   :  { %5748 = vrot.lane.b32.xlu0 %v12579_v7, %s8780_s12  ;;  %v5503_v57 = vpop.permute.xlu1 %5502 }
 0x6cb   :  { %5678 = vst.msk [vmem:[#allocation2 + $0x81] sm:$0xff] %vm15113_vm3, %v5503_v57  ;;  %vm15120_vm3 = vmmov %vm15111_vm1 }
 0x6cc   :  { %v5509_v6 = vpop.permute.xlu0 %5508  ;;  %5746 = vrot.lane.b32.xlu1 %v12586_v10, %s8780_s12 }
 0x6cd   :  { %5681 = vst.msk [vmem:[#allocation2 + $0x99] sm:$0x7f] %vm1296_vm9, %v5509_v6 }
 0x6ce   :  { %5752 = vrot.lane.b32.xlu0 %v12593_v14, %s8780_s12  ;;  %v5507_v51 = vpop.permute.xlu1 %5506 }
 0x6cf   :  { %5680 = vst.msk [vmem:[#allocation2 + $0x91] sm:$0xff] %vm15114_vm4, %v5507_v51  ;;  %vm15123_vm4 = vmmov %vm15111_vm1 }
 0x6d0   :  { %v5513_v13 = vpop.permute.xlu0 %5512  ;;  %5750 = vrot.lane.b32.xlu1 %v12600_v24, %s8780_s12 }
 0x6d1   :  { %5683 = vst.msk [vmem:[#allocation2 + $0xa9] sm:$0x7f] %vm1296_vm9, %v5513_v13 }
 0x6d2   :  { %5756 = vrot.lane.b32.xlu0 %v12607_v19, %s8780_s12  ;;  %v5511_v0 = vpop.permute.xlu1 %5510 }
 0x6d3   :  { %5682 = vst.msk [vmem:[#allocation2 + $0xa1] sm:$0xff] %vm15115_vm5, %v5511_v0  ;;  %vm15125_vm5 = vmmov %vm15111_vm1 }
 0x6d4   :  { %v5517_v47 = vpop.permute.xlu0 %5516  ;;  %5754 = vrot.lane.b32.xlu1 %v12614_v23, %s8780_s12 }
 0x6d5   :  { %5685 = vst.msk [vmem:[#allocation2 + $0xb9] sm:$0x7f] %vm1296_vm9, %v5517_v47 }
 0x6d6   :  { %5760 = vrot.lane.b32.xlu0 %v12621_v48, %s8780_s12  ;;  %v5515_v46 = vpop.permute.xlu1 %5514 }
 0x6d7   :  { %5684 = vst.msk [vmem:[#allocation2 + $0xb1] sm:$0xff] %vm15116_vm6, %v5515_v46  ;;  %vm15126_vm6 = vmmov %vm15111_vm1 }
 0x6d8   :  { %v5521_v57 = vpop.permute.xlu0 %5520  ;;  %5758 = vrot.lane.b32.xlu1 %v12628_v8, %s8780_s12 }
 0x6d9   :  { %5687 = vst.msk [vmem:[#allocation2 + $0xc9] sm:$0x7f] %vm1296_vm9, %v5521_v57  ;;  %v15119_v57 = vld [vmem:[#allocation21_spill] sm:$0xff] }
 0x6da   :  { %5764 = vrot.lane.b32.xlu0 %v12635_v35, %s8780_s12  ;;  %v5519_v6 = vpop.permute.xlu1 %5518 }
 0x6db   :  { %5686 = vst.msk [vmem:[#allocation2 + $0xc1] sm:$0xff] %vm15117_vm8, %v5519_v6  ;;  %vm15127_vm8 = vmmov %vm15111_vm1 }
 0x6dc   :  { %v5525_v51 = vpop.permute.xlu0 %5524  ;;  %5762 = vrot.lane.b32.xlu1 %v12642_v56, %s8780_s12 }
 0x6dd   :  { %5689 = vst.msk [vmem:[#allocation2 + $0xd9] sm:$0x7f] %vm1296_vm9, %v5525_v51 }
 0x6de   :  { %5768 = vrot.lane.b32.xlu0 %v12649_v1, %s8780_s12  ;;  %v5523_v13 = vpop.permute.xlu1 %5522 }
 0x6df   :  { %5688 = vst.msk [vmem:[#allocation2 + $0xd1] sm:$0xff] %vm15111_vm1, %v5523_v13  ;;  %v15121_v13 = vld [vmem:[#allocation22_spill] sm:$0xff] }
 0x6e0   :  { %v5529_v0 = vpop.permute.xlu0 %5528  ;;  %5766 = vrot.lane.b32.xlu1 %v12656_v37, %s8780_s12 }
 0x6e1   :  { %5691 = vst.msk [vmem:[#allocation2 + $0xe9] sm:$0x7f] %vm1296_vm9, %v5529_v0  ;;  %v15122_v0 = vld [vmem:[#allocation23_spill] sm:$0xff] }
 0x6e2   :  { %5772 = vrot.lane.b32.xlu0 %v12663_v17, %s8780_s12  ;;  %v5527_v47 = vpop.permute.xlu1 %5526 }
 0x6e3   :  { %5690 = vst.msk [vmem:[#allocation2 + $0xe1] sm:$0xff] %vm15118_vm2, %v5527_v47  ;;  %vm15128_vm2 = vmmov %vm15111_vm1 }
 0x6e4   :  { %v5533_v46 = vpop.permute.xlu0 %5532  ;;  %5770 = vrot.lane.b32.xlu1 %v12670_v58, %s8780_s12 }
 0x6e5   :  { %5693 = vst.msk [vmem:[#allocation2 + $0xf9] sm:$0x7f] %vm1296_vm9, %v5533_v46  ;;  %v15124_v46 = vld [vmem:[#allocation24_spill] sm:$0xff] }
 0x6e6   :  { %5776 = vrot.lane.b32.xlu0 %v15119_v57, %s8780_s12  ;;  %v5531_v6 = vpop.permute.xlu1 %5530 }
 0x6e7   :  { %5692 = vst.msk [vmem:[#allocation2 + $0xf1] sm:$0xff] %vm15120_vm3, %v5531_v6  ;;  %vm15129_vm3 = vmmov %vm15111_vm1 }
 0x6e8   :  { %v5537_v51 = vpop.permute.xlu0 %5536  ;;  %5774 = vrot.lane.b32.xlu1 %v15121_v13, %s8780_s12 }
 0x6e9   :  { %5695 = vst.msk [vmem:[#allocation2 + $0x109] sm:$0x7f] %vm1296_vm9, %v5537_v51 }
 0x6ea   :  { %5780 = vrot.lane.b32.xlu0 %v15122_v0, %s8780_s12  ;;  %v5535_v47 = vpop.permute.xlu1 %5534 }
 0x6eb   :  { %5694 = vst.msk [vmem:[#allocation2 + $0x101] sm:$0xff] %vm15123_vm4, %v5535_v47  ;;  %vm15130_vm4 = vmmov %vm15111_vm1 }
 0x6ec   :  { %v5541_v58 = vpop.permute.xlu0 %5540  ;;  %5778 = vrot.lane.b32.xlu1 %v15124_v46, %s8780_s12 }
 0x6ed   :  { %5697 = vst.msk [vmem:[#allocation2 + $0x119] sm:$0x7f] %vm1296_vm9, %v5541_v58 }
 0x6ee   :  { %5784 = vrot.lane.b32.xlu0 %v12705_v41, %s8780_s12  ;;  %v5539_v6 = vpop.permute.xlu1 %5538 }
 0x6ef   :  { %5696 = vst.msk [vmem:[#allocation2 + $0x111] sm:$0xff] %vm15125_vm5, %v5539_v6  ;;  %vm15131_vm5 = vmmov %vm15111_vm1 }
 0x6f0   :  { %v5545_v13 = vpop.permute.xlu0 %5544  ;;  %5782 = vrot.lane.b32.xlu1 %v12712_v5, %s8780_s12 }
 0x6f1   :  { %5699 = vst.msk [vmem:[#allocation2 + $0x129] sm:$0x7f] %vm1296_vm9, %v5545_v13 }
 0x6f2   :  { %5788 = vrot.lane.b32.xlu0 %v13310_v16, %s8780_s12  ;;  %v5543_v51 = vpop.permute.xlu1 %5542 }
 0x6f3   :  { %5698 = vst.msk [vmem:[#allocation2 + $0x121] sm:$0xff] %vm15126_vm6, %v5543_v51  ;;  %vm15132_vm6 = vmmov %vm15111_vm1 }
 0x6f4   :  { %v5549_v47 = vpop.permute.xlu0 %5548  ;;  %5786 = vrot.lane.b32.xlu1 %v13319_v20, %s8780_s12 }
 0x6f5   :  { %5701 = vst.msk [vmem:[#allocation2 + $0x139] sm:$0x7f] %vm1296_vm9, %v5549_v47 }
 0x6f6   :  { %5792 = vrot.lane.b32.xlu0 %v12727_v4, %s8780_s12  ;;  %v5547_v58 = vpop.permute.xlu1 %5546 }
 0x6f7   :  { %5700 = vst.msk [vmem:[#allocation2 + $0x131] sm:$0xff] %vm15127_vm8, %v5547_v58  ;;  %vm15133_vm8 = vmmov %vm15111_vm1 }
 0x6f8   :  { %v5553_v6 = vpop.permute.xlu0 %5552  ;;  %5790 = vrot.lane.b32.xlu1 %v12734_v49, %s8780_s12 }
 0x6f9   :  { %5703 = vst.msk [vmem:[#allocation2 + $0x149] sm:$0x7f] %vm1296_vm9, %v5553_v6 }
 0x6fa   :  { %5796 = vrot.lane.b32.xlu0 %v12741_v50, %s8780_s12  ;;  %v5551_v13 = vpop.permute.xlu1 %5550 }
 0x6fb   :  { %5702 = vst.msk [vmem:[#allocation2 + $0x141] sm:$0xff] %vm15111_vm1, %v5551_v13 }
 0x6fc   :  { %v5557_v51 = vpop.permute.xlu0 %5556  ;;  %5794 = vrot.lane.b32.xlu1 %v12748_v18, %s8780_s12 }
 0x6fd   :  { %5705 = vst.msk [vmem:[#allocation2 + $0x159] sm:$0x7f] %vm1296_vm9, %v5557_v51 }
 0x6fe   :  { %5800 = vrot.lane.b32.xlu0 %v12755_v21, %s8780_s12  ;;  %v5555_v47 = vpop.permute.xlu1 %5554 }
 0x6ff   :  { %5704 = vst.msk [vmem:[#allocation2 + $0x151] sm:$0xff] %vm15128_vm2, %v5555_v47  ;;  %vm15134_vm2 = vmmov %vm15111_vm1 }
 0x700   :  { %v5561_v58 = vpop.permute.xlu0 %5560  ;;  %5798 = vrot.lane.b32.xlu1 %v12762_v29, %s8780_s12 }
 0x701   :  { %5707 = vst.msk [vmem:[#allocation2 + $0x169] sm:$0x7f] %vm1296_vm9, %v5561_v58 }
 0x702   :  { %5804 = vrot.lane.b32.xlu0 %v12769_v54, %s8780_s12  ;;  %v5559_v6 = vpop.permute.xlu1 %5558 }
 0x703   :  { %5706 = vst.msk [vmem:[#allocation2 + $0x161] sm:$0xff] %vm15129_vm3, %v5559_v6  ;;  %vm15135_vm3 = vmmov %vm15111_vm1 }
 0x704   :  { %v5565_v13 = vpop.permute.xlu0 %5564  ;;  %5802 = vrot.lane.b32.xlu1 %v12776_v32, %s8780_s12 }
 0x705   :  { %5709 = vst.msk [vmem:[#allocation2 + $0x179] sm:$0x7f] %vm1296_vm9, %v5565_v13 }
 0x706   :  { %5808 = vrot.lane.b32.xlu0 %v12783_v28, %s8780_s12  ;;  %v5563_v51 = vpop.permute.xlu1 %5562 }
 0x707   :  { %5708 = vst.msk [vmem:[#allocation2 + $0x171] sm:$0xff] %vm15130_vm4, %v5563_v51  ;;  %vm15136_vm4 = vmmov %vm15111_vm1 }
 0x708   :  { %v5569_v47 = vpop.permute.xlu0 %5568  ;;  %5806 = vrot.lane.b32.xlu1 %v12790_v27, %s8780_s12 }
 0x709   :  { %5711 = vst.msk [vmem:[#allocation2 + $0x189] sm:$0x7f] %vm1296_vm9, %v5569_v47 }
 0x70a   :  { %5812 = vrot.lane.b32.xlu0 %v12797_v36, %s8780_s12  ;;  %v5567_v58 = vpop.permute.xlu1 %5566 }
 0x70b   :  { %5710 = vst.msk [vmem:[#allocation2 + $0x181] sm:$0xff] %vm15131_vm5, %v5567_v58  ;;  %vm15137_vm5 = vmmov %vm15111_vm1 }
 0x70c   :  { %v5573_v6 = vpop.permute.xlu0 %5572  ;;  %5810 = vrot.lane.b32.xlu1 %v12804_v31, %s8780_s12 }
 0x70d   :  { %5713 = vst.msk [vmem:[#allocation2 + $0x199] sm:$0x7f] %vm1296_vm9, %v5573_v6 }
 0x70e   :  { %5816 = vrot.lane.b32.xlu0 %v12811_v12, %s8780_s12  ;;  %v5571_v13 = vpop.permute.xlu1 %5570 }
 0x70f   :  { %5712 = vst.msk [vmem:[#allocation2 + $0x191] sm:$0xff] %vm15132_vm6, %v5571_v13  ;;  %vm15139_vm6 = vcmask 162944  }
 0x710   :  { %v5577_v51 = vpop.permute.xlu0 %5576  ;;  %5814 = vrot.lane.b32.xlu1 %v12818_v33, %s8780_s12 }
 0x711   :  { %5715 = vst.msk [vmem:[#allocation2 + $0x1a9] sm:$0x7f] %vm1296_vm9, %v5577_v51 }
 0x712   :  { %5820 = vrot.lane.b32.xlu0 %v12825_v22, %s8780_s12  ;;  %v5575_v47 = vpop.permute.xlu1 %5574 }
 0x713   :  { %5714 = vst.msk [vmem:[#allocation2 + $0x1a1] sm:$0xff] %vm15133_vm8, %v5575_v47  ;;  %vm15141_vm8 = vcmask 188576  }
 0x714   :  { %v5581_v58 = vpop.permute.xlu0 %5580  ;;  %5818 = vrot.lane.b32.xlu1 %v12832_v15, %s8780_s12 }
 0x715   :  { %5717 = vst.msk [vmem:[#allocation2 + $0x1b9] sm:$0x7f] %vm1296_vm9, %v5581_v58 }
 0x716   :  { %5824 = vrot.lane.b32.xlu0 %v12839_v52, %s8780_s12  ;;  %v5579_v6 = vpop.permute.xlu1 %5578 }
 0x717   :  { %5716 = vst.msk [vmem:[#allocation2 + $0x1b1] sm:$0xff] %vm15111_vm1, %v5579_v6  ;;  %vm15145_vm1 = vmmov %vm15139_vm6 }
 0x718   :  { %v5585_v13 = vpop.permute.xlu0 %5584  ;;  %5822 = vrot.lane.b32.xlu1 %v12846_v26, %s8780_s12 }
 0x719   :  { %5719 = vst.msk [vmem:[#allocation2 + $0x1c9] sm:$0x7f] %vm1296_vm9, %v5585_v13 }
 0x71a   :  { %5828 = vrot.lane.b32.xlu0 %v12853_v44, %s8780_s12  ;;  %v5583_v51 = vpop.permute.xlu1 %5582 }
 0x71b   :  { %5718 = vst.msk [vmem:[#allocation2 + $0x1c1] sm:$0xff] %vm15134_vm2, %v5583_v51  ;;  %vm15146_vm2 = vmmov %vm15141_vm8 }
 0x71c   :  { %v5589_v47 = vpop.permute.xlu0 %5588  ;;  %5826 = vrot.lane.b32.xlu1 %v15100_v55, %s8780_s12 }
 0x71d   :  { %5721 = vst.msk [vmem:[#allocation2 + $0x1d9] sm:$0x7f] %vm1296_vm9, %v5589_v47 }
 0x71e   :  { %5832 = vrot.lane.b32.xlu0 %v12867_v25, %s8780_s12  ;;  %v5587_v58 = vpop.permute.xlu1 %5586 }
 0x71f   :  { %5720 = vst.msk [vmem:[#allocation2 + $0x1d1] sm:$0xff] %vm15135_vm3, %v5587_v58  ;;  %vm15147_vm3 = vmmov %vm15145_vm1 }
 0x720   :  { %v5593_v6 = vpop.permute.xlu0 %5592  ;;  %5830 = vrot.lane.b32.xlu1 %v12874_v39, %s8780_s12 }
 0x721   :  { %5723 = vst.msk [vmem:[#allocation2 + $0x1e9] sm:$0x7f] %vm1296_vm9, %v5593_v6  ;;  %v15138_v6 = vld [vmem:[#allocation9_spill] sm:$0xff] }
 0x722   :  { %5836 = vrot.lane.b32.xlu0 %v15095_v40, %s8780_s12  ;;  %v5591_v13 = vpop.permute.xlu1 %5590  ;;  %v15140_v40 = vmov 0.0  }
 0x723   :  { %5722 = vst.msk [vmem:[#allocation2 + $0x1e1] sm:$0xff] %vm15136_vm4, %v5591_v13  ;;  %v15142_v13 = vld [vmem:[#allocation10_spill] sm:$0xff]  ;;  %vm15148_vm4 = vmmov %vm15145_vm1 }
 0x724   :  { %v5597_v51 = vpop.permute.xlu0 %5596  ;;  %5834 = vrot.lane.b32.xlu1 %v12888_v53, %s8780_s12 }
 0x725   :  { %5725 = vst.msk [vmem:[#allocation2 + $0x1f9] sm:$0x7f] %vm1296_vm9, %v5597_v51  ;;  %vm15143_vm9 = vmmov %vm15139_vm6 }
 0x726   :  { %5840 = vrot.lane.b32.xlu0 %v12895_v11, %s8780_s12  ;;  %v5595_v47 = vpop.permute.xlu1 %5594  ;;  %v15144_v11 = vld [vmem:[#allocation11_spill] sm:$0xff] }
 0x727   :  { %5724 = vst.msk [vmem:[#allocation2 + $0x1f1] sm:$0xff] %vm15137_vm5, %v5595_v47  ;;  %vm15149_vm5 = vmmov %vm15146_vm2 }
 0x728   :  { %v5729_v58 = vpop.permute.xlu0 %5728  ;;  %5838 = vrot.lane.b32.xlu1 %v15138_v6, %s8780_s12 }
 0x729   :  { %5919 = vst.msk [vmem:[#allocation2 + $0x8] sm:$0xff] %vm15139_vm6, %v5729_v58  ;;  %vm15150_vm6 = vmmov %vm15145_vm1 }
 0x72a   :  { %5982 = vst.msk [vmem:[#allocation2 + $0xf] sm:$0x1] %vm15141_vm8, %v15140_v40  ;;  %5844 = vrot.lane.b32.xlu0 %v15142_v13, %s8780_s12  ;;  %v5727_v53 = vpop.permute.xlu1 %5726  ;;  %vm15151_vm8 = vmmov %vm15145_vm1 }
 0x72b   :  { %5918 = vst.msk [vmem:[#allocation2] sm:$0xff] %vm15143_vm9, %v5727_v53  ;;  %vm15152_vm9 = vmmov %vm15146_vm2 }
 0x72c   :  { %v5733_v51 = vpop.permute.xlu0 %5732  ;;  %5842 = vrot.lane.b32.xlu1 %v15144_v11, %s8780_s12 }
 0x72d   :  { %5921 = vst.msk [vmem:[#allocation2 + $0x18] sm:$0xff] %vm15145_vm1, %v5733_v51 }
 0x72e   :  { %5983 = vst.msk [vmem:[#allocation2 + $0x1f] sm:$0x1] %vm15146_vm2, %v15140_v40  ;;  %5848 = vrot.lane.b32.xlu0 %v12923_v59, %s8780_s12  ;;  %v5731_v47 = vpop.permute.xlu1 %5730  ;;  %vm15153_vm2 = vmmov %vm15145_vm1 }
 0x72f   :  { %5920 = vst.msk [vmem:[#allocation2 + $0x10] sm:$0xff] %vm15147_vm3, %v5731_v47  ;;  %vm15154_vm3 = vmmov %vm15149_vm5 }
 0x730   :  { %v5737_v58 = vpop.permute.xlu0 %5736  ;;  %5846 = vrot.lane.b32.xlu1 %v12930_v61, %s8780_s12 }
 0x731   :  { %5923 = vst.msk [vmem:[#allocation2 + $0x28] sm:$0xff] %vm15148_vm4, %v5737_v58  ;;  %vm15155_vm4 = vmmov %vm15145_vm1 }
 0x732   :  { %5984 = vst.msk [vmem:[#allocation2 + $0x2f] sm:$0x1] %vm15149_vm5, %v15140_v40  ;;  %5852 = vrot.lane.b32.xlu0 %v13444_v30, %s8780_s12  ;;  %v5735_v53 = vpop.permute.xlu1 %5734  ;;  %vm15156_vm5 = vmmov %vm15145_vm1 }
 0x733   :  { %5922 = vst.msk [vmem:[#allocation2 + $0x20] sm:$0xff] %vm15150_vm6, %v5735_v53  ;;  %vm15157_vm6 = vmmov %vm15154_vm3 }
 0x734   :  { %v5741_v51 = vpop.permute.xlu0 %5740  ;;  %5850 = vrot.lane.b32.xlu1 %v13451_v2, %s8780_s12 }
 0x735   :  { %5925 = vst.msk [vmem:[#allocation2 + $0x38] sm:$0xff] %vm15151_vm8, %v5741_v51  ;;  %vm15158_vm8 = vmmov %vm15145_vm1 }
 0x736   :  { %5985 = vst.msk [vmem:[#allocation2 + $0x3f] sm:$0x1] %vm15152_vm9, %v15140_v40  ;;  %6016 = vrot.lane.b32.xlu0 %v12515_v34, %s8781_s13  ;;  %v5739_v47 = vpop.permute.xlu1 %5738  ;;  %vm15159_vm9 = vmmov %vm15145_vm1 }
 0x737   :  { %5924 = vst.msk [vmem:[#allocation2 + $0x30] sm:$0xff] %vm15145_vm1, %v5739_v47  ;;  %vm15160_vm1 = vmmov %vm15154_vm3 }
 0x738   :  { %v5745_v58 = vpop.permute.xlu0 %5744  ;;  %6014 = vrot.lane.b32.xlu1 %v12518_v9, %s8781_s13 }
 0x739   :  { %5927 = vst.msk [vmem:[#allocation2 + $0x48] sm:$0xff] %vm15153_vm2, %v5745_v58 }
 0x73a   :  { %5986 = vst.msk [vmem:[#allocation2 + $0x4f] sm:$0x1] %vm15154_vm3, %v15140_v40  ;;  %6020 = vrot.lane.b32.xlu0 %v12527_v43, %s8781_s13  ;;  %v5743_v53 = vpop.permute.xlu1 %5742  ;;  %vm15161_vm3 = vmmov %vm15153_vm2 }
 0x73b   :  { %5926 = vst.msk [vmem:[#allocation2 + $0x40] sm:$0xff] %vm15155_vm4, %v5743_v53  ;;  %vm15162_vm4 = vmmov %vm15160_vm1 }
 0x73c   :  { %v5749_v51 = vpop.permute.xlu0 %5748  ;;  %6018 = vrot.lane.b32.xlu1 %v12530_v60, %s8781_s13 }
 0x73d   :  { %5929 = vst.msk [vmem:[#allocation2 + $0x58] sm:$0xff] %vm15156_vm5, %v5749_v51  ;;  %vm15163_vm5 = vmmov %vm15153_vm2 }
 0x73e   :  { %5987 = vst.msk [vmem:[#allocation2 + $0x5f] sm:$0x1] %vm15157_vm6, %v15140_v40  ;;  %6024 = vrot.lane.b32.xlu0 %v12539_v45, %s8781_s13  ;;  %v5747_v34 = vpop.permute.xlu1 %5746  ;;  %vm15164_vm6 = vmmov %vm15153_vm2 }
 0x73f   :  { %5928 = vst.msk [vmem:[#allocation2 + $0x50] sm:$0xff] %vm15158_vm8, %v5747_v34  ;;  %vm15165_vm8 = vmmov %vm15160_vm1 }
 0x740   :  { %v5753_v9 = vpop.permute.xlu0 %5752  ;;  %6022 = vrot.lane.b32.xlu1 %v12542_v63, %s8781_s13 }
 0x741   :  { %5931 = vst.msk [vmem:[#allocation2 + $0x68] sm:$0xff] %vm15159_vm9, %v5753_v9  ;;  %vm15166_vm9 = vmmov %vm15153_vm2 }
 0x742   :  { %5988 = vst.msk [vmem:[#allocation2 + $0x6f] sm:$0x1] %vm15160_vm1, %v15140_v40  ;;  %6028 = vrot.lane.b32.xlu0 %v12551_v42, %s8781_s13  ;;  %v5751_v47 = vpop.permute.xlu1 %5750  ;;  %vm15167_vm1 = vmmov %vm15153_vm2 }
 0x743   :  { %5930 = vst.msk [vmem:[#allocation2 + $0x60] sm:$0xff] %vm15153_vm2, %v5751_v47  ;;  %vm15168_vm2 = vmmov %vm15162_vm4 }
 0x744   :  { %v5757_v58 = vpop.permute.xlu0 %5756  ;;  %6026 = vrot.lane.b32.xlu1 %v12554_v38, %s8781_s13 }
 0x745   :  { %5933 = vst.msk [vmem:[#allocation2 + $0x78] sm:$0xff] %vm15161_vm3, %v5757_v58  ;;  %vm15169_vm3 = vmmov %vm15167_vm1 }
 0x746   :  { %5989 = vst.msk [vmem:[#allocation2 + $0x7f] sm:$0x1] %vm15162_vm4, %v15140_v40  ;;  %6032 = vrot.lane.b32.xlu0 %v12565_v62, %s8781_s13  ;;  %v5755_v53 = vpop.permute.xlu1 %5754  ;;  %vm15170_vm4 = vmmov %vm15167_vm1 }
 0x747   :  { %5932 = vst.msk [vmem:[#allocation2 + $0x70] sm:$0xff] %vm15163_vm5, %v5755_v53  ;;  %vm15171_vm5 = vmmov %vm15168_vm2 }
 0x748   :  { %v5761_v51 = vpop.permute.xlu0 %5760  ;;  %6030 = vrot.lane.b32.xlu1 %v12572_v3, %s8781_s13 }
 0x749   :  { %5935 = vst.msk [vmem:[#allocation2 + $0x88] sm:$0xff] %vm15164_vm6, %v5761_v51  ;;  %vm15172_vm6 = vmmov %vm15167_vm1 }
 0x74a   :  { %5990 = vst.msk [vmem:[#allocation2 + $0x8f] sm:$0x1] %vm15165_vm8, %v15140_v40  ;;  %6036 = vrot.lane.b32.xlu0 %v12579_v7, %s8781_s13  ;;  %v5759_v34 = vpop.permute.xlu1 %5758  ;;  %vm15173_vm8 = vmmov %vm15167_vm1 }
 0x74b   :  { %5934 = vst.msk [vmem:[#allocation2 + $0x80] sm:$0xff] %vm15166_vm9, %v5759_v34  ;;  %vm15174_vm9 = vmmov %vm15168_vm2 }
 0x74c   :  { %v5765_v9 = vpop.permute.xlu0 %5764  ;;  %6034 = vrot.lane.b32.xlu1 %v12586_v10, %s8781_s13 }
 0x74d   :  { %5937 = vst.msk [vmem:[#allocation2 + $0x98] sm:$0xff] %vm15167_vm1, %v5765_v9 }
 0x74e   :  { %5991 = vst.msk [vmem:[#allocation2 + $0x9f] sm:$0x1] %vm15168_vm2, %v15140_v40  ;;  %6040 = vrot.lane.b32.xlu0 %v12593_v14, %s8781_s13  ;;  %v5763_v47 = vpop.permute.xlu1 %5762  ;;  %vm15175_vm2 = vmmov %vm15167_vm1 }
 0x74f   :  { %5936 = vst.msk [vmem:[#allocation2 + $0x90] sm:$0xff] %vm15169_vm3, %v5763_v47  ;;  %vm15176_vm3 = vmmov %vm15171_vm5 }
 0x750   :  { %v5769_v58 = vpop.permute.xlu0 %5768  ;;  %6038 = vrot.lane.b32.xlu1 %v12600_v24, %s8781_s13 }
 0x751   :  { %5939 = vst.msk [vmem:[#allocation2 + $0xa8] sm:$0xff] %vm15170_vm4, %v5769_v58  ;;  %vm15177_vm4 = vmmov %vm15167_vm1 }
 0x752   :  { %5992 = vst.msk [vmem:[#allocation2 + $0xaf] sm:$0x1] %vm15171_vm5, %v15140_v40  ;;  %6044 = vrot.lane.b32.xlu0 %v12607_v19, %s8781_s13  ;;  %v5767_v53 = vpop.permute.xlu1 %5766  ;;  %vm15178_vm5 = vmmov %vm15167_vm1 }
 0x753   :  { %5938 = vst.msk [vmem:[#allocation2 + $0xa0] sm:$0xff] %vm15172_vm6, %v5767_v53  ;;  %vm15179_vm6 = vmmov %vm15176_vm3 }
 0x754   :  { %v5773_v51 = vpop.permute.xlu0 %5772  ;;  %6042 = vrot.lane.b32.xlu1 %v12614_v23, %s8781_s13 }
 0x755   :  { %5941 = vst.msk [vmem:[#allocation2 + $0xb8] sm:$0xff] %vm15173_vm8, %v5773_v51  ;;  %vm15180_vm8 = vmmov %vm15167_vm1 }
 0x756   :  { %5993 = vst.msk [vmem:[#allocation2 + $0xbf] sm:$0x1] %vm15174_vm9, %v15140_v40  ;;  %6048 = vrot.lane.b32.xlu0 %v12621_v48, %s8781_s13  ;;  %v5771_v34 = vpop.permute.xlu1 %5770  ;;  %vm15181_vm9 = vmmov %vm15167_vm1 }
 0x757   :  { %5940 = vst.msk [vmem:[#allocation2 + $0xb0] sm:$0xff] %vm15167_vm1, %v5771_v34  ;;  %vm15182_vm1 = vmmov %vm15176_vm3 }
 0x758   :  { %v5777_v9 = vpop.permute.xlu0 %5776  ;;  %6046 = vrot.lane.b32.xlu1 %v12628_v8, %s8781_s13 }
 0x759   :  { %5943 = vst.msk [vmem:[#allocation2 + $0xc8] sm:$0xff] %vm15175_vm2, %v5777_v9 }
 0x75a   :  { %5994 = vst.msk [vmem:[#allocation2 + $0xcf] sm:$0x1] %vm15176_vm3, %v15140_v40  ;;  %6052 = vrot.lane.b32.xlu0 %v12635_v35, %s8781_s13  ;;  %v5775_v47 = vpop.permute.xlu1 %5774  ;;  %vm15184_vm3 = vmmov %vm15175_vm2 }
 0x75b   :  { %5942 = vst.msk [vmem:[#allocation2 + $0xc0] sm:$0xff] %vm15177_vm4, %v5775_v47  ;;  %v15183_v47 = vld [vmem:[#allocation20_spill] sm:$0xff]  ;;  %vm15185_vm4 = vmmov %vm15182_vm1 }
 0x75c   :  { %v5781_v58 = vpop.permute.xlu0 %5780  ;;  %6050 = vrot.lane.b32.xlu1 %v12642_v56, %s8781_s13 }
 0x75d   :  { %5945 = vst.msk [vmem:[#allocation2 + $0xd8] sm:$0xff] %vm15178_vm5, %v5781_v58  ;;  %vm15186_vm5 = vmmov %vm15175_vm2 }
 0x75e   :  { %5995 = vst.msk [vmem:[#allocation2 + $0xdf] sm:$0x1] %vm15179_vm6, %v15140_v40  ;;  %6056 = vrot.lane.b32.xlu0 %v12649_v1, %s8781_s13  ;;  %v5779_v53 = vpop.permute.xlu1 %5778  ;;  %vm15188_vm6 = vmmov %vm15175_vm2 }
 0x75f   :  { %5944 = vst.msk [vmem:[#allocation2 + $0xd0] sm:$0xff] %vm15180_vm8, %v5779_v53  ;;  %vm15189_vm8 = vmmov %vm15182_vm1 }
 0x760   :  { %v5785_v51 = vpop.permute.xlu0 %5784  ;;  %6054 = vrot.lane.b32.xlu1 %v12656_v37, %s8781_s13 }
 0x761   :  { %5947 = vst.msk [vmem:[#allocation2 + $0xe8] sm:$0xff] %vm15181_vm9, %v5785_v51  ;;  %v15187_v51 = vld [vmem:[#allocation22_spill] sm:$0xff]  ;;  %vm15190_vm9 = vmmov %vm15175_vm2 }
 0x762   :  { %5996 = vst.msk [vmem:[#allocation2 + $0xef] sm:$0x1] %vm15182_vm1, %v15140_v40  ;;  %6060 = vrot.lane.b32.xlu0 %v12663_v17, %s8781_s13  ;;  %v5783_v34 = vpop.permute.xlu1 %5782  ;;  %vm15191_vm1 = vmmov %vm15175_vm2 }
 0x763   :  { %5946 = vst.msk [vmem:[#allocation2 + $0xe0] sm:$0xff] %vm15175_vm2, %v5783_v34  ;;  %vm15192_vm2 = vmmov %vm15185_vm4 }
 0x764   :  { %v5789_v9 = vpop.permute.xlu0 %5788  ;;  %6058 = vrot.lane.b32.xlu1 %v15183_v47, %s8781_s13 }
 0x765   :  { %5949 = vst.msk [vmem:[#allocation2 + $0xf8] sm:$0xff] %vm15184_vm3, %v5789_v9  ;;  %vm15193_vm3 = vmmov %vm15191_vm1 }
 0x766   :  { %5997 = vst.msk [vmem:[#allocation2 + $0xff] sm:$0x1] %vm15185_vm4, %v15140_v40  ;;  %6064 = vrot.lane.b32.xlu0 %v15119_v57, %s8781_s13  ;;  %v5787_v58 = vpop.permute.xlu1 %5786  ;;  %vm15194_vm4 = vmmov %vm15191_vm1 }
 0x767   :  { %5948 = vst.msk [vmem:[#allocation2 + $0xf0] sm:$0xff] %vm15186_vm5, %v5787_v58  ;;  %vm15195_vm5 = vmmov %vm15192_vm2 }
 0x768   :  { %v5793_v53 = vpop.permute.xlu0 %5792  ;;  %6062 = vrot.lane.b32.xlu1 %v15187_v51, %s8781_s13 }
 0x769   :  { %5951 = vst.msk [vmem:[#allocation2 + $0x108] sm:$0xff] %vm15188_vm6, %v5793_v53  ;;  %vm15196_vm6 = vmmov %vm15191_vm1 }
 0x76a   :  { %5998 = vst.msk [vmem:[#allocation2 + $0x10f] sm:$0x1] %vm15189_vm8, %v15140_v40  ;;  %6068 = vrot.lane.b32.xlu0 %v15122_v0, %s8781_s13  ;;  %v5791_v34 = vpop.permute.xlu1 %5790  ;;  %vm15197_vm8 = vmmov %vm15191_vm1 }
 0x76b   :  { %5950 = vst.msk [vmem:[#allocation2 + $0x100] sm:$0xff] %vm15190_vm9, %v5791_v34  ;;  %vm15198_vm9 = vmmov %vm15192_vm2 }
 0x76c   :  { %v5797_v9 = vpop.permute.xlu0 %5796  ;;  %6066 = vrot.lane.b32.xlu1 %v15124_v46, %s8781_s13 }
 0x76d   :  { %5953 = vst.msk [vmem:[#allocation2 + $0x118] sm:$0xff] %vm15191_vm1, %v5797_v9 }
 0x76e   :  { %5999 = vst.msk [vmem:[#allocation2 + $0x11f] sm:$0x1] %vm15192_vm2, %v15140_v40  ;;  %6072 = vrot.lane.b32.xlu0 %v12705_v41, %s8781_s13  ;;  %v5795_v58 = vpop.permute.xlu1 %5794  ;;  %vm15199_vm2 = vmmov %vm15191_vm1 }
 0x76f   :  { %5952 = vst.msk [vmem:[#allocation2 + $0x110] sm:$0xff] %vm15193_vm3, %v5795_v58  ;;  %vm15200_vm3 = vmmov %vm15195_vm5 }
 0x770   :  { %v5801_v53 = vpop.permute.xlu0 %5800  ;;  %6070 = vrot.lane.b32.xlu1 %v12712_v5, %s8781_s13 }
 0x771   :  { %5955 = vst.msk [vmem:[#allocation2 + $0x128] sm:$0xff] %vm15194_vm4, %v5801_v53  ;;  %vm15201_vm4 = vmmov %vm15191_vm1 }
 0x772   :  { %6000 = vst.msk [vmem:[#allocation2 + $0x12f] sm:$0x1] %vm15195_vm5, %v15140_v40  ;;  %6076 = vrot.lane.b32.xlu0 %v13310_v16, %s8781_s13  ;;  %v5799_v34 = vpop.permute.xlu1 %5798  ;;  %vm15202_vm5 = vmmov %vm15191_vm1 }
 0x773   :  { %5954 = vst.msk [vmem:[#allocation2 + $0x120] sm:$0xff] %vm15196_vm6, %v5799_v34  ;;  %vm15203_vm6 = vmmov %vm15200_vm3 }
 0x774   :  { %v5805_v9 = vpop.permute.xlu0 %5804  ;;  %6074 = vrot.lane.b32.xlu1 %v13319_v20, %s8781_s13 }
 0x775   :  { %5957 = vst.msk [vmem:[#allocation2 + $0x138] sm:$0xff] %vm15197_vm8, %v5805_v9  ;;  %vm15204_vm8 = vmmov %vm15191_vm1 }
 0x776   :  { %6001 = vst.msk [vmem:[#allocation2 + $0x13f] sm:$0x1] %vm15198_vm9, %v15140_v40  ;;  %6080 = vrot.lane.b32.xlu0 %v12727_v4, %s8781_s13  ;;  %v5803_v58 = vpop.permute.xlu1 %5802  ;;  %vm15205_vm9 = vmmov %vm15191_vm1 }
 0x777   :  { %5956 = vst.msk [vmem:[#allocation2 + $0x130] sm:$0xff] %vm15191_vm1, %v5803_v58  ;;  %vm15206_vm1 = vmmov %vm15200_vm3 }
 0x778   :  { %v5809_v53 = vpop.permute.xlu0 %5808  ;;  %6078 = vrot.lane.b32.xlu1 %v12734_v49, %s8781_s13 }
 0x779   :  { %5959 = vst.msk [vmem:[#allocation2 + $0x148] sm:$0xff] %vm15199_vm2, %v5809_v53 }
 0x77a   :  { %6002 = vst.msk [vmem:[#allocation2 + $0x14f] sm:$0x1] %vm15200_vm3, %v15140_v40  ;;  %6084 = vrot.lane.b32.xlu0 %v12741_v50, %s8781_s13  ;;  %v5807_v34 = vpop.permute.xlu1 %5806  ;;  %vm15207_vm3 = vmmov %vm15199_vm2 }
 0x77b   :  { %5958 = vst.msk [vmem:[#allocation2 + $0x140] sm:$0xff] %vm15201_vm4, %v5807_v34  ;;  %vm15208_vm4 = vmmov %vm15206_vm1 }
 0x77c   :  { %v5813_v9 = vpop.permute.xlu0 %5812  ;;  %6082 = vrot.lane.b32.xlu1 %v12748_v18, %s8781_s13 }
 0x77d   :  { %5961 = vst.msk [vmem:[#allocation2 + $0x158] sm:$0xff] %vm15202_vm5, %v5813_v9  ;;  %vm15209_vm5 = vmmov %vm15199_vm2 }
 0x77e   :  { %6003 = vst.msk [vmem:[#allocation2 + $0x15f] sm:$0x1] %vm15203_vm6, %v15140_v40  ;;  %6088 = vrot.lane.b32.xlu0 %v12755_v21, %s8781_s13  ;;  %v5811_v4 = vpop.permute.xlu1 %5810  ;;  %vm15210_vm6 = vmmov %vm15199_vm2 }
 0x77f   :  { %5960 = vst.msk [vmem:[#allocation2 + $0x150] sm:$0xff] %vm15204_vm8, %v5811_v4  ;;  %vm15211_vm8 = vmmov %vm15206_vm1 }
 0x780   :  { %v5817_v49 = vpop.permute.xlu0 %5816  ;;  %6086 = vrot.lane.b32.xlu1 %v12762_v29, %s8781_s13 }
 0x781   :  { %5963 = vst.msk [vmem:[#allocation2 + $0x168] sm:$0xff] %vm15205_vm9, %v5817_v49  ;;  %vm15212_vm9 = vmmov %vm15199_vm2 }
 0x782   :  { %6004 = vst.msk [vmem:[#allocation2 + $0x16f] sm:$0x1] %vm15206_vm1, %v15140_v40  ;;  %6092 = vrot.lane.b32.xlu0 %v12769_v54, %s8781_s13  ;;  %v5815_v58 = vpop.permute.xlu1 %5814  ;;  %vm15213_vm1 = vmmov %vm15199_vm2 }
 0x783   :  { %5962 = vst.msk [vmem:[#allocation2 + $0x160] sm:$0xff] %vm15199_vm2, %v5815_v58  ;;  %vm15214_vm2 = vmmov %vm15208_vm4 }
 0x784   :  { %v5821_v53 = vpop.permute.xlu0 %5820  ;;  %6090 = vrot.lane.b32.xlu1 %v12776_v32, %s8781_s13 }
 0x785   :  { %5965 = vst.msk [vmem:[#allocation2 + $0x178] sm:$0xff] %vm15207_vm3, %v5821_v53  ;;  %vm15215_vm3 = vmmov %vm15213_vm1 }
 0x786   :  { %6005 = vst.msk [vmem:[#allocation2 + $0x17f] sm:$0x1] %vm15208_vm4, %v15140_v40  ;;  %6096 = vrot.lane.b32.xlu0 %v12783_v28, %s8781_s13  ;;  %v5819_v34 = vpop.permute.xlu1 %5818  ;;  %vm15216_vm4 = vmmov %vm15213_vm1 }
 0x787   :  { %5964 = vst.msk [vmem:[#allocation2 + $0x170] sm:$0xff] %vm15209_vm5, %v5819_v34  ;;  %vm15217_vm5 = vmmov %vm15214_vm2 }
 0x788   :  { %v5825_v9 = vpop.permute.xlu0 %5824  ;;  %6094 = vrot.lane.b32.xlu1 %v12790_v27, %s8781_s13 }
 0x789   :  { %5967 = vst.msk [vmem:[#allocation2 + $0x188] sm:$0xff] %vm15210_vm6, %v5825_v9  ;;  %vm15218_vm6 = vmmov %vm15213_vm1 }
 0x78a   :  { %6006 = vst.msk [vmem:[#allocation2 + $0x18f] sm:$0x1] %vm15211_vm8, %v15140_v40  ;;  %6100 = vrot.lane.b32.xlu0 %v12797_v36, %s8781_s13  ;;  %v5823_v4 = vpop.permute.xlu1 %5822  ;;  %vm15219_vm8 = vmmov %vm15213_vm1 }
 0x78b   :  { %5966 = vst.msk [vmem:[#allocation2 + $0x180] sm:$0xff] %vm15212_vm9, %v5823_v4  ;;  %v7136_v4 = vld [vmem:[%s14996_s3 + $0x20] sm:$0xf]  ;;  %vm15220_vm9 = vmmov %vm15214_vm2 }
 0x78c   :  { %v5829_v49 = vpop.permute.xlu0 %5828  ;;  %6098 = vrot.lane.b32.xlu1 %v12804_v31, %s8781_s13  ;;  %8404 = vmatprep.subr.msk.mxu1 %vm3591_vm13, %v7136_v4 }
 0x78d   :  { %5969 = vst.msk [vmem:[#allocation2 + $0x198] sm:$0xff] %vm15213_vm1, %v5829_v49  ;;  %8405 = vmatpush3.msk.msra.mxu1 %vm3591_vm13, %v7136_v4  ;;  %vm15223_vm13 = vmmov %vm15213_vm1  ;;  %v7133_v4 = vld [vmem:[%s14996_s3 + $0x8] sm:$0xff] }
 0x78e   :  { %6007 = vst.msk [vmem:[#allocation2 + $0x19f] sm:$0x1] %vm15214_vm2, %v15140_v40  ;;  %6104 = vrot.lane.b32.xlu0 %v12811_v12, %s8781_s13  ;;  %v5827_v58 = vpop.permute.xlu1 %5826  ;;  %vm15221_vm2 = vmmov %vm15213_vm1 }
 0x78f   :  { %5968 = vst.msk [vmem:[#allocation2 + $0x190] sm:$0xff] %vm15215_vm3, %v5827_v58  ;;  %v7135_v58 = vld [vmem:[%s14996_s3 + $0x18] sm:$0xff]  ;;  %vm15222_vm3 = vmmov %vm15217_vm5 }
 0x790   :  { %v5833_v53 = vpop.permute.xlu0 %5832  ;;  %6102 = vrot.lane.b32.xlu1 %v12818_v33, %s8781_s13  ;;  %8406 = vmatprep.subr.mxu1 %v7135_v58 }
 0x791   :  { %5971 = vst.msk [vmem:[#allocation2 + $0x1a8] sm:$0xff] %vm15216_vm4, %v5833_v53  ;;  %8407 = vmatpush3.msra.mxu1 %v7135_v58  ;;  %vm15224_vm4 = vmmov %vm15213_vm1  ;;  %v7132_v58 = vld [vmem:[%s14996_s3] sm:$0xff] }
 0x792   :  { %6008 = vst.msk [vmem:[#allocation2 + $0x1af] sm:$0x1] %vm15217_vm5, %v15140_v40  ;;  %6108 = vrot.lane.b32.xlu0 %v12825_v22, %s8781_s13  ;;  %v5831_v34 = vpop.permute.xlu1 %5830  ;;  %vm15225_vm5 = vmmov %vm15222_vm3 }
 0x793   :  { %5970 = vst.msk [vmem:[#allocation2 + $0x1a0] sm:$0xff] %vm15218_vm6, %v5831_v34  ;;  %v7134_v34 = vld [vmem:[%s14996_s3 + $0x10] sm:$0xff]  ;;  %vm15226_vm6 = vmmov %vm15213_vm1 }
 0x794   :  { %v5837_v9 = vpop.permute.xlu0 %5836  ;;  %6106 = vrot.lane.b32.xlu1 %v12832_v15, %s8781_s13  ;;  %8408 = vmatprep.subr.mxu1 %v7134_v34 }
 0x795   :  { %5973 = vst.msk [vmem:[#allocation2 + $0x1b8] sm:$0xff] %vm15219_vm8, %v5837_v9  ;;  %8409 = vmatpush3.msra.mxu1 %v7134_v34  ;;  %vm15227_vm8 = vmmov %vm15213_vm1 }
 0x796   :  { %6009 = vst.msk [vmem:[#allocation2 + $0x1bf] sm:$0x1] %vm15220_vm9, %v15140_v40  ;;  %6112 = vrot.lane.b32.xlu0 %v12839_v52, %s8781_s13  ;;  %v5835_v49 = vpop.permute.xlu1 %5834  ;;  %8410 = vmatprep.subr.mxu1 %v7133_v4  ;;  %vm15228_vm9 = vmmov %vm15222_vm3 }
 0x797   :  { %5972 = vst.msk [vmem:[#allocation2 + $0x1b0] sm:$0xff] %vm15213_vm1, %v5835_v49  ;;  %8411 = vmatpush3.msra.mxu1 %v7133_v4 }
 0x798   :  { %v5841_v53 = vpop.permute.xlu0 %5840  ;;  %6110 = vrot.lane.b32.xlu1 %v12846_v26, %s8781_s13  ;;  %8412 = vmatprep.subr.mxu1 %v7132_v58 }
 0x799   :  { %5975 = vst.msk [vmem:[#allocation2 + $0x1c8] sm:$0xff] %vm15221_vm2, %v5841_v53  ;;  %8413 = vmatpush3.msra.mxu1 %v7132_v58  ;;  %vm15229_vm2 = vmmov %vm15213_vm1 }
 0x79a   :  { %6010 = vst.msk [vmem:[#allocation2 + $0x1cf] sm:$0x1] %vm15222_vm3, %v15140_v40  ;;  %6309 = vrot.lane.b32.xlu0 %v12527_v43, %s8782_s16  ;;  %v5839_v9 = vpop.permute.xlu1 %5838 }
 0x79b   :  { %5974 = vst.msk [vmem:[#allocation2 + $0x1c0] sm:$0xff] %vm15223_vm13, %v5839_v9  ;;  %vm15230_vm13 = vmmov %vm15213_vm1 }
 0x79c   :  { %v5845_v49 = vpop.permute.xlu0 %5844  ;;  %6307 = vrot.lane.b32.xlu1 %v12530_v60, %s8782_s16 }
 0x79d   :  { %5977 = vst.msk [vmem:[#allocation2 + $0x1d8] sm:$0xff] %vm15224_vm4, %v5845_v49  ;;  %vm6206_vm4 = vcmask 195745  }
 0x79e   :  { %6011 = vst.msk [vmem:[#allocation2 + $0x1df] sm:$0x1] %vm15225_vm5, %v15140_v40  ;;  %6553 = vrot.lane.b32.xlu0 %v12527_v43, %s8783_s14  ;;  %v5843_v53 = vpop.permute.xlu1 %5842  ;;  %vm15231_vm5 = vcmask 286976  }
 0x79f   :  { %5976 = vst.msk [vmem:[#allocation2 + $0x1d0] sm:$0xff] %vm15226_vm6, %v5843_v53  ;;  %vm15232_vm6 = vcmask 227520  }
 0x7a0   :  { %v5849_v34 = vpop.permute.xlu0 %5848  ;;  %6551 = vrot.lane.b32.xlu1 %v12530_v60, %s8783_s14 }
 0x7a1   :  { %5979 = vst.msk [vmem:[#allocation2 + $0x1e8] sm:$0xff] %vm15227_vm8, %v5849_v34  ;;  %vm15233_vm8 = vmmov %vm15231_vm5 }
 0x7a2   :  { %6012 = vst.msk [vmem:[#allocation2 + $0x1ef] sm:$0x1] %vm15228_vm9, %v15140_v40  ;;  %6829 = vrot.lane.b32.xlu0 %v12527_v43, %s8784_s1  ;;  %v5847_v9 = vpop.permute.xlu1 %5846  ;;  %vm7007_vm9 = vcmask 294145  }
 0x7a3   :  { %5978 = vst.msk [vmem:[#allocation2 + $0x1e0] sm:$0xff] %vm15213_vm1, %v5847_v9  ;;  %vm15234_vm1 = vmmov %vm15232_vm6 }
 0x7a4   :  { %v5853_v4 = vpop.permute.xlu0 %5852  ;;  %6827 = vrot.lane.b32.xlu1 %v12530_v60, %s8784_s1 }
 0x7a5   :  { %5981 = vst.msk [vmem:[#allocation2 + $0x1f8] sm:$0xff] %vm15229_vm2, %v5853_v4  ;;  %vm15235_vm2 = vmmov %vm15231_vm5 }
 0x7a6   :  { %6013 = vst.msk [vmem:[#allocation2 + $0x1ff] sm:$0x1] %vm15222_vm3, %v15140_v40  ;;  %6313 = vrot.lane.b32.xlu0 %v12539_v45, %s8782_s16  ;;  %v5851_v49 = vpop.permute.xlu1 %5850  ;;  %vm15236_vm3 = vmmov %vm15234_vm1 }
 0x7a7   :  { %5980 = vst.msk [vmem:[#allocation2 + $0x1f0] sm:$0xff] %vm15230_vm13, %v5851_v49  ;;  %vm15237_vm13 = vmmov %vm15235_vm2 }
 0x7a8   :  { %v6017_v58 = vpop.permute.xlu0 %6016  ;;  %6311 = vrot.lane.b32.xlu1 %v12542_v63, %s8782_s16 }
 0x7a9   :  { %6208 = vst.msk [vmem:[#allocation2 + $0x7] sm:$0xff] %vm2098_vm12, %v6017_v58 }
 0x7aa   :  { %6557 = vrot.lane.b32.xlu0 %v12539_v45, %s8783_s14  ;;  %v6015_v43 = vpop.permute.xlu1 %6014 }
 0x7ab   :  { %6207 = vst.msk [vmem:[#allocation2 - $0x1] sm:$0xfe] %vm6206_vm4, %v6015_v43 }
 0x7ac   :  { %6275 = vst.msk [vmem:[#allocation2] sm:$0x1] %vm2170_vm14, %v15140_v40  ;;  %v6021_v60 = vpop.permute.xlu0 %6020  ;;  %6555 = vrot.lane.b32.xlu1 %v12542_v63, %s8783_s14 }
 0x7ad   :  { %6210 = vst.msk [vmem:[#allocation2 + $0x17] sm:$0xff] %vm2098_vm12, %v6021_v60 }
 0x7ae   :  { %6833 = vrot.lane.b32.xlu0 %v12539_v45, %s8784_s1  ;;  %v6019_v53 = vpop.permute.xlu1 %6018 }
 0x7af   :  { %6209 = vst.msk [vmem:[#allocation2 + $0xf] sm:$0xfe] %vm6206_vm4, %v6019_v53 }
 0x7b0   :  { %6276 = vst.msk [vmem:[#allocation2 + $0x10] sm:$0x1] %vm2170_vm14, %v15140_v40  ;;  %v6025_v34 = vpop.permute.xlu0 %6024  ;;  %6831 = vrot.lane.b32.xlu1 %v12542_v63, %s8784_s1 }
 0x7b1   :  { %6212 = vst.msk [vmem:[#allocation2 + $0x27] sm:$0xff] %vm2098_vm12, %v6025_v34 }
 0x7b2   :  { %6317 = vrot.lane.b32.xlu0 %v12551_v42, %s8782_s16  ;;  %v6023_v9 = vpop.permute.xlu1 %6022 }
 0x7b3   :  { %6211 = vst.msk [vmem:[#allocation2 + $0x1f] sm:$0xfe] %vm6206_vm4, %v6023_v9 }
 0x7b4   :  { %6277 = vst.msk [vmem:[#allocation2 + $0x20] sm:$0x1] %vm2170_vm14, %v15140_v40  ;;  %v6029_v45 = vpop.permute.xlu0 %6028  ;;  %6315 = vrot.lane.b32.xlu1 %v12554_v38, %s8782_s16 }
 0x7b5   :  { %6214 = vst.msk [vmem:[#allocation2 + $0x37] sm:$0xff] %vm2098_vm12, %v6029_v45 }
 0x7b6   :  { %6561 = vrot.lane.b32.xlu0 %v12551_v42, %s8783_s14  ;;  %v6027_v63 = vpop.permute.xlu1 %6026 }
 0x7b7   :  { %6213 = vst.msk [vmem:[#allocation2 + $0x2f] sm:$0xfe] %vm6206_vm4, %v6027_v63 }
 0x7b8   :  { %6278 = vst.msk [vmem:[#allocation2 + $0x30] sm:$0x1] %vm2170_vm14, %v15140_v40  ;;  %v6033_v4 = vpop.permute.xlu0 %6032  ;;  %6559 = vrot.lane.b32.xlu1 %v12554_v38, %s8783_s14 }
 0x7b9   :  { %6216 = vst.msk [vmem:[#allocation2 + $0x47] sm:$0xff] %vm2098_vm12, %v6033_v4 }
 0x7ba   :  { %6837 = vrot.lane.b32.xlu0 %v12551_v42, %s8784_s1  ;;  %v6031_v49 = vpop.permute.xlu1 %6030 }
 0x7bb   :  { %6215 = vst.msk [vmem:[#allocation2 + $0x3f] sm:$0xfe] %vm6206_vm4, %v6031_v49 }
 0x7bc   :  { %6279 = vst.msk [vmem:[#allocation2 + $0x40] sm:$0x1] %vm2170_vm14, %v15140_v40  ;;  %v6037_v58 = vpop.permute.xlu0 %6036  ;;  %6835 = vrot.lane.b32.xlu1 %v12554_v38, %s8784_s1 }
 0x7bd   :  { %6218 = vst.msk [vmem:[#allocation2 + $0x57] sm:$0xff] %vm2098_vm12, %v6037_v58 }
 0x7be   :  { %6321 = vrot.lane.b32.xlu0 %v12565_v62, %s8782_s16  ;;  %v6035_v43 = vpop.permute.xlu1 %6034 }
 0x7bf   :  { %6217 = vst.msk [vmem:[#allocation2 + $0x4f] sm:$0xfe] %vm6206_vm4, %v6035_v43 }
 0x7c0   :  { %6280 = vst.msk [vmem:[#allocation2 + $0x50] sm:$0x1] %vm2170_vm14, %v15140_v40  ;;  %v6041_v42 = vpop.permute.xlu0 %6040  ;;  %6319 = vrot.lane.b32.xlu1 %v12572_v3, %s8782_s16 }
 0x7c1   :  { %6220 = vst.msk [vmem:[#allocation2 + $0x67] sm:$0xff] %vm2098_vm12, %v6041_v42 }
 0x7c2   :  { %6565 = vrot.lane.b32.xlu0 %v12565_v62, %s8783_s14  ;;  %v6039_v38 = vpop.permute.xlu1 %6038 }
 0x7c3   :  { %6219 = vst.msk [vmem:[#allocation2 + $0x5f] sm:$0xfe] %vm6206_vm4, %v6039_v38 }
 0x7c4   :  { %6281 = vst.msk [vmem:[#allocation2 + $0x60] sm:$0x1] %vm2170_vm14, %v15140_v40  ;;  %v6045_v60 = vpop.permute.xlu0 %6044  ;;  %6563 = vrot.lane.b32.xlu1 %v12572_v3, %s8783_s14 }
 0x7c5   :  { %6222 = vst.msk [vmem:[#allocation2 + $0x77] sm:$0xff] %vm2098_vm12, %v6045_v60 }
 0x7c6   :  { %6841 = vrot.lane.b32.xlu0 %v12565_v62, %s8784_s1  ;;  %v6043_v53 = vpop.permute.xlu1 %6042 }
 0x7c7   :  { %6221 = vst.msk [vmem:[#allocation2 + $0x6f] sm:$0xfe] %vm6206_vm4, %v6043_v53 }
 0x7c8   :  { %6282 = vst.msk [vmem:[#allocation2 + $0x70] sm:$0x1] %vm2170_vm14, %v15140_v40  ;;  %v6049_v34 = vpop.permute.xlu0 %6048  ;;  %6839 = vrot.lane.b32.xlu1 %v12572_v3, %s8784_s1 }
 0x7c9   :  { %6224 = vst.msk [vmem:[#allocation2 + $0x87] sm:$0xff] %vm2098_vm12, %v6049_v34 }
 0x7ca   :  { %6325 = vrot.lane.b32.xlu0 %v12579_v7, %s8782_s16  ;;  %v6047_v9 = vpop.permute.xlu1 %6046 }
 0x7cb   :  { %6223 = vst.msk [vmem:[#allocation2 + $0x7f] sm:$0xfe] %vm6206_vm4, %v6047_v9 }
 0x7cc   :  { %6283 = vst.msk [vmem:[#allocation2 + $0x80] sm:$0x1] %vm2170_vm14, %v15140_v40  ;;  %v6053_v62 = vpop.permute.xlu0 %6052  ;;  %6323 = vrot.lane.b32.xlu1 %v12586_v10, %s8782_s16 }
 0x7cd   :  { %6226 = vst.msk [vmem:[#allocation2 + $0x97] sm:$0xff] %vm2098_vm12, %v6053_v62 }
 0x7ce   :  { %6569 = vrot.lane.b32.xlu0 %v12579_v7, %s8783_s14  ;;  %v6051_v3 = vpop.permute.xlu1 %6050 }
 0x7cf   :  { %6225 = vst.msk [vmem:[#allocation2 + $0x8f] sm:$0xfe] %vm6206_vm4, %v6051_v3 }
 0x7d0   :  { %6284 = vst.msk [vmem:[#allocation2 + $0x90] sm:$0x1] %vm2170_vm14, %v15140_v40  ;;  %v6057_v45 = vpop.permute.xlu0 %6056  ;;  %6567 = vrot.lane.b32.xlu1 %v12586_v10, %s8783_s14 }
 0x7d1   :  { %6228 = vst.msk [vmem:[#allocation2 + $0xa7] sm:$0xff] %vm2098_vm12, %v6057_v45 }
 0x7d2   :  { %6845 = vrot.lane.b32.xlu0 %v12579_v7, %s8784_s1  ;;  %v6055_v63 = vpop.permute.xlu1 %6054 }
 0x7d3   :  { %6227 = vst.msk [vmem:[#allocation2 + $0x9f] sm:$0xfe] %vm6206_vm4, %v6055_v63 }
 0x7d4   :  { %6285 = vst.msk [vmem:[#allocation2 + $0xa0] sm:$0x1] %vm2170_vm14, %v15140_v40  ;;  %v6061_v4 = vpop.permute.xlu0 %6060  ;;  %6843 = vrot.lane.b32.xlu1 %v12586_v10, %s8784_s1 }
 0x7d5   :  { %6230 = vst.msk [vmem:[#allocation2 + $0xb7] sm:$0xff] %vm2098_vm12, %v6061_v4 }
 0x7d6   :  { %6329 = vrot.lane.b32.xlu0 %v12593_v14, %s8782_s16  ;;  %v6059_v49 = vpop.permute.xlu1 %6058 }
 0x7d7   :  { %6229 = vst.msk [vmem:[#allocation2 + $0xaf] sm:$0xfe] %vm6206_vm4, %v6059_v49 }
 0x7d8   :  { %6286 = vst.msk [vmem:[#allocation2 + $0xb0] sm:$0x1] %vm2170_vm14, %v15140_v40  ;;  %v6065_v7 = vpop.permute.xlu0 %6064  ;;  %6327 = vrot.lane.b32.xlu1 %v12600_v24, %s8782_s16 }
 0x7d9   :  { %6232 = vst.msk [vmem:[#allocation2 + $0xc7] sm:$0xff] %vm2098_vm12, %v6065_v7 }
 0x7da   :  { %6573 = vrot.lane.b32.xlu0 %v12593_v14, %s8783_s14  ;;  %v6063_v10 = vpop.permute.xlu1 %6062 }
 0x7db   :  { %6231 = vst.msk [vmem:[#allocation2 + $0xbf] sm:$0xfe] %vm6206_vm4, %v6063_v10 }
 0x7dc   :  { %6287 = vst.msk [vmem:[#allocation2 + $0xc0] sm:$0x1] %vm2170_vm14, %v15140_v40  ;;  %v6069_v58 = vpop.permute.xlu0 %6068  ;;  %6571 = vrot.lane.b32.xlu1 %v12600_v24, %s8783_s14 }
 0x7dd   :  { %6234 = vst.msk [vmem:[#allocation2 + $0xd7] sm:$0xff] %vm2098_vm12, %v6069_v58 }
 0x7de   :  { %6849 = vrot.lane.b32.xlu0 %v12593_v14, %s8784_s1  ;;  %v6067_v43 = vpop.permute.xlu1 %6066 }
 0x7df   :  { %6233 = vst.msk [vmem:[#allocation2 + $0xcf] sm:$0xfe] %vm6206_vm4, %v6067_v43 }
 0x7e0   :  { %6288 = vst.msk [vmem:[#allocation2 + $0xd0] sm:$0x1] %vm2170_vm14, %v15140_v40  ;;  %v6073_v42 = vpop.permute.xlu0 %6072  ;;  %6847 = vrot.lane.b32.xlu1 %v12600_v24, %s8784_s1 }
 0x7e1   :  { %6236 = vst.msk [vmem:[#allocation2 + $0xe7] sm:$0xff] %vm2098_vm12, %v6073_v42 }
 0x7e2   :  { %6333 = vrot.lane.b32.xlu0 %v12607_v19, %s8782_s16  ;;  %v6071_v38 = vpop.permute.xlu1 %6070 }
 0x7e3   :  { %6235 = vst.msk [vmem:[#allocation2 + $0xdf] sm:$0xfe] %vm6206_vm4, %v6071_v38 }
 0x7e4   :  { %6289 = vst.msk [vmem:[#allocation2 + $0xe0] sm:$0x1] %vm2170_vm14, %v15140_v40  ;;  %v6077_v14 = vpop.permute.xlu0 %6076  ;;  %6331 = vrot.lane.b32.xlu1 %v12614_v23, %s8782_s16 }
 0x7e5   :  { %6238 = vst.msk [vmem:[#allocation2 + $0xf7] sm:$0xff] %vm2098_vm12, %v6077_v14 }
 0x7e6   :  { %6272 = vst.msk [vmem:[#allocation2 + $0xf8] sm:$0xff] %vm2165_vm15, %v15140_v40  ;;  %6577 = vrot.lane.b32.xlu0 %v12607_v19, %s8783_s14  ;;  %v6075_v24 = vpop.permute.xlu1 %6074 }
 0x7e7   :  { %6548 = vst.msk [vmem:[#allocation2 + $0xf8] sm:$0xff] %vm2565_vm7, %v15140_v40 }
 0x7e8   :  { %6237 = vst.msk [vmem:[#allocation2 + $0xef] sm:$0xfe] %vm6206_vm4, %v6075_v24  ;;  %v6081_v60 = vpop.permute.xlu0 %6080  ;;  %6575 = vrot.lane.b32.xlu1 %v12614_v23, %s8783_s14 }
 0x7e9   :  { %6792 = vst.msk [vmem:[#allocation2 + $0xf8] sm:$0xff] %vm2930_vm11, %v15140_v40 }
 0x7ea   :  { %6271 = vst.msk [vmem:[#allocation2 + $0xf0] sm:$0xff] %vm2165_vm15, %v15140_v40  ;;  %6853 = vrot.lane.b32.xlu0 %v12607_v19, %s8784_s1  ;;  %v6079_v53 = vpop.permute.xlu1 %6078 }
 0x7eb   :  { %6810 = vst.msk [vmem:[#allocation2 + $0xff] sm:$0x1] %vm15231_vm5, %v15140_v40  ;;  %vm15238_vm5 = vmmov %vm15234_vm1 }
 0x7ec   :  { %6290 = vst.msk [vmem:[#allocation2 + $0xf0] sm:$0x1] %vm2170_vm14, %v15140_v40  ;;  %v6085_v34 = vpop.permute.xlu0 %6084  ;;  %6851 = vrot.lane.b32.xlu1 %v12614_v23, %s8784_s1 }
 0x7ed   :  { %6240 = vst.msk [vmem:[#allocation2 + $0x107] sm:$0xff] %vm2098_vm12, %v6081_v60  ;;  %6242 = vst.msk [vmem:[#allocation2 + $0x117] sm:$0xff] %vm2098_vm12, %v6085_v34 }
 0x7ee   :  { %6547 = vst.msk [vmem:[#allocation2 + $0xf0] sm:$0xff] %vm2565_vm7, %v15140_v40  ;;  %6337 = vrot.lane.b32.xlu0 %v12621_v48, %s8782_s16  ;;  %v6083_v9 = vpop.permute.xlu1 %6082 }
 0x7ef   :  { %6791 = vst.msk [vmem:[#allocation2 + $0xf0] sm:$0xff] %vm2930_vm11, %v15140_v40 }
 0x7f0   :  { %6239 = vst.msk [vmem:[#allocation2 + $0xff] sm:$0xfe] %vm6206_vm4, %v6079_v53  ;;  %6241 = vst.msk [vmem:[#allocation2 + $0x10f] sm:$0xfe] %vm6206_vm4, %v6083_v9  ;;  %v6089_v19 = vpop.permute.xlu0 %6088  ;;  %6335 = vrot.lane.b32.xlu1 %v12628_v8, %s8782_s16 }
 0x7f1   :  { %6291 = vst.msk [vmem:[#allocation2 + $0x100] sm:$0x1] %vm2170_vm14, %v15140_v40  ;;  %6292 = vst.msk [vmem:[#allocation2 + $0x110] sm:$0x1] %vm2170_vm14, %v15140_v40 }
 0x7f2   :  { %6244 = vst.msk [vmem:[#allocation2 + $0x127] sm:$0xff] %vm2098_vm12, %v6089_v19  ;;  %6581 = vrot.lane.b32.xlu0 %v12621_v48, %s8783_s14  ;;  %v6087_v23 = vpop.permute.xlu1 %6086 }
 0x7f3   :  { %6243 = vst.msk [vmem:[#allocation2 + $0x11f] sm:$0xfe] %vm6206_vm4, %v6087_v23 }
 0x7f4   :  { %6293 = vst.msk [vmem:[#allocation2 + $0x120] sm:$0x1] %vm2170_vm14, %v15140_v40  ;;  %v6093_v62 = vpop.permute.xlu0 %6092  ;;  %6579 = vrot.lane.b32.xlu1 %v12628_v8, %s8783_s14 }
 0x7f5   :  { %6246 = vst.msk [vmem:[#allocation2 + $0x137] sm:$0xff] %vm2098_vm12, %v6093_v62 }
 0x7f6   :  { %6857 = vrot.lane.b32.xlu0 %v12621_v48, %s8784_s1  ;;  %v6091_v3 = vpop.permute.xlu1 %6090 }
 0x7f7   :  { %6245 = vst.msk [vmem:[#allocation2 + $0x12f] sm:$0xfe] %vm6206_vm4, %v6091_v3 }
 0x7f8   :  { %6294 = vst.msk [vmem:[#allocation2 + $0x130] sm:$0x1] %vm2170_vm14, %v15140_v40  ;;  %v6097_v45 = vpop.permute.xlu0 %6096  ;;  %6855 = vrot.lane.b32.xlu1 %v12628_v8, %s8784_s1 }
 0x7f9   :  { %6248 = vst.msk [vmem:[#allocation2 + $0x147] sm:$0xff] %vm2098_vm12, %v6097_v45 }
 0x7fa   :  { %6341 = vrot.lane.b32.xlu0 %v12635_v35, %s8782_s16  ;;  %v6095_v63 = vpop.permute.xlu1 %6094 }
 0x7fb   :  { %6247 = vst.msk [vmem:[#allocation2 + $0x13f] sm:$0xfe] %vm6206_vm4, %v6095_v63 }
 0x7fc   :  { %6295 = vst.msk [vmem:[#allocation2 + $0x140] sm:$0x1] %vm2170_vm14, %v15140_v40  ;;  %v6101_v48 = vpop.permute.xlu0 %6100  ;;  %6339 = vrot.lane.b32.xlu1 %v12642_v56, %s8782_s16 }
 0x7fd   :  { %6250 = vst.msk [vmem:[#allocation2 + $0x157] sm:$0xff] %vm2098_vm12, %v6101_v48 }
 0x7fe   :  { %6585 = vrot.lane.b32.xlu0 %v12635_v35, %s8783_s14  ;;  %v6099_v8 = vpop.permute.xlu1 %6098 }
 0x7ff   :  { %6249 = vst.msk [vmem:[#allocation2 + $0x14f] sm:$0xfe] %vm6206_vm4, %v6099_v8 }
 0x800   :  { %6296 = vst.msk [vmem:[#allocation2 + $0x150] sm:$0x1] %vm2170_vm14, %v15140_v40  ;;  %v6105_v4 = vpop.permute.xlu0 %6104  ;;  %6583 = vrot.lane.b32.xlu1 %v12642_v56, %s8783_s14 }
 0x801   :  { %6252 = vst.msk [vmem:[#allocation2 + $0x167] sm:$0xff] %vm2098_vm12, %v6105_v4 }
 0x802   :  { %6861 = vrot.lane.b32.xlu0 %v12635_v35, %s8784_s1  ;;  %v6103_v49 = vpop.permute.xlu1 %6102 }
 0x803   :  { %6251 = vst.msk [vmem:[#allocation2 + $0x15f] sm:$0xfe] %vm6206_vm4, %v6103_v49 }
 0x804   :  { %6297 = vst.msk [vmem:[#allocation2 + $0x160] sm:$0x1] %vm2170_vm14, %v15140_v40  ;;  %v6109_v7 = vpop.permute.xlu0 %6108  ;;  %6859 = vrot.lane.b32.xlu1 %v12642_v56, %s8784_s1 }
 0x805   :  { %6254 = vst.msk [vmem:[#allocation2 + $0x177] sm:$0xff] %vm2098_vm12, %v6109_v7 }
 0x806   :  { %6345 = vrot.lane.b32.xlu0 %v12649_v1, %s8782_s16  ;;  %v6107_v10 = vpop.permute.xlu1 %6106 }
 0x807   :  { %6253 = vst.msk [vmem:[#allocation2 + $0x16f] sm:$0xfe] %vm6206_vm4, %v6107_v10 }
 0x808   :  { %6298 = vst.msk [vmem:[#allocation2 + $0x170] sm:$0x1] %vm2170_vm14, %v15140_v40  ;;  %v6113_v35 = vpop.permute.xlu0 %6112  ;;  %6343 = vrot.lane.b32.xlu1 %v12656_v37, %s8782_s16 }
 0x809   :  { %6256 = vst.msk [vmem:[#allocation2 + $0x187] sm:$0xff] %vm2098_vm12, %v6113_v35 }
 0x80a   :  { %6589 = vrot.lane.b32.xlu0 %v12649_v1, %s8783_s14  ;;  %v6111_v56 = vpop.permute.xlu1 %6110 }
 0x80b   :  { %6255 = vst.msk [vmem:[#allocation2 + $0x17f] sm:$0xfe] %vm6206_vm4, %v6111_v56 }
 0x80c   :  { %6299 = vst.msk [vmem:[#allocation2 + $0x180] sm:$0x1] %vm2170_vm14, %v15140_v40  ;;  %v6310_v58 = vpop.permute.xlu0 %6309  ;;  %6587 = vrot.lane.b32.xlu1 %v12656_v37, %s8783_s14 }
 0x80d   :  { %6488 = vst.msk [vmem:[#allocation2 + $0x9] sm:$0x7f] %vm15232_vm6, %v6310_v58  ;;  %vm15239_vm6 = vmmov %vm15235_vm2 }
 0x80e   :  { %6865 = vrot.lane.b32.xlu0 %v12649_v1, %s8784_s1  ;;  %v6308_v43 = vpop.permute.xlu1 %6307 }
 0x80f   :  { %6487 = vst.msk [vmem:[#allocation2 + $0x1] sm:$0xff] %vm2165_vm15, %v6308_v43 }
 0x810   :  { %v6554_v42 = vpop.permute.xlu0 %6553  ;;  %6863 = vrot.lane.b32.xlu1 %v12656_v37, %s8784_s1 }
 0x811   :  { %6732 = vst.msk [vmem:[#allocation2 + $0x8] sm:$0xff] %vm2565_vm7, %v6554_v42 }
 0x812   :  { %6795 = vst.msk [vmem:[#allocation2 + $0xf] sm:$0x1] %vm15233_vm8, %v15140_v40  ;;  %6349 = vrot.lane.b32.xlu0 %v12663_v17, %s8782_s16  ;;  %v6552_v38 = vpop.permute.xlu1 %6551  ;;  %vm15240_vm8 = vmmov %vm15234_vm1 }
 0x813   :  { %6731 = vst.msk [vmem:[#allocation2] sm:$0xff] %vm2565_vm7, %v6552_v38 }
 0x814   :  { %v6830_v14 = vpop.permute.xlu0 %6829  ;;  %6347 = vrot.lane.b32.xlu1 %v15183_v47, %s8782_s16 }
 0x815   :  { %7009 = vst.msk [vmem:[#allocation2 + $0x7] sm:$0xff] %vm2930_vm11, %v6830_v14 }
 0x816   :  { %6593 = vrot.lane.b32.xlu0 %v12663_v17, %s8783_s14  ;;  %v6828_v1 = vpop.permute.xlu1 %6827 }
 0x817   :  { %7008 = vst.msk [vmem:[#allocation2 - $0x1] sm:$0xfe] %vm7007_vm9, %v6828_v1 }
 0x818   :  { %v6314_v37 = vpop.permute.xlu0 %6313  ;;  %6591 = vrot.lane.b32.xlu1 %v15183_v47, %s8783_s14 }
 0x819   :  { %6490 = vst.msk [vmem:[#allocation2 + $0x19] sm:$0x7f] %vm15234_vm1, %v6314_v37  ;;  %vm15241_vm1 = vmmov %vm15235_vm2 }
 0x81a   :  { %6869 = vrot.lane.b32.xlu0 %v12663_v17, %s8784_s1  ;;  %v6312_v24 = vpop.permute.xlu1 %6311 }
 0x81b   :  { %6489 = vst.msk [vmem:[#allocation2 + $0x11] sm:$0xff] %vm2165_vm15, %v6312_v24 }
 0x81c   :  { %v6558_v60 = vpop.permute.xlu0 %6557  ;;  %6867 = vrot.lane.b32.xlu1 %v15183_v47, %s8784_s1  ;;  %v7069_v17 = vld [vmem:[#allocation2 + $0x8] sm:$0xff] }
 0x81d   :  { %6734 = vst.msk [vmem:[#allocation2 + $0x18] sm:$0xff] %vm2565_vm7, %v6558_v60 }
 0x81e   :  { %6796 = vst.msk [vmem:[#allocation2 + $0x1f] sm:$0x1] %vm15235_vm2, %v15140_v40  ;;  %6353 = vrot.lane.b32.xlu0 %v15119_v57, %s8782_s16  ;;  %v6556_v53 = vpop.permute.xlu1 %6555  ;;  %v7068_v34 = vld [vmem:[#allocation2] sm:$0xff]  ;;  %vm15242_vm2 = vmmov %vm15236_vm3 }
 0x81f   :  { %6733 = vst.msk [vmem:[#allocation2 + $0x10] sm:$0xff] %vm2565_vm7, %v6556_v53  ;;  %8414 = vmatprep.mubr.msk.f32.mxu1 %vm3398_vm10, %v7068_v34 }
 0x820   :  { %v6834_v9 = vpop.permute.xlu0 %6833  ;;  %6351 = vrot.lane.b32.xlu1 %v15187_v51, %s8782_s16  ;;  %8415 = vmatmul.mubr.msk.f32.vlgmr.msra.gmra.mxu1 %vm3398_vm10, %v7069_v17 }
 0x821   :  { %7011 = vst.msk [vmem:[#allocation2 + $0x17] sm:$0xff] %vm2930_vm11, %v6834_v9 }
 0x822   :  { %6597 = vrot.lane.b32.xlu0 %v15119_v57, %s8783_s14  ;;  %v6832_v47 = vpop.permute.xlu1 %6831 }
 0x823   :  { %7010 = vst.msk [vmem:[#allocation2 + $0xf] sm:$0xfe] %vm7007_vm9, %v6832_v47 }
 0x824   :  { %v6318_v19 = vpop.permute.xlu0 %6317  ;;  %6595 = vrot.lane.b32.xlu1 %v15187_v51, %s8783_s14 }
 0x825   :  { %6492 = vst.msk [vmem:[#allocation2 + $0x29] sm:$0x7f] %vm15236_vm3, %v6318_v19  ;;  %vm15243_vm3 = vmmov %vm15241_vm1 }
 0x826   :  { %6873 = vrot.lane.b32.xlu0 %v15119_v57, %s8784_s1  ;;  %v6316_v23 = vpop.permute.xlu1 %6315 }
 0x827   :  { %6491 = vst.msk [vmem:[#allocation2 + $0x21] sm:$0xff] %vm2165_vm15, %v6316_v23 }
 0x828   :  { %v6562_v62 = vpop.permute.xlu0 %6561  ;;  %6871 = vrot.lane.b32.xlu1 %v15187_v51, %s8784_s1  ;;  %v7071_v57 = vld [vmem:[#allocation2 + $0x18] sm:$0xff] }
 0x829   :  { %6736 = vst.msk [vmem:[#allocation2 + $0x28] sm:$0xff] %vm2565_vm7, %v6562_v62 }
 0x82a   :  { %6797 = vst.msk [vmem:[#allocation2 + $0x2f] sm:$0x1] %vm15237_vm13, %v15140_v40  ;;  %6357 = vrot.lane.b32.xlu0 %v15122_v0, %s8782_s16  ;;  %v6560_v3 = vpop.permute.xlu1 %6559  ;;  %v7070_v45 = vld [vmem:[#allocation2 + $0x10] sm:$0xff]  ;;  %vm15244_vm13 = vmmov %vm15242_vm2 }
 0x82b   :  { %6735 = vst.msk [vmem:[#allocation2 + $0x20] sm:$0xff] %vm2565_vm7, %v6560_v3  ;;  %8417 = vmatprep.mubr.msk.f32.mxu1 %vm3398_vm10, %v7070_v45 }
 0x82c   :  { %v6838_v63 = vpop.permute.xlu0 %6837  ;;  %6355 = vrot.lane.b32.xlu1 %v15124_v46, %s8782_s16  ;;  %8418 = vmatmul.mubr.msk.f32.gmra.mxu1 %vm3398_vm10, %v7071_v57 }
 0x82d   :  { %7013 = vst.msk [vmem:[#allocation2 + $0x27] sm:$0xff] %vm2930_vm11, %v6838_v63 }
 0x82e   :  { %6601 = vrot.lane.b32.xlu0 %v15122_v0, %s8783_s14  ;;  %v6836_v51 = vpop.permute.xlu1 %6835 }
 0x82f   :  { %7012 = vst.msk [vmem:[#allocation2 + $0x1f] sm:$0xfe] %vm7007_vm9, %v6836_v51 }
 0x830   :  { %v6322_v48 = vpop.permute.xlu0 %6321  ;;  %6599 = vrot.lane.b32.xlu1 %v15124_v46, %s8783_s14 }
 0x831   :  { %6494 = vst.msk [vmem:[#allocation2 + $0x39] sm:$0x7f] %vm15238_vm5, %v6322_v48  ;;  %vm15245_vm5 = vmmov %vm15241_vm1 }
 0x832   :  { %6877 = vrot.lane.b32.xlu0 %v15122_v0, %s8784_s1  ;;  %v6320_v8 = vpop.permute.xlu1 %6319 }
 0x833   :  { %6493 = vst.msk [vmem:[#allocation2 + $0x31] sm:$0xff] %vm2165_vm15, %v6320_v8 }
 0x834   :  { %v6566_v4 = vpop.permute.xlu0 %6565  ;;  %6875 = vrot.lane.b32.xlu1 %v15124_v46, %s8784_s1  ;;  %v7073_v0 = vld [vmem:[#allocation2 + $0x28] sm:$0xff] }
 0x835   :  { %6738 = vst.msk [vmem:[#allocation2 + $0x38] sm:$0xff] %vm2565_vm7, %v6566_v4 }
 0x836   :  { %6798 = vst.msk [vmem:[#allocation2 + $0x3f] sm:$0x1] %vm15239_vm6, %v15140_v40  ;;  %6361 = vrot.lane.b32.xlu0 %v12705_v41, %s8782_s16  ;;  %v6564_v49 = vpop.permute.xlu1 %6563  ;;  %v7072_v7 = vld [vmem:[#allocation2 + $0x20] sm:$0xff]  ;;  %vm15246_vm6 = vmmov %vm15242_vm2 }
 0x837   :  { %6737 = vst.msk [vmem:[#allocation2 + $0x30] sm:$0xff] %vm2565_vm7, %v6564_v49  ;;  %8420 = vmatprep.mubr.msk.f32.mxu1 %vm3398_vm10, %v7072_v7 }
 0x838   :  { %v6842_v10 = vpop.permute.xlu0 %6841  ;;  %6359 = vrot.lane.b32.xlu1 %v12712_v5, %s8782_s16  ;;  %8421 = vmatmul.mubr.msk.f32.gmra.mxu1 %vm3398_vm10, %v7073_v0 }
 0x839   :  { %7015 = vst.msk [vmem:[#allocation2 + $0x37] sm:$0xff] %vm2930_vm11, %v6842_v10 }
 0x83a   :  { %6605 = vrot.lane.b32.xlu0 %v12705_v41, %s8783_s14  ;;  %v6840_v46 = vpop.permute.xlu1 %6839 }
 0x83b   :  { %7014 = vst.msk [vmem:[#allocation2 + $0x2f] sm:$0xfe] %vm7007_vm9, %v6840_v46 }
 0x83c   :  { %v6326_v35 = vpop.permute.xlu0 %6325  ;;  %6603 = vrot.lane.b32.xlu1 %v12712_v5, %s8783_s14 }
 0x83d   :  { %6496 = vst.msk [vmem:[#allocation2 + $0x49] sm:$0x7f] %vm15240_vm8, %v6326_v35  ;;  %vm15247_vm8 = vmmov %vm15241_vm1 }
 0x83e   :  { %6881 = vrot.lane.b32.xlu0 %v12705_v41, %s8784_s1  ;;  %v6324_v56 = vpop.permute.xlu1 %6323 }
 0x83f   :  { %6495 = vst.msk [vmem:[#allocation2 + $0x41] sm:$0xff] %vm2165_vm15, %v6324_v56 }
 0x840   :  { %v6570_v58 = vpop.permute.xlu0 %6569  ;;  %6879 = vrot.lane.b32.xlu1 %v12712_v5, %s8784_s1  ;;  %v7075_v41 = vld [vmem:[#allocation2 + $0x38] sm:$0xff] }
 0x841   :  { %6740 = vst.msk [vmem:[#allocation2 + $0x48] sm:$0xff] %vm2565_vm7, %v6570_v58 }
 0x842   :  { %6799 = vst.msk [vmem:[#allocation2 + $0x4f] sm:$0x1] %vm15241_vm1, %v15140_v40  ;;  %6365 = vrot.lane.b32.xlu0 %v13310_v16, %s8782_s16  ;;  %v6568_v43 = vpop.permute.xlu1 %6567  ;;  %v7074_v42 = vld [vmem:[#allocation2 + $0x30] sm:$0xff]  ;;  %vm15248_vm1 = vmmov %vm15242_vm2 }
 0x843   :  { %6739 = vst.msk [vmem:[#allocation2 + $0x40] sm:$0xff] %vm2565_vm7, %v6568_v43  ;;  %8423 = vmatprep.mubr.msk.f32.mxu1 %vm3398_vm10, %v7074_v42 }
 0x844   :  { %v6846_v38 = vpop.permute.xlu0 %6845  ;;  %6363 = vrot.lane.b32.xlu1 %v13319_v20, %s8782_s16  ;;  %8424 = vmatmul.mubr.msk.f32.gmra.mxu1 %vm3398_vm10, %v7075_v41 }
 0x845   :  { %7017 = vst.msk [vmem:[#allocation2 + $0x47] sm:$0xff] %vm2930_vm11, %v6846_v38 }
 0x846   :  { %6609 = vrot.lane.b32.xlu0 %v13310_v16, %s8783_s14  ;;  %v6844_v5 = vpop.permute.xlu1 %6843 }
 0x847   :  { %7016 = vst.msk [vmem:[#allocation2 + $0x3f] sm:$0xfe] %vm7007_vm9, %v6844_v5 }
 0x848   :  { %v6330_v14 = vpop.permute.xlu0 %6329  ;;  %6607 = vrot.lane.b32.xlu1 %v13319_v20, %s8783_s14 }
 0x849   :  { %6498 = vst.msk [vmem:[#allocation2 + $0x59] sm:$0x7f] %vm15242_vm2, %v6330_v14  ;;  %vm15249_vm2 = vmmov %vm15243_vm3 }
 0x84a   :  { %6885 = vrot.lane.b32.xlu0 %v13310_v16, %s8784_s1  ;;  %v6328_v1 = vpop.permute.xlu1 %6327 }
 0x84b   :  { %6497 = vst.msk [vmem:[#allocation2 + $0x51] sm:$0xff] %vm2165_vm15, %v6328_v1 }
 0x84c   :  { %v6574_v37 = vpop.permute.xlu0 %6573  ;;  %6883 = vrot.lane.b32.xlu1 %v13319_v20, %s8784_s1  ;;  %v7077_v16 = vld [vmem:[#allocation2 + $0x48] sm:$0xff] }
 0x84d   :  { %6742 = vst.msk [vmem:[#allocation2 + $0x58] sm:$0xff] %vm2565_vm7, %v6574_v37 }
 0x84e   :  { %6800 = vst.msk [vmem:[#allocation2 + $0x5f] sm:$0x1] %vm15243_vm3, %v15140_v40  ;;  %6369 = vrot.lane.b32.xlu0 %v12741_v50, %s8782_s16  ;;  %v6572_v24 = vpop.permute.xlu1 %6571  ;;  %v7076_v60 = vld [vmem:[#allocation2 + $0x40] sm:$0xff]  ;;  %vm15250_vm3 = vmmov %vm15248_vm1 }
 0x84f   :  { %6741 = vst.msk [vmem:[#allocation2 + $0x50] sm:$0xff] %vm2565_vm7, %v6572_v24  ;;  %8426 = vmatprep.mubr.msk.f32.mxu1 %vm3398_vm10, %v7076_v60 }
 0x850   :  { %v6850_v53 = vpop.permute.xlu0 %6849  ;;  %6367 = vrot.lane.b32.xlu1 %v12748_v18, %s8782_s16  ;;  %8427 = vmatmul.mubr.msk.f32.gmra.mxu1 %vm3398_vm10, %v7077_v16 }
 0x851   :  { %7019 = vst.msk [vmem:[#allocation2 + $0x57] sm:$0xff] %vm2930_vm11, %v6850_v53 }
 0x852   :  { %6613 = vrot.lane.b32.xlu0 %v12741_v50, %s8783_s14  ;;  %v6848_v20 = vpop.permute.xlu1 %6847 }
 0x853   :  { %7018 = vst.msk [vmem:[#allocation2 + $0x4f] sm:$0xfe] %vm7007_vm9, %v6848_v20 }
 0x854   :  { %v6334_v34 = vpop.permute.xlu0 %6333  ;;  %6611 = vrot.lane.b32.xlu1 %v12748_v18, %s8783_s14 }
 0x855   :  { %6500 = vst.msk [vmem:[#allocation2 + $0x69] sm:$0x7f] %vm15244_vm13, %v6334_v34  ;;  %vm15251_vm13 = vmmov %vm15249_vm2 }
 0x856   :  { %6889 = vrot.lane.b32.xlu0 %v12741_v50, %s8784_s1  ;;  %v6332_v17 = vpop.permute.xlu1 %6331 }
 0x857   :  { %6499 = vst.msk [vmem:[#allocation2 + $0x61] sm:$0xff] %vm2165_vm15, %v6332_v17 }
 0x858   :  { %v6578_v9 = vpop.permute.xlu0 %6577  ;;  %6887 = vrot.lane.b32.xlu1 %v12748_v18, %s8784_s1  ;;  %v7079_v50 = vld [vmem:[#allocation2 + $0x58] sm:$0xff] }
 0x859   :  { %6744 = vst.msk [vmem:[#allocation2 + $0x68] sm:$0xff] %vm2565_vm7, %v6578_v9 }
 0x85a   :  { %6801 = vst.msk [vmem:[#allocation2 + $0x6f] sm:$0x1] %vm15245_vm5, %v15140_v40  ;;  %6373 = vrot.lane.b32.xlu0 %v12755_v21, %s8782_s16  ;;  %v6576_v47 = vpop.permute.xlu1 %6575  ;;  %v7078_v19 = vld [vmem:[#allocation2 + $0x50] sm:$0xff]  ;;  %vm15252_vm5 = vmmov %vm15248_vm1 }
 0x85b   :  { %6743 = vst.msk [vmem:[#allocation2 + $0x60] sm:$0xff] %vm2565_vm7, %v6576_v47  ;;  %8429 = vmatprep.mubr.msk.f32.mxu1 %vm3398_vm10, %v7078_v19 }
 0x85c   :  { %v6854_v23 = vpop.permute.xlu0 %6853  ;;  %6371 = vrot.lane.b32.xlu1 %v12762_v29, %s8782_s16  ;;  %8430 = vmatmul.mubr.msk.f32.gmra.mxu1 %vm3398_vm10, %v7079_v50 }
 0x85d   :  { %7021 = vst.msk [vmem:[#allocation2 + $0x67] sm:$0xff] %vm2930_vm11, %v6854_v23 }
 0x85e   :  { %6617 = vrot.lane.b32.xlu0 %v12755_v21, %s8783_s14  ;;  %v6852_v18 = vpop.permute.xlu1 %6851 }
 0x85f   :  { %7020 = vst.msk [vmem:[#allocation2 + $0x5f] sm:$0xfe] %vm7007_vm9, %v6852_v18 }
 0x860   :  { %v6338_v62 = vpop.permute.xlu0 %6337  ;;  %6615 = vrot.lane.b32.xlu1 %v12762_v29, %s8783_s14 }
 0x861   :  { %6502 = vst.msk [vmem:[#allocation2 + $0x79] sm:$0x7f] %vm15246_vm6, %v6338_v62  ;;  %vm15253_vm6 = vmmov %vm15249_vm2 }
 0x862   :  { %6893 = vrot.lane.b32.xlu0 %v12755_v21, %s8784_s1  ;;  %v6336_v3 = vpop.permute.xlu1 %6335 }
 0x863   :  { %6501 = vst.msk [vmem:[#allocation2 + $0x71] sm:$0xff] %vm2165_vm15, %v6336_v3 }
 0x864   :  { %v6582_v45 = vpop.permute.xlu0 %6581  ;;  %6891 = vrot.lane.b32.xlu1 %v12762_v29, %s8784_s1  ;;  %v7081_v21 = vld [vmem:[#allocation2 + $0x68] sm:$0xff] }
 0x865   :  { %6746 = vst.msk [vmem:[#allocation2 + $0x78] sm:$0xff] %vm2565_vm7, %v6582_v45 }
 0x866   :  { %6802 = vst.msk [vmem:[#allocation2 + $0x7f] sm:$0x1] %vm15247_vm8, %v15140_v40  ;;  %6377 = vrot.lane.b32.xlu0 %v12769_v54, %s8782_s16  ;;  %v6580_v57 = vpop.permute.xlu1 %6579  ;;  %v7080_v63 = vld [vmem:[#allocation2 + $0x60] sm:$0xff]  ;;  %vm15254_vm8 = vmmov %vm15248_vm1 }
 0x867   :  { %6745 = vst.msk [vmem:[#allocation2 + $0x70] sm:$0xff] %vm2565_vm7, %v6580_v57  ;;  %8432 = vmatprep.mubr.msk.f32.mxu1 %vm3398_vm10, %v7080_v63 }
 0x868   :  { %v6858_v51 = vpop.permute.xlu0 %6857  ;;  %6375 = vrot.lane.b32.xlu1 %v12776_v32, %s8782_s16  ;;  %8433 = vmatmul.mubr.msk.f32.gmra.mxu1 %vm3398_vm10, %v7081_v21 }
 0x869   :  { %7023 = vst.msk [vmem:[#allocation2 + $0x77] sm:$0xff] %vm2930_vm11, %v6858_v51 }
 0x86a   :  { %6621 = vrot.lane.b32.xlu0 %v12769_v54, %s8783_s14  ;;  %v6856_v29 = vpop.permute.xlu1 %6855 }
 0x86b   :  { %7022 = vst.msk [vmem:[#allocation2 + $0x6f] sm:$0xfe] %vm7007_vm9, %v6856_v29 }
 0x86c   :  { %v6342_v48 = vpop.permute.xlu0 %6341  ;;  %6619 = vrot.lane.b32.xlu1 %v12776_v32, %s8783_s14 }
 0x86d   :  { %6504 = vst.msk [vmem:[#allocation2 + $0x89] sm:$0x7f] %vm15248_vm1, %v6342_v48  ;;  %vm15255_vm1 = vmmov %vm15249_vm2 }
 0x86e   :  { %6897 = vrot.lane.b32.xlu0 %v12769_v54, %s8784_s1  ;;  %v6340_v8 = vpop.permute.xlu1 %6339 }
 0x86f   :  { %6503 = vst.msk [vmem:[#allocation2 + $0x81] sm:$0xff] %vm2165_vm15, %v6340_v8 }
 0x870   :  { %v6586_v4 = vpop.permute.xlu0 %6585  ;;  %6895 = vrot.lane.b32.xlu1 %v12776_v32, %s8784_s1  ;;  %v7083_v54 = vld [vmem:[#allocation2 + $0x78] sm:$0xff] }
 0x871   :  { %6748 = vst.msk [vmem:[#allocation2 + $0x88] sm:$0xff] %vm2565_vm7, %v6586_v4 }
 0x872   :  { %6803 = vst.msk [vmem:[#allocation2 + $0x8f] sm:$0x1] %vm15249_vm2, %v15140_v40  ;;  %6381 = vrot.lane.b32.xlu0 %v12783_v28, %s8782_s16  ;;  %v6584_v49 = vpop.permute.xlu1 %6583  ;;  %v7082_v7 = vld [vmem:[#allocation2 + $0x70] sm:$0xff]  ;;  %vm15256_vm2 = vmmov %vm15250_vm3 }
 0x873   :  { %6747 = vst.msk [vmem:[#allocation2 + $0x80] sm:$0xff] %vm2565_vm7, %v6584_v49  ;;  %8435 = vmatprep.mubr.msk.f32.mxu1 %vm3398_vm10, %v7082_v7 }
 0x874   :  { %v6862_v0 = vpop.permute.xlu0 %6861  ;;  %6379 = vrot.lane.b32.xlu1 %v12790_v27, %s8782_s16  ;;  %8436 = vmatmul.mubr.msk.f32.gmra.mxu1 %vm3398_vm10, %v7083_v54 }
 0x875   :  { %7025 = vst.msk [vmem:[#allocation2 + $0x87] sm:$0xff] %vm2930_vm11, %v6862_v0 }
 0x876   :  { %6625 = vrot.lane.b32.xlu0 %v12783_v28, %s8783_s14  ;;  %v6860_v32 = vpop.permute.xlu1 %6859 }
 0x877   :  { %7024 = vst.msk [vmem:[#allocation2 + $0x7f] sm:$0xfe] %vm7007_vm9, %v6860_v32  ;;  %v7098_v32 = vld [vmem:[#allocation2 + $0xf0] sm:$0xff] }
 0x878   :  { %v6346_v10 = vpop.permute.xlu0 %6345  ;;  %6623 = vrot.lane.b32.xlu1 %v12790_v27, %s8783_s14 }
 0x879   :  { %6506 = vst.msk [vmem:[#allocation2 + $0x99] sm:$0x7f] %vm15250_vm3, %v6346_v10  ;;  %vm15257_vm3 = vmmov %vm15255_vm1 }
 0x87a   :  { %6901 = vrot.lane.b32.xlu0 %v12783_v28, %s8784_s1  ;;  %v6344_v46 = vpop.permute.xlu1 %6343 }
 0x87b   :  { %6505 = vst.msk [vmem:[#allocation2 + $0x91] sm:$0xff] %vm2165_vm15, %v6344_v46 }
 0x87c   :  { %v6590_v35 = vpop.permute.xlu0 %6589  ;;  %6899 = vrot.lane.b32.xlu1 %v12790_v27, %s8784_s1  ;;  %v7085_v28 = vld [vmem:[#allocation2 + $0x88] sm:$0xff] }
 0x87d   :  { %6750 = vst.msk [vmem:[#allocation2 + $0x98] sm:$0xff] %vm2565_vm7, %v6590_v35  ;;  %v7099_v35 = vld [vmem:[#allocation2 + $0xf8] sm:$0xff] }
 0x87e   :  { %6804 = vst.msk [vmem:[#allocation2 + $0x9f] sm:$0x1] %vm15251_vm13, %v15140_v40  ;;  %6385 = vrot.lane.b32.xlu0 %v12797_v36, %s8782_s16  ;;  %v6588_v56 = vpop.permute.xlu1 %6587  ;;  %v7084_v58 = vld [vmem:[#allocation2 + $0x80] sm:$0xff]  ;;  %vm15258_vm13 = vmmov %vm15256_vm2 }
 0x87f   :  { %6749 = vst.msk [vmem:[#allocation2 + $0x90] sm:$0xff] %vm2565_vm7, %v6588_v56  ;;  %8438 = vmatprep.mubr.msk.f32.mxu1 %vm3398_vm10, %v7084_v58 }
 0x880   :  { %v6866_v43 = vpop.permute.xlu0 %6865  ;;  %6383 = vrot.lane.b32.xlu1 %v12804_v31, %s8782_s16  ;;  %8439 = vmatmul.mubr.msk.f32.gmra.mxu1 %vm3398_vm10, %v7085_v28  ;;  %v15265_v28 = vld [vmem:[#allocation6_spill] sm:$0xff] }
 0x881   :  { %7027 = vst.msk [vmem:[#allocation2 + $0x97] sm:$0xff] %vm2930_vm11, %v6866_v43 }
 0x882   :  { %6629 = vrot.lane.b32.xlu0 %v12797_v36, %s8783_s14  ;;  %v6864_v27 = vpop.permute.xlu1 %6863 }
 0x883   :  { %7026 = vst.msk [vmem:[#allocation2 + $0x8f] sm:$0xfe] %vm7007_vm9, %v6864_v27 }
 0x884   :  { %v6350_v42 = vpop.permute.xlu0 %6349  ;;  %6627 = vrot.lane.b32.xlu1 %v12804_v31, %s8783_s14 }
 0x885   :  { %6508 = vst.msk [vmem:[#allocation2 + $0xa9] sm:$0x7f] %vm15252_vm5, %v6350_v42  ;;  %vm15259_vm5 = vmmov %vm15255_vm1 }
 0x886   :  { %6905 = vrot.lane.b32.xlu0 %v12797_v36, %s8784_s1  ;;  %v6348_v41 = vpop.permute.xlu1 %6347 }
 0x887   :  { %6507 = vst.msk [vmem:[#allocation2 + $0xa1] sm:$0xff] %vm2165_vm15, %v6348_v41 }
 0x888   :  { %v6594_v38 = vpop.permute.xlu0 %6593  ;;  %6903 = vrot.lane.b32.xlu1 %v12804_v31, %s8784_s1  ;;  %v7087_v36 = vld [vmem:[#allocation2 + $0x98] sm:$0xff] }
 0x889   :  { %6752 = vst.msk [vmem:[#allocation2 + $0xa8] sm:$0xff] %vm2565_vm7, %v6594_v38 }
 0x88a   :  { %6805 = vst.msk [vmem:[#allocation2 + $0xaf] sm:$0x1] %vm15253_vm6, %v15140_v40  ;;  %6389 = vrot.lane.b32.xlu0 %v12811_v12, %s8782_s16  ;;  %v6592_v5 = vpop.permute.xlu1 %6591  ;;  %v7086_v14 = vld [vmem:[#allocation2 + $0x90] sm:$0xff]  ;;  %vm15260_vm6 = vmmov %vm15256_vm2 }
 0x88b   :  { %6751 = vst.msk [vmem:[#allocation2 + $0xa0] sm:$0xff] %vm2565_vm7, %v6592_v5  ;;  %8441 = vmatprep.mubr.msk.f32.mxu1 %vm3398_vm10, %v7086_v14 }
 0x88c   :  { %v6870_v1 = vpop.permute.xlu0 %6869  ;;  %6387 = vrot.lane.b32.xlu1 %v12818_v33, %s8782_s16  ;;  %8442 = vmatmul.mubr.msk.f32.gmra.mxu1 %vm3398_vm10, %v7087_v36 }
 0x88d   :  { %7029 = vst.msk [vmem:[#allocation2 + $0xa7] sm:$0xff] %vm2930_vm11, %v6870_v1 }
 0x88e   :  { %6633 = vrot.lane.b32.xlu0 %v12811_v12, %s8783_s14  ;;  %v6868_v31 = vpop.permute.xlu1 %6867 }
 0x88f   :  { %7028 = vst.msk [vmem:[#allocation2 + $0x9f] sm:$0xfe] %vm7007_vm9, %v6868_v31  ;;  %v15270_v31 = vld [vmem:[#allocation8_spill] sm:$0xff] }
 0x890   :  { %v6354_v37 = vpop.permute.xlu0 %6353  ;;  %6631 = vrot.lane.b32.xlu1 %v12818_v33, %s8783_s14 }
 0x891   :  { %6510 = vst.msk [vmem:[#allocation2 + $0xb9] sm:$0x7f] %vm15254_vm8, %v6354_v37  ;;  %vm15261_vm8 = vmmov %vm15255_vm1 }
 0x892   :  { %6909 = vrot.lane.b32.xlu0 %v12811_v12, %s8784_s1  ;;  %v6352_v24 = vpop.permute.xlu1 %6351 }
 0x893   :  { %6509 = vst.msk [vmem:[#allocation2 + $0xb1] sm:$0xff] %vm2165_vm15, %v6352_v24 }
 0x894   :  { %v6598_v60 = vpop.permute.xlu0 %6597  ;;  %6907 = vrot.lane.b32.xlu1 %v12818_v33, %s8784_s1  ;;  %v7089_v12 = vld [vmem:[#allocation2 + $0xa8] sm:$0xff] }
 0x895   :  { %6754 = vst.msk [vmem:[#allocation2 + $0xb8] sm:$0xff] %vm2565_vm7, %v6598_v60 }
 0x896   :  { %6806 = vst.msk [vmem:[#allocation2 + $0xbf] sm:$0x1] %vm15255_vm1, %v15140_v40  ;;  %6393 = vrot.lane.b32.xlu0 %v12825_v22, %s8782_s16  ;;  %v6596_v16 = vpop.permute.xlu1 %6595  ;;  %v7088_v53 = vld [vmem:[#allocation2 + $0xa0] sm:$0xff]  ;;  %vm15262_vm1 = vmmov %vm15256_vm2 }
 0x897   :  { %6753 = vst.msk [vmem:[#allocation2 + $0xb0] sm:$0xff] %vm2565_vm7, %v6596_v16  ;;  %8444 = vmatprep.mubr.msk.f32.mxu1 %vm3398_vm10, %v7088_v53 }
 0x898   :  { %v6874_v20 = vpop.permute.xlu0 %6873  ;;  %6391 = vrot.lane.b32.xlu1 %v12832_v15, %s8782_s16  ;;  %8445 = vmatmul.mubr.msk.f32.gmra.mxu1 %vm3398_vm10, %v7089_v12 }
 0x899   :  { %7031 = vst.msk [vmem:[#allocation2 + $0xb7] sm:$0xff] %vm2930_vm11, %v6874_v20 }
 0x89a   :  { %6637 = vrot.lane.b32.xlu0 %v12825_v22, %s8783_s14  ;;  %v6872_v33 = vpop.permute.xlu1 %6871 }
 0x89b   :  { %7030 = vst.msk [vmem:[#allocation2 + $0xaf] sm:$0xfe] %vm7007_vm9, %v6872_v33 }
 0x89c   :  { %v6358_v34 = vpop.permute.xlu0 %6357  ;;  %6635 = vrot.lane.b32.xlu1 %v12832_v15, %s8783_s14 }
 0x89d   :  { %6512 = vst.msk [vmem:[#allocation2 + $0xc9] sm:$0x7f] %vm15256_vm2, %v6358_v34  ;;  %vm15263_vm2 = vmmov %vm15257_vm3 }
 0x89e   :  { %6913 = vrot.lane.b32.xlu0 %v12825_v22, %s8784_s1  ;;  %v6356_v17 = vpop.permute.xlu1 %6355 }
 0x89f   :  { %6511 = vst.msk [vmem:[#allocation2 + $0xc1] sm:$0xff] %vm2165_vm15, %v6356_v17 }
 0x8a0   :  { %v6602_v9 = vpop.permute.xlu0 %6601  ;;  %6911 = vrot.lane.b32.xlu1 %v12832_v15, %s8784_s1  ;;  %v7091_v22 = vld [vmem:[#allocation2 + $0xb8] sm:$0xff] }
 0x8a1   :  { %6756 = vst.msk [vmem:[#allocation2 + $0xc8] sm:$0xff] %vm2565_vm7, %v6602_v9 }
 0x8a2   :  { %6807 = vst.msk [vmem:[#allocation2 + $0xcf] sm:$0x1] %vm15257_vm3, %v15140_v40  ;;  %6397 = vrot.lane.b32.xlu0 %v12839_v52, %s8782_s16  ;;  %v6600_v47 = vpop.permute.xlu1 %6599  ;;  %v7090_v19 = vld [vmem:[#allocation2 + $0xb0] sm:$0xff]  ;;  %vm15264_vm3 = vmmov %vm15262_vm1 }
 0x8a3   :  { %6755 = vst.msk [vmem:[#allocation2 + $0xc0] sm:$0xff] %vm2565_vm7, %v6600_v47  ;;  %8447 = vmatprep.mubr.msk.f32.mxu1 %vm3398_vm10, %v7090_v19 }
 0x8a4   :  { %v6878_v50 = vpop.permute.xlu0 %6877  ;;  %6395 = vrot.lane.b32.xlu1 %v12846_v26, %s8782_s16  ;;  %8448 = vmatmul.mubr.msk.f32.gmra.mxu1 %vm3398_vm10, %v7091_v22 }
 0x8a5   :  { %7033 = vst.msk [vmem:[#allocation2 + $0xc7] sm:$0xff] %vm2930_vm11, %v6878_v50 }
 0x8a6   :  { %6641 = vrot.lane.b32.xlu0 %v12839_v52, %s8783_s14  ;;  %v6876_v15 = vpop.permute.xlu1 %6875 }
 0x8a7   :  { %7032 = vst.msk [vmem:[#allocation2 + $0xbf] sm:$0xfe] %vm7007_vm9, %v6876_v15 }
 0x8a8   :  { %v6362_v23 = vpop.permute.xlu0 %6361  ;;  %6639 = vrot.lane.b32.xlu1 %v12846_v26, %s8783_s14 }
 0x8a9   :  { %6514 = vst.msk [vmem:[#allocation2 + $0xd9] sm:$0x7f] %vm15258_vm13, %v6362_v23  ;;  %vm15267_vm13 = vmmov %vm15263_vm2 }
 0x8aa   :  { %6917 = vrot.lane.b32.xlu0 %v12839_v52, %s8784_s1  ;;  %v6360_v18 = vpop.permute.xlu1 %6359 }
 0x8ab   :  { %6513 = vst.msk [vmem:[#allocation2 + $0xd1] sm:$0xff] %vm2165_vm15, %v6360_v18 }
 0x8ac   :  { %v6606_v62 = vpop.permute.xlu0 %6605  ;;  %6915 = vrot.lane.b32.xlu1 %v12846_v26, %s8784_s1  ;;  %v7093_v52 = vld [vmem:[#allocation2 + $0xc8] sm:$0xff] }
 0x8ad   :  { %6758 = vst.msk [vmem:[#allocation2 + $0xd8] sm:$0xff] %vm2565_vm7, %v6606_v62 }
 0x8ae   :  { %6808 = vst.msk [vmem:[#allocation2 + $0xdf] sm:$0x1] %vm15259_vm5, %v15140_v40  ;;  %6401 = vrot.lane.b32.xlu0 %v12853_v44, %s8782_s16  ;;  %v6604_v3 = vpop.permute.xlu1 %6603  ;;  %v7092_v45 = vld [vmem:[#allocation2 + $0xc0] sm:$0xff]  ;;  %vm15268_vm5 = vmmov %vm15262_vm1 }
 0x8af   :  { %6757 = vst.msk [vmem:[#allocation2 + $0xd0] sm:$0xff] %vm2565_vm7, %v6604_v3  ;;  %8450 = vmatprep.mubr.msk.f32.mxu1 %vm3398_vm10, %v7092_v45 }
 0x8b0   :  { %v6882_v57 = vpop.permute.xlu0 %6881  ;;  %6399 = vrot.lane.b32.xlu1 %v15100_v55, %s8782_s16  ;;  %8451 = vmatmul.mubr.msk.f32.gmra.mxu1 %vm3398_vm10, %v7093_v52 }
 0x8b1   :  { %7035 = vst.msk [vmem:[#allocation2 + $0xd7] sm:$0xff] %vm2930_vm11, %v6882_v57 }
 0x8b2   :  { %6645 = vrot.lane.b32.xlu0 %v12853_v44, %s8783_s14  ;;  %v6880_v26 = vpop.permute.xlu1 %6879 }
 0x8b3   :  { %7034 = vst.msk [vmem:[#allocation2 + $0xcf] sm:$0xfe] %vm7007_vm9, %v6880_v26 }
 0x8b4   :  { %v6366_v63 = vpop.permute.xlu0 %6365  ;;  %6643 = vrot.lane.b32.xlu1 %v15100_v55, %s8783_s14 }
 0x8b5   :  { %6516 = vst.msk [vmem:[#allocation2 + $0xe9] sm:$0x7f] %vm15260_vm6, %v6366_v63  ;;  %vm15269_vm6 = vmmov %vm15263_vm2 }
 0x8b6   :  { %6921 = vrot.lane.b32.xlu0 %v12853_v44, %s8784_s1  ;;  %v6364_v21 = vpop.permute.xlu1 %6363 }
 0x8b7   :  { %6515 = vst.msk [vmem:[#allocation2 + $0xe1] sm:$0xff] %vm2165_vm15, %v6364_v21 }
 0x8b8   :  { %v6610_v51 = vpop.permute.xlu0 %6609  ;;  %6919 = vrot.lane.b32.xlu1 %v15100_v55, %s8784_s1  ;;  %v7095_v8 = vld [vmem:[#allocation2 + $0xd8] sm:$0xff] }
 0x8b9   :  { %6760 = vst.msk [vmem:[#allocation2 + $0xe8] sm:$0xff] %vm2565_vm7, %v6610_v51 }
 0x8ba   :  { %6809 = vst.msk [vmem:[#allocation2 + $0xef] sm:$0x1] %vm15261_vm8, %v15140_v40  ;;  %6116 = vrot.lane.b32.xlu0 %v12853_v44, %s8781_s13  ;;  %v6608_v29 = vpop.permute.xlu1 %6607  ;;  %v7094_v48 = vld [vmem:[#allocation2 + $0xd0] sm:$0xff]  ;;  %vm15271_vm8 = vmmov %vm15262_vm1 }
 0x8bb   :  { %6759 = vst.msk [vmem:[#allocation2 + $0xe0] sm:$0xff] %vm2565_vm7, %v6608_v29  ;;  %8453 = vmatprep.mubr.msk.f32.mxu1 %vm3398_vm10, %v7094_v48 }
 0x8bc   :  { %v6886_v4 = vpop.permute.xlu0 %6885  ;;  %6114 = vrot.lane.b32.xlu1 %v15100_v55, %s8781_s13  ;;  %8454 = vmatmul.mubr.msk.f32.gmra.mxu1 %vm3398_vm10, %v7095_v8 }
 0x8bd   :  { %7037 = vst.msk [vmem:[#allocation2 + $0xe7] sm:$0xff] %vm2930_vm11, %v6886_v4 }
 0x8be   :  { %6405 = vrot.lane.b32.xlu0 %v12867_v25, %s8782_s16  ;;  %v6884_v49 = vpop.permute.xlu1 %6883 }
 0x8bf   :  { %7036 = vst.msk [vmem:[#allocation2 + $0xdf] sm:$0xfe] %vm7007_vm9, %v6884_v49 }
 0x8c0   :  { %v6370_v44 = vpop.permute.xlu0 %6369  ;;  %6403 = vrot.lane.b32.xlu1 %v12874_v39, %s8782_s16 }
 0x8c1   :  { %6518 = vst.msk [vmem:[#allocation2 + $0x109] sm:$0x7f] %vm15262_vm1, %v6370_v44  ;;  %vm15272_vm1 = vmmov %vm15263_vm2 }
 0x8c2   :  { %6649 = vrot.lane.b32.xlu0 %v12867_v25, %s8783_s14  ;;  %v6368_v55 = vpop.permute.xlu1 %6367 }
 0x8c3   :  { %6517 = vst.msk [vmem:[#allocation2 + $0x101] sm:$0xff] %vm2165_vm15, %v6368_v55 }
 0x8c4   :  { %v6614_v7 = vpop.permute.xlu0 %6613  ;;  %6647 = vrot.lane.b32.xlu1 %v12874_v39, %s8783_s14  ;;  %v7097_v10 = vld [vmem:[#allocation2 + $0xe8] sm:$0xff] }
 0x8c5   :  { %6762 = vst.msk [vmem:[#allocation2 + $0x108] sm:$0xff] %vm2565_vm7, %v6614_v7 }
 0x8c6   :  { %6811 = vst.msk [vmem:[#allocation2 + $0x10f] sm:$0x1] %vm15263_vm2, %v15140_v40  ;;  %6925 = vrot.lane.b32.xlu0 %v12867_v25, %s8784_s1  ;;  %v6612_v54 = vpop.permute.xlu1 %6611  ;;  %v7096_v0 = vld [vmem:[#allocation2 + $0xe0] sm:$0xff]  ;;  %vm15273_vm2 = vmmov %vm15264_vm3 }
 0x8c7   :  { %6761 = vst.msk [vmem:[#allocation2 + $0x100] sm:$0xff] %vm2565_vm7, %v6612_v54  ;;  %8456 = vmatprep.mubr.msk.f32.mxu1 %vm3398_vm10, %v7096_v0 }
 0x8c8   :  { %v6890_v46 = vpop.permute.xlu0 %6889  ;;  %6923 = vrot.lane.b32.xlu1 %v12874_v39, %s8784_s1  ;;  %8457 = vmatmul.mubr.msk.f32.gmra.mxu1 %vm3398_vm10, %v7097_v10 }
 0x8c9   :  { %7039 = vst.msk [vmem:[#allocation2 + $0x107] sm:$0xff] %vm2930_vm11, %v6890_v46  ;;  %8459 = vmatprep.mubr.msk.f32.mxu1 %vm3398_vm10, %v7098_v32 }
 0x8ca   :  { %6120 = vrot.lane.b32.xlu0 %v12867_v25, %s8781_s13  ;;  %v6888_v56 = vpop.permute.xlu1 %6887  ;;  %v15266_v25 = vld [vmem:[#allocation7_spill] sm:$0xff] }
 0x8cb   :  { %7038 = vst.msk [vmem:[#allocation2 + $0xff] sm:$0xfe] %vm7007_vm9, %v6888_v56 }
 0x8cc   :  { %v6374_v58 = vpop.permute.xlu0 %6373  ;;  %6118 = vrot.lane.b32.xlu1 %v12874_v39, %s8781_s13  ;;  %8460 = vmatmul.mubr.msk.f32.gmra.mxu1 %vm3398_vm10, %v7099_v35 }
 0x8cd   :  { %6520 = vst.msk [vmem:[#allocation2 + $0x119] sm:$0x7f] %vm15264_vm3, %v6374_v58  ;;  %vm15274_vm3 = vmmov %vm15272_vm1 }
 0x8ce   :  { %6409 = vrot.lane.b32.xlu0 %v15265_v28, %s8782_s16  ;;  %v6372_v43 = vpop.permute.xlu1 %6371 }
 0x8cf   :  { %6519 = vst.msk [vmem:[#allocation2 + $0x111] sm:$0xff] %vm2165_vm15, %v6372_v43 }
 0x8d0   :  { %v6618_v27 = vpop.permute.xlu0 %6617  ;;  %6407 = vrot.lane.b32.xlu1 %v15266_v25, %s8782_s16  ;;  %v7101_v41 = vld [vmem:[#allocation2 + $0x108] sm:$0xff] }
 0x8d1   :  { %6764 = vst.msk [vmem:[#allocation2 + $0x118] sm:$0xff] %vm2565_vm7, %v6618_v27 }
 0x8d2   :  { %6812 = vst.msk [vmem:[#allocation2 + $0x11f] sm:$0x1] %vm15267_vm13, %v15140_v40  ;;  %6653 = vrot.lane.b32.xlu0 %v15265_v28, %s8783_s14  ;;  %v6616_v39 = vpop.permute.xlu1 %6615  ;;  %v7100_v42 = vld [vmem:[#allocation2 + $0x100] sm:$0xff]  ;;  %vm15275_vm13 = vmmov %vm15273_vm2 }
 0x8d3   :  { %6763 = vst.msk [vmem:[#allocation2 + $0x110] sm:$0xff] %vm2565_vm7, %v6616_v39  ;;  %8462 = vmatprep.mubr.msk.f32.mxu1 %vm3398_vm10, %v7100_v42 }
 0x8d4   :  { %v6894_v38 = vpop.permute.xlu0 %6893  ;;  %6651 = vrot.lane.b32.xlu1 %v15266_v25, %s8783_s14  ;;  %8463 = vmatmul.mubr.msk.f32.gmra.mxu1 %vm3398_vm10, %v7101_v41 }
 0x8d5   :  { %7041 = vst.msk [vmem:[#allocation2 + $0x117] sm:$0xff] %vm2930_vm11, %v6894_v38 }
 0x8d6   :  { %6929 = vrot.lane.b32.xlu0 %v15265_v28, %s8784_s1  ;;  %v6892_v5 = vpop.permute.xlu1 %6891 }
 0x8d7   :  { %7040 = vst.msk [vmem:[#allocation2 + $0x10f] sm:$0xfe] %vm7007_vm9, %v6892_v5 }
 0x8d8   :  { %v6378_v14 = vpop.permute.xlu0 %6377  ;;  %6927 = vrot.lane.b32.xlu1 %v15266_v25, %s8784_s1 }
 0x8d9   :  { %6522 = vst.msk [vmem:[#allocation2 + $0x129] sm:$0x7f] %vm15268_vm5, %v6378_v14  ;;  %vm15276_vm5 = vmmov %vm15272_vm1 }
 0x8da   :  { %6124 = vrot.lane.b32.xlu0 %v15265_v28, %s8781_s13  ;;  %v6376_v36 = vpop.permute.xlu1 %6375 }
 0x8db   :  { %6521 = vst.msk [vmem:[#allocation2 + $0x121] sm:$0xff] %vm2165_vm15, %v6376_v36 }
 0x8dc   :  { %v6622_v1 = vpop.permute.xlu0 %6621  ;;  %6122 = vrot.lane.b32.xlu1 %v15266_v25, %s8781_s13  ;;  %v7103_v60 = vld [vmem:[#allocation2 + $0x118] sm:$0xff] }
 0x8dd   :  { %6766 = vst.msk [vmem:[#allocation2 + $0x128] sm:$0xff] %vm2565_vm7, %v6622_v1 }
 0x8de   :  { %6813 = vst.msk [vmem:[#allocation2 + $0x12f] sm:$0x1] %vm15269_vm6, %v15140_v40  ;;  %6413 = vrot.lane.b32.xlu0 %v15270_v31, %s8782_s16  ;;  %v6620_v37 = vpop.permute.xlu1 %6619  ;;  %v7102_v24 = vld [vmem:[#allocation2 + $0x110] sm:$0xff]  ;;  %vm15277_vm6 = vmmov %vm15273_vm2 }
 0x8df   :  { %6765 = vst.msk [vmem:[#allocation2 + $0x120] sm:$0xff] %vm2565_vm7, %v6620_v37  ;;  %8465 = vmatprep.mubr.msk.f32.mxu1 %vm3398_vm10, %v7102_v24 }
 0x8e0   :  { %v6898_v16 = vpop.permute.xlu0 %6897  ;;  %v8416_v53 = vpop.f32.mrf.mxu1  ;;  %6411 = vrot.lane.b32.xlu1 %v15138_v6, %s8782_s16  ;;  %8466 = vmatmul.mubr.msk.f32.gmra.mxu1 %vm3398_vm10, %v7103_v60 }
 0x8e1   :  { %7043 = vst.msk [vmem:[#allocation2 + $0x127] sm:$0xff] %vm2930_vm11, %v6898_v16 }
 0x8e2   :  { %7718 = vst.msk [vmem:[%s14997_s4 + $0x8] sm:$0xff] %vm17_vm0, %v8416_v53  ;;  %6657 = vrot.lane.b32.xlu0 %v15270_v31, %s8783_s14  ;;  %v7398_v12 = vpop.f32.mrf.mxu1  ;;  %v6896_v20 = vpop.permute.xlu1 %6895 }
 0x8e3   :  { %7717 = vst.msk [vmem:[%s14997_s4] sm:$0xff] %vm17_vm0, %v7398_v12 }
 0x8e4   :  { %7042 = vst.msk [vmem:[#allocation2 + $0x11f] sm:$0xfe] %vm7007_vm9, %v6896_v20  ;;  %v6382_v33 = vpop.permute.xlu0 %6381  ;;  %6655 = vrot.lane.b32.xlu1 %v15138_v6, %s8783_s14 }
 0x8e5   :  { %6524 = vst.msk [vmem:[#allocation2 + $0x139] sm:$0x7f] %vm15271_vm8, %v6382_v33  ;;  %vm15278_vm8 = vmmov %vm15272_vm1 }
 0x8e6   :  { %6933 = vrot.lane.b32.xlu0 %v15270_v31, %s8784_s1  ;;  %v6380_v34 = vpop.permute.xlu1 %6379 }
 0x8e7   :  { %6523 = vst.msk [vmem:[#allocation2 + $0x131] sm:$0xff] %vm2165_vm15, %v6380_v34 }
 0x8e8   :  { %v6626_v17 = vpop.permute.xlu0 %6625  ;;  %6931 = vrot.lane.b32.xlu1 %v15138_v6, %s8784_s1  ;;  %v7105_v19 = vld [vmem:[#allocation2 + $0x128] sm:$0xff] }
 0x8e9   :  { %6768 = vst.msk [vmem:[#allocation2 + $0x138] sm:$0xff] %vm2565_vm7, %v6626_v17 }
 0x8ea   :  { %6814 = vst.msk [vmem:[#allocation2 + $0x13f] sm:$0x1] %vm15272_vm1, %v15140_v40  ;;  %6128 = vrot.lane.b32.xlu0 %v15270_v31, %s8781_s13  ;;  %v6624_v9 = vpop.permute.xlu1 %6623  ;;  %vm15279_vm1 = vmmov %vm15273_vm2 }
 0x8eb   :  { %v7104_v47 = vld [vmem:[#allocation2 + $0x120] sm:$0xff]  ;;  %6767 = vst.msk [vmem:[#allocation2 + $0x130] sm:$0xff] %vm2565_vm7, %v6624_v9 }
 0x8ec   :  { %8468 = vmatprep.mubr.msk.f32.mxu1 %vm3398_vm10, %v7104_v47  ;;  %v6902_v22 = vpop.permute.xlu0 %6901  ;;  %v8419_v50 = vpop.f32.mrf.mxu1  ;;  %6126 = vrot.lane.b32.xlu1 %v15138_v6, %s8781_s13 }
 0x8ed   :  { %8469 = vmatmul.mubr.msk.f32.gmra.mxu1 %vm3398_vm10, %v7105_v19  ;;  %7045 = vst.msk [vmem:[#allocation2 + $0x137] sm:$0xff] %vm2930_vm11, %v6902_v22 }
 0x8ee   :  { %7720 = vst.msk [vmem:[%s14997_s4 + $0x18] sm:$0xff] %vm17_vm0, %v8419_v50  ;;  %6417 = vrot.lane.b32.xlu0 %v15142_v13, %s8782_s16  ;;  %v7408_v15 = vpop.f32.mrf.mxu1  ;;  %v6900_v23 = vpop.permute.xlu1 %6899 }
 0x8ef   :  { %7719 = vst.msk [vmem:[%s14997_s4 + $0x10] sm:$0xff] %vm17_vm0, %v7408_v15 }
 0x8f0   :  { %7044 = vst.msk [vmem:[#allocation2 + $0x12f] sm:$0xfe] %vm7007_vm9, %v6900_v23  ;;  %v6386_v6 = vpop.permute.xlu0 %6385  ;;  %6415 = vrot.lane.b32.xlu1 %v15144_v11, %s8782_s16 }
 0x8f1   :  { %6526 = vst.msk [vmem:[#allocation2 + $0x149] sm:$0x7f] %vm15273_vm2, %v6386_v6  ;;  %vm15280_vm2 = vmmov %vm15274_vm3 }
 0x8f2   :  { %6661 = vrot.lane.b32.xlu0 %v15142_v13, %s8783_s14  ;;  %v6384_v18 = vpop.permute.xlu1 %6383 }
 0x8f3   :  { %6525 = vst.msk [vmem:[#allocation2 + $0x141] sm:$0xff] %vm2165_vm15, %v6384_v18 }
 0x8f4   :  { %v6630_v62 = vpop.permute.xlu0 %6629  ;;  %6659 = vrot.lane.b32.xlu1 %v15144_v11, %s8783_s14  ;;  %v7107_v52 = vld [vmem:[#allocation2 + $0x138] sm:$0xff] }
 0x8f5   :  { %6770 = vst.msk [vmem:[#allocation2 + $0x148] sm:$0xff] %vm2565_vm7, %v6630_v62 }
 0x8f6   :  { %6815 = vst.msk [vmem:[#allocation2 + $0x14f] sm:$0x1] %vm15274_vm3, %v15140_v40  ;;  %6937 = vrot.lane.b32.xlu0 %v15142_v13, %s8784_s1  ;;  %v6628_v3 = vpop.permute.xlu1 %6627  ;;  %vm15281_vm3 = vmmov %vm15279_vm1 }
 0x8f7   :  { %v7106_v45 = vld [vmem:[#allocation2 + $0x130] sm:$0xff]  ;;  %6769 = vst.msk [vmem:[#allocation2 + $0x140] sm:$0xff] %vm2565_vm7, %v6628_v3 }
 0x8f8   :  { %8471 = vmatprep.mubr.msk.f32.mxu1 %vm3398_vm10, %v7106_v45  ;;  %v6906_v57 = vpop.permute.xlu0 %6905  ;;  %v8422_v26 = vpop.f32.mrf.mxu1  ;;  %6935 = vrot.lane.b32.xlu1 %v15144_v11, %s8784_s1 }
 0x8f9   :  { %8472 = vmatmul.mubr.msk.f32.gmra.mxu1 %vm3398_vm10, %v7107_v52  ;;  %7047 = vst.msk [vmem:[#allocation2 + $0x147] sm:$0xff] %vm2930_vm11, %v6906_v57 }
 0x8fa   :  { %7722 = vst.msk [vmem:[%s14997_s4 + $0x28] sm:$0xff] %vm17_vm0, %v8422_v26  ;;  %6132 = vrot.lane.b32.xlu0 %v15142_v13, %s8781_s13  ;;  %v7418_v63 = vpop.f32.mrf.mxu1  ;;  %v6904_v21 = vpop.permute.xlu1 %6903 }
 0x8fb   :  { %7721 = vst.msk [vmem:[%s14997_s4 + $0x20] sm:$0xff] %vm17_vm0, %v7418_v63 }
 0x8fc   :  { %7046 = vst.msk [vmem:[#allocation2 + $0x13f] sm:$0xfe] %vm7007_vm9, %v6904_v21  ;;  %v6390_v51 = vpop.permute.xlu0 %6389  ;;  %6130 = vrot.lane.b32.xlu1 %v15144_v11, %s8781_s13 }
 0x8fd   :  { %6528 = vst.msk [vmem:[#allocation2 + $0x159] sm:$0x7f] %vm15275_vm13, %v6390_v51  ;;  %vm15282_vm13 = vmmov %vm15280_vm2 }
 0x8fe   :  { %6421 = vrot.lane.b32.xlu0 %v12923_v59, %s8782_s16  ;;  %v6388_v29 = vpop.permute.xlu1 %6387 }
 0x8ff   :  { %6527 = vst.msk [vmem:[#allocation2 + $0x151] sm:$0xff] %vm2165_vm15, %v6388_v29 }
 0x900   :  { %v6634_v13 = vpop.permute.xlu0 %6633  ;;  %6419 = vrot.lane.b32.xlu1 %v12930_v61, %s8782_s16  ;;  %v7109_v8 = vld [vmem:[#allocation2 + $0x148] sm:$0xff] }
 0x901   :  { %6772 = vst.msk [vmem:[#allocation2 + $0x158] sm:$0xff] %vm2565_vm7, %v6634_v13 }
 0x902   :  { %6816 = vst.msk [vmem:[#allocation2 + $0x15f] sm:$0x1] %vm15276_vm5, %v15140_v40  ;;  %6665 = vrot.lane.b32.xlu0 %v12923_v59, %s8783_s14  ;;  %v6632_v11 = vpop.permute.xlu1 %6631  ;;  %vm15283_vm5 = vmmov %vm15279_vm1 }
 0x903   :  { %v7108_v48 = vld [vmem:[#allocation2 + $0x140] sm:$0xff]  ;;  %6771 = vst.msk [vmem:[#allocation2 + $0x150] sm:$0xff] %vm2565_vm7, %v6632_v11 }
 0x904   :  { %8474 = vmatprep.mubr.msk.f32.mxu1 %vm3398_vm10, %v7108_v48  ;;  %v6910_v4 = vpop.permute.xlu0 %6909  ;;  %v8425_v49 = vpop.f32.mrf.mxu1  ;;  %6663 = vrot.lane.b32.xlu1 %v12930_v61, %s8783_s14 }
 0x905   :  { %8475 = vmatmul.mubr.msk.f32.gmra.mxu1 %vm3398_vm10, %v7109_v8  ;;  %7049 = vst.msk [vmem:[#allocation2 + $0x157] sm:$0xff] %vm2930_vm11, %v6910_v4 }
 0x906   :  { %7724 = vst.msk [vmem:[%s14997_s4 + $0x38] sm:$0xff] %vm17_vm0, %v8425_v49  ;;  %6941 = vrot.lane.b32.xlu0 %v12923_v59, %s8784_s1  ;;  %v7428_v44 = vpop.f32.mrf.mxu1  ;;  %v6908_v55 = vpop.permute.xlu1 %6907 }
 0x907   :  { %7723 = vst.msk [vmem:[%s14997_s4 + $0x30] sm:$0xff] %vm17_vm0, %v7428_v44 }
 0x908   :  { %7048 = vst.msk [vmem:[#allocation2 + $0x14f] sm:$0xfe] %vm7007_vm9, %v6908_v55  ;;  %v6394_v7 = vpop.permute.xlu0 %6393  ;;  %6939 = vrot.lane.b32.xlu1 %v12930_v61, %s8784_s1 }
 0x909   :  { %6530 = vst.msk [vmem:[#allocation2 + $0x169] sm:$0x7f] %vm15277_vm6, %v6394_v7  ;;  %vm15284_vm6 = vmmov %vm15280_vm2 }
 0x90a   :  { %6136 = vrot.lane.b32.xlu0 %v12923_v59, %s8781_s13  ;;  %v6392_v54 = vpop.permute.xlu1 %6391 }
 0x90b   :  { %6529 = vst.msk [vmem:[#allocation2 + $0x161] sm:$0xff] %vm2165_vm15, %v6392_v54 }
 0x90c   :  { %v6638_v0 = vpop.permute.xlu0 %6637  ;;  %6134 = vrot.lane.b32.xlu1 %v12930_v61, %s8781_s13  ;;  %v7111_v59 = vld [vmem:[#allocation2 + $0x158] sm:$0xff] }
 0x90d   :  { %6774 = vst.msk [vmem:[#allocation2 + $0x168] sm:$0xff] %vm2565_vm7, %v6638_v0 }
 0x90e   :  { %6817 = vst.msk [vmem:[#allocation2 + $0x16f] sm:$0x1] %vm15278_vm8, %v15140_v40  ;;  %6425 = vrot.lane.b32.xlu0 %v13444_v30, %s8782_s16  ;;  %v6636_v32 = vpop.permute.xlu1 %6635  ;;  %vm15285_vm8 = vmmov %vm15279_vm1 }
 0x90f   :  { %v7110_v10 = vld [vmem:[#allocation2 + $0x150] sm:$0xff]  ;;  %6773 = vst.msk [vmem:[#allocation2 + $0x160] sm:$0xff] %vm2565_vm7, %v6636_v32 }
 0x910   :  { %8477 = vmatprep.mubr.msk.f32.mxu1 %vm3398_vm10, %v7110_v10  ;;  %v6914_v46 = vpop.permute.xlu0 %6913  ;;  %v8428_v35 = vpop.f32.mrf.mxu1  ;;  %6423 = vrot.lane.b32.xlu1 %v13451_v2, %s8782_s16 }
 0x911   :  { %8478 = vmatmul.mubr.msk.f32.gmra.mxu1 %vm3398_vm10, %v7111_v59  ;;  %7051 = vst.msk [vmem:[#allocation2 + $0x167] sm:$0xff] %vm2930_vm11, %v6914_v46 }
 0x912   :  { %7726 = vst.msk [vmem:[%s14997_s4 + $0x48] sm:$0xff] %vm17_vm0, %v8428_v35  ;;  %6669 = vrot.lane.b32.xlu0 %v13444_v30, %s8783_s14  ;;  %v7438_v61 = vpop.f32.mrf.mxu1  ;;  %v6912_v56 = vpop.permute.xlu1 %6911 }
 0x913   :  { %7725 = vst.msk [vmem:[%s14997_s4 + $0x40] sm:$0xff] %vm17_vm0, %v7438_v61 }
 0x914   :  { %7050 = vst.msk [vmem:[#allocation2 + $0x15f] sm:$0xfe] %vm7007_vm9, %v6912_v56  ;;  %v6398_v58 = vpop.permute.xlu0 %6397  ;;  %6667 = vrot.lane.b32.xlu1 %v13451_v2, %s8783_s14 }
 0x915   :  { %6532 = vst.msk [vmem:[#allocation2 + $0x179] sm:$0x7f] %vm15279_vm1, %v6398_v58  ;;  %vm15286_vm1 = vmmov %vm15280_vm2 }
 0x916   :  { %6140 = vrot.lane.b32.xlu0 %v13444_v30, %s8781_s13  ;;  %v6396_v28 = vpop.permute.xlu1 %6395 }
 0x917   :  { %6531 = vst.msk [vmem:[#allocation2 + $0x171] sm:$0xff] %vm2165_vm15, %v6396_v28 }
 0x918   :  { %v6642_v43 = vpop.permute.xlu0 %6641  ;;  %6138 = vrot.lane.b32.xlu1 %v13451_v2, %s8781_s13  ;;  %v7113_v39 = vld [vmem:[#allocation2 + $0x168] sm:$0xff] }
 0x919   :  { %6776 = vst.msk [vmem:[#allocation2 + $0x178] sm:$0xff] %vm2565_vm7, %v6642_v43 }
 0x91a   :  { %6818 = vst.msk [vmem:[#allocation2 + $0x17f] sm:$0x1] %vm15280_vm2, %v15140_v40  ;;  %6945 = vrot.lane.b32.xlu0 %v13444_v30, %s8784_s1  ;;  %v6640_v27 = vpop.permute.xlu1 %6639  ;;  %vm15287_vm2 = vmmov %vm15281_vm3 }
 0x91b   :  { %v7112_v25 = vld [vmem:[#allocation2 + $0x160] sm:$0xff]  ;;  %6775 = vst.msk [vmem:[#allocation2 + $0x170] sm:$0xff] %vm2565_vm7, %v6640_v27 }
 0x91c   :  { %8480 = vmatprep.mubr.msk.f32.mxu1 %vm3398_vm10, %v7112_v25  ;;  %v6918_v42 = vpop.permute.xlu0 %6917  ;;  %v8431_v41 = vpop.f32.mrf.mxu1  ;;  %6943 = vrot.lane.b32.xlu1 %v13451_v2, %s8784_s1 }
 0x91d   :  { %8481 = vmatmul.mubr.msk.f32.gmra.mxu1 %vm3398_vm10, %v7113_v39  ;;  %7053 = vst.msk [vmem:[#allocation2 + $0x177] sm:$0xff] %vm2930_vm11, %v6918_v42 }
 0x91e   :  { %7728 = vst.msk [vmem:[%s14997_s4 + $0x58] sm:$0xff] %vm17_vm0, %v8431_v41  ;;  %v7448_v30 = vpop.f32.mrf.mxu1  ;;  %v6916_v38 = vpop.permute.xlu1 %6915 }
 0x91f   :  { %7727 = vst.msk [vmem:[%s14997_s4 + $0x50] sm:$0xff] %vm17_vm0, %v7448_v30 }
 0x920   :  { %7052 = vst.msk [vmem:[#allocation2 + $0x16f] sm:$0xfe] %vm7007_vm9, %v6916_v38  ;;  %v6402_v5 = vpop.permute.xlu0 %6401 }
 0x921   :  { %6534 = vst.msk [vmem:[#allocation2 + $0x189] sm:$0x7f] %vm15281_vm3, %v6402_v5  ;;  %vm15288_vm3 = vmmov %vm15286_vm1 }
 0x922   :  { %v6400_v2 = vpop.permute.xlu1 %6399 }
 0x923   :  { %6533 = vst.msk [vmem:[#allocation2 + $0x181] sm:$0xff] %vm2165_vm15, %v6400_v2 }
 0x924   :  { %v6646_v14 = vpop.permute.xlu0 %6645  ;;  %v7115_v31 = vld [vmem:[#allocation2 + $0x178] sm:$0xff] }
 0x925   :  { %6778 = vst.msk [vmem:[#allocation2 + $0x188] sm:$0xff] %vm2565_vm7, %v6646_v14 }
 0x926   :  { %6819 = vst.msk [vmem:[#allocation2 + $0x18f] sm:$0x1] %vm15282_vm13, %v15140_v40  ;;  %v6644_v36 = vpop.permute.xlu1 %6643  ;;  %vm15289_vm13 = vmmov %vm15287_vm2 }
 0x927   :  { %v7114_v1 = vld [vmem:[#allocation2 + $0x170] sm:$0xff]  ;;  %6777 = vst.msk [vmem:[#allocation2 + $0x180] sm:$0xff] %vm2565_vm7, %v6644_v36 }
 0x928   :  { %8483 = vmatprep.mubr.msk.f32.mxu1 %vm3398_vm10, %v7114_v1  ;;  %v6922_v37 = vpop.permute.xlu0 %6921  ;;  %v8434_v24 = vpop.f32.mrf.mxu1 }
 0x929   :  { %8484 = vmatmul.mubr.msk.f32.gmra.mxu1 %vm3398_vm10, %v7115_v31  ;;  %7055 = vst.msk [vmem:[#allocation2 + $0x187] sm:$0xff] %vm2930_vm11, %v6922_v37 }
 0x92a   :  { %7730 = vst.msk [vmem:[%s14997_s4 + $0x68] sm:$0xff] %vm17_vm0, %v8434_v24  ;;  %v7458_v60 = vpop.f32.mrf.mxu1  ;;  %v6920_v16 = vpop.permute.xlu1 %6919 }
 0x92b   :  { %7729 = vst.msk [vmem:[%s14997_s4 + $0x60] sm:$0xff] %vm17_vm0, %v7458_v60 }
 0x92c   :  { %7054 = vst.msk [vmem:[#allocation2 + $0x17f] sm:$0xfe] %vm7007_vm9, %v6920_v16  ;;  %v6117_v53 = vpop.permute.xlu0 %6116 }
 0x92d   :  { %6258 = vst.msk [vmem:[#allocation2 + $0x197] sm:$0xff] %vm2098_vm12, %v6117_v53 }
 0x92e   :  { %v6115_v12 = vpop.permute.xlu1 %6114 }
 0x92f   :  { %6257 = vst.msk [vmem:[#allocation2 + $0x18f] sm:$0xfe] %vm6206_vm4, %v6115_v12 }
 0x930   :  { %6300 = vst.msk [vmem:[#allocation2 + $0x190] sm:$0x1] %vm2170_vm14, %v15140_v40  ;;  %v6406_v20 = vpop.permute.xlu0 %6405  ;;  %v7117_v17 = vld [vmem:[#allocation2 + $0x188] sm:$0xff] }
 0x931   :  { %6536 = vst.msk [vmem:[#allocation2 + $0x199] sm:$0x7f] %vm15283_vm5, %v6406_v20  ;;  %vm15290_vm5 = vmmov %vm15286_vm1 }
 0x932   :  { %v6404_v33 = vpop.permute.xlu1 %6403 }
 0x933   :  { %v7116_v34 = vld [vmem:[#allocation2 + $0x180] sm:$0xff]  ;;  %6535 = vst.msk [vmem:[#allocation2 + $0x191] sm:$0xff] %vm2165_vm15, %v6404_v33 }
 0x934   :  { %8486 = vmatprep.mubr.msk.f32.mxu1 %vm3398_vm10, %v7116_v34  ;;  %v6650_v9 = vpop.permute.xlu0 %6649  ;;  %v8437_v47 = vpop.f32.mrf.mxu1 }
 0x935   :  { %8487 = vmatmul.mubr.msk.f32.gmra.mxu1 %vm3398_vm10, %v7117_v17  ;;  %6780 = vst.msk [vmem:[#allocation2 + $0x198] sm:$0xff] %vm2565_vm7, %v6650_v9 }
 0x936   :  { %7732 = vst.msk [vmem:[%s14997_s4 + $0x78] sm:$0xff] %vm17_vm0, %v8437_v47  ;;  %v7468_v19 = vpop.f32.mrf.mxu1  ;;  %v6648_v22 = vpop.permute.xlu1 %6647 }
 0x937   :  { %6820 = vst.msk [vmem:[#allocation2 + $0x19f] sm:$0x1] %vm15284_vm6, %v15140_v40  ;;  %vm15291_vm6 = vmmov %vm15287_vm2 }
 0x938   :  { %7731 = vst.msk [vmem:[%s14997_s4 + $0x70] sm:$0xff] %vm17_vm0, %v7468_v19  ;;  %v6926_v50 = vpop.permute.xlu0 %6925 }
 0x939   :  { %6779 = vst.msk [vmem:[#allocation2 + $0x190] sm:$0xff] %vm2565_vm7, %v6648_v22 }
 0x93a   :  { %7057 = vst.msk [vmem:[#allocation2 + $0x197] sm:$0xff] %vm2930_vm11, %v6926_v50  ;;  %v6924_v15 = vpop.permute.xlu1 %6923 }
 0x93b   :  { %7056 = vst.msk [vmem:[#allocation2 + $0x18f] sm:$0xfe] %vm7007_vm9, %v6924_v15 }
 0x93c   :  { %v6121_v23 = vpop.permute.xlu0 %6120 }
 0x93d   :  { %6260 = vst.msk [vmem:[#allocation2 + $0x1a7] sm:$0xff] %vm2098_vm12, %v6121_v23 }
 0x93e   :  { %v6119_v6 = vpop.permute.xlu1 %6118 }
 0x93f   :  { %6259 = vst.msk [vmem:[#allocation2 + $0x19f] sm:$0xfe] %vm6206_vm4, %v6119_v6 }
 0x940   :  { %6301 = vst.msk [vmem:[#allocation2 + $0x1a0] sm:$0x1] %vm2170_vm14, %v15140_v40  ;;  %v6410_v18 = vpop.permute.xlu0 %6409  ;;  %v8440_v62 = vpop.f32.mrf.mxu1 }
 0x941   :  { %6538 = vst.msk [vmem:[#allocation2 + $0x1a9] sm:$0x7f] %vm15285_vm8, %v6410_v18  ;;  %v7119_v57 = vld [vmem:[#allocation2 + $0x198] sm:$0xff]  ;;  %vm15292_vm8 = vmmov %vm15286_vm1 }
 0x942   :  { %7734 = vst.msk [vmem:[%s14997_s4 + $0x88] sm:$0xff] %vm17_vm0, %v8440_v62  ;;  %v7478_v3 = vpop.f32.mrf.mxu1  ;;  %v6408_v45 = vpop.permute.xlu1 %6407  ;;  %v7118_v52 = vld [vmem:[#allocation2 + $0x190] sm:$0xff] }
 0x943   :  { %7733 = vst.msk [vmem:[%s14997_s4 + $0x80] sm:$0xff] %vm17_vm0, %v7478_v3  ;;  %8489 = vmatprep.mubr.msk.f32.mxu1 %vm3398_vm10, %v7118_v52 }
 0x944   :  { %6537 = vst.msk [vmem:[#allocation2 + $0x1a1] sm:$0xff] %vm2165_vm15, %v6408_v45  ;;  %v6654_v26 = vpop.permute.xlu0 %6653  ;;  %8490 = vmatmul.mubr.msk.f32.gmra.mxu1 %vm3398_vm10, %v7119_v57 }
 0x945   :  { %6782 = vst.msk [vmem:[#allocation2 + $0x1a8] sm:$0xff] %vm2565_vm7, %v6654_v26 }
 0x946   :  { %6821 = vst.msk [vmem:[#allocation2 + $0x1af] sm:$0x1] %vm15286_vm1, %v15140_v40  ;;  %v6652_v63 = vpop.permute.xlu1 %6651  ;;  %vm15293_vm1 = vmmov %vm15287_vm2 }
 0x947   :  { %6781 = vst.msk [vmem:[#allocation2 + $0x1a0] sm:$0xff] %vm2565_vm7, %v6652_v63 }
 0x948   :  { %v6930_v21 = vpop.permute.xlu0 %6929 }
 0x949   :  { %7059 = vst.msk [vmem:[#allocation2 + $0x1a7] sm:$0xff] %vm2930_vm11, %v6930_v21 }
 0x94a   :  { %v6928_v51 = vpop.permute.xlu1 %6927 }
 0x94b   :  { %7058 = vst.msk [vmem:[#allocation2 + $0x19f] sm:$0xfe] %vm7007_vm9, %v6928_v51 }
 0x94c   :  { %v6125_v29 = vpop.permute.xlu0 %6124  ;;  %v8443_v13 = vpop.f32.mrf.mxu1 }
 0x94d   :  { %6262 = vst.msk [vmem:[#allocation2 + $0x1b7] sm:$0xff] %vm2098_vm12, %v6125_v29 }
 0x94e   :  { %7736 = vst.msk [vmem:[%s14997_s4 + $0x98] sm:$0xff] %vm17_vm0, %v8443_v13  ;;  %v7488_v11 = vpop.f32.mrf.mxu1  ;;  %v6123_v48 = vpop.permute.xlu1 %6122 }
 0x94f   :  { %7735 = vst.msk [vmem:[%s14997_s4 + $0x90] sm:$0xff] %vm17_vm0, %v7488_v11 }
 0x950   :  { %6261 = vst.msk [vmem:[#allocation2 + $0x1af] sm:$0xfe] %vm6206_vm4, %v6123_v48  ;;  %v6414_v8 = vpop.permute.xlu0 %6413  ;;  %v7121_v44 = vld [vmem:[#allocation2 + $0x1a8] sm:$0xff] }
 0x951   :  { %6302 = vst.msk [vmem:[#allocation2 + $0x1b0] sm:$0x1] %vm2170_vm14, %v15140_v40 }
 0x952   :  { %6540 = vst.msk [vmem:[#allocation2 + $0x1b9] sm:$0x7f] %vm15287_vm2, %v6414_v8  ;;  %v6412_v4 = vpop.permute.xlu1 %6411  ;;  %v7120_v49 = vld [vmem:[#allocation2 + $0x1a0] sm:$0xff]  ;;  %vm15294_vm2 = vmmov %vm15288_vm3 }
 0x953   :  { %6539 = vst.msk [vmem:[#allocation2 + $0x1b1] sm:$0xff] %vm2165_vm15, %v6412_v4  ;;  %8492 = vmatprep.mubr.msk.f32.mxu1 %vm3398_vm10, %v7120_v49 }
 0x954   :  { %v6658_v55 = vpop.permute.xlu0 %6657  ;;  %8493 = vmatmul.mubr.msk.f32.gmra.mxu1 %vm3398_vm10, %v7121_v44 }
 0x955   :  { %6784 = vst.msk [vmem:[#allocation2 + $0x1b8] sm:$0xff] %vm2565_vm7, %v6658_v55 }
 0x956   :  { %6822 = vst.msk [vmem:[#allocation2 + $0x1bf] sm:$0x1] %vm15288_vm3, %v15140_v40  ;;  %v6656_v7 = vpop.permute.xlu1 %6655 }
 0x957   :  { %6783 = vst.msk [vmem:[#allocation2 + $0x1b0] sm:$0xff] %vm2565_vm7, %v6656_v7 }
 0x958   :  { %v6934_v54 = vpop.permute.xlu0 %6933  ;;  %v8446_v0 = vpop.f32.mrf.mxu1 }
 0x959   :  { %7061 = vst.msk [vmem:[#allocation2 + $0x1b7] sm:$0xff] %vm2930_vm11, %v6934_v54 }
 0x95a   :  { %7738 = vst.msk [vmem:[%s14997_s4 + $0xa8] sm:$0xff] %vm17_vm0, %v8446_v0  ;;  %v7498_v32 = vpop.f32.mrf.mxu1  ;;  %v6932_v10 = vpop.permute.xlu1 %6931 }
 0x95b   :  { %7737 = vst.msk [vmem:[%s14997_s4 + $0xa0] sm:$0xff] %vm17_vm0, %v7498_v32 }
 0x95c   :  { %7060 = vst.msk [vmem:[#allocation2 + $0x1af] sm:$0xfe] %vm7007_vm9, %v6932_v10  ;;  %v6129_v59 = vpop.permute.xlu0 %6128 }
 0x95d   :  { %6264 = vst.msk [vmem:[#allocation2 + $0x1c7] sm:$0xff] %vm2098_vm12, %v6129_v59 }
 0x95e   :  { %v6127_v46 = vpop.permute.xlu1 %6126 }
 0x95f   :  { %6263 = vst.msk [vmem:[#allocation2 + $0x1bf] sm:$0xfe] %vm6206_vm4, %v6127_v46 }
 0x960   :  { %6303 = vst.msk [vmem:[#allocation2 + $0x1c0] sm:$0x1] %vm2170_vm14, %v15140_v40  ;;  %v6418_v35 = vpop.permute.xlu0 %6417  ;;  %v7123_v58 = vld [vmem:[#allocation2 + $0x1b8] sm:$0xff] }
 0x961   :  { %6542 = vst.msk [vmem:[#allocation2 + $0x1c9] sm:$0x7f] %vm15289_vm13, %v6418_v35 }
 0x962   :  { %v6416_v61 = vpop.permute.xlu1 %6415 }
 0x963   :  { %v7122_v56 = vld [vmem:[#allocation2 + $0x1b0] sm:$0xff]  ;;  %6541 = vst.msk [vmem:[#allocation2 + $0x1c1] sm:$0xff] %vm2165_vm15, %v6416_v61 }
 0x964   :  { %8495 = vmatprep.mubr.msk.f32.mxu1 %vm3398_vm10, %v7122_v56  ;;  %v6662_v28 = vpop.permute.xlu0 %6661  ;;  %v8449_v43 = vpop.f32.mrf.mxu1 }
 0x965   :  { %8496 = vmatmul.mubr.msk.f32.gmra.mxu1 %vm3398_vm10, %v7123_v58  ;;  %6786 = vst.msk [vmem:[#allocation2 + $0x1c8] sm:$0xff] %vm2565_vm7, %v6662_v28 }
 0x966   :  { %7740 = vst.msk [vmem:[%s14997_s4 + $0xb8] sm:$0xff] %vm17_vm0, %v8449_v43  ;;  %v7508_v27 = vpop.f32.mrf.mxu1  ;;  %v6660_v25 = vpop.permute.xlu1 %6659 }
 0x967   :  { %6823 = vst.msk [vmem:[#allocation2 + $0x1cf] sm:$0x1] %vm15290_vm5, %v15140_v40 }
 0x968   :  { %7739 = vst.msk [vmem:[%s14997_s4 + $0xb0] sm:$0xff] %vm17_vm0, %v7508_v27  ;;  %v6938_v39 = vpop.permute.xlu0 %6937 }
 0x969   :  { %6785 = vst.msk [vmem:[#allocation2 + $0x1c0] sm:$0xff] %vm2565_vm7, %v6660_v25 }
 0x96a   :  { %7063 = vst.msk [vmem:[#allocation2 + $0x1c7] sm:$0xff] %vm2930_vm11, %v6938_v39  ;;  %v6936_v42 = vpop.permute.xlu1 %6935 }
 0x96b   :  { %7062 = vst.msk [vmem:[#allocation2 + $0x1bf] sm:$0xfe] %vm7007_vm9, %v6936_v42 }
 0x96c   :  { %v6133_v41 = vpop.permute.xlu0 %6132 }
 0x96d   :  { %6266 = vst.msk [vmem:[#allocation2 + $0x1d7] sm:$0xff] %vm2098_vm12, %v6133_v41 }
 0x96e   :  { %v6131_v30 = vpop.permute.xlu1 %6130 }
 0x96f   :  { %6265 = vst.msk [vmem:[#allocation2 + $0x1cf] sm:$0xfe] %vm6206_vm4, %v6131_v30 }
 0x970   :  { %6304 = vst.msk [vmem:[#allocation2 + $0x1d0] sm:$0x1] %vm2170_vm14, %v15140_v40  ;;  %v6422_v38 = vpop.permute.xlu0 %6421  ;;  %v8452_v5 = vpop.f32.mrf.mxu1 }
 0x971   :  { %6544 = vst.msk [vmem:[#allocation2 + $0x1d9] sm:$0x7f] %vm15291_vm6, %v6422_v38  ;;  %v7125_v1 = vld [vmem:[#allocation2 + $0x1c8] sm:$0xff] }
 0x972   :  { %7742 = vst.msk [vmem:[%s14997_s4 + $0xc8] sm:$0xff] %vm17_vm0, %v8452_v5  ;;  %v7518_v2 = vpop.f32.mrf.mxu1  ;;  %v6420_v14 = vpop.permute.xlu1 %6419  ;;  %v7124_v36 = vld [vmem:[#allocation2 + $0x1c0] sm:$0xff] }
 0x973   :  { %7741 = vst.msk [vmem:[%s14997_s4 + $0xc0] sm:$0xff] %vm17_vm0, %v7518_v2  ;;  %8498 = vmatprep.mubr.msk.f32.mxu1 %vm3398_vm10, %v7124_v36 }
 0x974   :  { %6543 = vst.msk [vmem:[#allocation2 + $0x1d1] sm:$0xff] %vm2165_vm15, %v6420_v14  ;;  %v6666_v31 = vpop.permute.xlu0 %6665  ;;  %8499 = vmatmul.mubr.msk.f32.gmra.mxu1 %vm3398_vm10, %v7125_v1 }
 0x975   :  { %6788 = vst.msk [vmem:[#allocation2 + $0x1d8] sm:$0xff] %vm2565_vm7, %v6666_v31 }
 0x976   :  { %6824 = vst.msk [vmem:[#allocation2 + $0x1df] sm:$0x1] %vm15292_vm8, %v15140_v40  ;;  %v6664_v37 = vpop.permute.xlu1 %6663 }
 0x977   :  { %6787 = vst.msk [vmem:[#allocation2 + $0x1d0] sm:$0xff] %vm2565_vm7, %v6664_v37 }
 0x978   :  { %v6942_v24 = vpop.permute.xlu0 %6941 }
 0x979   :  { %7065 = vst.msk [vmem:[#allocation2 + $0x1d7] sm:$0xff] %vm2930_vm11, %v6942_v24 }
 0x97a   :  { %v6940_v60 = vpop.permute.xlu1 %6939 }
 0x97b   :  { %7064 = vst.msk [vmem:[#allocation2 + $0x1cf] sm:$0xfe] %vm7007_vm9, %v6940_v60 }
 0x97c   :  { %v6137_v16 = vpop.permute.xlu0 %6136  ;;  %v8455_v53 = vpop.f32.mrf.mxu1 }
 0x97d   :  { %6268 = vst.msk [vmem:[#allocation2 + $0x1e7] sm:$0xff] %vm2098_vm12, %v6137_v16 }
 0x97e   :  { %7744 = vst.msk [vmem:[%s14997_s4 + $0xd8] sm:$0xff] %vm17_vm0, %v8455_v53  ;;  %v7528_v12 = vpop.f32.mrf.mxu1  ;;  %v6135_v20 = vpop.permute.xlu1 %6134 }
 0x97f   :  { %7743 = vst.msk [vmem:[%s14997_s4 + $0xd0] sm:$0xff] %vm17_vm0, %v7528_v12 }
 0x980   :  { %6267 = vst.msk [vmem:[#allocation2 + $0x1df] sm:$0xfe] %vm6206_vm4, %v6135_v20  ;;  %v6426_v33 = vpop.permute.xlu0 %6425  ;;  %v7127_v9 = vld [vmem:[#allocation2 + $0x1d8] sm:$0xff] }
 0x981   :  { %6305 = vst.msk [vmem:[#allocation2 + $0x1e0] sm:$0x1] %vm2170_vm14, %v15140_v40 }
 0x982   :  { %6546 = vst.msk [vmem:[#allocation2 + $0x1e9] sm:$0x7f] %vm15293_vm1, %v6426_v33  ;;  %v6424_v34 = vpop.permute.xlu1 %6423  ;;  %v7126_v17 = vld [vmem:[#allocation2 + $0x1d0] sm:$0xff] }
 0x983   :  { %6545 = vst.msk [vmem:[#allocation2 + $0x1e1] sm:$0xff] %vm2165_vm15, %v6424_v34  ;;  %8501 = vmatprep.mubr.msk.f32.mxu1 %vm3398_vm10, %v7126_v17 }
 0x984   :  { %v6670_v47 = vpop.permute.xlu0 %6669  ;;  %8502 = vmatmul.mubr.msk.f32.gmra.mxu1 %vm3398_vm10, %v7127_v9 }
 0x985   :  { %6790 = vst.msk [vmem:[#allocation2 + $0x1e8] sm:$0xff] %vm2565_vm7, %v6670_v47 }
 0x986   :  { %6825 = vst.msk [vmem:[#allocation2 + $0x1ef] sm:$0x1] %vm15294_vm2, %v15140_v40  ;;  %v6668_v19 = vpop.permute.xlu1 %6667 }
 0x987   :  { %6789 = vst.msk [vmem:[#allocation2 + $0x1e0] sm:$0xff] %vm2565_vm7, %v6668_v19 }
 0x988   :  { %v6141_v22 = vpop.permute.xlu0 %6140  ;;  %v8458_v50 = vpop.f32.mrf.mxu1 }
 0x989   :  { %6270 = vst.msk [vmem:[#allocation2 + $0x1f7] sm:$0xff] %vm2098_vm12, %v6141_v22  ;;  %vm15295_vm12 = vmmov %vm15294_vm2 }
 0x98a   :  { %7746 = vst.msk [vmem:[%s14997_s4 + $0xe8] sm:$0xff] %vm17_vm0, %v8458_v50  ;;  %v7538_v15 = vpop.f32.mrf.mxu1  ;;  %v6139_v23 = vpop.permute.xlu1 %6138 }
 0x98b   :  { %6274 = vst.msk [vmem:[#allocation2 + $0x1f8] sm:$0xff] %vm2165_vm15, %v15140_v40 }
 0x98c   :  { %6550 = vst.msk [vmem:[#allocation2 + $0x1f8] sm:$0xff] %vm2565_vm7, %v15140_v40  ;;  %v6946_v6 = vpop.permute.xlu0 %6945  ;;  %v8461_v18 = vpop.f32.mrf.mxu1 }
 0x98d   :  { %7745 = vst.msk [vmem:[%s14997_s4 + $0xe0] sm:$0xff] %vm17_vm0, %v7538_v15  ;;  %7748 = vst.msk [vmem:[%s14997_s4 + $0xf8] sm:$0xff] %vm17_vm0, %v8461_v18 }
 0x98e   :  { %6269 = vst.msk [vmem:[#allocation2 + $0x1ef] sm:$0xfe] %vm6206_vm4, %v6139_v23  ;;  %v6944_v62 = vpop.permute.xlu1 %6943  ;;  %v7548_v3 = vpop.f32.mrf.mxu1 }
 0x98f   :  { %6794 = vst.msk [vmem:[#allocation2 + $0x1f8] sm:$0xff] %vm2930_vm11, %v15140_v40  ;;  %7067 = vst.msk [vmem:[#allocation2 + $0x1e7] sm:$0xff] %vm2930_vm11, %v6946_v6 }
 0x990   :  { %6273 = vst.msk [vmem:[#allocation2 + $0x1f0] sm:$0xff] %vm2165_vm15, %v15140_v40 }
 0x991   :  { %6826 = vst.msk [vmem:[#allocation2 + $0x1ff] sm:$0x1] %vm15295_vm12, %v15140_v40 }
 0x992   :  { %6306 = vst.msk [vmem:[#allocation2 + $0x1f0] sm:$0x1] %vm2170_vm14, %v15140_v40 }
 0x993   :  { %6549 = vst.msk [vmem:[#allocation2 + $0x1f0] sm:$0xff] %vm2565_vm7, %v15140_v40 }
 0x994   :  { %6793 = vst.msk [vmem:[#allocation2 + $0x1f0] sm:$0xff] %vm2930_vm11, %v15140_v40  ;;  %v8464_v45 = vpop.f32.mrf.mxu1 }
 0x995   :  { %7066 = vst.msk [vmem:[#allocation2 + $0x1df] sm:$0xfe] %vm7007_vm9, %v6944_v62 }
 0x996   :  { %7747 = vst.msk [vmem:[%s14997_s4 + $0xf0] sm:$0xff] %vm17_vm0, %v7548_v3  ;;  %7750 = vst.msk [vmem:[%s14997_s4 + $0x108] sm:$0xff] %vm17_vm0, %v8464_v45  ;;  %v7558_v52 = vpop.f32.mrf.mxu1  ;;  %v7129_v40 = vld [vmem:[#allocation2 + $0x1e8] sm:$0xff] }
 0x997   :  { %7749 = vst.msk [vmem:[%s14997_s4 + $0x100] sm:$0xff] %vm17_vm0, %v7558_v52 }
 0x998   :  { %v7131_v63 = vld [vmem:[#allocation2 + $0x1f8] sm:$0xff] }
 0x99b   :  { %v7130_v26 = vld [vmem:[#allocation2 + $0x1f0] sm:$0xff] }
 0x99c   :  { %v7128_v57 = vld [vmem:[#allocation2 + $0x1e0] sm:$0xff] }
 0x99d   :  { %8504 = vmatprep.mubr.msk.f32.mxu1 %vm3398_vm10, %v7128_v57 }
 0x99e   :  { %8505 = vmatmul.mubr.msk.f32.gmra.mxu1 %vm3398_vm10, %v7129_v40 }
 0x99f   :  { %8507 = vmatprep.mubr.msk.f32.mxu1 %vm3398_vm10, %v7130_v26 }
 0x9a0   :  { %v8467_v21 = vpop.f32.mrf.mxu1 }
 0x9a1   :  { %7752 = vst.msk [vmem:[%s14997_s4 + $0x118] sm:$0xff] %vm17_vm0, %v8467_v21 }
 0x9a2   :  { %8508 = vmatmul.mubr.msk.f32.gmra.mxu1 %vm3398_vm10, %v7131_v63  ;;  %v7568_v51 = vpop.f32.mrf.mxu1 }
 0x9a3   :  { %7751 = vst.msk [vmem:[%s14997_s4 + $0x110] sm:$0xff] %vm17_vm0, %v7568_v51 }
 0x9ad   :  { %v8470_v29 = vpop.f32.mrf.mxu1 }
 0x9ae   :  { %7754 = vst.msk [vmem:[%s14997_s4 + $0x128] sm:$0xff] %vm17_vm0, %v8470_v29 }
 0x9af   :  { %v7578_v13 = vpop.f32.mrf.mxu1 }
 0x9b0   :  { %7753 = vst.msk [vmem:[%s14997_s4 + $0x120] sm:$0xff] %vm17_vm0, %v7578_v13 }
 0x9b9   :  { %v8473_v11 = vpop.f32.mrf.mxu1 }
 0x9ba   :  { %7756 = vst.msk [vmem:[%s14997_s4 + $0x138] sm:$0xff] %vm17_vm0, %v8473_v11 }
 0x9bb   :  { %v7588_v48 = vpop.f32.mrf.mxu1 }
 0x9bc   :  { %7755 = vst.msk [vmem:[%s14997_s4 + $0x130] sm:$0xff] %vm17_vm0, %v7588_v48 }
 0x9c5   :  { %v8476_v8 = vpop.f32.mrf.mxu1 }
 0x9c6   :  { %7758 = vst.msk [vmem:[%s14997_s4 + $0x148] sm:$0xff] %vm17_vm0, %v8476_v8 }
 0x9c7   :  { %v7598_v4 = vpop.f32.mrf.mxu1 }
 0x9c8   :  { %7757 = vst.msk [vmem:[%s14997_s4 + $0x140] sm:$0xff] %vm17_vm0, %v7598_v4 }
 0x9d1   :  { %v8479_v49 = vpop.f32.mrf.mxu1 }
 0x9d2   :  { %7760 = vst.msk [vmem:[%s14997_s4 + $0x158] sm:$0xff] %vm17_vm0, %v8479_v49 }
 0x9d3   :  { %v7608_v44 = vpop.f32.mrf.mxu1 }
 0x9d4   :  { %7759 = vst.msk [vmem:[%s14997_s4 + $0x150] sm:$0xff] %vm17_vm0, %v7608_v44 }
 0x9dd   :  { %v8482_v55 = vpop.f32.mrf.mxu1 }
 0x9de   :  { %7762 = vst.msk [vmem:[%s14997_s4 + $0x168] sm:$0xff] %vm17_vm0, %v8482_v55 }
 0x9df   :  { %v7618_v7 = vpop.f32.mrf.mxu1 }
 0x9e0   :  { %7761 = vst.msk [vmem:[%s14997_s4 + $0x160] sm:$0xff] %vm17_vm0, %v7618_v7 }
 0x9e9   :  { %v8485_v54 = vpop.f32.mrf.mxu1 }
 0x9ea   :  { %7764 = vst.msk [vmem:[%s14997_s4 + $0x178] sm:$0xff] %vm17_vm0, %v8485_v54 }
 0x9eb   :  { %v7628_v0 = vpop.f32.mrf.mxu1 }
 0x9ec   :  { %7763 = vst.msk [vmem:[%s14997_s4 + $0x170] sm:$0xff] %vm17_vm0, %v7628_v0 }
 0x9f5   :  { %v8488_v32 = vpop.f32.mrf.mxu1 }
 0x9f6   :  { %7766 = vst.msk [vmem:[%s14997_s4 + $0x188] sm:$0xff] %vm17_vm0, %v8488_v32 }
 0x9f7   :  { %v7638_v10 = vpop.f32.mrf.mxu1 }
 0x9f8   :  { %7765 = vst.msk [vmem:[%s14997_s4 + $0x180] sm:$0xff] %vm17_vm0, %v7638_v10 }
 0xa04   :  { %v8491_v59 = vpop.f32.mrf.mxu1 }
 0xa05   :  { %7768 = vst.msk [vmem:[%s14997_s4 + $0x198] sm:$0xff] %vm17_vm0, %v8491_v59 }
 0xa06   :  { %v7648_v46 = vpop.f32.mrf.mxu1 }
 0xa07   :  { %7767 = vst.msk [vmem:[%s14997_s4 + $0x190] sm:$0xff] %vm17_vm0, %v7648_v46 }
 0xa14   :  { %v8494_v35 = vpop.f32.mrf.mxu1 }
 0xa15   :  { %7770 = vst.msk [vmem:[%s14997_s4 + $0x1a8] sm:$0xff] %vm17_vm0, %v8494_v35 }
 0xa16   :  { %v7658_v61 = vpop.f32.mrf.mxu1 }
 0xa17   :  { %7769 = vst.msk [vmem:[%s14997_s4 + $0x1a0] sm:$0xff] %vm17_vm0, %v7658_v61 }
 0xa25   :  { %v8497_v56 = vpop.f32.mrf.mxu1 }
 0xa26   :  { %7772 = vst.msk [vmem:[%s14997_s4 + $0x1b8] sm:$0xff] %vm17_vm0, %v8497_v56 }
 0xa27   :  { %v7668_v58 = vpop.f32.mrf.mxu1 }
 0xa28   :  { %7771 = vst.msk [vmem:[%s14997_s4 + $0x1b0] sm:$0xff] %vm17_vm0, %v7668_v58 }
 0xa34   :  { %v8500_v28 = vpop.f32.mrf.mxu1 }
 0xa35   :  { %7774 = vst.msk [vmem:[%s14997_s4 + $0x1c8] sm:$0xff] %vm17_vm0, %v8500_v28 }
 0xa36   :  { %v7678_v43 = vpop.f32.mrf.mxu1 }
 0xa37   :  { %7773 = vst.msk [vmem:[%s14997_s4 + $0x1c0] sm:$0xff] %vm17_vm0, %v7678_v43 }
 0xa44   :  { %v8503_v27 = vpop.f32.mrf.mxu1 }
 0xa45   :  { %7776 = vst.msk [vmem:[%s14997_s4 + $0x1d8] sm:$0xff] %vm17_vm0, %v8503_v27 }
 0xa46   :  { %v7688_v25 = vpop.f32.mrf.mxu1 }
 0xa47   :  { %7775 = vst.msk [vmem:[%s14997_s4 + $0x1d0] sm:$0xff] %vm17_vm0, %v7688_v25 }
 0xa5e   :  { %v8506_v39 = vpop.f32.mrf.mxu1 }
 0xa5f   :  { %7778 = vst.msk [vmem:[%s14997_s4 + $0x1e8] sm:$0xff] %vm17_vm0, %v8506_v39 }
 0xa60   :  { %v7698_v42 = vpop.f32.mrf.mxu1 }
 0xa61   :  { %7777 = vst.msk [vmem:[%s14997_s4 + $0x1e0] sm:$0xff] %vm17_vm0, %v7698_v42 }
 0xa62   :  { %v8509_v41 = vpop.f32.mrf.mxu1 }
 0xa63   :  { %7780 = vst.msk [vmem:[%s14997_s4 + $0x1f8] sm:$0xff] %vm17_vm0, %v8509_v41 }
 0xa64   :  { %v7708_v30 = vpop.f32.mrf.mxu1 }
 0xa65   :  { %7779 = vst.msk [vmem:[%s14997_s4 + $0x1f0] sm:$0xff] %vm17_vm0, %v7708_v30 }

</bundles_post_ra>
